<compile_context>
chip_gen: v7x
topology: tpu7x:2x2x1
jax: 0.10.0
libtpu: 0.0.40
codegen_flags: <defaults>
</compile_context>

<pallas_src>
import functools

import jax
import jax.numpy as jnp
from jax.experimental import pallas as pl
from jax.experimental.pallas import tpu as pltpu


# Matmul-input dtype for the HBM-dominant streams (patches, activations, FC/conv
# weights).  Set to jnp.bfloat16 on v6e/v7x to halve HBM bytes at native MXU rate
# (f32 accumulation is kept); loosen the allclose tolerance in __main__ if so.
MATMUL_INPUT_DTYPE = jnp.float32

_LANES = 128


# ---------------------------------------------------------------------------
# VMEM limit (generation aware, safe fallback)
# ---------------------------------------------------------------------------
def _vmem_limit_bytes():
    try:
        cap = int(pltpu.get_tpu_info().vmem_capacity_bytes)
    except Exception:
        cap = 64 << 20  # assume the smallest per-core VMEM (v7x)
    return min(int(cap * 3 // 4), 96 << 20)


_VMEM_LIMIT = _vmem_limit_bytes()


# ---------------------------------------------------------------------------
# Tile-size helpers
# ---------------------------------------------------------------------------
def _pick_tile_m(M, target):
    """Largest multiple of 8 that divides M and is <= target (else M itself)."""
    best = M
    for t in range(8, min(M, target) + 1, 8):
        if M % t == 0:
            best = t
    return best


def _pick_tk(K):
    """Keep the whole K unless it is a large multiple of 128 (then split <=2048)."""
    if K % 128 != 0 or K <= 2048:
        return K
    for tk in range(2048, 127, -128):
        if K % tk == 0:
            return tk
    return K


# ---------------------------------------------------------------------------
# Pallas kernels
# ---------------------------------------------------------------------------
def _conv_pool_kernel(x_ref, w_ref, b_ref, o_ref, acc_ref):
    """One pool-phase step of conv-as-matmul with fused bias + ReLU + 2x2 max-pool.

    Grid = (M tiles, 4 pool phases); phase is the innermost reduction axis.
    acc_ref carries the running max over phases; bias/ReLU are applied once at
    the end (max(conv)+b then ReLU == maxpool(ReLU(conv+b)) exactly)."""
    p = pl.program_id(1)
    y = jnp.dot(x_ref[0], w_ref[...], preferred_element_type=jnp.float32)

    @pl.when(p == 0)
    def _():
        acc_ref[...] = y            # no redundant init / zero-fill

    @pl.when(p > 0)
    def _():
        acc_ref[...] = jnp.maximum(acc_ref[...], y)

    @pl.when(p == pl.num_programs(1) - 1)
    def _():
        o_ref[...] = jnp.maximum(acc_ref[...] + b_ref[...], 0.0).astype(o_ref.dtype)


def _fc_kernel_single(x_ref, w_ref, b_ref, o_ref, *, apply_relu):
    """Single-K-step FC: no accumulator scratch, no zero-fill (review item)."""
    y = jnp.dot(x_ref[...], w_ref[...], preferred_element_type=jnp.float32)
    y = y + b_ref[...]
    if apply_relu:
        y = jnp.maximum(y, 0.0)
    o_ref[...] = y.astype(o_ref.dtype)


def _fc_kernel_multi(x_ref, w_ref, b_ref, o_ref, acc_ref, *, apply_relu):
    """K-tiled FC matmul with f32 accumulator, fused bias + optional ReLU."""
    k = pl.program_id(2)

    @pl.when(k == 0)
    def _():
        acc_ref[...] = jnp.zeros_like(acc_ref)

    acc_ref[...] += jnp.dot(x_ref[...], w_ref[...],
                            preferred_element_type=jnp.float32)

    @pl.when(k == pl.num_programs(2) - 1)
    def _():
        y = acc_ref[...] + b_ref[...]
        if apply_relu:
            y = jnp.maximum(y, 0.0)
        o_ref[...] = y.astype(o_ref.dtype)


# ---------------------------------------------------------------------------
# Wrappers around pallas_call
# ---------------------------------------------------------------------------
def im2col_pooled(x_nhwc, k=3, pad=1):
    """Pool-phase-major im2col for 3x3/pad-1 conv followed by 2x2/stride-2 max-pool.

    Returns (4, N*H2*W2, k*k*C) with
      patches[2*p+q, n*H2*W2 + h2*W2 + w2, (ky*k+kx)*C + c]
        == x_pad[n, 2*h2 + p + ky, 2*w2 + q + kx, c]
    so the 4 leading "phases" are exactly the 2x2 pooling window of each output.
    XLA glue only (pad + static strided slices + stack); the consumer kernel
    reduces the phase axis, so no full-resolution conv output ever hits HBM."""
    N, H, W, C = x_nhwc.shape
    H2, W2 = H // 2, W // 2
    xp = jnp.pad(x_nhwc, ((0, 0), (pad, pad), (pad, pad), (0, 0)))
    phases = []
    for p in range(2):
        for q in range(2):
            taps = []
            for ky in range(k):
                for kx in range(k):
                    taps.append(xp[:, p + ky:p + ky + H:2, q + kx:q + kx + W:2, :])
            ph = jnp.stack(taps, axis=3)                   # (N, H2, W2, k*k, C)
            phases.append(ph.reshape(N * H2 * W2, k * k * C))
    return jnp.stack(phases, axis=0)                       # (4, N*H2*W2, k*k*C)


def conv3x3_relu_pool(x_nhwc, wmat, b2d, *, tm_target=2048):
    """3x3 conv (pad=1) + bias + ReLU + 2x2/2 max-pool fused in one Pallas kernel.

    Output channels are lane-padded to 128 (padded lanes have zero weight/bias,
    so they stay exactly 0 through max-pool and ReLU and are sliced off later)."""
    x_nhwc = x_nhwc.astype(MATMUL_INPUT_DTYPE)
    N, H, W, Cin = x_nhwc.shape
    K, C = wmat.shape
    assert K == 9 * Cin and C == _LANES and b2d.shape == (1, C)
    assert H % 2 == 0 and W % 2 == 0
    H2, W2 = H // 2, W // 2
    M = N * H2 * W2                                     # pooled output rows
    patches = im2col_pooled(x_nhwc)                     # (4, M, K)
    tm = _pick_tile_m(M, tm_target)
    assert M % tm == 0, (M, tm)

    pooled = pl.pallas_call(
        _conv_pool_kernel,
        out_shape=jax.ShapeDtypeStruct((M, C), jnp.float32),
        grid_spec=pltpu.PrefetchScalarGridSpec(
            num_scalar_prefetch=0,
            grid=(M // tm, 4),
            in_specs=[
                pl.BlockSpec((1, tm, K), lambda i, p: (p, i, 0)),
                pl.BlockSpec((K, C), lambda i, p: (0, 0)),
                pl.BlockSpec((1, C), lambda i, p: (0, 0)),
            ],
            out_specs=pl.BlockSpec((tm, C), lambda i, p: (i, 0)),
            scratch_shapes=[pltpu.VMEM((tm, C), jnp.float32)],
        ),
        compiler_params=pltpu.CompilerParams(
            dimension_semantics=("parallel", "arbitrary"),
            vmem_limit_bytes=_VMEM_LIMIT,
        ),
    )(patches, wmat, b2d)
    return pooled.reshape(N, H2, W2, C)                 # free HBM view


def fc_layer(x, w, b2d, *, apply_relu, tn, tm_target=512):
    """y = act(x @ w + b).  K-tiled only when K is large; Nout is tiled with a
    'parallel' grid axis so v7x's second TensorCore gets work at small batch."""
    x = x.astype(MATMUL_INPUT_DTYPE)
    M, K = x.shape
    K2, N = w.shape
    assert K == K2 and b2d.shape == (1, N)
    assert N % tn == 0 and tn % _LANES == 0
    tk = _pick_tk(K)
    assert K % tk == 0, (K, tk)          # never silently drop reduction remainder
    nk = K // tk
    tm = _pick_tile_m(M, tm_target)
    assert M % tm == 0, (M, tm)
    nm, nn = M // tm, N // tn

    if nk == 1:
        kernel = functools.partial(_fc_kernel_single, apply_relu=apply_relu)
        grid = (nm, nn)
        in_specs = [
            pl.BlockSpec((tm, K), lambda i, j: (i, 0)),
            pl.BlockSpec((K, tn), lambda i, j: (0, j)),
            pl.BlockSpec((1, tn), lambda i, j: (0, j)),
        ]
        out_spec = pl.BlockSpec((tm, tn), lambda i, j: (i, j))
        scratch = []
        dims = ("parallel", "parallel")
    else:
        kernel = functools.partial(_fc_kernel_multi, apply_relu=apply_relu)
        grid = (nm, nn, nk)
        in_specs = [
            pl.BlockSpec((tm, tk), lambda i, j, k: (i, k)),
            pl.BlockSpec((tk, tn), lambda i, j, k: (k, j)),
            pl.BlockSpec((1, tn), lambda i, j, k: (0, j)),
        ]
        out_spec = pl.BlockSpec((tm, tn), lambda i, j, k: (i, j))
        scratch = [pltpu.VMEM((tm, tn), jnp.float32)]
        dims = ("parallel", "parallel", "arbitrary")

    return pl.pallas_call(
        kernel,
        out_shape=jax.ShapeDtypeStruct((M, N), jnp.float32),
        grid_spec=pltpu.PrefetchScalarGridSpec(
            num_scalar_prefetch=0, grid=grid,
            in_specs=in_specs, out_specs=out_spec, scratch_shapes=scratch),
        compiler_params=pltpu.CompilerParams(
            dimension_semantics=dims, vmem_limit_bytes=_VMEM_LIMIT),
    )(x, w, b2d)


# ---------------------------------------------------------------------------
# Parameters, repacking, forward pass
# ---------------------------------------------------------------------------
def init_params(key):
    ks = jax.random.split(key, 8)

    def u(k, shape, fan_in):
        bound = 1.0 / jnp.sqrt(jnp.float32(fan_in))
        return jax.random.uniform(k, shape, jnp.float32, -bound, bound)

    return {
        "conv1_w": u(ks[0], (32, 3, 3, 3), 3 * 9),
        "conv1_b": u(ks[1], (32,), 3 * 9),
        "conv2_w": u(ks[2], (64, 32, 3, 3), 32 * 9),
        "conv2_b": u(ks[3], (64,), 32 * 9),
        "fc1_w": u(ks[4], (512, 64 * 8 * 8), 64 * 8 * 8),
        "fc1_b": u(ks[5], (512,), 64 * 8 * 8),
        "fc2_w": u(ks[6], (10, 512), 512),
        "fc2_b": u(ks[7], (10,), 512),
    }


def prepare_params(params):
    """One-time (outside jit) repack of torch-layout params into kernel layouts:
    conv weights as lane-padded (9*Cin, 128) matmul operands, FC weights in
    (K, N) layout with fc1 rows permuted to NHWC flatten order, fc2 padded to
    128 lane-dense output columns."""
    lanes = _LANES

    def conv_pack(w_oihw, b):
        cout, cin, kh, kw = w_oihw.shape
        wmat = jnp.transpose(w_oihw, (2, 3, 1, 0)).reshape(kh * kw * cin, cout)
        wmat = jnp.pad(wmat, ((0, 0), (0, lanes - cout)))
        b2d = jnp.pad(b, (0, lanes - cout)).reshape(1, lanes)
        return wmat.astype(MATMUL_INPUT_DTYPE), b2d

    c1w, c1b = conv_pack(params["conv1_w"], params["conv1_b"])
    c2w, c2b = conv_pack(params["conv2_w"], params["conv2_b"])

    # Torch flattens NCHW (c, h, w); our activations flatten NHWC (h, w, c):
    # permute fc1 rows once so the NHWC activation can be used directly.
    fc1_t = params["fc1_w"].T                                     # (4096,512) rows (c,h,w)
    fc1_kn = fc1_t.reshape(64, 8, 8, 512).transpose(1, 2, 0, 3).reshape(4096, 512)

    # Pad fc2 to 128 output lanes (sliced back to 10 after the matmul) so the
    # final store is a lane-dense vst instead of a masked 10-wide one.
    fc2_kn = jnp.pad(params["fc2_w"].T, ((0, 0), (0, lanes - 10)))  # (512, 128)
    fc2_b = jnp.pad(params["fc2_b"], (0, lanes - 10)).reshape(1, lanes)

    return {
        "conv1_wmat": c1w, "conv1_b": c1b,
        "conv2_wmat": c2w, "conv2_b": c2b,
        "fc1_w": fc1_kn.astype(MATMUL_INPUT_DTYPE),
        "fc1_b": params["fc1_b"].reshape(1, 512),
        "fc2_w": fc2_kn.astype(MATMUL_INPUT_DTYPE),
        "fc2_b": fc2_b,
    }


def cnn_forward(prepped, x_nchw):
    N = x_nchw.shape[0]
    x = jnp.transpose(x_nchw, (0, 2, 3, 1))                               # NCHW -> NHWC
    # Conv+ReLU+pool fused; channel slices below feed straight into the next
    # layer's im2col gather / fc reshape, so XLA fuses them into that pass.
    x = conv3x3_relu_pool(x, prepped["conv1_wmat"], prepped["conv1_b"])   # (N,16,16,128)
    x = conv3x3_relu_pool(x[..., :32],
                          prepped["conv2_wmat"], prepped["conv2_b"])      # (N,8,8,128)
    x = x[..., :64].reshape(N, 8 * 8 * 64)        # NHWC flatten (fc1 rows pre-permuted)
    x = fc_layer(x, prepped["fc1_w"], prepped["fc1_b"], apply_relu=True, tn=256)
    x = fc_layer(x, prepped["fc2_w"], prepped["fc2_b"], apply_relu=False, tn=128)
    return x[:, :10]                                                      # drop fc2 lane pad


def cnn_forward_ref(params, x):
    """Pure-JAX reference (mirrors the PyTorch forward) for correctness check."""
    dn = ("NCHW", "OIHW", "NCHW")
    y = jax.lax.conv_general_dilated(x, params["conv1_w"], (1, 1),
                                     ((1, 1), (1, 1)), dimension_numbers=dn)
    y = jax.nn.relu(y + params["conv1_b"][None, :, None, None])
    y = jax.lax.reduce_window(y, -jnp.inf, jax.lax.max,
                              (1, 1, 2, 2), (1, 1, 2, 2), "VALID")
    y = jax.lax.conv_general_dilated(y, params["conv2_w"], (1, 1),
                                     ((1, 1), (1, 1)), dimension_numbers=dn)
    y = jax.nn.relu(y + params["conv2_b"][None, :, None, None])
    y = jax.lax.reduce_window(y, -jnp.inf, jax.lax.max,
                              (1, 1, 2, 2), (1, 1, 2, 2), "VALID")
    y = y.reshape(y.shape[0], -1)
    y = jax.nn.relu(y @ params["fc1_w"].T + params["fc1_b"])
    return y @ params["fc2_w"].T + params["fc2_b"]


if __name__ == "__main__":
    key = jax.random.PRNGKey(0)
    pkey, xkey = jax.random.split(key)
    params = init_params(pkey)
    prepped = prepare_params(params)      # one-time repack, outside the jitted path
    # 64*8*8 flatten in the module implies 32x32 spatial input (CIFAR-sized).
    x = jax.random.normal(xkey, (2, 3, 32, 32), jnp.float32)

    logits = jax.block_until_ready(jax.jit(cnn_forward)(prepped, x))
    assert logits.shape == (2, 10), logits.shape

    ref = jax.block_until_ready(jax.jit(cnn_forward_ref)(params, x))
    # (Loosen tolerance to ~2e-2 if MATMUL_INPUT_DTYPE is switched to bf16.)
    assert jnp.allclose(logits, ref, rtol=1e-4, atol=1e-4), (
        float(jnp.max(jnp.abs(logits - ref))))

    print("KERNEL_OK")
</pallas_src>

<mosaic_0001>
module attributes {stable_mosaic.version = 11 : i64} {
  func.func @_conv_pool_kernel(%arg0: i32, %arg1: i32, %arg2: memref<1x512x27xf32, #tpu.memory_space<vmem>>, %arg3: memref<27x128xf32, #tpu.memory_space<vmem>>, %arg4: memref<1x128xf32, #tpu.memory_space<vmem>>, %arg5: memref<512x128xf32, #tpu.memory_space<vmem>>, %arg6: memref<512x128xf32, #tpu.memory_space<vmem>>) attributes {dimension_semantics = [#tpu.dimension_semantics<parallel>, #tpu.dimension_semantics<arbitrary>], iteration_bounds = array<i64: 1, 4>, scalar_prefetch = 0 : i64, scratch_operands = 1 : i64, tpu.core_type = #tpu.core_type<tc>, window_params = [{transform_indices = @transform_0, window_bounds = array<i64: 1, 512, 27>}, {pipeline_mode = #tpu.pipeline_mode<synchronous>, transform_indices = @transform_1, window_bounds = array<i64: 27, 128>}, {pipeline_mode = #tpu.pipeline_mode<synchronous>, transform_indices = @transform_2, window_bounds = array<i64: 1, 128>}, {transform_indices = @transform_3, window_bounds = array<i64: 512, 128>}]} {
    %c0 = arith.constant 0 : index
    %c0_0 = arith.constant 0 : index
    %c0_1 = arith.constant 0 : index
    %0 = vector.load %arg2[%c0, %c0_0, %c0_1] : memref<1x512x27xf32, #tpu.memory_space<vmem>>, vector<1x512x27xf32>
    %1 = vector.shape_cast %0 : vector<1x512x27xf32> to vector<512x27xf32>
    %c0_2 = arith.constant 0 : index
    %c0_3 = arith.constant 0 : index
    %2 = vector.load %arg3[%c0_2, %c0_3] : memref<27x128xf32, #tpu.memory_space<vmem>>, vector<27x128xf32>
    %cst = arith.constant dense<0.000000e+00> : vector<512x128xf32>
    %3 = tpu.matmul %1, %2, %cst {dimension_numbers = #tpu.dot_dimension_numbers<[1], [0], [0], [1], [0, 0, 1, 1], [], []>} : vector<512x27xf32>, vector<27x128xf32>, vector<512x128xf32> -> vector<512x128xf32>
    %c0_i32 = arith.constant 0 : i32
    %4 = arith.cmpi eq, %arg1, %c0_i32 : i32
    %5 = arith.extui %4 : i1 to i32
    %c0_i32_4 = arith.constant 0 : i32
    %6 = arith.cmpi ne, %5, %c0_i32_4 : i32
    scf.if %6 {
      %c0_8 = arith.constant 0 : index
      %c0_9 = arith.constant 0 : index
      %13 = vector.load %arg6[%c0_8, %c0_9] : memref<512x128xf32, #tpu.memory_space<vmem>>, vector<512x128xf32>
      tpu.vector_store %arg6[%c0_8, %c0_9], %3 {strides = array<i32>} : memref<512x128xf32, #tpu.memory_space<vmem>>, vector<512x128xf32>,
    } else {
    }
    %c0_i32_5 = arith.constant 0 : i32
    %7 = arith.cmpi sgt, %arg1, %c0_i32_5 : i32
    %8 = arith.extui %7 : i1 to i32
    %c0_i32_6 = arith.constant 0 : i32
    %9 = arith.cmpi ne, %8, %c0_i32_6 : i32
    scf.if %9 {
      %c0_8 = arith.constant 0 : index
      %c0_9 = arith.constant 0 : index
      %13 = vector.load %arg6[%c0_8, %c0_9] : memref<512x128xf32, #tpu.memory_space<vmem>>, vector<512x128xf32>
      %14 = arith.maximumf %13, %3 : vector<512x128xf32>
      %c0_10 = arith.constant 0 : index
      %c0_11 = arith.constant 0 : index
      %15 = vector.load %arg6[%c0_10, %c0_11] : memref<512x128xf32, #tpu.memory_space<vmem>>, vector<512x128xf32>
      tpu.vector_store %arg6[%c0_10, %c0_11], %14 {strides = array<i32>} : memref<512x128xf32, #tpu.memory_space<vmem>>, vector<512x128xf32>,
    } else {
    }
    %c3_i32 = arith.constant 3 : i32
    %10 = arith.cmpi eq, %arg1, %c3_i32 : i32
    %11 = arith.extui %10 : i1 to i32
    %c0_i32_7 = arith.constant 0 : i32
    %12 = arith.cmpi ne, %11, %c0_i32_7 : i32
    scf.if %12 {
      %c0_8 = arith.constant 0 : index
      %c0_9 = arith.constant 0 : index
      %13 = vector.load %arg6[%c0_8, %c0_9] : memref<512x128xf32, #tpu.memory_space<vmem>>, vector<512x128xf32>
      %c0_10 = arith.constant 0 : index
      %c0_11 = arith.constant 0 : index
      %14 = vector.load %arg4[%c0_10, %c0_11] : memref<1x128xf32, #tpu.memory_space<vmem>>, vector<1x128xf32>
      %15 = vector.broadcast %14 : vector<1x128xf32> to vector<512x128xf32>
      %16 = arith.addf %13, %15 : vector<512x128xf32>
      %cst_12 = arith.constant 0.000000e+00 : f32
      %17 = vector.broadcast %cst_12 : f32 to vector<512x128xf32>
      %18 = arith.maximumf %16, %17 : vector<512x128xf32>
      %c0_13 = arith.constant 0 : index
      %c0_14 = arith.constant 0 : index
      %19 = vector.load %arg5[%c0_13, %c0_14] : memref<512x128xf32, #tpu.memory_space<vmem>>, vector<512x128xf32>
      tpu.vector_store %arg5[%c0_13, %c0_14], %18 {strides = array<i32>} : memref<512x128xf32, #tpu.memory_space<vmem>>, vector<512x128xf32>,
    } else {
    }
    return
  }
  func.func @transform_0(%arg0: i32, %arg1: i32) -> (i32, i32, i32) {
    %c0_i32 = arith.constant 0 : i32
    %c0_i32_0 = arith.constant 0 : i32
    return %arg1, %arg0, %c0_i32 : i32, i32, i32
  }
  func.func @transform_1(%arg0: i32, %arg1: i32) -> (i32, i32) {
    %c0_i32 = arith.constant 0 : i32
    %c0_i32_0 = arith.constant 0 : i32
    %c0_i32_1 = arith.constant 0 : i32
    return %c0_i32, %c0_i32_0 : i32, i32
  }
  func.func @transform_2(%arg0: i32, %arg1: i32) -> (i32, i32) {
    %c0_i32 = arith.constant 0 : i32
    %c0_i32_0 = arith.constant 0 : i32
    %c0_i32_1 = arith.constant 0 : i32
    return %c0_i32, %c0_i32_0 : i32, i32
  }
  func.func @transform_3(%arg0: i32, %arg1: i32) -> (i32, i32) {
    %c0_i32 = arith.constant 0 : i32
    %c0_i32_0 = arith.constant 0 : i32
    return %arg0, %c0_i32 : i32, i32
  }
}

module attributes {stable_mosaic.version = 11 : i64} {
  func.func @_conv_pool_kernel(%arg0: i32, %arg1: i32, %arg2: memref<1x128x288xf32, #tpu.memory_space<vmem>>, %arg3: memref<288x128xf32, #tpu.memory_space<vmem>>, %arg4: memref<1x128xf32, #tpu.memory_space<vmem>>, %arg5: memref<128x128xf32, #tpu.memory_space<vmem>>, %arg6: memref<128x128xf32, #tpu.memory_space<vmem>>) attributes {dimension_semantics = [#tpu.dimension_semantics<parallel>, #tpu.dimension_semantics<arbitrary>], iteration_bounds = array<i64: 1, 4>, scalar_prefetch = 0 : i64, scratch_operands = 1 : i64, tpu.core_type = #tpu.core_type<tc>, window_params = [{transform_indices = @transform_0, window_bounds = array<i64: 1, 128, 288>}, {pipeline_mode = #tpu.pipeline_mode<synchronous>, transform_indices = @transform_1, window_bounds = array<i64: 288, 128>}, {pipeline_mode = #tpu.pipeline_mode<synchronous>, transform_indices = @transform_2, window_bounds = array<i64: 1, 128>}, {transform_indices = @transform_3, window_bounds = array<i64: 128, 128>}]} {
    %c0 = arith.constant 0 : index
    %c0_0 = arith.constant 0 : index
    %c0_1 = arith.constant 0 : index
    %0 = vector.load %arg2[%c0, %c0_0, %c0_1] : memref<1x128x288xf32, #tpu.memory_space<vmem>>, vector<1x128x288xf32>
    %1 = vector.shape_cast %0 : vector<1x128x288xf32> to vector<128x288xf32>
    %c0_2 = arith.constant 0 : index
    %c0_3 = arith.constant 0 : index
    %2 = vector.load %arg3[%c0_2, %c0_3] : memref<288x128xf32, #tpu.memory_space<vmem>>, vector<288x128xf32>
    %cst = arith.constant dense<0.000000e+00> : vector<128x128xf32>
    %3 = tpu.matmul %1, %2, %cst {dimension_numbers = #tpu.dot_dimension_numbers<[1], [0], [0], [1], [0, 0, 1, 1], [], []>} : vector<128x288xf32>, vector<288x128xf32>, vector<128x128xf32> -> vector<128x128xf32>
    %c0_i32 = arith.constant 0 : i32
    %4 = arith.cmpi eq, %arg1, %c0_i32 : i32
    %5 = arith.extui %4 : i1 to i32
    %c0_i32_4 = arith.constant 0 : i32
    %6 = arith.cmpi ne, %5, %c0_i32_4 : i32
    scf.if %6 {
      %c0_8 = arith.constant 0 : index
      %c0_9 = arith.constant 0 : index
      %13 = vector.load %arg6[%c0_8, %c0_9] : memref<128x128xf32, #tpu.memory_space<vmem>>, vector<128x128xf32>
      tpu.vector_store %arg6[%c0_8, %c0_9], %3 {strides = array<i32>} : memref<128x128xf32, #tpu.memory_space<vmem>>, vector<128x128xf32>,
    } else {
    }
    %c0_i32_5 = arith.constant 0 : i32
    %7 = arith.cmpi sgt, %arg1, %c0_i32_5 : i32
    %8 = arith.extui %7 : i1 to i32
    %c0_i32_6 = arith.constant 0 : i32
    %9 = arith.cmpi ne, %8, %c0_i32_6 : i32
    scf.if %9 {
      %c0_8 = arith.constant 0 : index
      %c0_9 = arith.constant 0 : index
      %13 = vector.load %arg6[%c0_8, %c0_9] : memref<128x128xf32, #tpu.memory_space<vmem>>, vector<128x128xf32>
      %14 = arith.maximumf %13, %3 : vector<128x128xf32>
      %c0_10 = arith.constant 0 : index
      %c0_11 = arith.constant 0 : index
      %15 = vector.load %arg6[%c0_10, %c0_11] : memref<128x128xf32, #tpu.memory_space<vmem>>, vector<128x128xf32>
      tpu.vector_store %arg6[%c0_10, %c0_11], %14 {strides = array<i32>} : memref<128x128xf32, #tpu.memory_space<vmem>>, vector<128x128xf32>,
    } else {
    }
    %c3_i32 = arith.constant 3 : i32
    %10 = arith.cmpi eq, %arg1, %c3_i32 : i32
    %11 = arith.extui %10 : i1 to i32
    %c0_i32_7 = arith.constant 0 : i32
    %12 = arith.cmpi ne, %11, %c0_i32_7 : i32
    scf.if %12 {
      %c0_8 = arith.constant 0 : index
      %c0_9 = arith.constant 0 : index
      %13 = vector.load %arg6[%c0_8, %c0_9] : memref<128x128xf32, #tpu.memory_space<vmem>>, vector<128x128xf32>
      %c0_10 = arith.constant 0 : index
      %c0_11 = arith.constant 0 : index
      %14 = vector.load %arg4[%c0_10, %c0_11] : memref<1x128xf32, #tpu.memory_space<vmem>>, vector<1x128xf32>
      %15 = vector.broadcast %14 : vector<1x128xf32> to vector<128x128xf32>
      %16 = arith.addf %13, %15 : vector<128x128xf32>
      %cst_12 = arith.constant 0.000000e+00 : f32
      %17 = vector.broadcast %cst_12 : f32 to vector<128x128xf32>
      %18 = arith.maximumf %16, %17 : vector<128x128xf32>
      %c0_13 = arith.constant 0 : index
      %c0_14 = arith.constant 0 : index
      %19 = vector.load %arg5[%c0_13, %c0_14] : memref<128x128xf32, #tpu.memory_space<vmem>>, vector<128x128xf32>
      tpu.vector_store %arg5[%c0_13, %c0_14], %18 {strides = array<i32>} : memref<128x128xf32, #tpu.memory_space<vmem>>, vector<128x128xf32>,
    } else {
    }
    return
  }
  func.func @transform_0(%arg0: i32, %arg1: i32) -> (i32, i32, i32) {
    %c0_i32 = arith.constant 0 : i32
    %c0_i32_0 = arith.constant 0 : i32
    return %arg1, %arg0, %c0_i32 : i32, i32, i32
  }
  func.func @transform_1(%arg0: i32, %arg1: i32) -> (i32, i32) {
    %c0_i32 = arith.constant 0 : i32
    %c0_i32_0 = arith.constant 0 : i32
    %c0_i32_1 = arith.constant 0 : i32
    return %c0_i32, %c0_i32_0 : i32, i32
  }
  func.func @transform_2(%arg0: i32, %arg1: i32) -> (i32, i32) {
    %c0_i32 = arith.constant 0 : i32
    %c0_i32_0 = arith.constant 0 : i32
    %c0_i32_1 = arith.constant 0 : i32
    return %c0_i32, %c0_i32_0 : i32, i32
  }
  func.func @transform_3(%arg0: i32, %arg1: i32) -> (i32, i32) {
    %c0_i32 = arith.constant 0 : i32
    %c0_i32_0 = arith.constant 0 : i32
    return %arg0, %c0_i32 : i32, i32
  }
}

module attributes {stable_mosaic.version = 11 : i64} {
  func.func @_fc_kernel_multi(%arg0: i32, %arg1: i32, %arg2: i32, %arg3: memref<2x2048xf32, #tpu.memory_space<vmem>>, %arg4: memref<2048x256xf32, #tpu.memory_space<vmem>>, %arg5: memref<1x256xf32, #tpu.memory_space<vmem>>, %arg6: memref<2x256xf32, #tpu.memory_space<vmem>>, %arg7: memref<2x256xf32, #tpu.memory_space<vmem>>) attributes {dimension_semantics = [#tpu.dimension_semantics<parallel>, #tpu.dimension_semantics<parallel>, #tpu.dimension_semantics<arbitrary>], iteration_bounds = array<i64: 1, 2, 2>, scalar_prefetch = 0 : i64, scratch_operands = 1 : i64, tpu.core_type = #tpu.core_type<tc>, window_params = [{transform_indices = @transform_0, window_bounds = array<i64: 2, 2048>}, {transform_indices = @transform_1, window_bounds = array<i64: 2048, 256>}, {transform_indices = @transform_2, window_bounds = array<i64: 1, 256>}, {transform_indices = @transform_3, window_bounds = array<i64: 2, 256>}]} {
    %c0_i32 = arith.constant 0 : i32
    %0 = arith.cmpi eq, %arg2, %c0_i32 : i32
    %1 = arith.extui %0 : i1 to i32
    %c0_i32_0 = arith.constant 0 : i32
    %2 = arith.cmpi ne, %1, %c0_i32_0 : i32
    scf.if %2 {
      %cst_9 = arith.constant 0.000000e+00 : f32
      %12 = vector.broadcast %cst_9 : f32 to vector<2x256xf32>
      %c0_10 = arith.constant 0 : index
      %c0_11 = arith.constant 0 : index
      %13 = vector.load %arg7[%c0_10, %c0_11] : memref<2x256xf32, #tpu.memory_space<vmem>>, vector<2x256xf32>
      tpu.vector_store %arg7[%c0_10, %c0_11], %12 {strides = array<i32>} : memref<2x256xf32, #tpu.memory_space<vmem>>, vector<2x256xf32>,
    } else {
    }
    %c0 = arith.constant 0 : index
    %c0_1 = arith.constant 0 : index
    %3 = vector.load %arg7[%c0, %c0_1] : memref<2x256xf32, #tpu.memory_space<vmem>>, vector<2x256xf32>
    %c0_2 = arith.constant 0 : index
    %c0_3 = arith.constant 0 : index
    %4 = vector.load %arg3[%c0_2, %c0_3] : memref<2x2048xf32, #tpu.memory_space<vmem>>, vector<2x2048xf32>
    %c0_4 = arith.constant 0 : index
    %c0_5 = arith.constant 0 : index
    %5 = vector.load %arg4[%c0_4, %c0_5] : memref<2048x256xf32, #tpu.memory_space<vmem>>, vector<2048x256xf32>
    %cst = arith.constant dense<0.000000e+00> : vector<2x256xf32>
    %6 = tpu.matmul %4, %5, %cst {dimension_numbers = #tpu.dot_dimension_numbers<[1], [0], [0], [1], [0, 0, 1, 1], [], []>} : vector<2x2048xf32>, vector<2048x256xf32>, vector<2x256xf32> -> vector<2x256xf32>
    %7 = arith.addf %3, %6 : vector<2x256xf32>
    %c0_6 = arith.constant 0 : index
    %c0_7 = arith.constant 0 : index
    %8 = vector.load %arg7[%c0_6, %c0_7] : memref<2x256xf32, #tpu.memory_space<vmem>>, vector<2x256xf32>
    tpu.vector_store %arg7[%c0_6, %c0_7], %7 {strides = array<i32>} : memref<2x256xf32, #tpu.memory_space<vmem>>, vector<2x256xf32>,
    %c1_i32 = arith.constant 1 : i32
    %9 = arith.cmpi eq, %arg2, %c1_i32 : i32
    %10 = arith.extui %9 : i1 to i32
    %c0_i32_8 = arith.constant 0 : i32
    %11 = arith.cmpi ne, %10, %c0_i32_8 : i32
    scf.if %11 {
      %c0_9 = arith.constant 0 : index
      %c0_10 = arith.constant 0 : index
      %12 = vector.load %arg7[%c0_9, %c0_10] : memref<2x256xf32, #tpu.memory_space<vmem>>, vector<2x256xf32>
      %c0_11 = arith.constant 0 : index
      %c0_12 = arith.constant 0 : index
      %13 = vector.load %arg5[%c0_11, %c0_12] : memref<1x256xf32, #tpu.memory_space<vmem>>, vector<1x256xf32>
      %14 = vector.broadcast %13 : vector<1x256xf32> to vector<2x256xf32>
      %15 = arith.addf %12, %14 : vector<2x256xf32>
      %cst_13 = arith.constant 0.000000e+00 : f32
      %16 = vector.broadcast %cst_13 : f32 to vector<2x256xf32>
      %17 = arith.maximumf %15, %16 : vector<2x256xf32>
      %c0_14 = arith.constant 0 : index
      %c0_15 = arith.constant 0 : index
      %18 = vector.load %arg6[%c0_14, %c0_15] : memref<2x256xf32, #tpu.memory_space<vmem>>, vector<2x256xf32>
      tpu.vector_store %arg6[%c0_14, %c0_15], %17 {strides = array<i32>} : memref<2x256xf32, #tpu.memory_space<vmem>>, vector<2x256xf32>,
    } else {
    }
    return
  }
  func.func @transform_0(%arg0: i32, %arg1: i32, %arg2: i32) -> (i32, i32) {
    %c0_i32 = arith.constant 0 : i32
    return %arg0, %arg2 : i32, i32
  }
  func.func @transform_1(%arg0: i32, %arg1: i32, %arg2: i32) -> (i32, i32) {
    %c0_i32 = arith.constant 0 : i32
    return %arg2, %arg1 : i32, i32
  }
  func.func @transform_2(%arg0: i32, %arg1: i32, %arg2: i32) -> (i32, i32) {
    %c0_i32 = arith.constant 0 : i32
    %c0_i32_0 = arith.constant 0 : i32
    return %c0_i32, %arg1 : i32, i32
  }
  func.func @transform_3(%arg0: i32, %arg1: i32, %arg2: i32) -> (i32, i32) {
    %c0_i32 = arith.constant 0 : i32
    return %arg0, %arg1 : i32, i32
  }
}

module attributes {stable_mosaic.version = 11 : i64} {
  func.func @_fc_kernel_single(%arg0: i32, %arg1: i32, %arg2: memref<2x512xf32, #tpu.memory_space<vmem>>, %arg3: memref<512x128xf32, #tpu.memory_space<vmem>>, %arg4: memref<1x128xf32, #tpu.memory_space<vmem>>, %arg5: memref<2x128xf32, #tpu.memory_space<vmem>>) attributes {dimension_semantics = [#tpu.dimension_semantics<parallel>, #tpu.dimension_semantics<parallel>], iteration_bounds = array<i64: 1, 1>, scalar_prefetch = 0 : i64, scratch_operands = 0 : i64, tpu.core_type = #tpu.core_type<tc>, window_params = [{transform_indices = @transform_0, window_bounds = array<i64: 2, 512>}, {transform_indices = @transform_1, window_bounds = array<i64: 512, 128>}, {transform_indices = @transform_2, window_bounds = array<i64: 1, 128>}, {transform_indices = @transform_3, window_bounds = array<i64: 2, 128>}]} {
    %c0 = arith.constant 0 : index
    %c0_0 = arith.constant 0 : index
    %0 = vector.load %arg2[%c0, %c0_0] : memref<2x512xf32, #tpu.memory_space<vmem>>, vector<2x512xf32>
    %c0_1 = arith.constant 0 : index
    %c0_2 = arith.constant 0 : index
    %1 = vector.load %arg3[%c0_1, %c0_2] : memref<512x128xf32, #tpu.memory_space<vmem>>, vector<512x128xf32>
    %cst = arith.constant dense<0.000000e+00> : vector<2x128xf32>
    %2 = tpu.matmul %0, %1, %cst {dimension_numbers = #tpu.dot_dimension_numbers<[1], [0], [0], [1], [0, 0, 1, 1], [], []>} : vector<2x512xf32>, vector<512x128xf32>, vector<2x128xf32> -> vector<2x128xf32>
    %c0_3 = arith.constant 0 : index
    %c0_4 = arith.constant 0 : index
    %3 = vector.load %arg4[%c0_3, %c0_4] : memref<1x128xf32, #tpu.memory_space<vmem>>, vector<1x128xf32>
    %4 = vector.broadcast %3 : vector<1x128xf32> to vector<2x128xf32>
    %5 = arith.addf %2, %4 : vector<2x128xf32>
    %c0_5 = arith.constant 0 : index
    %c0_6 = arith.constant 0 : index
    %6 = vector.load %arg5[%c0_5, %c0_6] : memref<2x128xf32, #tpu.memory_space<vmem>>, vector<2x128xf32>
    tpu.vector_store %arg5[%c0_5, %c0_6], %5 {strides = array<i32>} : memref<2x128xf32, #tpu.memory_space<vmem>>, vector<2x128xf32>,
    return
  }
  func.func @transform_0(%arg0: i32, %arg1: i32) -> (i32, i32) {
    %c0_i32 = arith.constant 0 : i32
    %c0_i32_0 = arith.constant 0 : i32
    return %arg0, %c0_i32 : i32, i32
  }
  func.func @transform_1(%arg0: i32, %arg1: i32) -> (i32, i32) {
    %c0_i32 = arith.constant 0 : i32
    %c0_i32_0 = arith.constant 0 : i32
    return %c0_i32, %arg1 : i32, i32
  }
  func.func @transform_2(%arg0: i32, %arg1: i32) -> (i32, i32) {
    %c0_i32 = arith.constant 0 : i32
    %c0_i32_0 = arith.constant 0 : i32
    return %c0_i32, %arg1 : i32, i32
  }
  func.func @transform_3(%arg0: i32, %arg1: i32) -> (i32, i32) {
    %c0_i32 = arith.constant 0 : i32
    return %arg0, %arg1 : i32, i32
  }
}

</mosaic_0001>

<bundles_post_ra>
// kernel: cnn_forward.4
= control target key start
LH: loop header
LB: loop body
LE: loop exit
PB: predicated region body
PF: predicated region fallthrough
CT: control target
= control target key end

     0   :  { %s1785_s12 = smov 0   ;;  %s1787_s13 = smov 0   ;;  %s2493_s0 = inlined_call_operand.vmem [shape: f32[4,512,27], index: 0, kind: input, shape index: {}]   ;;  %s2494_s1 = inlined_call_operand.vmem [shape: f32[27,128], index: 1, kind: input, shape index: {}]   ;;  %s2495_s2 = inlined_call_operand.vmem [shape: f32[1,128], index: 2, kind: input, shape index: {}]   ;;  %s2496_s3 = inlined_call_operand.vmem [shape: f32[512,128], index: 3, kind: output, shape index: {}]  }
   0x1   :  { %s1789_s14 = smov 0  }
   0x2 LB: > { %s22_s15 = sadd.s32 1, %s1758_s13  ;;  %p1452_p0 = scmp.ge.s32.totalorder %s1762_s14, 1  ;;  %s1762_s14 = sphi %s1789_s14, %s13_s14   ;;  %s1758_s13 = sphi %s1787_s13, %s2545_s13   ;;  %s1754_s12 = sphi %s1785_s12, %s2544_s12  }
   0x3   : > { %p23_p1 = scmp.ge.s32.totalorder %s22_s15, 4  ;;  %p156_p2 = scmp.lt.s32.totalorder %s1762_s14, 5 }
   0x5   : > { %s2547_s15 = smov (%p23_p1, %s22_s15), 0  ;;  %p157_p3 = pnand %p1452_p0, %p156_p2 }
   0x7   : > { %160 = sbr.rel (%p157_p3) target bundleno = 380 (0x17c), region = 32 }
   0xe   : > { %v264_v0 = vld [vmem:[%s2494_s1] sm:$0xff]  ;;  %v265_v1 = vld [vmem:[%s2494_s1 + $0x8] sm:$0xff]  ;;  %v266_v2 = vld [vmem:[%s2494_s1 + $0x10] sm:$0xff]  ;;  %vm461_vm0 = vcmask 1042432   ;;  %p185_p4 = scmp.lt.s32.totalorder %s1754_s12, 3  ;;  %vm1764_vm1 = vmmov 1  }
   0xf   : > { %v1701_v3 = vpack.c.bf16 %v265_v1, %v264_v0  ;;  %v267_v4 = vld [vmem:[%s2494_s1 + $0x18] sm:$0x7]  ;;  %vm1818_vm2 = vmpackc.low %vm461_vm0, %vm1764_vm1  ;;  %vm268_vm3 = vcmask 220160   ;;  %p1520_p5 = scmp.ne.s32.totalorder %s1754_s12, 0 }
  0x10   : > { %v1705_v5 = vpack.c.bf16 %v267_v4, %v266_v2  ;;  %s186_s24 = scalar_select %p185_p4, %s1754_s12, 3 }
  0x11   : > { %1702 = vmatprep.subr.bf16.mxu0 %v1701_v3  ;;  %1711 = vmatprep.subr.bf16.mxu1 %v1701_v3 }
  0x12   : > { %1704 = vmatpush3.bf16.msra.mxu0 %v1701_v3  ;;  %1713 = vmatpush3.bf16.msra.mxu1 %v1701_v3  ;;  %s1528_s25 = sshll.u32 %s186_s24, 9 }
  0x13   : > { %1707 = vmatprep.subr.msk.bf16.mxu0 %vm1818_vm2, %v1705_v5  ;;  %1712 = vmatprep.subr.msk.bf16.mxu1 %vm1818_vm2, %v1705_v5  ;;  %s1830_s28 = scalar_lea.vmem %s2493_s0, %s1528_s25 }
  0x14   : > { %v200_v7 = vld [vmem:[%s1830_s28] sm:$0xff]  ;;  %v201_v9 = vld [vmem:[%s1830_s28 + $0x8] sm:$0xff]  ;;  %v202_v11 = vld [vmem:[%s1830_s28 + $0x10] sm:$0xff] }
  0x15   : > { %v232_v8 = vld [vmem:[%s1830_s28 + $0x100] sm:$0xff]  ;;  %1605 = vmatprep.mubr.msk.f32.mxu0 %vm268_vm3, %v200_v7  ;;  %v233_v10 = vld [vmem:[%s1830_s28 + $0x108] sm:$0xff]  ;;  %v234_v12 = vld [vmem:[%s1830_s28 + $0x110] sm:$0xff] }
  0x16   : > { %1653 = vmatprep.mubr.msk.f32.mxu1 %vm268_vm3, %v232_v8  ;;  %1710 = vmatpush3.bf16.msk.msra.mxu0 %vm1818_vm2, %v1705_v5  ;;  %v203_v13 = vld [vmem:[%s1830_s28 + $0x18] sm:$0xff]  ;;  %v204_v15 = vld [vmem:[%s1830_s28 + $0x20] sm:$0xff]  ;;  %v205_v17 = vld [vmem:[%s1830_s28 + $0x28] sm:$0xff] }
  0x17   : > { %1714 = vmatpush3.bf16.msk.msra.mxu1 %vm1818_vm2, %v1705_v5  ;;  %v235_v14 = vld [vmem:[%s1830_s28 + $0x118] sm:$0xff]  ;;  %v236_v16 = vld [vmem:[%s1830_s28 + $0x120] sm:$0xff]  ;;  %v237_v18 = vld [vmem:[%s1830_s28 + $0x128] sm:$0xff] }
  0x18   : > { %v206_v19 = vld [vmem:[%s1830_s28 + $0x30] sm:$0xff]  ;;  %v207_v21 = vld [vmem:[%s1830_s28 + $0x38] sm:$0xff]  ;;  %v208_v23 = vld [vmem:[%s1830_s28 + $0x40] sm:$0xff] }
  0x19   : > { %1606 = vmatmul.mubr.msk.f32.vlgmr.msra.gmra.mrb[0].mxu0 %vm268_vm3, %v201_v9  ;;  %v238_v20 = vld [vmem:[%s1830_s28 + $0x130] sm:$0xff]  ;;  %v239_v22 = vld [vmem:[%s1830_s28 + $0x138] sm:$0xff]  ;;  %v240_v24 = vld [vmem:[%s1830_s28 + $0x140] sm:$0xff] }
  0x1a   : > { %1654 = vmatmul.mubr.msk.f32.vlgmr.msra.gmra.mrb[0].mxu1 %vm268_vm3, %v233_v10  ;;  %1608 = vmatprep.mubr.msk.f32.mxu0 %vm268_vm3, %v202_v11  ;;  %v209_v25 = vld [vmem:[%s1830_s28 + $0x48] sm:$0xff]  ;;  %v210_v27 = vld [vmem:[%s1830_s28 + $0x50] sm:$0xff]  ;;  %v211_v29 = vld [vmem:[%s1830_s28 + $0x58] sm:$0xff] }
  0x1b   : > { %1656 = vmatprep.mubr.msk.f32.mxu1 %vm268_vm3, %v234_v12  ;;  %v241_v26 = vld [vmem:[%s1830_s28 + $0x148] sm:$0xff]  ;;  %v242_v28 = vld [vmem:[%s1830_s28 + $0x150] sm:$0xff]  ;;  %v243_v30 = vld [vmem:[%s1830_s28 + $0x158] sm:$0xff] }
  0x1c   : > { %v212_v31 = vld [vmem:[%s1830_s28 + $0x60] sm:$0xff]  ;;  %v213_v33 = vld [vmem:[%s1830_s28 + $0x68] sm:$0xff]  ;;  %v214_v35 = vld [vmem:[%s1830_s28 + $0x70] sm:$0xff] }
  0x1d   : > { %1609 = vmatmul.mubr.msk.f32.gmra.mrb[2].mxu0 %vm268_vm3, %v203_v13  ;;  %v244_v32 = vld [vmem:[%s1830_s28 + $0x160] sm:$0xff]  ;;  %v245_v34 = vld [vmem:[%s1830_s28 + $0x168] sm:$0xff]  ;;  %v246_v36 = vld [vmem:[%s1830_s28 + $0x170] sm:$0xff] }
  0x1e   : > { %1657 = vmatmul.mubr.msk.f32.gmra.mrb[2].mxu1 %vm268_vm3, %v235_v14  ;;  %1611 = vmatprep.mubr.msk.f32.mxu0 %vm268_vm3, %v204_v15  ;;  %v215_v37 = vld [vmem:[%s1830_s28 + $0x78] sm:$0xff]  ;;  %v216_v39 = vld [vmem:[%s1830_s28 + $0x80] sm:$0xff]  ;;  %v217_v41 = vld [vmem:[%s1830_s28 + $0x88] sm:$0xff] }
  0x1f   : > { %1659 = vmatprep.mubr.msk.f32.mxu1 %vm268_vm3, %v236_v16  ;;  %v247_v38 = vld [vmem:[%s1830_s28 + $0x178] sm:$0xff]  ;;  %v248_v40 = vld [vmem:[%s1830_s28 + $0x180] sm:$0xff]  ;;  %v249_v42 = vld [vmem:[%s1830_s28 + $0x188] sm:$0xff] }
  0x20   : > { %v218_v43 = vld [vmem:[%s1830_s28 + $0x90] sm:$0xff]  ;;  %v219_v45 = vld [vmem:[%s1830_s28 + $0x98] sm:$0xff]  ;;  %v220_v47 = vld [vmem:[%s1830_s28 + $0xa0] sm:$0xff] }
  0x21   : > { %1612 = vmatmul.mubr.msk.f32.gmra.mrb[4].mxu0 %vm268_vm3, %v205_v17  ;;  %v250_v44 = vld [vmem:[%s1830_s28 + $0x190] sm:$0xff]  ;;  %v251_v46 = vld [vmem:[%s1830_s28 + $0x198] sm:$0xff]  ;;  %v252_v48 = vld [vmem:[%s1830_s28 + $0x1a0] sm:$0xff] }
  0x22   : > { %1660 = vmatmul.mubr.msk.f32.gmra.mrb[4].mxu1 %vm268_vm3, %v237_v18  ;;  %1614 = vmatprep.mubr.msk.f32.mxu0 %vm268_vm3, %v206_v19  ;;  %v221_v49 = vld [vmem:[%s1830_s28 + $0xa8] sm:$0xff]  ;;  %v222_v51 = vld [vmem:[%s1830_s28 + $0xb0] sm:$0xff]  ;;  %v223_v53 = vld [vmem:[%s1830_s28 + $0xb8] sm:$0xff] }
  0x23   : > { %1662 = vmatprep.mubr.msk.f32.mxu1 %vm268_vm3, %v238_v20  ;;  %v253_v50 = vld [vmem:[%s1830_s28 + $0x1a8] sm:$0xff]  ;;  %v254_v52 = vld [vmem:[%s1830_s28 + $0x1b0] sm:$0xff]  ;;  %v255_v54 = vld [vmem:[%s1830_s28 + $0x1b8] sm:$0xff] }
  0x24   : > { %v224_v55 = vld [vmem:[%s1830_s28 + $0xc0] sm:$0xff]  ;;  %v225_v57 = vld [vmem:[%s1830_s28 + $0xc8] sm:$0xff]  ;;  %v226_v59 = vld [vmem:[%s1830_s28 + $0xd0] sm:$0xff] }
  0x25   : > { %1615 = vmatmul.mubr.msk.f32.gmra.mrb[6].mxu0 %vm268_vm3, %v207_v21  ;;  %v256_v56 = vld [vmem:[%s1830_s28 + $0x1c0] sm:$0xff]  ;;  %v257_v58 = vld [vmem:[%s1830_s28 + $0x1c8] sm:$0xff]  ;;  %v258_v60 = vld [vmem:[%s1830_s28 + $0x1d0] sm:$0xff] }
  0x26   : > { %1663 = vmatmul.mubr.msk.f32.gmra.mrb[6].mxu1 %vm268_vm3, %v239_v22  ;;  %1617 = vmatprep.mubr.msk.f32.mxu0 %vm268_vm3, %v208_v23  ;;  %v227_v61 = vld [vmem:[%s1830_s28 + $0xd8] sm:$0xff]  ;;  %v228_v63 = vld [vmem:[%s1830_s28 + $0xe0] sm:$0xff]  ;;  %v229_v1 = vld [vmem:[%s1830_s28 + $0xe8] sm:$0xff] }
  0x27   : > { %1665 = vmatprep.mubr.msk.f32.mxu1 %vm268_vm3, %v240_v24  ;;  %v259_v62 = vld [vmem:[%s1830_s28 + $0x1d8] sm:$0xff]  ;;  %v260_v0 = vld [vmem:[%s1830_s28 + $0x1e0] sm:$0xff]  ;;  %v261_v2 = vld [vmem:[%s1830_s28 + $0x1e8] sm:$0xff] }
  0x28   : > { %v230_v3 = vld [vmem:[%s1830_s28 + $0xf0] sm:$0xff]  ;;  %v231_v5 = vld [vmem:[%s1830_s28 + $0xf8] sm:$0xff] }
  0x29   : > { %1618 = vmatmul.mubr.msk.f32.gmra.mrb[8].mxu0 %vm268_vm3, %v209_v25  ;;  %v262_v4 = vld [vmem:[%s1830_s28 + $0x1f0] sm:$0xff]  ;;  %v263_v6 = vld [vmem:[%s1830_s28 + $0x1f8] sm:$0xff] }
  0x2a   : > { %1666 = vmatmul.mubr.msk.f32.gmra.mrb[8].mxu1 %vm268_vm3, %v241_v26  ;;  %1620 = vmatprep.mubr.msk.f32.mxu0 %vm268_vm3, %v210_v27 }
  0x2b   : > { %1668 = vmatprep.mubr.msk.f32.mxu1 %vm268_vm3, %v242_v28 }
  0x2d   : > { %1621 = vmatmul.mubr.msk.f32.gmra.mrb[10].mxu0 %vm268_vm3, %v211_v29 }
  0x2e   : > { %1669 = vmatmul.mubr.msk.f32.gmra.mrb[10].mxu1 %vm268_vm3, %v243_v30  ;;  %1623 = vmatprep.mubr.msk.f32.mxu0 %vm268_vm3, %v212_v31 }
  0x2f   : > { %1671 = vmatprep.mubr.msk.f32.mxu1 %vm268_vm3, %v244_v32 }
  0x31   : > { %1624 = vmatmul.mubr.msk.f32.gmra.mrb[12].mxu0 %vm268_vm3, %v213_v33 }
  0x32   : > { %1672 = vmatmul.mubr.msk.f32.gmra.mrb[12].mxu1 %vm268_vm3, %v245_v34  ;;  %1626 = vmatprep.mubr.msk.f32.mxu0 %vm268_vm3, %v214_v35 }
  0x33   : > { %1674 = vmatprep.mubr.msk.f32.mxu1 %vm268_vm3, %v246_v36 }
  0x35   : > { %1627 = vmatmul.mubr.msk.f32.gmra.mrb[14].mxu0 %vm268_vm3, %v215_v37 }
  0x36   : > { %1675 = vmatmul.mubr.msk.f32.gmra.mrb[14].mxu1 %vm268_vm3, %v247_v38  ;;  %1629 = vmatprep.mubr.msk.f32.mxu0 %vm268_vm3, %v216_v39 }
  0x37   : > { %1677 = vmatprep.mubr.msk.f32.mxu1 %vm268_vm3, %v248_v40 }
  0x39   : > { %1630 = vmatmul.mubr.msk.f32.gmra.mrb[16].mxu0 %vm268_vm3, %v217_v41 }
  0x3a   : > { %1678 = vmatmul.mubr.msk.f32.gmra.mrb[16].mxu1 %vm268_vm3, %v249_v42  ;;  %1632 = vmatprep.mubr.msk.f32.mxu0 %vm268_vm3, %v218_v43 }
  0x3b   : > { %1680 = vmatprep.mubr.msk.f32.mxu1 %vm268_vm3, %v250_v44 }
  0x3d   : > { %1633 = vmatmul.mubr.msk.f32.gmra.mrb[18].mxu0 %vm268_vm3, %v219_v45 }
  0x3e   : > { %1681 = vmatmul.mubr.msk.f32.gmra.mrb[18].mxu1 %vm268_vm3, %v251_v46  ;;  %1635 = vmatprep.mubr.msk.f32.mxu0 %vm268_vm3, %v220_v47 }
  0x3f   : > { %1683 = vmatprep.mubr.msk.f32.mxu1 %vm268_vm3, %v252_v48 }
  0x41   : > { %1636 = vmatmul.mubr.msk.f32.gmra.mrb[20].mxu0 %vm268_vm3, %v221_v49 }
  0x42   : > { %1684 = vmatmul.mubr.msk.f32.gmra.mrb[20].mxu1 %vm268_vm3, %v253_v50  ;;  %1638 = vmatprep.mubr.msk.f32.mxu0 %vm268_vm3, %v222_v51 }
  0x43   : > { %1686 = vmatprep.mubr.msk.f32.mxu1 %vm268_vm3, %v254_v52 }
  0x45   : > { %1639 = vmatmul.mubr.msk.f32.gmra.mrb[22].mxu0 %vm268_vm3, %v223_v53 }
  0x46   : > { %1687 = vmatmul.mubr.msk.f32.gmra.mrb[22].mxu1 %vm268_vm3, %v255_v54  ;;  %1641 = vmatprep.mubr.msk.f32.mxu0 %vm268_vm3, %v224_v55 }
  0x47   : > { %1689 = vmatprep.mubr.msk.f32.mxu1 %vm268_vm3, %v256_v56 }
  0x49   : > { %1642 = vmatmul.mubr.msk.f32.gmra.mrb[24].mxu0 %vm268_vm3, %v225_v57 }
  0x4a   : > { %1690 = vmatmul.mubr.msk.f32.gmra.mrb[24].mxu1 %vm268_vm3, %v257_v58  ;;  %1644 = vmatprep.mubr.msk.f32.mxu0 %vm268_vm3, %v226_v59 }
  0x4b   : > { %1692 = vmatprep.mubr.msk.f32.mxu1 %vm268_vm3, %v258_v60 }
  0x4d   : > { %1645 = vmatmul.mubr.msk.f32.gmra.mrb[26].mxu0 %vm268_vm3, %v227_v61 }
  0x4e   : > { %1693 = vmatmul.mubr.msk.f32.gmra.mrb[26].mxu1 %vm268_vm3, %v259_v62  ;;  %1647 = vmatprep.mubr.msk.f32.mxu0 %vm268_vm3, %v228_v63 }
  0x4f   : > { %1695 = vmatprep.mubr.msk.f32.mxu1 %vm268_vm3, %v260_v0 }
  0x51   : > { %1648 = vmatmul.mubr.msk.f32.gmra.mrb[28].mxu0 %vm268_vm3, %v229_v1 }
  0x52   : > { %1696 = vmatmul.mubr.msk.f32.gmra.mrb[28].mxu1 %vm268_vm3, %v261_v2  ;;  %1650 = vmatprep.mubr.msk.f32.mxu0 %vm268_vm3, %v230_v3 }
  0x53   : > { %1698 = vmatprep.mubr.msk.f32.mxu1 %vm268_vm3, %v262_v4 }
  0x55   : > { %1651 = vmatmul.mubr.msk.f32.gmra.mrb[30].mxu0 %vm268_vm3, %v231_v5 }
  0x56   : > { %1699 = vmatmul.mubr.msk.f32.gmra.mrb[30].mxu1 %vm268_vm3, %v263_v6 }
  0xec   : > { %v1964_v7 = vpop.f32.mrb[0].mxu0 }
  0xed   : > { %v1966_v8 = vpop.f32.mrb[0].mxu1  ;;  %v1968_v9 = vpop.f32.mrb[1].mxu0  ;;  %855 = vst [vmem:[#allocation2 + $0x8] sm:$0xff] (!%p1520_p5), %v1964_v7 }
  0xee   : > { %v1970_v10 = vpop.f32.mrb[1].mxu1  ;;  %854 = vst [vmem:[#allocation2] sm:$0xff] (!%p1520_p5), %v1968_v9  ;;  %887 = vst [vmem:[#allocation2 + $0x108] sm:$0xff] (!%p1520_p5), %v1966_v8 }
  0xef   : > { %886 = vst [vmem:[#allocation2 + $0x100] sm:$0xff] (!%p1520_p5), %v1970_v10 }
  0xf0   : > { %v1972_v11 = vpop.f32.mrb[2].mxu0 }
  0xf1   : > { %v1974_v12 = vpop.f32.mrb[2].mxu1  ;;  %v1976_v13 = vpop.f32.mrb[3].mxu0  ;;  %857 = vst [vmem:[#allocation2 + $0x18] sm:$0xff] (!%p1520_p5), %v1972_v11 }
  0xf2   : > { %v1978_v14 = vpop.f32.mrb[3].mxu1  ;;  %856 = vst [vmem:[#allocation2 + $0x10] sm:$0xff] (!%p1520_p5), %v1976_v13  ;;  %889 = vst [vmem:[#allocation2 + $0x118] sm:$0xff] (!%p1520_p5), %v1974_v12 }
  0xf3   : > { %888 = vst [vmem:[#allocation2 + $0x110] sm:$0xff] (!%p1520_p5), %v1978_v14 }
  0xf4   : > { %v1980_v15 = vpop.f32.mrb[4].mxu0 }
  0xf5   : > { %v1982_v16 = vpop.f32.mrb[4].mxu1  ;;  %v1984_v17 = vpop.f32.mrb[5].mxu0  ;;  %859 = vst [vmem:[#allocation2 + $0x28] sm:$0xff] (!%p1520_p5), %v1980_v15 }
  0xf6   : > { %v1986_v18 = vpop.f32.mrb[5].mxu1  ;;  %858 = vst [vmem:[#allocation2 + $0x20] sm:$0xff] (!%p1520_p5), %v1984_v17  ;;  %891 = vst [vmem:[#allocation2 + $0x128] sm:$0xff] (!%p1520_p5), %v1982_v16 }
  0xf7   : > { %890 = vst [vmem:[#allocation2 + $0x120] sm:$0xff] (!%p1520_p5), %v1986_v18 }
  0xf8   : > { %v1988_v19 = vpop.f32.mrb[6].mxu0 }
  0xf9   : > { %v1990_v20 = vpop.f32.mrb[6].mxu1  ;;  %v1992_v21 = vpop.f32.mrb[7].mxu0  ;;  %861 = vst [vmem:[#allocation2 + $0x38] sm:$0xff] (!%p1520_p5), %v1988_v19 }
  0xfa   : > { %v1994_v22 = vpop.f32.mrb[7].mxu1  ;;  %860 = vst [vmem:[#allocation2 + $0x30] sm:$0xff] (!%p1520_p5), %v1992_v21  ;;  %893 = vst [vmem:[#allocation2 + $0x138] sm:$0xff] (!%p1520_p5), %v1990_v20 }
  0xfb   : > { %892 = vst [vmem:[#allocation2 + $0x130] sm:$0xff] (!%p1520_p5), %v1994_v22 }
  0xfc   : > { %v1996_v23 = vpop.f32.mrb[8].mxu0 }
  0xfd   : > { %v1998_v24 = vpop.f32.mrb[8].mxu1  ;;  %v2000_v25 = vpop.f32.mrb[9].mxu0  ;;  %863 = vst [vmem:[#allocation2 + $0x48] sm:$0xff] (!%p1520_p5), %v1996_v23 }
  0xfe   : > { %v2002_v26 = vpop.f32.mrb[9].mxu1  ;;  %862 = vst [vmem:[#allocation2 + $0x40] sm:$0xff] (!%p1520_p5), %v2000_v25  ;;  %895 = vst [vmem:[#allocation2 + $0x148] sm:$0xff] (!%p1520_p5), %v1998_v24 }
  0xff   : > { %894 = vst [vmem:[#allocation2 + $0x140] sm:$0xff] (!%p1520_p5), %v2002_v26 }
 0x100   : > { %v2004_v27 = vpop.f32.mrb[10].mxu0 }
 0x101   : > { %v2006_v28 = vpop.f32.mrb[10].mxu1  ;;  %v2008_v29 = vpop.f32.mrb[11].mxu0  ;;  %865 = vst [vmem:[#allocation2 + $0x58] sm:$0xff] (!%p1520_p5), %v2004_v27 }
 0x102   : > { %v2010_v30 = vpop.f32.mrb[11].mxu1  ;;  %864 = vst [vmem:[#allocation2 + $0x50] sm:$0xff] (!%p1520_p5), %v2008_v29  ;;  %897 = vst [vmem:[#allocation2 + $0x158] sm:$0xff] (!%p1520_p5), %v2006_v28 }
 0x103   : > { %896 = vst [vmem:[#allocation2 + $0x150] sm:$0xff] (!%p1520_p5), %v2010_v30 }
 0x104   : > { %v2012_v31 = vpop.f32.mrb[12].mxu0 }
 0x105   : > { %v2014_v32 = vpop.f32.mrb[12].mxu1  ;;  %v2016_v33 = vpop.f32.mrb[13].mxu0  ;;  %867 = vst [vmem:[#allocation2 + $0x68] sm:$0xff] (!%p1520_p5), %v2012_v31 }
 0x106   : > { %v2018_v34 = vpop.f32.mrb[13].mxu1  ;;  %866 = vst [vmem:[#allocation2 + $0x60] sm:$0xff] (!%p1520_p5), %v2016_v33  ;;  %899 = vst [vmem:[#allocation2 + $0x168] sm:$0xff] (!%p1520_p5), %v2014_v32 }
 0x107   : > { %898 = vst [vmem:[#allocation2 + $0x160] sm:$0xff] (!%p1520_p5), %v2018_v34 }
 0x108   : > { %v2020_v35 = vpop.f32.mrb[14].mxu0 }
 0x109   : > { %v2022_v36 = vpop.f32.mrb[14].mxu1  ;;  %v2024_v37 = vpop.f32.mrb[15].mxu0  ;;  %869 = vst [vmem:[#allocation2 + $0x78] sm:$0xff] (!%p1520_p5), %v2020_v35 }
 0x10a   : > { %v2026_v38 = vpop.f32.mrb[15].mxu1  ;;  %868 = vst [vmem:[#allocation2 + $0x70] sm:$0xff] (!%p1520_p5), %v2024_v37  ;;  %901 = vst [vmem:[#allocation2 + $0x178] sm:$0xff] (!%p1520_p5), %v2022_v36 }
 0x10b   : > { %900 = vst [vmem:[#allocation2 + $0x170] sm:$0xff] (!%p1520_p5), %v2026_v38 }
 0x10c   : > { %v2028_v39 = vpop.f32.mrb[16].mxu0 }
 0x10d   : > { %v2030_v40 = vpop.f32.mrb[16].mxu1  ;;  %v2032_v41 = vpop.f32.mrb[17].mxu0  ;;  %871 = vst [vmem:[#allocation2 + $0x88] sm:$0xff] (!%p1520_p5), %v2028_v39 }
 0x10e   : > { %2514 = vst [vmem:[#allocation3_spill] sm:$0xff] %v2030_v40  ;;  %v2034_v42 = vpop.f32.mrb[17].mxu1  ;;  %870 = vst [vmem:[#allocation2 + $0x80] sm:$0xff] (!%p1520_p5), %v2032_v41 }
 0x10f   : > { %902 = vst [vmem:[#allocation2 + $0x180] sm:$0xff] (!%p1520_p5), %v2034_v42  ;;  %903 = vst [vmem:[#allocation2 + $0x188] sm:$0xff] (!%p1520_p5), %v2030_v40 }
 0x110   : > { %v2036_v43 = vpop.f32.mrb[18].mxu0 }
 0x111   : > { %v2038_v44 = vpop.f32.mrb[18].mxu1  ;;  %v2040_v45 = vpop.f32.mrb[19].mxu0  ;;  %873 = vst [vmem:[#allocation2 + $0x98] sm:$0xff] (!%p1520_p5), %v2036_v43 }
 0x112   : > { %2515 = vst [vmem:[#allocation4_spill] sm:$0xff] %v2038_v44  ;;  %v2042_v46 = vpop.f32.mrb[19].mxu1  ;;  %872 = vst [vmem:[#allocation2 + $0x90] sm:$0xff] (!%p1520_p5), %v2040_v45 }
 0x113   : > { %2516 = vst [vmem:[#allocation5_spill] sm:$0xff] %v2042_v46  ;;  %904 = vst [vmem:[#allocation2 + $0x190] sm:$0xff] (!%p1520_p5), %v2042_v46 }
 0x114   : > { %v2044_v47 = vpop.f32.mrb[20].mxu0  ;;  %905 = vst [vmem:[#allocation2 + $0x198] sm:$0xff] (!%p1520_p5), %v2038_v44 }
 0x115   : > { %v2046_v48 = vpop.f32.mrb[20].mxu1  ;;  %v2048_v49 = vpop.f32.mrb[21].mxu0  ;;  %875 = vst [vmem:[#allocation2 + $0xa8] sm:$0xff] (!%p1520_p5), %v2044_v47 }
 0x116   : > { %2517 = vst [vmem:[#allocation6_spill] sm:$0xff] %v2046_v48  ;;  %v2050_v50 = vpop.f32.mrb[21].mxu1  ;;  %874 = vst [vmem:[#allocation2 + $0xa0] sm:$0xff] (!%p1520_p5), %v2048_v49 }
 0x117   : > { %2518 = vst [vmem:[#allocation7_spill] sm:$0xff] %v2050_v50  ;;  %906 = vst [vmem:[#allocation2 + $0x1a0] sm:$0xff] (!%p1520_p5), %v2050_v50 }
 0x118   : > { %v2052_v51 = vpop.f32.mrb[22].mxu0  ;;  %907 = vst [vmem:[#allocation2 + $0x1a8] sm:$0xff] (!%p1520_p5), %v2046_v48 }
 0x119   : > { %v2054_v52 = vpop.f32.mrb[22].mxu1  ;;  %v2056_v53 = vpop.f32.mrb[23].mxu0  ;;  %877 = vst [vmem:[#allocation2 + $0xb8] sm:$0xff] (!%p1520_p5), %v2052_v51 }
 0x11a   : > { %2519 = vst [vmem:[#allocation8_spill] sm:$0xff] %v2054_v52  ;;  %v2058_v54 = vpop.f32.mrb[23].mxu1  ;;  %876 = vst [vmem:[#allocation2 + $0xb0] sm:$0xff] (!%p1520_p5), %v2056_v53 }
 0x11b   : > { %2520 = vst [vmem:[#allocation9_spill] sm:$0xff] %v2058_v54  ;;  %908 = vst [vmem:[#allocation2 + $0x1b0] sm:$0xff] (!%p1520_p5), %v2058_v54 }
 0x11c   : > { %v2060_v55 = vpop.f32.mrb[24].mxu0  ;;  %909 = vst [vmem:[#allocation2 + $0x1b8] sm:$0xff] (!%p1520_p5), %v2054_v52 }
 0x11d   : > { %v2062_v56 = vpop.f32.mrb[24].mxu1  ;;  %v2064_v57 = vpop.f32.mrb[25].mxu0  ;;  %879 = vst [vmem:[#allocation2 + $0xc8] sm:$0xff] (!%p1520_p5), %v2060_v55 }
 0x11e   : > { %2521 = vst [vmem:[#allocation10_spill] sm:$0xff] %v2062_v56  ;;  %v2066_v58 = vpop.f32.mrb[25].mxu1  ;;  %878 = vst [vmem:[#allocation2 + $0xc0] sm:$0xff] (!%p1520_p5), %v2064_v57 }
 0x11f   : > { %2522 = vst [vmem:[#allocation11_spill] sm:$0xff] %v2066_v58  ;;  %910 = vst [vmem:[#allocation2 + $0x1c0] sm:$0xff] (!%p1520_p5), %v2066_v58 }
 0x120   : > { %v2068_v59 = vpop.f32.mrb[26].mxu0  ;;  %911 = vst [vmem:[#allocation2 + $0x1c8] sm:$0xff] (!%p1520_p5), %v2062_v56 }
 0x121   : > { %v2070_v60 = vpop.f32.mrb[26].mxu1  ;;  %v2072_v61 = vpop.f32.mrb[27].mxu0  ;;  %881 = vst [vmem:[#allocation2 + $0xd8] sm:$0xff] (!%p1520_p5), %v2068_v59 }
 0x122   : > { %2523 = vst [vmem:[#allocation12_spill] sm:$0xff] %v2070_v60  ;;  %v2074_v62 = vpop.f32.mrb[27].mxu1  ;;  %880 = vst [vmem:[#allocation2 + $0xd0] sm:$0xff] (!%p1520_p5), %v2072_v61 }
 0x123   : > { %2524 = vst [vmem:[#allocation13_spill] sm:$0xff] %v2074_v62  ;;  %912 = vst [vmem:[#allocation2 + $0x1d0] sm:$0xff] (!%p1520_p5), %v2074_v62 }
 0x124   : > { %v2076_v63 = vpop.f32.mrb[28].mxu0  ;;  %913 = vst [vmem:[#allocation2 + $0x1d8] sm:$0xff] (!%p1520_p5), %v2070_v60 }
 0x125   : > { %v2078_v0 = vpop.f32.mrb[28].mxu1  ;;  %v2080_v1 = vpop.f32.mrb[29].mxu0  ;;  %853 = sbr.rel (%p1520_p5) target bundleno = 301 (0x12d), region = 36  ;;  %883 = vst [vmem:[#allocation2 + $0xe8] sm:$0xff] (!%p1520_p5), %v2076_v63 }
 0x126   : > { %2525 = vst [vmem:[#allocation14_spill] sm:$0xff] %v2078_v0  ;;  %v2082_v2 = vpop.f32.mrb[29].mxu1  ;;  %882 = vst [vmem:[#allocation2 + $0xe0] sm:$0xff] (!%p1520_p5), %v2080_v1 }
 0x127   : > { %2526 = vst [vmem:[#allocation15_spill] sm:$0xff] %v2082_v2  ;;  %914 = vst [vmem:[#allocation2 + $0x1e0] sm:$0xff] (!%p1520_p5), %v2082_v2 }
 0x128   : > { %v2084_v3 = vpop.f32.mrb[30].mxu0  ;;  %915 = vst [vmem:[#allocation2 + $0x1e8] sm:$0xff] (!%p1520_p5), %v2078_v0 }
 0x129   : > { %v2086_v4 = vpop.f32.mrb[30].mxu1  ;;  %v2088_v5 = vpop.f32.mrb[31].mxu0  ;;  %885 = vst [vmem:[#allocation2 + $0xf8] sm:$0xff] (!%p1520_p5), %v2084_v3 }
 0x12a   : > { %2527 = vst [vmem:[#allocation16_spill] sm:$0xff] %v2086_v4  ;;  %v2090_v6 = vpop.f32.mrb[31].mxu1  ;;  %884 = vst [vmem:[#allocation2 + $0xf0] sm:$0xff] (!%p1520_p5), %v2088_v5 }
 0x12b   : > { %2528 = vst [vmem:[#allocation17_spill] sm:$0xff] %v2090_v6  ;;  %916 = vst [vmem:[#allocation2 + $0x1f0] sm:$0xff] (!%p1520_p5), %v2090_v6 }
 0x12c   : > { %917 = vst [vmem:[#allocation2 + $0x1f8] sm:$0xff] %v2086_v4 }
 0x12d PF: > { %p1521_p6 = scmp.le.s32.totalorder %s1754_s12, 0 }
 0x12e   : > { %v922_v52 = vld [vmem:[#allocation2] sm:$0xff] (!%p1521_p6)  ;;  %v923_v58 = vld [vmem:[#allocation2 + $0x8] sm:$0xff] (!%p1521_p6)  ;;  %v924_v54 = vld [vmem:[#allocation2 + $0x10] sm:$0xff] (!%p1521_p6) }
 0x12f   : > { %921 = sbr.rel (%p1521_p6) target bundleno = 341 (0x155), region = 40  ;;  %v986_v56 = vmax.f32 (!%p1521_p6), %v922_v52, %v1968_v9  ;;  %v987_v62 = vmax.f32 (!%p1521_p6), %v923_v58, %v1964_v7  ;;  %v988_v60 = vmax.f32 (!%p1521_p6), %v924_v54, %v1976_v13  ;;  %v925_v2 = vld [vmem:[#allocation2 + $0x18] sm:$0xff] (!%p1521_p6)  ;;  %v926_v48 = vld [vmem:[#allocation2 + $0x20] sm:$0xff] (!%p1521_p6)  ;;  %v927_v0 = vld [vmem:[#allocation2 + $0x28] sm:$0xff] (!%p1521_p6) }
 0x130   : > { %v989_v6 = vmax.f32 (!%p1521_p6), %v925_v2, %v1972_v11  ;;  %v990_v4 = vmax.f32 (!%p1521_p6), %v926_v48, %v1984_v17  ;;  %v991_v50 = vmax.f32 (!%p1521_p6), %v927_v0, %v1980_v15  ;;  %v928_v44 = vld [vmem:[#allocation2 + $0x30] sm:$0xff] (!%p1521_p6)  ;;  %v929_v46 = vld [vmem:[#allocation2 + $0x38] sm:$0xff] (!%p1521_p6)  ;;  %v930_v40 = vld [vmem:[#allocation2 + $0x40] sm:$0xff] (!%p1521_p6) }
 0x131   : > { %1050 = vst [vmem:[#allocation2] sm:$0xff] (!%p1521_p6), %v986_v56  ;;  %1051 = vst [vmem:[#allocation2 + $0x8] sm:$0xff] (!%p1521_p6), %v987_v62  ;;  %v992_v9 = vmax.f32 (!%p1521_p6), %v928_v44, %v1992_v21  ;;  %v993_v7 = vmax.f32 (!%p1521_p6), %v929_v46, %v1988_v19  ;;  %v994_v13 = vmax.f32 (!%p1521_p6), %v930_v40, %v2000_v25  ;;  %v931_v52 = vld [vmem:[#allocation2 + $0x48] sm:$0xff] (!%p1521_p6)  ;;  %v932_v54 = vld [vmem:[#allocation2 + $0x50] sm:$0xff] (!%p1521_p6) }
 0x132   : > { %1052 = vst [vmem:[#allocation2 + $0x10] sm:$0xff] (!%p1521_p6), %v988_v60  ;;  %v933_v58 = vld [vmem:[#allocation2 + $0x58] sm:$0xff] (!%p1521_p6)  ;;  %1053 = vst [vmem:[#allocation2 + $0x18] sm:$0xff] (!%p1521_p6), %v989_v6  ;;  %v995_v11 = vmax.f32 (!%p1521_p6), %v931_v52, %v1996_v23  ;;  %v996_v15 = vmax.f32 (!%p1521_p6), %v932_v54, %v2008_v29  ;;  %v934_v48 = vld [vmem:[#allocation2 + $0x60] sm:$0xff] (!%p1521_p6) }
 0x133   : > { %1054 = vst [vmem:[#allocation2 + $0x20] sm:$0xff] (!%p1521_p6), %v990_v4  ;;  %1055 = vst [vmem:[#allocation2 + $0x28] sm:$0xff] (!%p1521_p6), %v991_v50  ;;  %v997_v17 = vmax.f32 (!%p1521_p6), %v933_v58, %v2004_v27  ;;  %v935_v56 = vld [vmem:[#allocation2 + $0x68] sm:$0xff] (!%p1521_p6)  ;;  %v936_v60 = vld [vmem:[#allocation2 + $0x70] sm:$0xff] (!%p1521_p6)  ;;  %v998_v19 = vmax.f32 (!%p1521_p6), %v934_v48, %v2016_v33 }
 0x134   : > { %1056 = vst [vmem:[#allocation2 + $0x30] sm:$0xff] (!%p1521_p6), %v992_v9  ;;  %1057 = vst [vmem:[#allocation2 + $0x38] sm:$0xff] (!%p1521_p6), %v993_v7  ;;  %v999_v21 = vmax.f32 (!%p1521_p6), %v935_v56, %v2012_v31  ;;  %v1000_v25 = vmax.f32 (!%p1521_p6), %v936_v60, %v2024_v37  ;;  %v937_v40 = vld [vmem:[#allocation2 + $0x78] sm:$0xff] (!%p1521_p6)  ;;  %v938_v44 = vld [vmem:[#allocation2 + $0x80] sm:$0xff] (!%p1521_p6) }
 0x135   : > { %1058 = vst [vmem:[#allocation2 + $0x40] sm:$0xff] (!%p1521_p6), %v994_v13  ;;  %v939_v46 = vld [vmem:[#allocation2 + $0x88] sm:$0xff] (!%p1521_p6)  ;;  %1059 = vst [vmem:[#allocation2 + $0x48] sm:$0xff] (!%p1521_p6), %v995_v11  ;;  %v1001_v23 = vmax.f32 (!%p1521_p6), %v937_v40, %v2020_v35  ;;  %v1002_v27 = vmax.f32 (!%p1521_p6), %v938_v44, %v2032_v41  ;;  %v940_v50 = vld [vmem:[#allocation2 + $0x90] sm:$0xff] (!%p1521_p6) }
 0x136   : > { %1060 = vst [vmem:[#allocation2 + $0x50] sm:$0xff] %v996_v15  ;;  %1061 = vst [vmem:[#allocation2 + $0x58] sm:$0xff] %v997_v17  ;;  %v1003_v29 = vmax.f32 %v939_v46, %v2028_v39  ;;  %v941_v62 = vld [vmem:[#allocation2 + $0x98] sm:$0xff]  ;;  %v942_v0 = vld [vmem:[#allocation2 + $0xa0] sm:$0xff]  ;;  %v1004_v31 = vmax.f32 %v940_v50, %v2040_v45 }
 0x137   : > { %1062 = vst [vmem:[#allocation2 + $0x60] sm:$0xff] %v998_v19  ;;  %1063 = vst [vmem:[#allocation2 + $0x68] sm:$0xff] %v999_v21  ;;  %v1005_v33 = vmax.f32 %v941_v62, %v2036_v43  ;;  %v1006_v37 = vmax.f32 %v942_v0, %v2048_v49  ;;  %v943_v2 = vld [vmem:[#allocation2 + $0xa8] sm:$0xff]  ;;  %v944_v4 = vld [vmem:[#allocation2 + $0xb0] sm:$0xff] }
 0x138   : > { %1064 = vst [vmem:[#allocation2 + $0x70] sm:$0xff] %v1000_v25  ;;  %v945_v6 = vld [vmem:[#allocation2 + $0xb8] sm:$0xff]  ;;  %1065 = vst [vmem:[#allocation2 + $0x78] sm:$0xff] %v1001_v23  ;;  %v1007_v35 = vmax.f32 %v943_v2, %v2044_v47  ;;  %v1008_v39 = vmax.f32 %v944_v4, %v2056_v53  ;;  %v946_v9 = vld [vmem:[#allocation2 + $0xc0] sm:$0xff] }
 0x139   : > { %1066 = vst [vmem:[#allocation2 + $0x80] sm:$0xff] %v1002_v27  ;;  %1067 = vst [vmem:[#allocation2 + $0x88] sm:$0xff] %v1003_v29  ;;  %v1009_v41 = vmax.f32 %v945_v6, %v2052_v51  ;;  %v947_v7 = vld [vmem:[#allocation2 + $0xc8] sm:$0xff]  ;;  %v948_v13 = vld [vmem:[#allocation2 + $0xd0] sm:$0xff]  ;;  %v1010_v43 = vmax.f32 %v946_v9, %v2064_v57 }
 0x13a   : > { %1068 = vst [vmem:[#allocation2 + $0x90] sm:$0xff] %v1004_v31  ;;  %1069 = vst [vmem:[#allocation2 + $0x98] sm:$0xff] %v1005_v33  ;;  %v1011_v45 = vmax.f32 %v947_v7, %v2060_v55  ;;  %v1012_v49 = vmax.f32 %v948_v13, %v2072_v61  ;;  %v949_v52 = vld [vmem:[#allocation2 + $0xd8] sm:$0xff]  ;;  %v950_v54 = vld [vmem:[#allocation2 + $0xe0] sm:$0xff] }
 0x13b   : > { %1070 = vst [vmem:[#allocation2 + $0xa0] sm:$0xff] %v1006_v37  ;;  %v951_v58 = vld [vmem:[#allocation2 + $0xe8] sm:$0xff]  ;;  %1071 = vst [vmem:[#allocation2 + $0xa8] sm:$0xff] %v1007_v35  ;;  %v1013_v47 = vmax.f32 %v949_v52, %v2068_v59  ;;  %v1014_v51 = vmax.f32 %v950_v54, %v2080_v1  ;;  %v952_v11 = vld [vmem:[#allocation2 + $0xf0] sm:$0xff] }
 0x13c   : > { %1072 = vst [vmem:[#allocation2 + $0xb0] sm:$0xff] %v1008_v39  ;;  %1073 = vst [vmem:[#allocation2 + $0xb8] sm:$0xff] %v1009_v41  ;;  %v1015_v53 = vmax.f32 %v951_v58, %v2076_v63  ;;  %v953_v15 = vld [vmem:[#allocation2 + $0xf8] sm:$0xff]  ;;  %v954_v17 = vld [vmem:[#allocation2 + $0x100] sm:$0xff]  ;;  %v1016_v55 = vmax.f32 %v952_v11, %v2088_v5 }
 0x13d   : > { %1074 = vst [vmem:[#allocation2 + $0xc0] sm:$0xff] %v1010_v43  ;;  %1075 = vst [vmem:[#allocation2 + $0xc8] sm:$0xff] %v1011_v45  ;;  %v1017_v57 = vmax.f32 %v953_v15, %v2084_v3  ;;  %v1018_v61 = vmax.f32 %v954_v17, %v1970_v10  ;;  %v955_v48 = vld [vmem:[#allocation2 + $0x108] sm:$0xff]  ;;  %v956_v56 = vld [vmem:[#allocation2 + $0x110] sm:$0xff] }
 0x13e   : > { %1076 = vst [vmem:[#allocation2 + $0xd0] sm:$0xff] %v1012_v49  ;;  %v957_v60 = vld [vmem:[#allocation2 + $0x118] sm:$0xff]  ;;  %1077 = vst [vmem:[#allocation2 + $0xd8] sm:$0xff] %v1013_v47  ;;  %v1019_v59 = vmax.f32 %v955_v48, %v1966_v8  ;;  %v1020_v63 = vmax.f32 %v956_v56, %v1978_v14  ;;  %v958_v19 = vld [vmem:[#allocation2 + $0x120] sm:$0xff] }
 0x13f   : > { %1078 = vst [vmem:[#allocation2 + $0xe0] sm:$0xff] %v1014_v51  ;;  %1079 = vst [vmem:[#allocation2 + $0xe8] sm:$0xff] %v1015_v53  ;;  %v1021_v1 = vmax.f32 %v957_v60, %v1974_v12  ;;  %v959_v21 = vld [vmem:[#allocation2 + $0x128] sm:$0xff]  ;;  %v960_v25 = vld [vmem:[#allocation2 + $0x130] sm:$0xff]  ;;  %v1022_v10 = vmax.f32 %v958_v19, %v1986_v18 }
 0x140   : > { %1080 = vst [vmem:[#allocation2 + $0xf0] sm:$0xff] %v1016_v55  ;;  %1081 = vst [vmem:[#allocation2 + $0xf8] sm:$0xff] %v1017_v57  ;;  %v1023_v3 = vmax.f32 %v959_v21, %v1982_v16  ;;  %v1024_v5 = vmax.f32 %v960_v25, %v1994_v22  ;;  %v961_v40 = vld [vmem:[#allocation2 + $0x138] sm:$0xff]  ;;  %v962_v44 = vld [vmem:[#allocation2 + $0x140] sm:$0xff] }
 0x141   : > { %1082 = vst [vmem:[#allocation2 + $0x100] sm:$0xff] %v1018_v61  ;;  %v963_v46 = vld [vmem:[#allocation2 + $0x148] sm:$0xff]  ;;  %1083 = vst [vmem:[#allocation2 + $0x108] sm:$0xff] %v1019_v59  ;;  %v1025_v8 = vmax.f32 %v961_v40, %v1990_v20  ;;  %v1026_v12 = vmax.f32 %v962_v44, %v2002_v26  ;;  %v964_v23 = vld [vmem:[#allocation2 + $0x150] sm:$0xff] }
 0x142   : > { %1084 = vst [vmem:[#allocation2 + $0x110] sm:$0xff] %v1020_v63  ;;  %1085 = vst [vmem:[#allocation2 + $0x118] sm:$0xff] %v1021_v1  ;;  %v1027_v14 = vmax.f32 %v963_v46, %v1998_v24  ;;  %v965_v27 = vld [vmem:[#allocation2 + $0x158] sm:$0xff]  ;;  %v966_v29 = vld [vmem:[#allocation2 + $0x160] sm:$0xff]  ;;  %v1028_v16 = vmax.f32 %v964_v23, %v2010_v30 }
 0x143   : > { %1086 = vst [vmem:[#allocation2 + $0x120] sm:$0xff] %v1022_v10  ;;  %1087 = vst [vmem:[#allocation2 + $0x128] sm:$0xff] %v1023_v3  ;;  %v1029_v18 = vmax.f32 %v965_v27, %v2006_v28  ;;  %v1030_v22 = vmax.f32 %v966_v29, %v2018_v34  ;;  %v967_v50 = vld [vmem:[#allocation2 + $0x168] sm:$0xff]  ;;  %v968_v62 = vld [vmem:[#allocation2 + $0x170] sm:$0xff] }
 0x144   : > { %1088 = vst [vmem:[#allocation2 + $0x130] sm:$0xff] %v1024_v5  ;;  %v969_v0 = vld [vmem:[#allocation2 + $0x178] sm:$0xff]  ;;  %1089 = vst [vmem:[#allocation2 + $0x138] sm:$0xff] %v1025_v8  ;;  %v1031_v20 = vmax.f32 %v967_v50, %v2014_v32  ;;  %v1032_v24 = vmax.f32 %v968_v62, %v2026_v38  ;;  %v970_v31 = vld [vmem:[#allocation2 + $0x180] sm:$0xff] }
 0x145   : > { %1090 = vst [vmem:[#allocation2 + $0x140] sm:$0xff] %v1026_v12  ;;  %1091 = vst [vmem:[#allocation2 + $0x148] sm:$0xff] %v1027_v14  ;;  %v1033_v26 = vmax.f32 %v969_v0, %v2022_v36  ;;  %v971_v33 = vld [vmem:[#allocation2 + $0x188] sm:$0xff]  ;;  %v972_v37 = vld [vmem:[#allocation2 + $0x190] sm:$0xff]  ;;  %v1034_v28 = vmax.f32 %v970_v31, %v2034_v42 }
 0x146   : > { %1092 = vst [vmem:[#allocation2 + $0x150] sm:$0xff] %v1028_v16  ;;  %1093 = vst [vmem:[#allocation2 + $0x158] sm:$0xff] %v1029_v18  ;;  %v2529_v30 = vld [vmem:[#allocation3_spill] sm:$0xff]  ;;  %v2530_v2 = vld [vmem:[#allocation5_spill] sm:$0xff] }
 0x147   : > { %1094 = vst [vmem:[#allocation2 + $0x160] sm:$0xff] %v1030_v22  ;;  %v1035_v34 = vmax.f32 %v971_v33, %v2529_v30  ;;  %v1036_v4 = vmax.f32 %v972_v37, %v2530_v2  ;;  %v973_v6 = vld [vmem:[#allocation2 + $0x198] sm:$0xff]  ;;  %v974_v35 = vld [vmem:[#allocation2 + $0x1a0] sm:$0xff]  ;;  %v975_v39 = vld [vmem:[#allocation2 + $0x1a8] sm:$0xff] }
 0x148   : > { %1095 = vst [vmem:[#allocation2 + $0x168] sm:$0xff] %v1031_v20  ;;  %1096 = vst [vmem:[#allocation2 + $0x170] sm:$0xff] %v1032_v24  ;;  %v2531_v32 = vld [vmem:[#allocation4_spill] sm:$0xff]  ;;  %v2532_v38 = vld [vmem:[#allocation7_spill] sm:$0xff] }
 0x149   : > { %1097 = vst [vmem:[#allocation2 + $0x178] sm:$0xff] %v1033_v26  ;;  %v1037_v36 = vmax.f32 %v973_v6, %v2531_v32  ;;  %v1038_v41 = vmax.f32 %v974_v35, %v2532_v38  ;;  %v2533_v9 = vld [vmem:[#allocation6_spill] sm:$0xff]  ;;  %v976_v13 = vld [vmem:[#allocation2 + $0x1b0] sm:$0xff]  ;;  %v978_v45 = vld [vmem:[#allocation2 + $0x1c0] sm:$0xff] }
 0x14a   : > { %v1039_v7 = vmax.f32 %v975_v39, %v2533_v9  ;;  %v977_v43 = vld [vmem:[#allocation2 + $0x1b8] sm:$0xff]  ;;  %1098 = vst [vmem:[#allocation2 + $0x180] sm:$0xff] %v1034_v28  ;;  %1099 = vst [vmem:[#allocation2 + $0x188] sm:$0xff] %v1035_v34  ;;  %v2534_v42 = vld [vmem:[#allocation9_spill] sm:$0xff] }
 0x14b   : > { %1100 = vst [vmem:[#allocation2 + $0x190] sm:$0xff] %v1036_v4  ;;  %v1040_v49 = vmax.f32 %v976_v13, %v2534_v42  ;;  %v2535_v52 = vld [vmem:[#allocation8_spill] sm:$0xff]  ;;  %v2536_v58 = vld [vmem:[#allocation11_spill] sm:$0xff]  ;;  %v980_v53 = vld [vmem:[#allocation2 + $0x1d0] sm:$0xff] }
 0x14c   : > { %v1041_v54 = vmax.f32 %v977_v43, %v2535_v52  ;;  %v1042_v47 = vmax.f32 %v978_v45, %v2536_v58  ;;  %v979_v51 = vld [vmem:[#allocation2 + $0x1c8] sm:$0xff]  ;;  %v981_v11 = vld [vmem:[#allocation2 + $0x1d8] sm:$0xff]  ;;  %1101 = vst [vmem:[#allocation2 + $0x198] sm:$0xff] %v1037_v36  ;;  %1102 = vst [vmem:[#allocation2 + $0x1a0] sm:$0xff] %v1038_v41 }
 0x14d   : > { %1103 = vst [vmem:[#allocation2 + $0x1a8] sm:$0xff] %v1039_v7  ;;  %v2537_v15 = vld [vmem:[#allocation10_spill] sm:$0xff]  ;;  %v2538_v55 = vld [vmem:[#allocation13_spill] sm:$0xff]  ;;  %v2539_v61 = vld [vmem:[#allocation12_spill] sm:$0xff] }
 0x14e   : > { %v1043_v17 = vmax.f32 %v979_v51, %v2537_v15  ;;  %v1044_v57 = vmax.f32 %v980_v53, %v2538_v55  ;;  %v1045_v48 = vmax.f32 %v981_v11, %v2539_v61  ;;  %v982_v56 = vld [vmem:[#allocation2 + $0x1e0] sm:$0xff]  ;;  %v983_v60 = vld [vmem:[#allocation2 + $0x1e8] sm:$0xff]  ;;  %v984_v59 = vld [vmem:[#allocation2 + $0x1f0] sm:$0xff]  ;;  %1104 = vst [vmem:[#allocation2 + $0x1b0] sm:$0xff] %v1040_v49 }
 0x14f   : > { %1105 = vst [vmem:[#allocation2 + $0x1b8] sm:$0xff] %v1041_v54  ;;  %1106 = vst [vmem:[#allocation2 + $0x1c0] sm:$0xff] %v1042_v47  ;;  %v2540_v63 = vld [vmem:[#allocation15_spill] sm:$0xff]  ;;  %v2541_v19 = vld [vmem:[#allocation14_spill] sm:$0xff] }
 0x150   : > { %v1046_v1 = vmax.f32 %v982_v56, %v2540_v63  ;;  %v1047_v21 = vmax.f32 %v983_v60, %v2541_v19  ;;  %v2542_v25 = vld [vmem:[#allocation17_spill] sm:$0xff]  ;;  %v985_v3 = vld [vmem:[#allocation2 + $0x1f8] sm:$0xff]  ;;  %1107 = vst [vmem:[#allocation2 + $0x1c8] sm:$0xff] %v1043_v17  ;;  %1108 = vst [vmem:[#allocation2 + $0x1d0] sm:$0xff] %v1044_v57 }
 0x151   : > { %v1048_v10 = vmax.f32 %v984_v59, %v2542_v25  ;;  %1109 = vst [vmem:[#allocation2 + $0x1d8] sm:$0xff] %v1045_v48  ;;  %v2543_v5 = vld [vmem:[#allocation16_spill] sm:$0xff] }
 0x152   : > { %v1049_v40 = vmax.f32 %v985_v3, %v2543_v5  ;;  %1110 = vst [vmem:[#allocation2 + $0x1e0] sm:$0xff] %v1046_v1  ;;  %1111 = vst [vmem:[#allocation2 + $0x1e8] sm:$0xff] %v1047_v21 }
 0x153   : > { %1112 = vst [vmem:[#allocation2 + $0x1f0] sm:$0xff] %v1048_v10 }
 0x154   : > { %1113 = vst [vmem:[#allocation2 + $0x1f8] sm:$0xff] %v1049_v40 }
 0x155 PF: > { %p1522_p7 = scmp.ne.s32.totalorder %s1754_s12, 3 }
 0x156   : > { %v2226_v46 = vld [vmem:[%s2495_s2] ss:$0 sm:$0xff] (!%p1522_p7)  ;;  %v1131_v39 = vld [vmem:[#allocation2 + $0x68] sm:$0xff] (!%p1522_p7)  ;;  %v1132_v9 = vld [vmem:[#allocation2 + $0x70] sm:$0xff] (!%p1522_p7) }
 0x157   : > { %1117 = sbr.rel (%p1522_p7) target bundleno = 380 (0x17c), region = 44  ;;  %v1118_v44 = vld [vmem:[#allocation2] sm:$0xff] (!%p1522_p7)  ;;  %v1119_v8 = vld [vmem:[#allocation2 + $0x8] sm:$0xff] (!%p1522_p7)  ;;  %v1133_v7 = vld [vmem:[#allocation2 + $0x78] sm:$0xff] (!%p1522_p7)  ;;  %v1202_v47 = vadd.f32 (!%p1522_p7), %v2226_v46, %v1131_v39  ;;  %v1203_v51 = vadd.f32 (!%p1522_p7), %v2226_v46, %v1132_v9 }
 0x158   : > { %v1189_v12 = vadd.f32 (!%p1522_p7), %v2226_v46, %v1118_v44  ;;  %v1190_v14 = vadd.f32 (!%p1522_p7), %v2226_v46, %v1119_v8  ;;  %v1120_v23 = vld [vmem:[#allocation2 + $0x10] sm:$0xff] (!%p1522_p7)  ;;  %v1121_v27 = vld [vmem:[#allocation2 + $0x18] sm:$0xff] (!%p1522_p7)  ;;  %v1130_v35 = vld [vmem:[#allocation2 + $0x60] sm:$0xff] (!%p1522_p7)  ;;  %v1204_v61 = vadd.f32 (!%p1522_p7), %v2226_v46, %v1133_v7 }
 0x159   : > { %v1122_v29 = vld [vmem:[#allocation2 + $0x20] sm:$0xff] (!%p1522_p7)  ;;  %v1191_v16 = vadd.f32 (!%p1522_p7), %v2226_v46, %v1120_v23  ;;  %v1192_v18 = vadd.f32 (!%p1522_p7), %v2226_v46, %v1121_v27  ;;  %v1123_v50 = vld [vmem:[#allocation2 + $0x28] sm:$0xff] (!%p1522_p7)  ;;  %v1201_v42 = vadd.f32 (!%p1522_p7), %v2226_v46, %v1130_v35  ;;  %v1136_v53 = vld [vmem:[#allocation2 + $0x90] sm:$0xff] (!%p1522_p7)  ;;  %v1266_v60 = vmax.f32 (!%p1522_p7), %v1202_v47, 0.0 }
 0x15a   : > { %v1193_v22 = vadd.f32 (!%p1522_p7), %v2226_v46, %v1122_v29  ;;  %v1124_v62 = vld [vmem:[#allocation2 + $0x30] sm:$0xff] (!%p1522_p7)  ;;  %v1125_v0 = vld [vmem:[#allocation2 + $0x38] sm:$0xff] (!%p1522_p7)  ;;  %v1253_v20 = vmax.f32 (!%p1522_p7), %v1189_v12, 0.0  ;;  %v1254_v24 = vmax.f32 (!%p1522_p7), %v1190_v14, 0.0  ;;  %v1194_v26 = vadd.f32 (!%p1522_p7), %v2226_v46, %v1123_v50  ;;  %v1134_v49 = vld [vmem:[#allocation2 + $0x80] sm:$0xff] (!%p1522_p7) }
 0x15b   : > { %v1195_v31 = vadd.f32 (!%p1522_p7), %v2226_v46, %v1124_v62  ;;  %v1126_v33 = vld [vmem:[#allocation2 + $0x40] sm:$0xff] (!%p1522_p7)  ;;  %v1127_v37 = vld [vmem:[#allocation2 + $0x48] sm:$0xff] (!%p1522_p7)  ;;  %v1255_v30 = vmax.f32 (!%p1522_p7), %v1191_v16, 0.0  ;;  %v1256_v34 = vmax.f32 (!%p1522_p7), %v1192_v18, 0.0  ;;  %v1196_v4 = vadd.f32 (!%p1522_p7), %v2226_v46, %v1125_v0  ;;  %v1137_v11 = vld [vmem:[#allocation2 + $0x98] sm:$0xff] (!%p1522_p7)  ;;  %1330 = vst [vmem:[%s2496_s3 + $0x68] sm:$0xff] (!%p1522_p7), %v1266_v60 }
 0x15c   : > { %v1128_v28 = vld [vmem:[#allocation2 + $0x50] sm:$0xff] (!%p1522_p7)  ;;  %v1257_v2 = vmax.f32 (!%p1522_p7), %v1193_v22, 0.0  ;;  %v1129_v6 = vld [vmem:[#allocation2 + $0x58] sm:$0xff] (!%p1522_p7)  ;;  %1317 = vst [vmem:[%s2496_s3] sm:$0xff] (!%p1522_p7), %v1253_v20  ;;  %1318 = vst [vmem:[%s2496_s3 + $0x8] sm:$0xff] (!%p1522_p7), %v1254_v24  ;;  %v1258_v32 = vmax.f32 (!%p1522_p7), %v1194_v26, 0.0  ;;  %v1197_v38 = vadd.f32 (!%p1522_p7), %v2226_v46, %v1126_v33  ;;  %v1198_v41 = vadd.f32 (!%p1522_p7), %v2226_v46, %v1127_v37 }
 0x15d   : > { %v1259_v36 = vmax.f32 (!%p1522_p7), %v1195_v31, 0.0  ;;  %1319 = vst [vmem:[%s2496_s3 + $0x10] sm:$0xff] (!%p1522_p7), %v1255_v30  ;;  %1320 = vst [vmem:[%s2496_s3 + $0x18] sm:$0xff] (!%p1522_p7), %v1256_v34  ;;  %v1260_v13 = vmax.f32 (!%p1522_p7), %v1196_v4, 0.0  ;;  %v1199_v43 = vadd.f32 (!%p1522_p7), %v2226_v46, %v1128_v28  ;;  %v1200_v45 = vadd.f32 (!%p1522_p7), %v2226_v46, %v1129_v6  ;;  %v1135_v52 = vld [vmem:[#allocation2 + $0x88] sm:$0xff] (!%p1522_p7)  ;;  %v1138_v15 = vld [vmem:[#allocation2 + $0xa0] sm:$0xff] (!%p1522_p7) }
 0x15e   : > { %1321 = vst [vmem:[%s2496_s3 + $0x20] sm:$0xff] %v1257_v2  ;;  %1322 = vst [vmem:[%s2496_s3 + $0x28] sm:$0xff] %v1258_v32  ;;  %v1261_v54 = vmax.f32 %v1197_v38, 0.0  ;;  %v1262_v58 = vmax.f32 %v1198_v41, 0.0  ;;  %v1265_v57 = vmax.f32 %v1201_v42, 0.0  ;;  %v1139_v48 = vld [vmem:[#allocation2 + $0xa8] sm:$0xff]  ;;  %v1205_v63 = vadd.f32 %v2226_v46, %v1134_v49 }
 0x15f   : > { %1323 = vst [vmem:[%s2496_s3 + $0x30] sm:$0xff] %v1259_v36  ;;  %1324 = vst [vmem:[%s2496_s3 + $0x38] sm:$0xff] %v1260_v13  ;;  %v1263_v17 = vmax.f32 %v1199_v43, 0.0  ;;  %v1264_v55 = vmax.f32 %v1200_v45, 0.0  ;;  %v1140_v56 = vld [vmem:[#allocation2 + $0xb0] sm:$0xff]  ;;  %v1267_v59 = vmax.f32 %v1203_v51, 0.0  ;;  %v1206_v1 = vadd.f32 %v2226_v46, %v1135_v52 }
 0x160   : > { %1325 = vst [vmem:[%s2496_s3 + $0x40] sm:$0xff] %v1261_v54  ;;  %1326 = vst [vmem:[%s2496_s3 + $0x48] sm:$0xff] %v1262_v58  ;;  %v1141_v19 = vld [vmem:[#allocation2 + $0xb8] sm:$0xff]  ;;  %v1268_v21 = vmax.f32 %v1204_v61, 0.0  ;;  %v1207_v25 = vadd.f32 %v2226_v46, %v1136_v53  ;;  %v1208_v10 = vadd.f32 %v2226_v46, %v1137_v11  ;;  %v1209_v3 = vadd.f32 %v2226_v46, %v1138_v15  ;;  %v1142_v5 = vld [vmem:[#allocation2 + $0xc0] sm:$0xff] }
 0x161   : > { %1327 = vst [vmem:[%s2496_s3 + $0x50] sm:$0xff] %v1263_v17  ;;  %1328 = vst [vmem:[%s2496_s3 + $0x58] sm:$0xff] %v1264_v55  ;;  %v1143_v40 = vld [vmem:[#allocation2 + $0xc8] sm:$0xff]  ;;  %v1269_v44 = vmax.f32 %v1205_v63, 0.0  ;;  %v1270_v8 = vmax.f32 %v1206_v1, 0.0  ;;  %v1210_v12 = vadd.f32 %v2226_v46, %v1139_v48  ;;  %v1211_v14 = vadd.f32 %v2226_v46, %v1140_v56  ;;  %v1144_v23 = vld [vmem:[#allocation2 + $0xd0] sm:$0xff] }
 0x162   : > { %1329 = vst [vmem:[%s2496_s3 + $0x60] sm:$0xff] %v1265_v57  ;;  %1331 = vst [vmem:[%s2496_s3 + $0x70] sm:$0xff] %v1267_v59  ;;  %v1145_v27 = vld [vmem:[#allocation2 + $0xd8] sm:$0xff]  ;;  %v1146_v29 = vld [vmem:[#allocation2 + $0xe0] sm:$0xff]  ;;  %v1271_v16 = vmax.f32 %v1207_v25, 0.0  ;;  %v1272_v18 = vmax.f32 %v1208_v10, 0.0  ;;  %v1212_v50 = vadd.f32 %v2226_v46, %v1141_v19  ;;  %v1213_v26 = vadd.f32 %v2226_v46, %v1142_v5 }
 0x163   : > { %1332 = vst [vmem:[%s2496_s3 + $0x78] sm:$0xff] %v1268_v21  ;;  %v1273_v22 = vmax.f32 %v1209_v3, 0.0  ;;  %v1147_v62 = vld [vmem:[#allocation2 + $0xe8] sm:$0xff]  ;;  %v1148_v0 = vld [vmem:[#allocation2 + $0xf0] sm:$0xff]  ;;  %1333 = vst [vmem:[%s2496_s3 + $0x80] sm:$0xff] %v1269_v44  ;;  %v1274_v20 = vmax.f32 %v1210_v12, 0.0  ;;  %v1214_v31 = vadd.f32 %v2226_v46, %v1143_v40  ;;  %v1215_v28 = vadd.f32 %v2226_v46, %v1144_v23 }
 0x164   : > { %1334 = vst [vmem:[%s2496_s3 + $0x88] sm:$0xff] %v1270_v8  ;;  %v1275_v24 = vmax.f32 %v1211_v14, 0.0  ;;  %v1149_v33 = vld [vmem:[#allocation2 + $0xf8] sm:$0xff]  ;;  %1335 = vst [vmem:[%s2496_s3 + $0x90] sm:$0xff] %v1271_v16  ;;  %v1276_v37 = vmax.f32 %v1212_v50, 0.0  ;;  %v1216_v30 = vadd.f32 %v2226_v46, %v1145_v27  ;;  %v1217_v34 = vadd.f32 %v2226_v46, %v1146_v29  ;;  %v1150_v2 = vld [vmem:[#allocation2 + $0x100] sm:$0xff] }
 0x165   : > { %1336 = vst [vmem:[%s2496_s3 + $0x98] sm:$0xff] %v1272_v18  ;;  %1337 = vst [vmem:[%s2496_s3 + $0xa0] sm:$0xff] %v1273_v22  ;;  %v1151_v4 = vld [vmem:[#allocation2 + $0x108] sm:$0xff]  ;;  %v1277_v6 = vmax.f32 %v1213_v26, 0.0  ;;  %v1278_v35 = vmax.f32 %v1214_v31, 0.0  ;;  %v1218_v39 = vadd.f32 %v2226_v46, %v1147_v62  ;;  %v1219_v32 = vadd.f32 %v2226_v46, %v1148_v0  ;;  %v1152_v36 = vld [vmem:[#allocation2 + $0x110] sm:$0xff] }
 0x166   : > { %1338 = vst [vmem:[%s2496_s3 + $0xa8] sm:$0xff] %v1274_v20  ;;  %1339 = vst [vmem:[%s2496_s3 + $0xb0] sm:$0xff] %v1275_v24  ;;  %v1153_v38 = vld [vmem:[#allocation2 + $0x118] sm:$0xff]  ;;  %v1154_v41 = vld [vmem:[#allocation2 + $0x120] sm:$0xff]  ;;  %v1279_v9 = vmax.f32 %v1215_v28, 0.0  ;;  %v1280_v7 = vmax.f32 %v1216_v30, 0.0  ;;  %v1220_v43 = vadd.f32 %v2226_v46, %v1149_v33  ;;  %v1221_v54 = vadd.f32 %v2226_v46, %v1150_v2 }
 0x167   : > { %1340 = vst [vmem:[%s2496_s3 + $0xb8] sm:$0xff] %v1276_v37  ;;  %v1281_v13 = vmax.f32 %v1217_v34, 0.0  ;;  %v1155_v45 = vld [vmem:[#allocation2 + $0x128] sm:$0xff]  ;;  %v1156_v42 = vld [vmem:[#allocation2 + $0x130] sm:$0xff]  ;;  %1341 = vst [vmem:[%s2496_s3 + $0xc0] sm:$0xff] %v1277_v6  ;;  %v1282_v49 = vmax.f32 %v1218_v39, 0.0  ;;  %v1222_v58 = vadd.f32 %v2226_v46, %v1151_v4  ;;  %v1223_v53 = vadd.f32 %v2226_v46, %v1152_v36 }
 0x168   : > { %1342 = vst [vmem:[%s2496_s3 + $0xc8] sm:$0xff] %v1278_v35  ;;  %v1283_v52 = vmax.f32 %v1219_v32, 0.0  ;;  %v1157_v47 = vld [vmem:[#allocation2 + $0x138] sm:$0xff]  ;;  %1343 = vst [vmem:[%s2496_s3 + $0xd0] sm:$0xff] %v1279_v9  ;;  %v1284_v51 = vmax.f32 %v1220_v43, 0.0  ;;  %v1224_v11 = vadd.f32 %v2226_v46, %v1153_v38  ;;  %v1225_v15 = vadd.f32 %v2226_v46, %v1154_v41  ;;  %v1158_v17 = vld [vmem:[#allocation2 + $0x140] sm:$0xff] }
 0x169   : > { %1344 = vst [vmem:[%s2496_s3 + $0xd8] sm:$0xff] %v1280_v7  ;;  %1345 = vst [vmem:[%s2496_s3 + $0xe0] sm:$0xff] %v1281_v13  ;;  %v1159_v55 = vld [vmem:[#allocation2 + $0x148] sm:$0xff]  ;;  %v1285_v57 = vmax.f32 %v1221_v54, 0.0  ;;  %v1286_v61 = vmax.f32 %v1222_v58, 0.0  ;;  %v1226_v48 = vadd.f32 %v2226_v46, %v1155_v45  ;;  %v1227_v56 = vadd.f32 %v2226_v46, %v1156_v42  ;;  %v1160_v60 = vld [vmem:[#allocation2 + $0x150] sm:$0xff] }
 0x16a   : > { %1346 = vst [vmem:[%s2496_s3 + $0xe8] sm:$0xff] %v1282_v49  ;;  %1347 = vst [vmem:[%s2496_s3 + $0xf0] sm:$0xff] %v1283_v52  ;;  %v1161_v59 = vld [vmem:[#allocation2 + $0x158] sm:$0xff]  ;;  %v1162_v63 = vld [vmem:[#allocation2 + $0x160] sm:$0xff]  ;;  %v1287_v1 = vmax.f32 %v1223_v53, 0.0  ;;  %v1288_v19 = vmax.f32 %v1224_v11, 0.0  ;;  %v1228_v25 = vadd.f32 %v2226_v46, %v1157_v47  ;;  %v1229_v44 = vadd.f32 %v2226_v46, %v1158_v17 }
 0x16b   : > { %1348 = vst [vmem:[%s2496_s3 + $0xf8] sm:$0xff] %v1284_v51  ;;  %v1289_v21 = vmax.f32 %v1225_v15, 0.0  ;;  %v1163_v10 = vld [vmem:[#allocation2 + $0x168] sm:$0xff]  ;;  %v1164_v3 = vld [vmem:[#allocation2 + $0x170] sm:$0xff]  ;;  %1349 = vst [vmem:[%s2496_s3 + $0x100] sm:$0xff] %v1285_v57  ;;  %v1290_v5 = vmax.f32 %v1226_v48, 0.0  ;;  %v1230_v8 = vadd.f32 %v2226_v46, %v1159_v55  ;;  %v1231_v23 = vadd.f32 %v2226_v46, %v1160_v60 }
 0x16c   : > { %1350 = vst [vmem:[%s2496_s3 + $0x108] sm:$0xff] %v1286_v61  ;;  %v1291_v40 = vmax.f32 %v1227_v56, 0.0  ;;  %v1165_v12 = vld [vmem:[#allocation2 + $0x178] sm:$0xff]  ;;  %1351 = vst [vmem:[%s2496_s3 + $0x110] sm:$0xff] %v1287_v1  ;;  %v1292_v14 = vmax.f32 %v1228_v25, 0.0  ;;  %v1232_v27 = vadd.f32 %v2226_v46, %v1161_v59  ;;  %v1233_v29 = vadd.f32 %v2226_v46, %v1162_v63  ;;  %v1166_v16 = vld [vmem:[#allocation2 + $0x180] sm:$0xff] }
 0x16d   : > { %1352 = vst [vmem:[%s2496_s3 + $0x118] sm:$0xff] %v1288_v19  ;;  %1353 = vst [vmem:[%s2496_s3 + $0x120] sm:$0xff] %v1289_v21  ;;  %v1167_v18 = vld [vmem:[#allocation2 + $0x188] sm:$0xff]  ;;  %v1293_v22 = vmax.f32 %v1229_v44, 0.0  ;;  %v1294_v50 = vmax.f32 %v1230_v8, 0.0  ;;  %v1234_v62 = vadd.f32 %v2226_v46, %v1163_v10  ;;  %v1235_v0 = vadd.f32 %v2226_v46, %v1164_v3  ;;  %v1168_v20 = vld [vmem:[#allocation2 + $0x190] sm:$0xff] }
 0x16e   : > { %1354 = vst [vmem:[%s2496_s3 + $0x128] sm:$0xff] %v1290_v5  ;;  %1355 = vst [vmem:[%s2496_s3 + $0x130] sm:$0xff] %v1291_v40  ;;  %v1169_v24 = vld [vmem:[#allocation2 + $0x198] sm:$0xff]  ;;  %v1170_v26 = vld [vmem:[#allocation2 + $0x1a0] sm:$0xff]  ;;  %v1295_v31 = vmax.f32 %v1231_v23, 0.0  ;;  %v1296_v33 = vmax.f32 %v1232_v27, 0.0  ;;  %v1236_v28 = vadd.f32 %v2226_v46, %v1165_v12  ;;  %v1237_v6 = vadd.f32 %v2226_v46, %v1166_v16 }
 0x16f   : > { %1356 = vst [vmem:[%s2496_s3 + $0x138] sm:$0xff] %v1292_v14  ;;  %v1297_v37 = vmax.f32 %v1233_v29, 0.0  ;;  %v1171_v30 = vld [vmem:[#allocation2 + $0x1a8] sm:$0xff]  ;;  %v1172_v34 = vld [vmem:[#allocation2 + $0x1b0] sm:$0xff]  ;;  %1357 = vst [vmem:[%s2496_s3 + $0x140] sm:$0xff] %v1293_v22  ;;  %v1298_v2 = vmax.f32 %v1234_v62, 0.0  ;;  %v1238_v35 = vadd.f32 %v2226_v46, %v1167_v18  ;;  %v1239_v36 = vadd.f32 %v2226_v46, %v1168_v20 }
 0x170   : > { %1358 = vst [vmem:[%s2496_s3 + $0x148] sm:$0xff] %v1294_v50  ;;  %v1299_v4 = vmax.f32 %v1235_v0, 0.0  ;;  %v1173_v39 = vld [vmem:[#allocation2 + $0x1b8] sm:$0xff]  ;;  %1359 = vst [vmem:[%s2496_s3 + $0x150] sm:$0xff] %v1295_v31  ;;  %v1300_v32 = vmax.f32 %v1236_v28, 0.0  ;;  %v1240_v38 = vadd.f32 %v2226_v46, %v1169_v24  ;;  %v1241_v41 = vadd.f32 %v2226_v46, %v1170_v26  ;;  %v1174_v9 = vld [vmem:[#allocation2 + $0x1c0] sm:$0xff] }
 0x171   : > { %1360 = vst [vmem:[%s2496_s3 + $0x158] sm:$0xff] %v1296_v33  ;;  %1361 = vst [vmem:[%s2496_s3 + $0x160] sm:$0xff] %v1297_v37  ;;  %v1175_v7 = vld [vmem:[#allocation2 + $0x1c8] sm:$0xff]  ;;  %v1301_v13 = vmax.f32 %v1237_v6, 0.0  ;;  %v1302_v43 = vmax.f32 %v1238_v35, 0.0  ;;  %v1242_v45 = vadd.f32 %v2226_v46, %v1171_v30  ;;  %v1243_v42 = vadd.f32 %v2226_v46, %v1172_v34  ;;  %v1176_v49 = vld [vmem:[#allocation2 + $0x1d0] sm:$0xff] }
 0x172   : > { %1362 = vst [vmem:[%s2496_s3 + $0x168] sm:$0xff] %v1298_v2  ;;  %1363 = vst [vmem:[%s2496_s3 + $0x170] sm:$0xff] %v1299_v4  ;;  %v1177_v52 = vld [vmem:[#allocation2 + $0x1d8] sm:$0xff]  ;;  %v1178_v54 = vld [vmem:[#allocation2 + $0x1e0] sm:$0xff]  ;;  %v1303_v58 = vmax.f32 %v1239_v36, 0.0  ;;  %v1304_v47 = vmax.f32 %v1240_v38, 0.0  ;;  %v1244_v53 = vadd.f32 %v2226_v46, %v1173_v39  ;;  %v1245_v57 = vadd.f32 %v2226_v46, %v1174_v9 }
 0x173   : > { %1364 = vst [vmem:[%s2496_s3 + $0x178] sm:$0xff] %v1300_v32  ;;  %v1305_v51 = vmax.f32 %v1241_v41, 0.0  ;;  %v1179_v11 = vld [vmem:[#allocation2 + $0x1e8] sm:$0xff]  ;;  %v1180_v15 = vld [vmem:[#allocation2 + $0x1f0] sm:$0xff]  ;;  %1365 = vst [vmem:[%s2496_s3 + $0x180] sm:$0xff] %v1301_v13  ;;  %v1306_v17 = vmax.f32 %v1242_v45, 0.0  ;;  %v1246_v61 = vadd.f32 %v2226_v46, %v1175_v7  ;;  %v1247_v60 = vadd.f32 %v2226_v46, %v1176_v49 }
 0x174   : > { %1366 = vst [vmem:[%s2496_s3 + $0x188] sm:$0xff] %v1302_v43  ;;  %v1307_v55 = vmax.f32 %v1243_v42, 0.0  ;;  %v1181_v48 = vld [vmem:[#allocation2 + $0x1f8] sm:$0xff]  ;;  %1367 = vst [vmem:[%s2496_s3 + $0x190] sm:$0xff] %v1303_v58  ;;  %v1308_v56 = vmax.f32 %v1244_v53, 0.0  ;;  %v1248_v59 = vadd.f32 %v2226_v46, %v1177_v52  ;;  %v1249_v63 = vadd.f32 %v2226_v46, %v1178_v54 }
 0x175   : > { %1368 = vst [vmem:[%s2496_s3 + $0x198] sm:$0xff] %v1304_v47  ;;  %1369 = vst [vmem:[%s2496_s3 + $0x1a0] sm:$0xff] %v1305_v51  ;;  %v1309_v1 = vmax.f32 %v1245_v57, 0.0  ;;  %v1310_v19 = vmax.f32 %v1246_v61, 0.0  ;;  %v1250_v21 = vadd.f32 %v2226_v46, %v1179_v11  ;;  %v1251_v25 = vadd.f32 %v2226_v46, %v1180_v15 }
 0x176   : > { %1370 = vst [vmem:[%s2496_s3 + $0x1a8] sm:$0xff] %v1306_v17  ;;  %1371 = vst [vmem:[%s2496_s3 + $0x1b0] sm:$0xff] %v1307_v55  ;;  %v1311_v10 = vmax.f32 %v1247_v60, 0.0  ;;  %v1312_v3 = vmax.f32 %v1248_v59, 0.0  ;;  %v1313_v5 = vmax.f32 %v1249_v63, 0.0  ;;  %v1252_v40 = vadd.f32 %v2226_v46, %v1181_v48 }
 0x177   : > { %1372 = vst [vmem:[%s2496_s3 + $0x1b8] sm:$0xff] %v1308_v56  ;;  %1373 = vst [vmem:[%s2496_s3 + $0x1c0] sm:$0xff] %v1309_v1  ;;  %v1314_v44 = vmax.f32 %v1250_v21, 0.0  ;;  %v1315_v8 = vmax.f32 %v1251_v25, 0.0 }
 0x178   : > { %1374 = vst [vmem:[%s2496_s3 + $0x1c8] sm:$0xff] %v1310_v19  ;;  %1375 = vst [vmem:[%s2496_s3 + $0x1d0] sm:$0xff] %v1311_v10  ;;  %v1316_v46 = vmax.f32 %v1252_v40, 0.0 }
 0x179   : > { %1376 = vst [vmem:[%s2496_s3 + $0x1d8] sm:$0xff] %v1312_v3  ;;  %1377 = vst [vmem:[%s2496_s3 + $0x1e0] sm:$0xff] %v1313_v5 }
 0x17a   : > { %1378 = vst [vmem:[%s2496_s3 + $0x1e8] sm:$0xff] %v1314_v44  ;;  %1379 = vst [vmem:[%s2496_s3 + $0x1f0] sm:$0xff] %v1315_v8 }
 0x17b   : > { %1380 = vst [vmem:[%s2496_s3 + $0x1f8] sm:$0xff] %v1316_v46 }
 0x17c PF: > { %s13_s14 = sadd.s32 1, %s1762_s14   ;;  %s2544_s12 = smov %s1758_s13 }
 0x17d   : > { %p10_p8 = scmp.ge.s32.totalorder %s13_s14, 6   ;;  %s2545_s13 = smov %s2547_s15 }
 0x17f   :  { %12 = sbr.rel (!%p10_p8) target bundleno = 2 (0x2), region = 74 }

// kernel: cnn_forward.5
= control target key start
LH: loop header
LB: loop body
LE: loop exit
PB: predicated region body
PF: predicated region fallthrough
CT: control target
= control target key end

     0   :  { %s1130_s12 = smov 0   ;;  %s1132_s13 = smov 0   ;;  %s1459_s0 = inlined_call_operand.vmem [shape: f32[4,128,288], index: 0, kind: input, shape index: {}]   ;;  %s1460_s1 = inlined_call_operand.vmem [shape: f32[288,128], index: 1, kind: input, shape index: {}]   ;;  %s1461_s2 = inlined_call_operand.vmem [shape: f32[1,128], index: 2, kind: input, shape index: {}]   ;;  %s1462_s3 = inlined_call_operand.vmem [shape: f32[128,128], index: 3, kind: output, shape index: {}]  }
   0x1   :  { %s1134_s14 = smov 0  }
   0x2 LB: > { %s22_s15 = sadd.s32 1, %s1104_s13  ;;  %p847_p0 = scmp.ge.s32.totalorder %s1108_s14, 1  ;;  %s1108_s14 = sphi %s1134_s14, %s13_s14   ;;  %s1104_s13 = sphi %s1132_s13, %s1464_s13   ;;  %s1100_s12 = sphi %s1130_s12, %s1463_s12  }
   0x3   : > { %p23_p1 = scmp.ge.s32.totalorder %s22_s15, 4  ;;  %p157_p2 = scmp.lt.s32.totalorder %s1108_s14, 5 }
   0x5   : > { %s1466_s15 = smov (%p23_p1, %s22_s15), 0  ;;  %p158_p3 = pnand %p847_p0, %p157_p2 }
   0x6   : > { %v267_v0 = vld [vmem:[%s1460_s1 + $0x80] sm:$0xff] (!%p158_p3)  ;;  %v268_v1 = vld [vmem:[%s1460_s1 + $0x88] sm:$0xff] (!%p158_p3)  ;;  %p187_p4 = scmp.lt.s32.totalorder (!%p158_p3), %s1100_s12, 3  ;;  %v269_v5 = vld [vmem:[%s1460_s1 + $0x90] sm:$0xff] (!%p158_p3)  ;;  %vm287_vm0 = vcmask (!%p158_p3), 261120   ;;  %p865_p5 = scmp.ne.s32.totalorder (!%p158_p3), %s1100_s12, 0 }
   0x7   : > { %161 = sbr.rel (%p158_p3) target bundleno = 331 (0x14b), region = 32  ;;  %v251_v2 = vld [vmem:[%s1460_s1] sm:$0xff] (!%p158_p3)  ;;  %v1005_v3 = vpack.c.bf16 (!%p158_p3), %v268_v1, %v267_v0  ;;  %v252_v4 = vld [vmem:[%s1460_s1 + $0x8] sm:$0xff] (!%p158_p3)  ;;  %v270_v6 = vld [vmem:[%s1460_s1 + $0x98] sm:$0xff] (!%p158_p3) }
   0x8   : > { %v1007_v7 = vpack.c.bf16 (!%p158_p3), %v252_v4, %v251_v2  ;;  %v1009_v8 = vpack.c.bf16 (!%p158_p3), %v270_v6, %v269_v5  ;;  %v253_v9 = vld [vmem:[%s1460_s1 + $0x10] sm:$0xff] (!%p158_p3)  ;;  %v254_v10 = vld [vmem:[%s1460_s1 + $0x18] sm:$0xff] (!%p158_p3)  ;;  %v271_v11 = vld [vmem:[%s1460_s1 + $0xa0] sm:$0xff] (!%p158_p3) }
   0x9   : > { %1006 = vmatprep.subr.bf16.mxu0 (!%p158_p3), %v1005_v3  ;;  %1045 = vmatprep.subr.bf16.mxu1 (!%p158_p3), %v1005_v3  ;;  %v272_v12 = vld [vmem:[%s1460_s1 + $0xa8] sm:$0xff] (!%p158_p3)  ;;  %v1011_v13 = vpack.c.bf16 (!%p158_p3), %v254_v10, %v253_v9  ;;  %v255_v15 = vld [vmem:[%s1460_s1 + $0x20] sm:$0xff] (!%p158_p3)  ;;  %v273_v17 = vld [vmem:[%s1460_s1 + $0xb0] sm:$0xff] (!%p158_p3) }
   0xa   : > { %1008 = vmatpush3.bf16.msra.mxu0 (!%p158_p3), %v1007_v7  ;;  %1053 = vmatpush3.bf16.msra.mxu1 (!%p158_p3), %v1007_v7  ;;  %v1013_v14 = vpack.c.bf16 (!%p158_p3), %v272_v12, %v271_v11  ;;  %v256_v16 = vld [vmem:[%s1460_s1 + $0x28] sm:$0xff] (!%p158_p3)  ;;  %v274_v18 = vld [vmem:[%s1460_s1 + $0xb8] sm:$0xff] (!%p158_p3)  ;;  %v257_v21 = vld [vmem:[%s1460_s1 + $0x30] sm:$0xff] (!%p158_p3) }
   0xb   : > { %1010 = vmatprep.subr.bf16.mxu0 (!%p158_p3), %v1009_v8  ;;  %1046 = vmatprep.subr.bf16.mxu1 (!%p158_p3), %v1009_v8  ;;  %v1015_v19 = vpack.c.bf16 (!%p158_p3), %v256_v16, %v255_v15  ;;  %v1017_v20 = vpack.c.bf16 (!%p158_p3), %v274_v18, %v273_v17  ;;  %v258_v22 = vld [vmem:[%s1460_s1 + $0x38] sm:$0xff] (!%p158_p3)  ;;  %v275_v23 = vld [vmem:[%s1460_s1 + $0xc0] sm:$0xff] (!%p158_p3)  ;;  %v276_v24 = vld [vmem:[%s1460_s1 + $0xc8] sm:$0xff] (!%p158_p3) }
   0xc   : > { %v1019_v27 = vpack.c.bf16 (!%p158_p3), %v258_v22, %v257_v21  ;;  %v1021_v28 = vpack.c.bf16 (!%p158_p3), %v276_v24, %v275_v23  ;;  %v259_v29 = vld [vmem:[%s1460_s1 + $0x40] sm:$0xff] (!%p158_p3)  ;;  %v260_v30 = vld [vmem:[%s1460_s1 + $0x48] sm:$0xff] (!%p158_p3)  ;;  %v277_v31 = vld [vmem:[%s1460_s1 + $0xd0] sm:$0xff] (!%p158_p3) }
   0xd   : > { %v278_v32 = vld [vmem:[%s1460_s1 + $0xd8] sm:$0xff] (!%p158_p3)  ;;  %v1023_v33 = vpack.c.bf16 (!%p158_p3), %v260_v30, %v259_v29  ;;  %v261_v35 = vld [vmem:[%s1460_s1 + $0x50] sm:$0xff] (!%p158_p3)  ;;  %v279_v37 = vld [vmem:[%s1460_s1 + $0xe0] sm:$0xff] (!%p158_p3) }
   0xe   : > { %s188_s7 = scalar_select %p187_p4, %s1100_s12, 3  ;;  %1012 = vmatpush3.bf16.msra.mxu0 %v1011_v13  ;;  %1054 = vmatpush3.bf16.msra.mxu1 %v1011_v13  ;;  %v1025_v34 = vpack.c.bf16 %v278_v32, %v277_v31  ;;  %v262_v36 = vld [vmem:[%s1460_s1 + $0x58] sm:$0xff]  ;;  %v280_v38 = vld [vmem:[%s1460_s1 + $0xe8] sm:$0xff]  ;;  %v263_v41 = vld [vmem:[%s1460_s1 + $0x60] sm:$0xff] }
   0xf   : > { %1014 = vmatprep.subr.bf16.mxu0 %v1013_v14  ;;  %1047 = vmatprep.subr.bf16.mxu1 %v1013_v14  ;;  %v1027_v39 = vpack.c.bf16 %v262_v36, %v261_v35  ;;  %v1029_v40 = vpack.c.bf16 %v280_v38, %v279_v37  ;;  %v264_v42 = vld [vmem:[%s1460_s1 + $0x68] sm:$0xff]  ;;  %v281_v43 = vld [vmem:[%s1460_s1 + $0xf0] sm:$0xff]  ;;  %v282_v44 = vld [vmem:[%s1460_s1 + $0xf8] sm:$0xff] }
  0x10   : > { %s1061_s10 = smul.u32 384, %s188_s7  ;;  %v1031_v45 = vpack.c.bf16 %v264_v42, %v263_v41  ;;  %v1033_v46 = vpack.c.bf16 %v282_v44, %v281_v43  ;;  %v265_v47 = vld [vmem:[%s1460_s1 + $0x70] sm:$0xff]  ;;  %v266_v48 = vld [vmem:[%s1460_s1 + $0x78] sm:$0xff]  ;;  %v283_v49 = vld [vmem:[%s1460_s1 + $0x100] sm:$0xff] }
  0x11   : > { %v284_v50 = vld [vmem:[%s1460_s1 + $0x108] sm:$0xff]  ;;  %v1035_v51 = vpack.c.bf16 %v266_v48, %v265_v47  ;;  %v285_v53 = vld [vmem:[%s1460_s1 + $0x110] sm:$0xff]  ;;  %v286_v54 = vld [vmem:[%s1460_s1 + $0x118] sm:$0xff] }
  0x12   : > { %s1197_s25 = scalar_lea.vmem %s1459_s0, %s1061_s10  ;;  %1016 = vmatpush3.bf16.msra.mxu0 %v1015_v19  ;;  %1055 = vmatpush3.bf16.msra.mxu1 %v1015_v19  ;;  %v1037_v52 = vpack.c.bf16 %v284_v50, %v283_v49  ;;  %v1041_v58 = vpack.c.bf16 %v286_v54, %v285_v53 }
  0x13   : > { %v204_v25 = vld [vmem:[%s1197_s25 + $0x8] sm:$0xff]  ;;  %1018 = vmatprep.subr.bf16.mxu0 %v1017_v20  ;;  %1048 = vmatprep.subr.bf16.mxu1 %v1017_v20  ;;  %v203_v55 = vld [vmem:[%s1197_s25] sm:$0xff]  ;;  %v206_v60 = vld [vmem:[%s1197_s25 + $0x18] sm:$0xff] }
  0x14   : > { %400 = vmatprep.mubr.f32.mxu0 %v204_v25  ;;  %v240_v26 = vld [vmem:[%s1197_s25 + $0x128] sm:$0xff]  ;;  %v239_v56 = vld [vmem:[%s1197_s25 + $0x120] sm:$0xff]  ;;  %v242_v61 = vld [vmem:[%s1197_s25 + $0x138] sm:$0xff] }
  0x15   : > { %460 = vmatprep.mubr.f32.mxu1 %v240_v26  ;;  %v207_v57 = vld [vmem:[%s1197_s25 + $0x20] sm:$0xff]  ;;  %v210_v62 = vld [vmem:[%s1197_s25 + $0x38] sm:$0xff]  ;;  %v209_v0 = vld [vmem:[%s1197_s25 + $0x30] sm:$0xff] }
  0x16   : > { %1020 = vmatpush3.bf16.msra.mxu0 %v1019_v27  ;;  %1056 = vmatpush3.bf16.msra.mxu1 %v1019_v27  ;;  %v243_v59 = vld [vmem:[%s1197_s25 + $0x140] sm:$0xff]  ;;  %v246_v63 = vld [vmem:[%s1197_s25 + $0x158] sm:$0xff]  ;;  %v245_v1 = vld [vmem:[%s1197_s25 + $0x150] sm:$0xff] }
  0x17   : > { %1022 = vmatprep.subr.bf16.mxu0 %v1021_v28  ;;  %1049 = vmatprep.subr.bf16.mxu1 %v1021_v28  ;;  %v213_v2 = vld [vmem:[%s1197_s25 + $0x50] sm:$0xff]  ;;  %v212_v4 = vld [vmem:[%s1197_s25 + $0x48] sm:$0xff]  ;;  %v215_v8 = vld [vmem:[%s1197_s25 + $0x60] sm:$0xff] }
  0x18   : > { %v249_v3 = vld [vmem:[%s1197_s25 + $0x170] sm:$0xff]  ;;  %v248_v5 = vld [vmem:[%s1197_s25 + $0x168] sm:$0xff]  ;;  %v219_v10 = vld [vmem:[%s1197_s25 + $0x80] sm:$0xff] }
  0x19   : > { %v216_v6 = vld [vmem:[%s1197_s25 + $0x68] sm:$0xff]  ;;  %v205_v7 = vld [vmem:[%s1197_s25 + $0x10] sm:$0xff]  ;;  %v211_v11 = vld [vmem:[%s1197_s25 + $0x40] sm:$0xff] }
  0x1a   : > { %1024 = vmatpush3.bf16.msra.mxu0 %v1023_v33  ;;  %1057 = vmatpush3.bf16.msra.mxu1 %v1023_v33  ;;  %v208_v9 = vld [vmem:[%s1197_s25 + $0x28] sm:$0xff]  ;;  %v218_v12 = vld [vmem:[%s1197_s25 + $0x78] sm:$0xff]  ;;  %v217_v15 = vld [vmem:[%s1197_s25 + $0x70] sm:$0xff] }
  0x1b   : > { %1026 = vmatprep.subr.bf16.mxu0 %v1025_v34  ;;  %1050 = vmatprep.subr.bf16.mxu1 %v1025_v34  ;;  %v214_v13 = vld [vmem:[%s1197_s25 + $0x58] sm:$0xff]  ;;  %v221_v16 = vld [vmem:[%s1197_s25 + $0x90] sm:$0xff]  ;;  %v220_v17 = vld [vmem:[%s1197_s25 + $0x88] sm:$0xff] }
  0x1c   : > { %v222_v14 = vld [vmem:[%s1197_s25 + $0x98] sm:$0xff]  ;;  %v225_v18 = vld [vmem:[%s1197_s25 + $0xb0] sm:$0xff]  ;;  %v223_v19 = vld [vmem:[%s1197_s25 + $0xa0] sm:$0xff] }
  0x1d   : > { %v224_v20 = vld [vmem:[%s1197_s25 + $0xa8] sm:$0xff]  ;;  %v226_v21 = vld [vmem:[%s1197_s25 + $0xb8] sm:$0xff]  ;;  %v229_v23 = vld [vmem:[%s1197_s25 + $0xd0] sm:$0xff] }
  0x1e   : > { %1028 = vmatpush3.bf16.msra.mxu0 %v1027_v39  ;;  %1058 = vmatpush3.bf16.msra.mxu1 %v1027_v39  ;;  %v228_v22 = vld [vmem:[%s1197_s25 + $0xc8] sm:$0xff]  ;;  %v227_v24 = vld [vmem:[%s1197_s25 + $0xc0] sm:$0xff]  ;;  %v230_v28 = vld [vmem:[%s1197_s25 + $0xd8] sm:$0xff] }
  0x1f   : > { %1030 = vmatprep.subr.bf16.mxu0 %v1029_v40  ;;  %1051 = vmatprep.subr.bf16.mxu1 %v1029_v40  ;;  %v232_v25 = vld [vmem:[%s1197_s25 + $0xe8] sm:$0xff]  ;;  %v231_v26 = vld [vmem:[%s1197_s25 + $0xe0] sm:$0xff]  ;;  %v238_v29 = vld [vmem:[%s1197_s25 + $0x118] sm:$0xff] }
  0x20   : > { %v235_v27 = vld [vmem:[%s1197_s25 + $0x100] sm:$0xff]  ;;  %v234_v30 = vld [vmem:[%s1197_s25 + $0xf8] sm:$0xff]  ;;  %v241_v31 = vld [vmem:[%s1197_s25 + $0x130] sm:$0xff] }
  0x21   : > { %v233_v32 = vld [vmem:[%s1197_s25 + $0xf0] sm:$0xff]  ;;  %v244_v33 = vld [vmem:[%s1197_s25 + $0x148] sm:$0xff]  ;;  %v247_v35 = vld [vmem:[%s1197_s25 + $0x160] sm:$0xff] }
  0x22   : > { %1032 = vmatpush3.bf16.msra.mxu0 %v1031_v45  ;;  %1059 = vmatpush3.bf16.msra.mxu1 %v1031_v45  ;;  %v237_v34 = vld [vmem:[%s1197_s25 + $0x110] sm:$0xff]  ;;  %v236_v36 = vld [vmem:[%s1197_s25 + $0x108] sm:$0xff]  ;;  %v250_v37 = vld [vmem:[%s1197_s25 + $0x178] sm:$0xff] }
  0x23   : > { %1034 = vmatprep.subr.bf16.mxu0 %v1033_v46  ;;  %1052 = vmatprep.subr.bf16.mxu1 %v1033_v46 }
  0x26   : > { %1036 = vmatpush3.bf16.msra.mxu0 %v1035_v51  ;;  %1060 = vmatpush3.bf16.msra.mxu1 %v1035_v51 }
  0x27   : > { %1038 = vmatprep.subr.bf16.mxu1 %v1037_v52 }
  0x29   : > { %401 = vmatmul.mubr.f32.vlgmr.msra.gmra.mrb[0].mxu0 %v203_v55  ;;  %461 = vmatmul.mubr.f32.vlgmr.msra.gmra.mrb[0].mxu1 %v239_v56 }
  0x2a   : > { %1040 = vmatpush3.bf16.msra.mxu1 %v1037_v52  ;;  %405 = vmatprep.mubr.f32.mxu0 %v207_v57 }
  0x2b   : > { %465 = vmatprep.mubr.f32.mxu1 %v243_v59  ;;  %1042 = vmatprep.subr.bf16.mxu1 %v1041_v58 }
  0x2d   : > { %406 = vmatmul.mubr.f32.gmra.mrb[2].mxu0 %v206_v60  ;;  %466 = vmatmul.mubr.f32.gmra.mrb[2].mxu1 %v242_v61 }
  0x2e   : > { %410 = vmatprep.mubr.f32.mxu0 %v210_v62  ;;  %470 = vmatprep.mubr.f32.mxu1 %v246_v63 }
  0x2f   : > { %1044 = vmatpush3.bf16.msra.mxu1 %v1041_v58 }
  0x31   : > { %411 = vmatmul.mubr.f32.gmra.mrb[4].mxu0 %v209_v0  ;;  %471 = vmatmul.mubr.f32.gmra.mrb[4].mxu1 %v245_v1 }
  0x32   : > { %415 = vmatprep.mubr.f32.mxu0 %v213_v2  ;;  %475 = vmatprep.mubr.f32.mxu1 %v249_v3 }
  0x35   : > { %416 = vmatmul.mubr.f32.gmra.mrb[6].mxu0 %v212_v4  ;;  %476 = vmatmul.mubr.f32.gmra.mrb[6].mxu1 %v248_v5 }
  0x36   : > { %420 = vmatprep.mubr.f32.mxu0 %v216_v6  ;;  %981 = vmatprep.mubr.msk.f32.mxu1 %vm287_vm0, %v205_v7 }
  0x39   : > { %421 = vmatmul.mubr.f32.gmra.mrb[8].mxu0 %v215_v8  ;;  %982 = vmatmul.mubr.msk.f32.vlgmr.msra.gmra.mrb[8].mxu1 %vm287_vm0, %v208_v9 }
  0x3a   : > { %425 = vmatprep.mubr.f32.mxu0 %v219_v10  ;;  %984 = vmatprep.mubr.msk.f32.mxu1 %vm287_vm0, %v211_v11 }
  0x3d   : > { %426 = vmatmul.mubr.f32.gmra.mrb[10].mxu0 %v218_v12  ;;  %985 = vmatmul.mubr.msk.f32.gmra.mrb[10].mxu1 %vm287_vm0, %v214_v13 }
  0x3e   : > { %430 = vmatprep.mubr.f32.mxu0 %v222_v14  ;;  %987 = vmatprep.mubr.msk.f32.mxu1 %vm287_vm0, %v217_v15 }
  0x41   : > { %431 = vmatmul.mubr.f32.gmra.mrb[12].mxu0 %v221_v16  ;;  %988 = vmatmul.mubr.msk.f32.gmra.mrb[12].mxu1 %vm287_vm0, %v220_v17 }
  0x42   : > { %435 = vmatprep.mubr.f32.mxu0 %v225_v18  ;;  %990 = vmatprep.mubr.msk.f32.mxu1 %vm287_vm0, %v223_v19 }
  0x45   : > { %436 = vmatmul.mubr.f32.gmra.mrb[14].mxu0 %v224_v20  ;;  %991 = vmatmul.mubr.msk.f32.gmra.mrb[14].mxu1 %vm287_vm0, %v226_v21 }
  0x46   : > { %440 = vmatprep.mubr.f32.mxu0 %v228_v22  ;;  %993 = vmatprep.mubr.msk.f32.mxu1 %vm287_vm0, %v229_v23 }
  0x49   : > { %441 = vmatmul.mubr.f32.gmra.mrb[16].mxu0 %v227_v24  ;;  %994 = vmatmul.mubr.msk.f32.gmra.mrb[16].mxu1 %vm287_vm0, %v232_v25 }
  0x4a   : > { %445 = vmatprep.mubr.f32.mxu0 %v231_v26  ;;  %996 = vmatprep.mubr.msk.f32.mxu1 %vm287_vm0, %v235_v27 }
  0x4d   : > { %446 = vmatmul.mubr.f32.gmra.mrb[18].mxu0 %v230_v28  ;;  %997 = vmatmul.mubr.msk.f32.gmra.mrb[18].mxu1 %vm287_vm0, %v238_v29 }
  0x4e   : > { %450 = vmatprep.mubr.f32.mxu0 %v234_v30  ;;  %999 = vmatprep.mubr.msk.f32.mxu1 %vm287_vm0, %v241_v31 }
  0x51   : > { %451 = vmatmul.mubr.f32.gmra.mrb[20].mxu0 %v233_v32  ;;  %1000 = vmatmul.mubr.msk.f32.gmra.mrb[20].mxu1 %vm287_vm0, %v244_v33 }
  0x52   : > { %455 = vmatprep.mubr.f32.mxu0 %v237_v34  ;;  %1002 = vmatprep.mubr.msk.f32.mxu1 %vm287_vm0, %v247_v35 }
  0x55   : > { %456 = vmatmul.mubr.f32.gmra.mrb[22].mxu0 %v236_v36  ;;  %1003 = vmatmul.mubr.msk.f32.gmra.mrb[22].mxu1 %vm287_vm0, %v250_v37 }
  0xfc   : > { %v905_v38 = vpop.f32.mrb[0].mxu0  ;;  %v941_v39 = vpop.f32.mrb[0].mxu1 }
  0xfd   : > { %v906_v40 = vpop.f32.mrb[1].mxu0  ;;  %v942_v41 = vpop.f32.mrb[1].mxu1 }
  0xfe   : > { %v907_v42 = vadd.f32 %v906_v40, %v905_v38  ;;  %v1329_v43 = vadd.f32 %v942_v41, %v941_v39 }
 0x100   : > { %v908_v44 = vpop.f32.mrb[2].mxu0  ;;  %v944_v45 = vpop.f32.mrb[2].mxu1 }
 0x101   : > { %v909_v46 = vpop.f32.mrb[3].mxu0  ;;  %v945_v47 = vpop.f32.mrb[3].mxu1 }
 0x102   : > { %v910_v48 = vadd.f32 %v909_v46, %v908_v44  ;;  %v946_v49 = vadd.f32 %v945_v47, %v944_v45 }
 0x104   : > { %v911_v50 = vpop.f32.mrb[4].mxu0  ;;  %v947_v51 = vpop.f32.mrb[4].mxu1 }
 0x105   : > { %v912_v52 = vpop.f32.mrb[5].mxu0  ;;  %v948_v53 = vpop.f32.mrb[5].mxu1 }
 0x106   : > { %v913_v54 = vadd.f32 %v912_v52, %v911_v50  ;;  %v949_v55 = vadd.f32 %v948_v53, %v947_v51 }
 0x108   : > { %v914_v56 = vpop.f32.mrb[6].mxu0  ;;  %v950_v57 = vpop.f32.mrb[6].mxu1 }
 0x109   : > { %v915_v58 = vpop.f32.mrb[7].mxu0  ;;  %v951_v59 = vpop.f32.mrb[7].mxu1 }
 0x10a   : > { %v916_v60 = vadd.f32 %v915_v58, %v914_v56  ;;  %v952_v61 = vadd.f32 %v951_v59, %v950_v57 }
 0x10c   : > { %v917_v62 = vpop.f32.mrb[8].mxu0  ;;  %v983_v63 = vpop.f32.mrb[8].mxu1 }
 0x10d   : > { %v1331_v0 = vadd.f32 %v983_v63, %v910_v48  ;;  %v918_v1 = vpop.f32.mrb[9].mxu0  ;;  %v547_v2 = vpop.f32.mrb[9].mxu1 }
 0x10e   : > { %v919_v3 = vadd.f32 %v918_v1, %v917_v62  ;;  %v1333_v4 = vadd.f32 %v907_v42, %v547_v2 }
 0x10f   : > { %631 = vst [vmem:[#allocation2 + $0x8] sm:$0xff] (!%p865_p5), %v1331_v0 }
 0x110   : > { %v920_v5 = vpop.f32.mrb[10].mxu0  ;;  %v986_v6 = vpop.f32.mrb[10].mxu1  ;;  %630 = vst [vmem:[#allocation2] sm:$0xff] (!%p865_p5), %v1333_v4 }
 0x111   : > { %v1335_v7 = vadd.f32 %v986_v6, %v916_v60  ;;  %v921_v8 = vpop.f32.mrb[11].mxu0  ;;  %v557_v9 = vpop.f32.mrb[11].mxu1 }
 0x112   : > { %v922_v10 = vadd.f32 %v921_v8, %v920_v5  ;;  %v1337_v11 = vadd.f32 %v913_v54, %v557_v9 }
 0x113   : > { %633 = vst [vmem:[#allocation2 + $0x18] sm:$0xff] (!%p865_p5), %v1335_v7 }
 0x114   : > { %v923_v12 = vpop.f32.mrb[12].mxu0  ;;  %v989_v13 = vpop.f32.mrb[12].mxu1  ;;  %632 = vst [vmem:[#allocation2 + $0x10] sm:$0xff] (!%p865_p5), %v1337_v11 }
 0x115   : > { %v1339_v14 = vadd.f32 %v989_v13, %v922_v10  ;;  %v924_v15 = vpop.f32.mrb[13].mxu0  ;;  %v567_v16 = vpop.f32.mrb[13].mxu1 }
 0x116   : > { %v925_v17 = vadd.f32 %v924_v15, %v923_v12  ;;  %v1341_v18 = vadd.f32 %v919_v3, %v567_v16 }
 0x117   : > { %635 = vst [vmem:[#allocation2 + $0x28] sm:$0xff] (!%p865_p5), %v1339_v14 }
 0x118   : > { %v926_v19 = vpop.f32.mrb[14].mxu0  ;;  %v992_v20 = vpop.f32.mrb[14].mxu1  ;;  %634 = vst [vmem:[#allocation2 + $0x20] sm:$0xff] (!%p865_p5), %v1341_v18 }
 0x119   : > { %v927_v21 = vpop.f32.mrb[15].mxu0  ;;  %v577_v22 = vpop.f32.mrb[15].mxu1 }
 0x11a   : > { %v928_v23 = vadd.f32 %v927_v21, %v926_v19  ;;  %v1343_v24 = vadd.f32 %v925_v17, %v577_v22 }
 0x11c   : > { %v1345_v25 = vadd.f32 %v992_v20, %v928_v23  ;;  %v929_v26 = vpop.f32.mrb[16].mxu0  ;;  %v995_v27 = vpop.f32.mrb[16].mxu1  ;;  %636 = vst [vmem:[#allocation2 + $0x30] sm:$0xff] (!%p865_p5), %v1343_v24 }
 0x11d   : > { %v930_v28 = vpop.f32.mrb[17].mxu0  ;;  %v587_v29 = vpop.f32.mrb[17].mxu1 }
 0x11e   : > { %v931_v30 = vadd.f32 %v930_v28, %v929_v26  ;;  %637 = vst [vmem:[#allocation2 + $0x38] sm:$0xff] (!%p865_p5), %v1345_v25 }
 0x120   : > { %v1347_v31 = vadd.f32 %v931_v30, %v587_v29  ;;  %v932_v32 = vpop.f32.mrb[18].mxu0  ;;  %v998_v33 = vpop.f32.mrb[18].mxu1 }
 0x121   : > { %v933_v34 = vpop.f32.mrb[19].mxu0  ;;  %v597_v35 = vpop.f32.mrb[19].mxu1 }
 0x122   : > { %v934_v36 = vadd.f32 %v933_v34, %v932_v32  ;;  %638 = vst [vmem:[#allocation2 + $0x40] sm:$0xff] (!%p865_p5), %v1347_v31 }
 0x124   : > { %v1349_v37 = vadd.f32 %v995_v27, %v934_v36  ;;  %v935_v38 = vpop.f32.mrb[20].mxu0  ;;  %v1001_v39 = vpop.f32.mrb[20].mxu1 }
 0x125   : > { %v1351_v40 = vadd.f32 %v1001_v39, %v946_v49  ;;  %v936_v41 = vpop.f32.mrb[21].mxu0  ;;  %v607_v42 = vpop.f32.mrb[21].mxu1 }
 0x126   : > { %v937_v44 = vadd.f32 %v936_v41, %v935_v38  ;;  %v1354_v45 = vadd.f32 %v1329_v43, %v607_v42  ;;  %629 = sbr.rel (%p865_p5) target bundleno = 303 (0x12f), region = 36  ;;  %639 = vst [vmem:[#allocation2 + $0x48] sm:$0xff] (!%p865_p5), %v1349_v37 }
 0x127   : > { %643 = vst [vmem:[#allocation2 + $0x68] sm:$0xff] (!%p865_p5), %v1351_v40 }
 0x128   : > { %v1356_v46 = vadd.f32 %v937_v44, %v597_v35  ;;  %v938_v47 = vpop.f32.mrb[22].mxu0  ;;  %v1004_v48 = vpop.f32.mrb[22].mxu1  ;;  %642 = vst [vmem:[#allocation2 + $0x60] sm:$0xff] (!%p865_p5), %v1354_v45 }
 0x129   : > { %v1358_v50 = vadd.f32 %v1004_v48, %v952_v61  ;;  %v939_v51 = vpop.f32.mrb[23].mxu0  ;;  %v617_v52 = vpop.f32.mrb[23].mxu1 }
 0x12a   : > { %v940_v53 = vadd.f32 %v939_v51, %v938_v47  ;;  %v1360_v54 = vadd.f32 %v949_v55, %v617_v52  ;;  %640 = vst [vmem:[#allocation2 + $0x50] sm:$0xff] (!%p865_p5), %v1356_v46 }
 0x12b   : > { %645 = vst [vmem:[#allocation2 + $0x78] sm:$0xff] (!%p865_p5), %v1358_v50 }
 0x12c   : > { %v1362_v56 = vadd.f32 %v998_v33, %v940_v53  ;;  %644 = vst [vmem:[#allocation2 + $0x70] sm:$0xff] (!%p865_p5), %v1360_v54 }
 0x12e   : > { %641 = vst [vmem:[#allocation2 + $0x58] sm:$0xff] %v1362_v56 }
 0x12f PF: > { %p866_p6 = scmp.le.s32.totalorder %s1100_s12, 0 }
 0x130   : > { %v650_v43 = vld [vmem:[#allocation2] sm:$0xff] (!%p866_p6)  ;;  %v651_v49 = vld [vmem:[#allocation2 + $0x8] sm:$0xff] (!%p866_p6)  ;;  %v652_v55 = vld [vmem:[#allocation2 + $0x10] sm:$0xff] (!%p866_p6) }
 0x131   : > { %649 = sbr.rel (%p866_p6) target bundleno = 315 (0x13b), region = 40  ;;  %v666_v57 = vmax.f32 (!%p866_p6), %v650_v43, %v1333_v4  ;;  %v667_v58 = vmax.f32 (!%p866_p6), %v651_v49, %v1331_v0  ;;  %v668_v59 = vmax.f32 (!%p866_p6), %v652_v55, %v1337_v11  ;;  %v653_v60 = vld [vmem:[#allocation2 + $0x18] sm:$0xff] (!%p866_p6)  ;;  %v654_v61 = vld [vmem:[#allocation2 + $0x20] sm:$0xff] (!%p866_p6)  ;;  %v655_v62 = vld [vmem:[#allocation2 + $0x28] sm:$0xff] (!%p866_p6) }
 0x132   : > { %v669_v63 = vmax.f32 (!%p866_p6), %v653_v60, %v1335_v7  ;;  %v670_v1 = vmax.f32 (!%p866_p6), %v654_v61, %v1341_v18  ;;  %v671_v2 = vmax.f32 (!%p866_p6), %v655_v62, %v1339_v14  ;;  %v656_v3 = vld [vmem:[#allocation2 + $0x30] sm:$0xff] (!%p866_p6)  ;;  %v657_v5 = vld [vmem:[#allocation2 + $0x38] sm:$0xff] (!%p866_p6)  ;;  %v658_v6 = vld [vmem:[#allocation2 + $0x40] sm:$0xff] (!%p866_p6) }
 0x133   : > { %682 = vst [vmem:[#allocation2] sm:$0xff] (!%p866_p6), %v666_v57  ;;  %683 = vst [vmem:[#allocation2 + $0x8] sm:$0xff] (!%p866_p6), %v667_v58  ;;  %v672_v4 = vmax.f32 (!%p866_p6), %v656_v3, %v1343_v24  ;;  %v673_v0 = vmax.f32 (!%p866_p6), %v657_v5, %v1345_v25  ;;  %v674_v8 = vmax.f32 (!%p866_p6), %v658_v6, %v1347_v31  ;;  %v659_v9 = vld [vmem:[#allocation2 + $0x48] sm:$0xff] (!%p866_p6)  ;;  %v660_v10 = vld [vmem:[#allocation2 + $0x50] sm:$0xff] (!%p866_p6) }
 0x134   : > { %684 = vst [vmem:[#allocation2 + $0x10] sm:$0xff] (!%p866_p6), %v668_v59  ;;  %685 = vst [vmem:[#allocation2 + $0x18] sm:$0xff] (!%p866_p6), %v669_v63  ;;  %v675_v7 = vmax.f32 (!%p866_p6), %v659_v9, %v1349_v37  ;;  %v676_v12 = vmax.f32 (!%p866_p6), %v660_v10, %v1356_v46  ;;  %v662_v14 = vld [vmem:[#allocation2 + $0x60] sm:$0xff] (!%p866_p6)  ;;  %v663_v15 = vld [vmem:[#allocation2 + $0x68] sm:$0xff] (!%p866_p6) }
 0x135   : > { %v661_v11 = vld [vmem:[#allocation2 + $0x58] sm:$0xff] (!%p866_p6)  ;;  %686 = vst [vmem:[#allocation2 + $0x20] sm:$0xff] (!%p866_p6), %v670_v1  ;;  %687 = vst [vmem:[#allocation2 + $0x28] sm:$0xff] (!%p866_p6), %v671_v2  ;;  %v664_v16 = vld [vmem:[#allocation2 + $0x70] sm:$0xff] (!%p866_p6)  ;;  %v678_v17 = vmax.f32 (!%p866_p6), %v662_v14, %v1354_v45  ;;  %v679_v18 = vmax.f32 (!%p866_p6), %v663_v15, %v1351_v40 }
 0x136   : > { %v677_v13 = vmax.f32 (!%p866_p6), %v661_v11, %v1362_v56  ;;  %688 = vst [vmem:[#allocation2 + $0x30] sm:$0xff] (!%p866_p6), %v672_v4  ;;  %689 = vst [vmem:[#allocation2 + $0x38] sm:$0xff] (!%p866_p6), %v673_v0  ;;  %v680_v19 = vmax.f32 (!%p866_p6), %v664_v16, %v1360_v54  ;;  %v665_v20 = vld [vmem:[#allocation2 + $0x78] sm:$0xff] (!%p866_p6) }
 0x137   : > { %690 = vst [vmem:[#allocation2 + $0x40] sm:$0xff] (!%p866_p6), %v674_v8  ;;  %691 = vst [vmem:[#allocation2 + $0x48] sm:$0xff] (!%p866_p6), %v675_v7  ;;  %v681_v21 = vmax.f32 (!%p866_p6), %v665_v20, %v1358_v50 }
 0x138   : > { %692 = vst [vmem:[#allocation2 + $0x50] sm:$0xff] %v676_v12  ;;  %693 = vst [vmem:[#allocation2 + $0x58] sm:$0xff] %v677_v13 }
 0x139   : > { %694 = vst [vmem:[#allocation2 + $0x60] sm:$0xff] %v678_v17  ;;  %695 = vst [vmem:[#allocation2 + $0x68] sm:$0xff] %v679_v18 }
 0x13a   : > { %696 = vst [vmem:[#allocation2 + $0x70] sm:$0xff] %v680_v19  ;;  %697 = vst [vmem:[#allocation2 + $0x78] sm:$0xff] %v681_v21 }
 0x13b PF: > { %p867_p7 = scmp.ne.s32.totalorder %s1100_s12, 3 }
 0x13c   : > { %v868_v23 = vld [vmem:[%s1461_s2] ss:$0 sm:$0xff] (!%p867_p7) }
 0x13d   : > { %701 = sbr.rel (%p867_p7) target bundleno = 331 (0x14b), region = 44  ;;  %v702_v22 = vld [vmem:[#allocation2] sm:$0xff] (!%p867_p7)  ;;  %v703_v24 = vld [vmem:[#allocation2 + $0x8] sm:$0xff] (!%p867_p7) }
 0x13e   : > { %v725_v25 = vadd.f32 (!%p867_p7), %v868_v23, %v702_v22  ;;  %v726_v26 = vadd.f32 (!%p867_p7), %v868_v23, %v703_v24  ;;  %v704_v27 = vld [vmem:[#allocation2 + $0x10] sm:$0xff] (!%p867_p7)  ;;  %v705_v28 = vld [vmem:[#allocation2 + $0x18] sm:$0xff] (!%p867_p7) }
 0x13f   : > { %v706_v29 = vld [vmem:[#allocation2 + $0x20] sm:$0xff] (!%p867_p7)  ;;  %v727_v30 = vadd.f32 (!%p867_p7), %v868_v23, %v704_v27  ;;  %v728_v31 = vadd.f32 (!%p867_p7), %v868_v23, %v705_v28  ;;  %v707_v33 = vld [vmem:[#allocation2 + $0x28] sm:$0xff] (!%p867_p7) }
 0x140   : > { %v729_v32 = vadd.f32 (!%p867_p7), %v868_v23, %v706_v29  ;;  %v708_v34 = vld [vmem:[#allocation2 + $0x30] sm:$0xff] (!%p867_p7)  ;;  %v709_v35 = vld [vmem:[#allocation2 + $0x38] sm:$0xff] (!%p867_p7)  ;;  %v741_v36 = vmax.f32 (!%p867_p7), %v725_v25, 0.0  ;;  %v742_v37 = vmax.f32 (!%p867_p7), %v726_v26, 0.0  ;;  %v730_v38 = vadd.f32 (!%p867_p7), %v868_v23, %v707_v33  ;;  %v714_v50 = vld [vmem:[#allocation2 + $0x60] sm:$0xff] (!%p867_p7) }
 0x141   : > { %v731_v39 = vadd.f32 (!%p867_p7), %v868_v23, %v708_v34  ;;  %v710_v40 = vld [vmem:[#allocation2 + $0x40] sm:$0xff] (!%p867_p7)  ;;  %v711_v41 = vld [vmem:[#allocation2 + $0x48] sm:$0xff] (!%p867_p7)  ;;  %v743_v44 = vmax.f32 (!%p867_p7), %v727_v30, 0.0  ;;  %v744_v45 = vmax.f32 (!%p867_p7), %v728_v31, 0.0  ;;  %v732_v47 = vadd.f32 (!%p867_p7), %v868_v23, %v709_v35  ;;  %v716_v43 = vld [vmem:[#allocation2 + $0x70] sm:$0xff] (!%p867_p7) }
 0x142   : > { %v712_v42 = vld [vmem:[#allocation2 + $0x50] sm:$0xff] (!%p867_p7)  ;;  %v745_v46 = vmax.f32 (!%p867_p7), %v729_v32, 0.0  ;;  %v713_v48 = vld [vmem:[#allocation2 + $0x58] sm:$0xff] (!%p867_p7)  ;;  %v715_v51 = vld [vmem:[#allocation2 + $0x68] sm:$0xff] (!%p867_p7)  ;;  %757 = vst [vmem:[%s1462_s3] sm:$0xff] (!%p867_p7), %v741_v36  ;;  %v746_v52 = vmax.f32 (!%p867_p7), %v730_v38, 0.0  ;;  %v733_v54 = vadd.f32 (!%p867_p7), %v868_v23, %v710_v40  ;;  %v734_v56 = vadd.f32 (!%p867_p7), %v868_v23, %v711_v41 }
 0x143   : > { %758 = vst [vmem:[%s1462_s3 + $0x8] sm:$0xff] (!%p867_p7), %v742_v37  ;;  %v747_v53 = vmax.f32 (!%p867_p7), %v731_v39, 0.0  ;;  %v717_v49 = vld [vmem:[#allocation2 + $0x78] sm:$0xff] (!%p867_p7)  ;;  %759 = vst [vmem:[%s1462_s3 + $0x10] sm:$0xff] (!%p867_p7), %v743_v44  ;;  %v748_v55 = vmax.f32 (!%p867_p7), %v732_v47, 0.0  ;;  %v735_v57 = vadd.f32 (!%p867_p7), %v868_v23, %v712_v42  ;;  %v736_v58 = vadd.f32 (!%p867_p7), %v868_v23, %v713_v48 }
 0x144   : > { %760 = vst [vmem:[%s1462_s3 + $0x18] sm:$0xff] %v744_v45  ;;  %761 = vst [vmem:[%s1462_s3 + $0x20] sm:$0xff] %v745_v46  ;;  %v737_v59 = vadd.f32 %v868_v23, %v714_v50  ;;  %v749_v60 = vmax.f32 %v733_v54, 0.0  ;;  %v750_v61 = vmax.f32 %v734_v56, 0.0  ;;  %v738_v62 = vadd.f32 %v868_v23, %v715_v51 }
 0x145   : > { %762 = vst [vmem:[%s1462_s3 + $0x28] sm:$0xff] %v746_v52  ;;  %763 = vst [vmem:[%s1462_s3 + $0x30] sm:$0xff] %v747_v53  ;;  %v739_v63 = vadd.f32 %v868_v23, %v716_v43  ;;  %v751_v1 = vmax.f32 %v735_v57, 0.0  ;;  %v752_v2 = vmax.f32 %v736_v58, 0.0  ;;  %v740_v5 = vadd.f32 %v868_v23, %v717_v49 }
 0x146   : > { %764 = vst [vmem:[%s1462_s3 + $0x38] sm:$0xff] %v748_v55  ;;  %v753_v3 = vmax.f32 %v737_v59, 0.0  ;;  %765 = vst [vmem:[%s1462_s3 + $0x40] sm:$0xff] %v749_v60  ;;  %v754_v6 = vmax.f32 %v738_v62, 0.0 }
 0x147   : > { %766 = vst [vmem:[%s1462_s3 + $0x48] sm:$0xff] %v750_v61  ;;  %v755_v4 = vmax.f32 %v739_v63, 0.0  ;;  %767 = vst [vmem:[%s1462_s3 + $0x50] sm:$0xff] %v751_v1  ;;  %v756_v0 = vmax.f32 %v740_v5, 0.0 }
 0x148   : > { %768 = vst [vmem:[%s1462_s3 + $0x58] sm:$0xff] %v752_v2  ;;  %769 = vst [vmem:[%s1462_s3 + $0x60] sm:$0xff] %v753_v3 }
 0x149   : > { %770 = vst [vmem:[%s1462_s3 + $0x68] sm:$0xff] %v754_v6  ;;  %771 = vst [vmem:[%s1462_s3 + $0x70] sm:$0xff] %v755_v4 }
 0x14a   : > { %772 = vst [vmem:[%s1462_s3 + $0x78] sm:$0xff] %v756_v0 }
 0x14b PF: > { %s13_s14 = sadd.s32 1, %s1108_s14   ;;  %s1463_s12 = smov %s1104_s13 }
 0x14c   : > { %p10_p8 = scmp.ge.s32.totalorder %s13_s14, 6   ;;  %s1464_s13 = smov %s1466_s15 }
 0x14e   :  { %12 = sbr.rel (!%p10_p8) target bundleno = 2 (0x2), region = 74 }

// kernel: cnn_forward.7
= control target key start
LH: loop header
LB: loop body
LE: loop exit
PB: predicated region body
PF: predicated region fallthrough
CT: control target
= control target key end

     0   :  { %v426_v47 = vmov 1983009808   ;;  %v92_v49 = vlaneseq  ;;  %s658_s0 = inlined_call_operand.vmem [shape: f32[2,512], index: 0, kind: input, shape index: {}]   ;;  %s659_s1 = inlined_call_operand.vmem [shape: f32[512,128], index: 1, kind: input, shape index: {}]   ;;  %s660_s2 = inlined_call_operand.vmem [shape: f32[1,128], index: 2, kind: input, shape index: {}]   ;;  %s661_s3 = inlined_call_operand.hbm [shape: f32[2,128], index: 3, kind: output, shape index: {}]  }
   0x1   :  { %v32_v0 = vld [vmem:[%s659_s1 + $0x80] sm:$0xff]  ;;  %v33_v1 = vld [vmem:[%s659_s1 + $0x88] sm:$0xff]  ;;  %v34_v11 = vld [vmem:[%s659_s1 + $0x90] sm:$0xff]  ;;  %v90_v48 = vunpack.c.l.s4 %v426_v47 }
   0x2   :  { %v16_v2 = vld [vmem:[%s659_s1] sm:$0xff]  ;;  %v335_v3 = vpack.c.bf16 %v33_v1, %v32_v0  ;;  %v17_v4 = vld [vmem:[%s659_s1 + $0x8] sm:$0xff]  ;;  %v35_v13 = vld [vmem:[%s659_s1 + $0x98] sm:$0xff]  ;;  %v93_v0 = vshrl.u32 %v92_v49, 7 }
   0x3   :  { %v64_v5 = vld [vmem:[%s659_s1 + $0x180] sm:$0xff]  ;;  %v65_v6 = vld [vmem:[%s659_s1 + $0x188] sm:$0xff]  ;;  %v337_v7 = vpack.c.bf16 %v17_v4, %v16_v2  ;;  %v18_v14 = vld [vmem:[%s659_s1 + $0x10] sm:$0xff]  ;;  %v339_v16 = vpack.c.bf16 %v35_v13, %v34_v11  ;;  %v91_v63 = vunpack.c.0.s8 %v90_v48 }
   0x4   :  { %v367_v8 = vpack.c.bf16 %v65_v6, %v64_v5  ;;  %v48_v9 = vld [vmem:[%s659_s1 + $0x100] sm:$0xff]  ;;  %v49_v10 = vld [vmem:[%s659_s1 + $0x108] sm:$0xff]  ;;  %336 = vmatprep.subr.bf16.mxu0 %v335_v3  ;;  %v19_v15 = vld [vmem:[%s659_s1 + $0x18] sm:$0xff] }
   0x5   :  { %v369_v12 = vpack.c.bf16 %v49_v10, %v48_v9  ;;  %338 = vmatpush3.bf16.msra.mxu0 %v337_v7  ;;  %v341_v17 = vpack.c.bf16 %v19_v15, %v18_v14  ;;  %v66_v18 = vld [vmem:[%s659_s1 + $0x190] sm:$0xff]  ;;  %v67_v19 = vld [vmem:[%s659_s1 + $0x198] sm:$0xff]  ;;  %v36_v23 = vld [vmem:[%s659_s1 + $0xa0] sm:$0xff]  ;;  %v94_v13 = vsub.s32 %v91_v63, %v93_v0 }
   0x6   :  { %368 = vmatprep.subr.bf16.mxu1 %v367_v8  ;;  %v50_v20 = vld [vmem:[%s659_s1 + $0x110] sm:$0xff]  ;;  %v371_v21 = vpack.c.bf16 %v67_v19, %v66_v18  ;;  %v51_v22 = vld [vmem:[%s659_s1 + $0x118] sm:$0xff]  ;;  %v37_v24 = vld [vmem:[%s659_s1 + $0xa8] sm:$0xff]  ;;  %340 = vmatprep.subr.bf16.mxu0 %v339_v16 }
   0x7   :  { %370 = vmatpush3.bf16.msra.mxu1 %v369_v12  ;;  %v373_v25 = vpack.c.bf16 %v51_v22, %v50_v20  ;;  %v343_v26 = vpack.c.bf16 %v37_v24, %v36_v23  ;;  %v20_v27 = vld [vmem:[%s659_s1 + $0x20] sm:$0xff]  ;;  %v21_v28 = vld [vmem:[%s659_s1 + $0x28] sm:$0xff]  ;;  %v38_v35 = vld [vmem:[%s659_s1 + $0xb0] sm:$0xff] }
   0x8   :  { %v68_v29 = vld [vmem:[%s659_s1 + $0x1a0] sm:$0xff]  ;;  %372 = vmatprep.subr.bf16.mxu1 %v371_v21  ;;  %v69_v30 = vld [vmem:[%s659_s1 + $0x1a8] sm:$0xff]  ;;  %v345_v33 = vpack.c.bf16 %v21_v28, %v20_v27  ;;  %v39_v36 = vld [vmem:[%s659_s1 + $0xb8] sm:$0xff] }
   0x9   :  { %v52_v31 = vld [vmem:[%s659_s1 + $0x120] sm:$0xff]  ;;  %v53_v32 = vld [vmem:[%s659_s1 + $0x128] sm:$0xff]  ;;  %342 = vmatpush3.bf16.msra.mxu0 %v341_v17  ;;  %v375_v34 = vpack.c.bf16 %v69_v30, %v68_v29  ;;  %v22_v37 = vld [vmem:[%s659_s1 + $0x30] sm:$0xff]  ;;  %v347_v39 = vpack.c.bf16 %v39_v36, %v38_v35 }
   0xa   :  { %344 = vmatprep.subr.bf16.mxu0 %v343_v26  ;;  %v377_v38 = vpack.c.bf16 %v53_v32, %v52_v31  ;;  %v23_v40 = vld [vmem:[%s659_s1 + $0x38] sm:$0xff]  ;;  %v70_v41 = vld [vmem:[%s659_s1 + $0x1b0] sm:$0xff]  ;;  %v40_v46 = vld [vmem:[%s659_s1 + $0xc0] sm:$0xff] }
   0xb   :  { %374 = vmatpush3.bf16.msra.mxu1 %v373_v25  ;;  %v71_v42 = vld [vmem:[%s659_s1 + $0x1b8] sm:$0xff]  ;;  %v54_v44 = vld [vmem:[%s659_s1 + $0x130] sm:$0xff]  ;;  %v41_v50 = vld [vmem:[%s659_s1 + $0xc8] sm:$0xff]  ;;  %v349_v51 = vpack.c.bf16 %v23_v40, %v22_v37 }
   0xc   :  { %376 = vmatprep.subr.bf16.mxu1 %v375_v34  ;;  %v379_v43 = vpack.c.bf16 %v71_v42, %v70_v41  ;;  %v55_v45 = vld [vmem:[%s659_s1 + $0x138] sm:$0xff]  ;;  %v72_v52 = vld [vmem:[%s659_s1 + $0x1c0] sm:$0xff]  ;;  %v73_v53 = vld [vmem:[%s659_s1 + $0x1c8] sm:$0xff]  ;;  %v351_v55 = vpack.c.bf16 %v41_v50, %v40_v46 }
   0xd   :  { %346 = vmatpush3.bf16.msra.mxu0 %v345_v33  ;;  %v381_v54 = vpack.c.bf16 %v55_v45, %v54_v44  ;;  %v24_v56 = vld [vmem:[%s659_s1 + $0x40] sm:$0xff]  ;;  %v25_v57 = vld [vmem:[%s659_s1 + $0x48] sm:$0xff]  ;;  %v383_v59 = vpack.c.bf16 %v73_v53, %v72_v52  ;;  %v42_v61 = vld [vmem:[%s659_s1 + $0xd0] sm:$0xff] }
   0xe   :  { %348 = vmatprep.subr.bf16.mxu0 %v347_v39  ;;  %v56_v58 = vld [vmem:[%s659_s1 + $0x140] sm:$0xff]  ;;  %v57_v60 = vld [vmem:[%s659_s1 + $0x148] sm:$0xff]  ;;  %v43_v62 = vld [vmem:[%s659_s1 + $0xd8] sm:$0xff]  ;;  %v353_v3 = vpack.c.bf16 %v25_v57, %v24_v56 }
   0xf   :  { %378 = vmatpush3.bf16.msra.mxu1 %v377_v38  ;;  %v74_v1 = vld [vmem:[%s659_s1 + $0x1d0] sm:$0xff]  ;;  %v75_v2 = vld [vmem:[%s659_s1 + $0x1d8] sm:$0xff]  ;;  %v385_v4 = vpack.c.bf16 %v57_v60, %v56_v58  ;;  %v355_v5 = vpack.c.bf16 %v43_v62, %v42_v61  ;;  %v44_v11 = vld [vmem:[%s659_s1 + $0xe0] sm:$0xff] }
  0x10   :  { %380 = vmatprep.subr.bf16.mxu1 %v379_v43  ;;  %v26_v6 = vld [vmem:[%s659_s1 + $0x50] sm:$0xff]  ;;  %v27_v7 = vld [vmem:[%s659_s1 + $0x58] sm:$0xff]  ;;  %v387_v9 = vpack.c.bf16 %v75_v2, %v74_v1  ;;  %v45_v12 = vld [vmem:[%s659_s1 + $0xe8] sm:$0xff] }
  0x11   :  { %350 = vmatpush3.bf16.msra.mxu0 %v349_v51  ;;  %v58_v8 = vld [vmem:[%s659_s1 + $0x150] sm:$0xff]  ;;  %v59_v10 = vld [vmem:[%s659_s1 + $0x158] sm:$0xff]  ;;  %v76_v14 = vld [vmem:[%s659_s1 + $0x1e0] sm:$0xff]  ;;  %v357_v16 = vpack.c.bf16 %v27_v7, %v26_v6  ;;  %v359_v20 = vpack.c.bf16 %v45_v12, %v44_v11 }
  0x12   :  { %352 = vmatprep.subr.bf16.mxu0 %v351_v55  ;;  %v77_v15 = vld [vmem:[%s659_s1 + $0x1e8] sm:$0xff]  ;;  %v28_v17 = vld [vmem:[%s659_s1 + $0x60] sm:$0xff]  ;;  %v389_v19 = vpack.c.bf16 %v59_v10, %v58_v8 }
  0x13   :  { %382 = vmatpush3.bf16.msra.mxu1 %v381_v54  ;;  %v29_v18 = vld [vmem:[%s659_s1 + $0x68] sm:$0xff]  ;;  %v60_v21 = vld [vmem:[%s659_s1 + $0x160] sm:$0xff] }
  0x14   :  { %384 = vmatprep.subr.bf16.mxu1 %v383_v59  ;;  %v15_v22 = vld [vmem:[%s658_s0] sm:$0xff] }
  0x15   :  { %354 = vmatpush3.bf16.msra.mxu0 %v353_v3 }
  0x16   :  { %356 = vmatprep.subr.bf16.mxu0 %v355_v5 }
  0x17   :  { %386 = vmatpush3.bf16.msra.mxu1 %v385_v4 }
  0x18   :  { %8 = vsyncpa [#allocation3], 0  ;;  %388 = vmatprep.subr.bf16.mxu1 %v387_v9  ;;  %v391_v23 = vpack.c.bf16 %v77_v15, %v76_v14  ;;  %v61_v24 = vld [vmem:[%s659_s1 + $0x168] sm:$0xff]  ;;  %v46_v25 = vld [vmem:[%s659_s1 + $0xf0] sm:$0xff]  ;;  %v95_v27 = vrot.slane %v15_v22, %v94_v13  ;;  %v88_v28 = vcombine.high %v15_v22, %v15_v22  ;;  %v361_v31 = vpack.c.bf16 %v29_v18, %v28_v17 }
  0x19   :  { %v47_v26 = vld [vmem:[%s659_s1 + $0xf8] sm:$0xff]  ;;  %v78_v29 = vld [vmem:[%s659_s1 + $0x1f0] sm:$0xff]  ;;  %358 = vmatpush3.bf16.msra.mxu0 %v357_v16  ;;  %v393_v34 = vpack.c.bf16 %v61_v24, %v60_v21  ;;  %v264_v45 = vld [vmem:[%s660_s2] ss:$0 sm:$0xff] }
  0x1a   :  { %v79_v30 = vld [vmem:[%s659_s1 + $0x1f8] sm:$0xff]  ;;  %v103_v32 = vcombine.high %v95_v27, %v95_v27  ;;  %v102_v33 = vrot.slane %v88_v28, %v94_v13  ;;  %360 = vmatprep.subr.bf16.mxu0 %v359_v20  ;;  %v363_v35 = vpack.c.bf16 %v47_v26, %v46_v25  ;;  %v30_v36 = vld [vmem:[%s659_s1 + $0x70] sm:$0xff] }
  0x1b   :  { %390 = vmatpush3.bf16.msra.mxu1 %v389_v19  ;;  %v31_v37 = vld [vmem:[%s659_s1 + $0x78] sm:$0xff]  ;;  %v395_v38 = vpack.c.bf16 %v79_v30, %v78_v29  ;;  %v62_v39 = vld [vmem:[%s659_s1 + $0x170] sm:$0xff] }
  0x1c   :  { %392 = vmatprep.subr.bf16.mxu1 %v391_v23  ;;  %v63_v40 = vld [vmem:[%s659_s1 + $0x178] sm:$0xff]  ;;  %173 = vmatprep.mubr.f32.mxu0 %v103_v32  ;;  %v104_v41 = vcombine.high %v102_v33, %v102_v33  ;;  %v365_v42 = vpack.c.bf16 %v31_v37, %v30_v36  ;;  %s427_s1 = smov [#allocation2]  }
  0x1d   :  { %362 = vmatpush3.bf16.msra.mxu0 %v361_v31  ;;  %v397_v43 = vpack.c.bf16 %v63_v40, %v62_v39  ;;  %s256_s8 = sshll.u32 %s427_s1, 4  ;;  %s257_s8 = int_to_ptr.vmem [resolvable:$true] %s256_s8 }
  0x1e   :  { %243 = vmatprep.mubr.f32.mxu1 %v104_v41  ;;  %364 = vmatprep.subr.bf16.mxu0 %v363_v35  ;;  %s402_s9 = scalar_lea.vmem %s257_s8, 32  ;;  %p407_p1 = scmp.lt.s32.totalorder %s257_s8, %s257_s8 }
  0x1f   :  { %394 = vmatpush3.bf16.msra.mxu1 %v393_v34  ;;  %p403_p0 = scmp.ne.s32.totalorder %s257_s8, %s402_s9  ;;  %p408_p2 = scmp.lt.s32.totalorder %s402_s9, %s402_s9 }
  0x20   :  { %396 = vmatprep.subr.bf16.mxu1 %v395_v38 }
  0x21   :  { %366 = vmatpush3.bf16.msra.mxu0 %v365_v42  ;;  %p409_p3 = por %p408_p2, %p407_p1 }
  0x23   :  { %398 = vmatpush3.bf16.msra.mxu1 %v397_v43  ;;  %p410_p4 = pnand %p409_p3, %p403_p0 }
  0x24   :  { %174 = vmatmul.mubr.f32.vlgmr.msra.gmra.mrb[0].mxu0 %v95_v27 }
  0x26   :  { %244 = vmatmul.mubr.f32.vlgmr.msra.gmra.mrb[0].mxu1 %v102_v33 }
  0xf7   :  { %v297_v44 = vpop.f32.mrb[0].mxu0 }
  0xf8   :  { %v298_v46 = vpop.f32.mrb[1].mxu0 }
  0xf9   :  { %v332_v47 = vpop.f32.mrb[0].mxu1  ;;  %v299_v48 = vadd.f32 %v298_v46, %v297_v44 }
  0xfa   :  { %v333_v49 = vpop.f32.mrb[1].mxu1 }
  0xfb   :  { %v334_v50 = vadd.f32 %v333_v49, %v332_v47  ;;  %v176_v51 = vadd.f32 %v299_v48, %v264_v45 }
  0xfd   :  { %v246_v52 = vadd.f32 %v334_v50, %v176_v51 }
  0xff   :  { %249 = vst [vmem:[#allocation2] sm:$0x3] %v246_v52 }
 0x100   :  { %413 = shalt.err (!%p410_p4)
}
 0x101   :  { %s414_s11 = scalar_lea.hbm %s661_s3, 32 }
 0x102   :  { %p415_p5 = scmp.ne.s32.totalorder %s661_s3, %s414_s11  ;;  %p418_p6 = scmp.lt.u32.totalorder %s414_s11, %s661_s3 }
 0x104   :  { %p420_p7 = pnand %p418_p6, %p415_p5 }
 0x106   :  { %423 = shalt.err (!%p420_p7)
}
 0x107   :  { %259 = dma.vmem_to_hbm [thread:$0]  %s257_s8, 32, %s661_s3, [#allocation3]  }
 0x108   :  { %424 = dma.done.wait [#allocation3], 32  }
 0x109   :  { %425 = vsyncadd [#allocation3], 4294967264 }
 0x10a   :  { %263 = vsyncpa [#allocation3], 1 }

// kernel: cnn_forward.6
= control target key start
LH: loop header
LB: loop body
LE: loop exit
PB: predicated region body
PF: predicated region fallthrough
CT: control target
= control target key end

     0   :  { %s3333_s12 = smov 0   ;;  %s3335_s13 = smov 0   ;;  %s5067_s0 = inlined_call_operand.vmem [shape: f32[2,4096], index: 0, kind: input, shape index: {}]   ;;  %s5068_s1 = inlined_call_operand.vmem [shape: f32[4096,512], index: 1, kind: input, shape index: {}]   ;;  %s5069_s2 = inlined_call_operand.vmem [shape: f32[1,512], index: 2, kind: input, shape index: {}]   ;;  %s5070_s3 = inlined_call_operand.vmem [shape: f32[2,512], index: 3, kind: output, shape index: {}]  }
   0x1   :  { %s3337_s14 = smov 0   ;;  %s3339_s15 = smov 0  }
   0x2   :  { %s3341_s16 = smov 0   ;;  %s3343_s17 = smov 0  }
   0x3   :  { %s3345_s18 = smov 0  }
   0x4 LB: > { %s25_s19 = sadd.s32 1, %s3301_s16  ;;  %s28_s20 = sadd.s32 1, %s3305_s17  ;;  %s3309_s18 = sphi %s3345_s18, %s13_s18   ;;  %s3305_s17 = sphi %s3343_s17, %s5076_s17   ;;  %s3301_s16 = sphi %s3341_s16, %s5075_s16   ;;  %s3297_s15 = sphi %s3339_s15, %s5074_s15   ;;  %s3293_s14 = sphi %s3337_s14, %s5073_s14   ;;  %s3289_s13 = sphi %s3335_s13, %s5072_s13   ;;  %s3285_s12 = sphi %s3333_s12, %s5071_s12  }
   0x5   : > { %p26_p0 = scmp.ge.s32.totalorder %s25_s19, 2  ;;  %p76_p1 = scmp.ne.s32.totalorder %s3289_s13, %s3285_s12 }
   0x6   : > { %p77_p2 = scmp.eq.s32.totalorder %s3309_s18, 0  ;;  %s69_s24 = sadd.s32 1, %s3289_s13 }
   0x7   : > { %s5078_s19 = smov (%p26_p0, %s25_s19), 0  ;;  %s5080_s20 = smov (!%p26_p0, %s28_s20), %s3305_s17 }
   0x8   : > { %p78_p3 = por %p77_p2, %p76_p1  ;;  %p30_p4 = scmp.ge.s32.totalorder %s5080_s20, 2 }
   0x9   : > { %s64_s21 = ssub.s32 %s3301_s16, %s5078_s19  ;;  %p2649_p6 = scmp.ge.s32.totalorder %s3309_s18, 4 }
   0xa   : > { %s5082_s20 = smov (%p30_p4, %s5080_s20), 0 }
   0xb   : > { %s65_s22 = ssub.s32 %s3305_s17, %s5082_s20  ;;  %156 = sbr.rel (%p2649_p6) target bundleno = 281 (0x119), region = 16 }
   0xc   : > { %s66_s23 = sor.u32 %s65_s22, %s64_s21 }
   0xd   : > { %p67_p5 = scmp.eq.s32.totalorder %s66_s23, 0 }
   0xf   : > { %s3384_s25 = scalar_select %p67_p5, %s3289_s13, %s69_s24  }
  0x12   : > { %172 = sbr.rel (!%p78_p3) target bundleno = 281 (0x119), region = 24  ;;  %s174_s26 = sand.u32 (%p78_p3), 1, %s3289_s13  }
  0x13   : > { %s2652_s27 = sshll.u32 (%p78_p3), %s3305_s17, 1  ;;  %s2650_s28 = sshll.u32 (%p78_p3), %s174_s26, 12 }
  0x14   : > { %s2666_s29 = sshll.u32 (%p78_p3), %s3301_s16, 10  ;;  %s3398_s8 = scalar_lea.vmem (%p78_p3), [#allocation3], %s2650_s28 }
  0x15   : > { %s180_s30 = sadd.s32 (%p78_p3), %s2666_s29, %s2652_s27 }
  0x16   : > { %s2654_s4 = sshll.u32 (%p78_p3), %s180_s30, 3 }
  0x17   : > { %s3393_s7 = scalar_lea.vmem (%p78_p3), %s5068_s1, %s2654_s4 }
  0x18   : > { %v195_v0 = vld [vmem:[%s3393_s7] sm:$0xff] (%p78_p3)  ;;  %v197_v1 = vld [vmem:[%s3393_s7 + $0x8] sm:$0xff] (%p78_p3) }
  0x19   : > { %v199_v2 = vld [vmem:[%s3393_s7 + $0x20] sm:$0xff]  ;;  %196 = vst [vmem:[%s3398_s8] sm:$0xff] %v195_v0  ;;  %198 = vst [vmem:[%s3398_s8 + $0x8] sm:$0xff] %v197_v1  ;;  %v201_v3 = vld [vmem:[%s3393_s7 + $0x28] sm:$0xff] }
  0x1a   : > { %200 = vst [vmem:[%s3398_s8 + $0x10] sm:$0xff] %v199_v2  ;;  %v203_v4 = vld [vmem:[%s3393_s7 + $0x40] sm:$0xff]  ;;  %v205_v5 = vld [vmem:[%s3393_s7 + $0x48] sm:$0xff]  ;;  %202 = vst [vmem:[%s3398_s8 + $0x18] sm:$0xff] %v201_v3 }
  0x1b   : > { %204 = vst [vmem:[%s3398_s8 + $0x20] sm:$0xff] %v203_v4  ;;  %206 = vst [vmem:[%s3398_s8 + $0x28] sm:$0xff] %v205_v5  ;;  %v207_v6 = vld [vmem:[%s3393_s7 + $0x60] sm:$0xff]  ;;  %v209_v7 = vld [vmem:[%s3393_s7 + $0x68] sm:$0xff] }
  0x1c   : > { %v211_v8 = vld [vmem:[%s3393_s7 + $0x80] sm:$0xff]  ;;  %208 = vst [vmem:[%s3398_s8 + $0x30] sm:$0xff] %v207_v6  ;;  %210 = vst [vmem:[%s3398_s8 + $0x38] sm:$0xff] %v209_v7  ;;  %v213_v9 = vld [vmem:[%s3393_s7 + $0x88] sm:$0xff] }
  0x1d   : > { %212 = vst [vmem:[%s3398_s8 + $0x40] sm:$0xff] %v211_v8  ;;  %v215_v10 = vld [vmem:[%s3393_s7 + $0xa0] sm:$0xff]  ;;  %v217_v11 = vld [vmem:[%s3393_s7 + $0xa8] sm:$0xff]  ;;  %214 = vst [vmem:[%s3398_s8 + $0x48] sm:$0xff] %v213_v9 }
  0x1e   : > { %216 = vst [vmem:[%s3398_s8 + $0x50] sm:$0xff] %v215_v10  ;;  %218 = vst [vmem:[%s3398_s8 + $0x58] sm:$0xff] %v217_v11  ;;  %v219_v12 = vld [vmem:[%s3393_s7 + $0xc0] sm:$0xff]  ;;  %v221_v13 = vld [vmem:[%s3393_s7 + $0xc8] sm:$0xff] }
  0x1f   : > { %v223_v14 = vld [vmem:[%s3393_s7 + $0xe0] sm:$0xff]  ;;  %220 = vst [vmem:[%s3398_s8 + $0x60] sm:$0xff] %v219_v12  ;;  %222 = vst [vmem:[%s3398_s8 + $0x68] sm:$0xff] %v221_v13  ;;  %v225_v15 = vld [vmem:[%s3393_s7 + $0xe8] sm:$0xff] }
  0x20   : > { %224 = vst [vmem:[%s3398_s8 + $0x70] sm:$0xff] %v223_v14  ;;  %v227_v16 = vld [vmem:[%s3393_s7 + $0x100] sm:$0xff]  ;;  %v229_v17 = vld [vmem:[%s3393_s7 + $0x108] sm:$0xff]  ;;  %226 = vst [vmem:[%s3398_s8 + $0x78] sm:$0xff] %v225_v15 }
  0x21   : > { %228 = vst [vmem:[%s3398_s8 + $0x80] sm:$0xff] %v227_v16  ;;  %230 = vst [vmem:[%s3398_s8 + $0x88] sm:$0xff] %v229_v17  ;;  %v231_v18 = vld [vmem:[%s3393_s7 + $0x120] sm:$0xff]  ;;  %v233_v19 = vld [vmem:[%s3393_s7 + $0x128] sm:$0xff] }
  0x22   : > { %v235_v20 = vld [vmem:[%s3393_s7 + $0x140] sm:$0xff]  ;;  %232 = vst [vmem:[%s3398_s8 + $0x90] sm:$0xff] %v231_v18  ;;  %234 = vst [vmem:[%s3398_s8 + $0x98] sm:$0xff] %v233_v19  ;;  %v237_v21 = vld [vmem:[%s3393_s7 + $0x148] sm:$0xff] }
  0x23   : > { %236 = vst [vmem:[%s3398_s8 + $0xa0] sm:$0xff] %v235_v20  ;;  %v239_v22 = vld [vmem:[%s3393_s7 + $0x160] sm:$0xff]  ;;  %v241_v23 = vld [vmem:[%s3393_s7 + $0x168] sm:$0xff]  ;;  %238 = vst [vmem:[%s3398_s8 + $0xa8] sm:$0xff] %v237_v21 }
  0x24   : > { %240 = vst [vmem:[%s3398_s8 + $0xb0] sm:$0xff] %v239_v22  ;;  %242 = vst [vmem:[%s3398_s8 + $0xb8] sm:$0xff] %v241_v23  ;;  %v243_v24 = vld [vmem:[%s3393_s7 + $0x180] sm:$0xff]  ;;  %v245_v25 = vld [vmem:[%s3393_s7 + $0x188] sm:$0xff] }
  0x25   : > { %v247_v26 = vld [vmem:[%s3393_s7 + $0x1a0] sm:$0xff]  ;;  %244 = vst [vmem:[%s3398_s8 + $0xc0] sm:$0xff] %v243_v24  ;;  %246 = vst [vmem:[%s3398_s8 + $0xc8] sm:$0xff] %v245_v25  ;;  %v249_v27 = vld [vmem:[%s3393_s7 + $0x1a8] sm:$0xff] }
  0x26   : > { %248 = vst [vmem:[%s3398_s8 + $0xd0] sm:$0xff] %v247_v26  ;;  %v251_v28 = vld [vmem:[%s3393_s7 + $0x1c0] sm:$0xff]  ;;  %v253_v29 = vld [vmem:[%s3393_s7 + $0x1c8] sm:$0xff]  ;;  %250 = vst [vmem:[%s3398_s8 + $0xd8] sm:$0xff] %v249_v27 }
  0x27   : > { %252 = vst [vmem:[%s3398_s8 + $0xe0] sm:$0xff] %v251_v28  ;;  %254 = vst [vmem:[%s3398_s8 + $0xe8] sm:$0xff] %v253_v29  ;;  %v255_v30 = vld [vmem:[%s3393_s7 + $0x1e0] sm:$0xff]  ;;  %v257_v31 = vld [vmem:[%s3393_s7 + $0x1e8] sm:$0xff] }
  0x28   : > { %v259_v32 = vld [vmem:[%s3393_s7 + $0x200] sm:$0xff]  ;;  %256 = vst [vmem:[%s3398_s8 + $0xf0] sm:$0xff] %v255_v30  ;;  %258 = vst [vmem:[%s3398_s8 + $0xf8] sm:$0xff] %v257_v31  ;;  %v261_v33 = vld [vmem:[%s3393_s7 + $0x208] sm:$0xff] }
  0x29   : > { %260 = vst [vmem:[%s3398_s8 + $0x100] sm:$0xff] %v259_v32  ;;  %v263_v34 = vld [vmem:[%s3393_s7 + $0x220] sm:$0xff]  ;;  %v265_v35 = vld [vmem:[%s3393_s7 + $0x228] sm:$0xff]  ;;  %262 = vst [vmem:[%s3398_s8 + $0x108] sm:$0xff] %v261_v33 }
  0x2a   : > { %264 = vst [vmem:[%s3398_s8 + $0x110] sm:$0xff] %v263_v34  ;;  %266 = vst [vmem:[%s3398_s8 + $0x118] sm:$0xff] %v265_v35  ;;  %v267_v36 = vld [vmem:[%s3393_s7 + $0x240] sm:$0xff]  ;;  %v269_v37 = vld [vmem:[%s3393_s7 + $0x248] sm:$0xff] }
  0x2b   : > { %v271_v38 = vld [vmem:[%s3393_s7 + $0x260] sm:$0xff]  ;;  %268 = vst [vmem:[%s3398_s8 + $0x120] sm:$0xff] %v267_v36  ;;  %270 = vst [vmem:[%s3398_s8 + $0x128] sm:$0xff] %v269_v37  ;;  %v273_v39 = vld [vmem:[%s3393_s7 + $0x268] sm:$0xff] }
  0x2c   : > { %272 = vst [vmem:[%s3398_s8 + $0x130] sm:$0xff] %v271_v38  ;;  %v275_v40 = vld [vmem:[%s3393_s7 + $0x280] sm:$0xff]  ;;  %v277_v41 = vld [vmem:[%s3393_s7 + $0x288] sm:$0xff]  ;;  %274 = vst [vmem:[%s3398_s8 + $0x138] sm:$0xff] %v273_v39 }
  0x2d   : > { %276 = vst [vmem:[%s3398_s8 + $0x140] sm:$0xff] %v275_v40  ;;  %278 = vst [vmem:[%s3398_s8 + $0x148] sm:$0xff] %v277_v41  ;;  %v279_v42 = vld [vmem:[%s3393_s7 + $0x2a0] sm:$0xff]  ;;  %v281_v43 = vld [vmem:[%s3393_s7 + $0x2a8] sm:$0xff] }
  0x2e   : > { %v283_v44 = vld [vmem:[%s3393_s7 + $0x2c0] sm:$0xff]  ;;  %280 = vst [vmem:[%s3398_s8 + $0x150] sm:$0xff] %v279_v42  ;;  %282 = vst [vmem:[%s3398_s8 + $0x158] sm:$0xff] %v281_v43  ;;  %v285_v45 = vld [vmem:[%s3393_s7 + $0x2c8] sm:$0xff] }
  0x2f   : > { %284 = vst [vmem:[%s3398_s8 + $0x160] sm:$0xff] %v283_v44  ;;  %v287_v46 = vld [vmem:[%s3393_s7 + $0x2e0] sm:$0xff]  ;;  %v289_v47 = vld [vmem:[%s3393_s7 + $0x2e8] sm:$0xff]  ;;  %286 = vst [vmem:[%s3398_s8 + $0x168] sm:$0xff] %v285_v45 }
  0x30   : > { %288 = vst [vmem:[%s3398_s8 + $0x170] sm:$0xff] %v287_v46  ;;  %290 = vst [vmem:[%s3398_s8 + $0x178] sm:$0xff] %v289_v47  ;;  %v291_v48 = vld [vmem:[%s3393_s7 + $0x300] sm:$0xff]  ;;  %v293_v49 = vld [vmem:[%s3393_s7 + $0x308] sm:$0xff] }
  0x31   : > { %v295_v50 = vld [vmem:[%s3393_s7 + $0x320] sm:$0xff]  ;;  %292 = vst [vmem:[%s3398_s8 + $0x180] sm:$0xff] %v291_v48  ;;  %294 = vst [vmem:[%s3398_s8 + $0x188] sm:$0xff] %v293_v49  ;;  %v297_v51 = vld [vmem:[%s3393_s7 + $0x328] sm:$0xff] }
  0x32   : > { %296 = vst [vmem:[%s3398_s8 + $0x190] sm:$0xff] %v295_v50  ;;  %v299_v52 = vld [vmem:[%s3393_s7 + $0x340] sm:$0xff]  ;;  %v301_v53 = vld [vmem:[%s3393_s7 + $0x348] sm:$0xff]  ;;  %298 = vst [vmem:[%s3398_s8 + $0x198] sm:$0xff] %v297_v51 }
  0x33   : > { %300 = vst [vmem:[%s3398_s8 + $0x1a0] sm:$0xff] %v299_v52  ;;  %302 = vst [vmem:[%s3398_s8 + $0x1a8] sm:$0xff] %v301_v53  ;;  %v303_v54 = vld [vmem:[%s3393_s7 + $0x360] sm:$0xff]  ;;  %v305_v55 = vld [vmem:[%s3393_s7 + $0x368] sm:$0xff] }
  0x34   : > { %v307_v56 = vld [vmem:[%s3393_s7 + $0x380] sm:$0xff]  ;;  %304 = vst [vmem:[%s3398_s8 + $0x1b0] sm:$0xff] %v303_v54  ;;  %306 = vst [vmem:[%s3398_s8 + $0x1b8] sm:$0xff] %v305_v55  ;;  %v309_v57 = vld [vmem:[%s3393_s7 + $0x388] sm:$0xff] }
  0x35   : > { %308 = vst [vmem:[%s3398_s8 + $0x1c0] sm:$0xff] %v307_v56  ;;  %v311_v58 = vld [vmem:[%s3393_s7 + $0x3a0] sm:$0xff]  ;;  %v313_v59 = vld [vmem:[%s3393_s7 + $0x3a8] sm:$0xff]  ;;  %310 = vst [vmem:[%s3398_s8 + $0x1c8] sm:$0xff] %v309_v57 }
  0x36   : > { %312 = vst [vmem:[%s3398_s8 + $0x1d0] sm:$0xff] %v311_v58  ;;  %314 = vst [vmem:[%s3398_s8 + $0x1d8] sm:$0xff] %v313_v59  ;;  %v315_v60 = vld [vmem:[%s3393_s7 + $0x3c0] sm:$0xff]  ;;  %v317_v61 = vld [vmem:[%s3393_s7 + $0x3c8] sm:$0xff] }
  0x37   : > { %v319_v62 = vld [vmem:[%s3393_s7 + $0x3e0] sm:$0xff]  ;;  %316 = vst [vmem:[%s3398_s8 + $0x1e0] sm:$0xff] %v315_v60  ;;  %318 = vst [vmem:[%s3398_s8 + $0x1e8] sm:$0xff] %v317_v61  ;;  %v321_v63 = vld [vmem:[%s3393_s7 + $0x3e8] sm:$0xff] }
  0x38   : > { %320 = vst [vmem:[%s3398_s8 + $0x1f0] sm:$0xff] %v319_v62  ;;  %v323_v0 = vld [vmem:[%s3393_s7 + $0x400] sm:$0xff]  ;;  %v325_v1 = vld [vmem:[%s3393_s7 + $0x408] sm:$0xff]  ;;  %322 = vst [vmem:[%s3398_s8 + $0x1f8] sm:$0xff] %v321_v63 }
  0x39   : > { %324 = vst [vmem:[%s3398_s8 + $0x200] sm:$0xff] %v323_v0  ;;  %326 = vst [vmem:[%s3398_s8 + $0x208] sm:$0xff] %v325_v1  ;;  %v327_v2 = vld [vmem:[%s3393_s7 + $0x420] sm:$0xff]  ;;  %v329_v3 = vld [vmem:[%s3393_s7 + $0x428] sm:$0xff] }
  0x3a   : > { %v331_v4 = vld [vmem:[%s3393_s7 + $0x440] sm:$0xff]  ;;  %328 = vst [vmem:[%s3398_s8 + $0x210] sm:$0xff] %v327_v2  ;;  %330 = vst [vmem:[%s3398_s8 + $0x218] sm:$0xff] %v329_v3  ;;  %v333_v5 = vld [vmem:[%s3393_s7 + $0x448] sm:$0xff] }
  0x3b   : > { %332 = vst [vmem:[%s3398_s8 + $0x220] sm:$0xff] %v331_v4  ;;  %v335_v6 = vld [vmem:[%s3393_s7 + $0x460] sm:$0xff]  ;;  %v337_v7 = vld [vmem:[%s3393_s7 + $0x468] sm:$0xff]  ;;  %334 = vst [vmem:[%s3398_s8 + $0x228] sm:$0xff] %v333_v5 }
  0x3c   : > { %336 = vst [vmem:[%s3398_s8 + $0x230] sm:$0xff] %v335_v6  ;;  %338 = vst [vmem:[%s3398_s8 + $0x238] sm:$0xff] %v337_v7  ;;  %v339_v8 = vld [vmem:[%s3393_s7 + $0x480] sm:$0xff]  ;;  %v341_v9 = vld [vmem:[%s3393_s7 + $0x488] sm:$0xff] }
  0x3d   : > { %v343_v10 = vld [vmem:[%s3393_s7 + $0x4a0] sm:$0xff]  ;;  %340 = vst [vmem:[%s3398_s8 + $0x240] sm:$0xff] %v339_v8  ;;  %342 = vst [vmem:[%s3398_s8 + $0x248] sm:$0xff] %v341_v9  ;;  %v345_v11 = vld [vmem:[%s3393_s7 + $0x4a8] sm:$0xff] }
  0x3e   : > { %344 = vst [vmem:[%s3398_s8 + $0x250] sm:$0xff] %v343_v10  ;;  %v347_v12 = vld [vmem:[%s3393_s7 + $0x4c0] sm:$0xff]  ;;  %v349_v13 = vld [vmem:[%s3393_s7 + $0x4c8] sm:$0xff]  ;;  %346 = vst [vmem:[%s3398_s8 + $0x258] sm:$0xff] %v345_v11 }
  0x3f   : > { %348 = vst [vmem:[%s3398_s8 + $0x260] sm:$0xff] %v347_v12  ;;  %350 = vst [vmem:[%s3398_s8 + $0x268] sm:$0xff] %v349_v13  ;;  %v351_v14 = vld [vmem:[%s3393_s7 + $0x4e0] sm:$0xff]  ;;  %v353_v15 = vld [vmem:[%s3393_s7 + $0x4e8] sm:$0xff] }
  0x40   : > { %v355_v16 = vld [vmem:[%s3393_s7 + $0x500] sm:$0xff]  ;;  %352 = vst [vmem:[%s3398_s8 + $0x270] sm:$0xff] %v351_v14  ;;  %354 = vst [vmem:[%s3398_s8 + $0x278] sm:$0xff] %v353_v15  ;;  %v357_v17 = vld [vmem:[%s3393_s7 + $0x508] sm:$0xff] }
  0x41   : > { %356 = vst [vmem:[%s3398_s8 + $0x280] sm:$0xff] %v355_v16  ;;  %v359_v18 = vld [vmem:[%s3393_s7 + $0x520] sm:$0xff]  ;;  %v361_v19 = vld [vmem:[%s3393_s7 + $0x528] sm:$0xff]  ;;  %358 = vst [vmem:[%s3398_s8 + $0x288] sm:$0xff] %v357_v17 }
  0x42   : > { %360 = vst [vmem:[%s3398_s8 + $0x290] sm:$0xff] %v359_v18  ;;  %362 = vst [vmem:[%s3398_s8 + $0x298] sm:$0xff] %v361_v19  ;;  %v363_v20 = vld [vmem:[%s3393_s7 + $0x540] sm:$0xff]  ;;  %v365_v21 = vld [vmem:[%s3393_s7 + $0x548] sm:$0xff] }
  0x43   : > { %v367_v22 = vld [vmem:[%s3393_s7 + $0x560] sm:$0xff]  ;;  %364 = vst [vmem:[%s3398_s8 + $0x2a0] sm:$0xff] %v363_v20  ;;  %366 = vst [vmem:[%s3398_s8 + $0x2a8] sm:$0xff] %v365_v21  ;;  %v369_v23 = vld [vmem:[%s3393_s7 + $0x568] sm:$0xff] }
  0x44   : > { %368 = vst [vmem:[%s3398_s8 + $0x2b0] sm:$0xff] %v367_v22  ;;  %v371_v24 = vld [vmem:[%s3393_s7 + $0x580] sm:$0xff]  ;;  %v373_v25 = vld [vmem:[%s3393_s7 + $0x588] sm:$0xff]  ;;  %370 = vst [vmem:[%s3398_s8 + $0x2b8] sm:$0xff] %v369_v23 }
  0x45   : > { %372 = vst [vmem:[%s3398_s8 + $0x2c0] sm:$0xff] %v371_v24  ;;  %374 = vst [vmem:[%s3398_s8 + $0x2c8] sm:$0xff] %v373_v25  ;;  %v375_v26 = vld [vmem:[%s3393_s7 + $0x5a0] sm:$0xff]  ;;  %v377_v27 = vld [vmem:[%s3393_s7 + $0x5a8] sm:$0xff] }
  0x46   : > { %v379_v28 = vld [vmem:[%s3393_s7 + $0x5c0] sm:$0xff]  ;;  %376 = vst [vmem:[%s3398_s8 + $0x2d0] sm:$0xff] %v375_v26  ;;  %378 = vst [vmem:[%s3398_s8 + $0x2d8] sm:$0xff] %v377_v27  ;;  %v381_v29 = vld [vmem:[%s3393_s7 + $0x5c8] sm:$0xff] }
  0x47   : > { %380 = vst [vmem:[%s3398_s8 + $0x2e0] sm:$0xff] %v379_v28  ;;  %v383_v30 = vld [vmem:[%s3393_s7 + $0x5e0] sm:$0xff]  ;;  %v385_v31 = vld [vmem:[%s3393_s7 + $0x5e8] sm:$0xff]  ;;  %382 = vst [vmem:[%s3398_s8 + $0x2e8] sm:$0xff] %v381_v29 }
  0x48   : > { %384 = vst [vmem:[%s3398_s8 + $0x2f0] sm:$0xff] %v383_v30  ;;  %386 = vst [vmem:[%s3398_s8 + $0x2f8] sm:$0xff] %v385_v31  ;;  %v387_v32 = vld [vmem:[%s3393_s7 + $0x600] sm:$0xff]  ;;  %v389_v33 = vld [vmem:[%s3393_s7 + $0x608] sm:$0xff] }
  0x49   : > { %v391_v34 = vld [vmem:[%s3393_s7 + $0x620] sm:$0xff]  ;;  %388 = vst [vmem:[%s3398_s8 + $0x300] sm:$0xff] %v387_v32  ;;  %390 = vst [vmem:[%s3398_s8 + $0x308] sm:$0xff] %v389_v33  ;;  %v393_v35 = vld [vmem:[%s3393_s7 + $0x628] sm:$0xff] }
  0x4a   : > { %392 = vst [vmem:[%s3398_s8 + $0x310] sm:$0xff] %v391_v34  ;;  %v395_v36 = vld [vmem:[%s3393_s7 + $0x640] sm:$0xff]  ;;  %v397_v37 = vld [vmem:[%s3393_s7 + $0x648] sm:$0xff]  ;;  %394 = vst [vmem:[%s3398_s8 + $0x318] sm:$0xff] %v393_v35 }
  0x4b   : > { %396 = vst [vmem:[%s3398_s8 + $0x320] sm:$0xff] %v395_v36  ;;  %398 = vst [vmem:[%s3398_s8 + $0x328] sm:$0xff] %v397_v37  ;;  %v399_v38 = vld [vmem:[%s3393_s7 + $0x660] sm:$0xff]  ;;  %v401_v39 = vld [vmem:[%s3393_s7 + $0x668] sm:$0xff] }
  0x4c   : > { %v403_v40 = vld [vmem:[%s3393_s7 + $0x680] sm:$0xff]  ;;  %400 = vst [vmem:[%s3398_s8 + $0x330] sm:$0xff] %v399_v38  ;;  %402 = vst [vmem:[%s3398_s8 + $0x338] sm:$0xff] %v401_v39  ;;  %v405_v41 = vld [vmem:[%s3393_s7 + $0x688] sm:$0xff] }
  0x4d   : > { %404 = vst [vmem:[%s3398_s8 + $0x340] sm:$0xff] %v403_v40  ;;  %v407_v42 = vld [vmem:[%s3393_s7 + $0x6a0] sm:$0xff]  ;;  %v409_v43 = vld [vmem:[%s3393_s7 + $0x6a8] sm:$0xff]  ;;  %406 = vst [vmem:[%s3398_s8 + $0x348] sm:$0xff] %v405_v41 }
  0x4e   : > { %408 = vst [vmem:[%s3398_s8 + $0x350] sm:$0xff] %v407_v42  ;;  %410 = vst [vmem:[%s3398_s8 + $0x358] sm:$0xff] %v409_v43  ;;  %v411_v44 = vld [vmem:[%s3393_s7 + $0x6c0] sm:$0xff]  ;;  %v413_v45 = vld [vmem:[%s3393_s7 + $0x6c8] sm:$0xff] }
  0x4f   : > { %v415_v46 = vld [vmem:[%s3393_s7 + $0x6e0] sm:$0xff]  ;;  %412 = vst [vmem:[%s3398_s8 + $0x360] sm:$0xff] %v411_v44  ;;  %414 = vst [vmem:[%s3398_s8 + $0x368] sm:$0xff] %v413_v45  ;;  %v417_v47 = vld [vmem:[%s3393_s7 + $0x6e8] sm:$0xff] }
  0x50   : > { %416 = vst [vmem:[%s3398_s8 + $0x370] sm:$0xff] %v415_v46  ;;  %v419_v48 = vld [vmem:[%s3393_s7 + $0x700] sm:$0xff]  ;;  %v421_v49 = vld [vmem:[%s3393_s7 + $0x708] sm:$0xff]  ;;  %418 = vst [vmem:[%s3398_s8 + $0x378] sm:$0xff] %v417_v47 }
  0x51   : > { %420 = vst [vmem:[%s3398_s8 + $0x380] sm:$0xff] %v419_v48  ;;  %422 = vst [vmem:[%s3398_s8 + $0x388] sm:$0xff] %v421_v49  ;;  %v423_v50 = vld [vmem:[%s3393_s7 + $0x720] sm:$0xff]  ;;  %v425_v51 = vld [vmem:[%s3393_s7 + $0x728] sm:$0xff] }
  0x52   : > { %v427_v52 = vld [vmem:[%s3393_s7 + $0x740] sm:$0xff]  ;;  %424 = vst [vmem:[%s3398_s8 + $0x390] sm:$0xff] %v423_v50  ;;  %426 = vst [vmem:[%s3398_s8 + $0x398] sm:$0xff] %v425_v51  ;;  %v429_v53 = vld [vmem:[%s3393_s7 + $0x748] sm:$0xff] }
  0x53   : > { %428 = vst [vmem:[%s3398_s8 + $0x3a0] sm:$0xff] %v427_v52  ;;  %v431_v54 = vld [vmem:[%s3393_s7 + $0x760] sm:$0xff]  ;;  %v433_v55 = vld [vmem:[%s3393_s7 + $0x768] sm:$0xff]  ;;  %430 = vst [vmem:[%s3398_s8 + $0x3a8] sm:$0xff] %v429_v53 }
  0x54   : > { %432 = vst [vmem:[%s3398_s8 + $0x3b0] sm:$0xff] %v431_v54  ;;  %434 = vst [vmem:[%s3398_s8 + $0x3b8] sm:$0xff] %v433_v55  ;;  %v435_v56 = vld [vmem:[%s3393_s7 + $0x780] sm:$0xff]  ;;  %v437_v57 = vld [vmem:[%s3393_s7 + $0x788] sm:$0xff] }
  0x55   : > { %v439_v58 = vld [vmem:[%s3393_s7 + $0x7a0] sm:$0xff]  ;;  %436 = vst [vmem:[%s3398_s8 + $0x3c0] sm:$0xff] %v435_v56  ;;  %438 = vst [vmem:[%s3398_s8 + $0x3c8] sm:$0xff] %v437_v57  ;;  %v441_v59 = vld [vmem:[%s3393_s7 + $0x7a8] sm:$0xff] }
  0x56   : > { %440 = vst [vmem:[%s3398_s8 + $0x3d0] sm:$0xff] %v439_v58  ;;  %v443_v60 = vld [vmem:[%s3393_s7 + $0x7c0] sm:$0xff]  ;;  %v445_v61 = vld [vmem:[%s3393_s7 + $0x7c8] sm:$0xff]  ;;  %442 = vst [vmem:[%s3398_s8 + $0x3d8] sm:$0xff] %v441_v59 }
  0x57   : > { %444 = vst [vmem:[%s3398_s8 + $0x3e0] sm:$0xff] %v443_v60  ;;  %446 = vst [vmem:[%s3398_s8 + $0x3e8] sm:$0xff] %v445_v61  ;;  %v447_v62 = vld [vmem:[%s3393_s7 + $0x7e0] sm:$0xff]  ;;  %v449_v63 = vld [vmem:[%s3393_s7 + $0x7e8] sm:$0xff] }
  0x58   : > { %v451_v0 = vld [vmem:[%s3393_s7 + $0x800] sm:$0xff]  ;;  %448 = vst [vmem:[%s3398_s8 + $0x3f0] sm:$0xff] %v447_v62  ;;  %450 = vst [vmem:[%s3398_s8 + $0x3f8] sm:$0xff] %v449_v63  ;;  %v453_v1 = vld [vmem:[%s3393_s7 + $0x808] sm:$0xff] }
  0x59   : > { %452 = vst [vmem:[%s3398_s8 + $0x400] sm:$0xff] %v451_v0  ;;  %v455_v2 = vld [vmem:[%s3393_s7 + $0x820] sm:$0xff]  ;;  %v457_v3 = vld [vmem:[%s3393_s7 + $0x828] sm:$0xff]  ;;  %454 = vst [vmem:[%s3398_s8 + $0x408] sm:$0xff] %v453_v1 }
  0x5a   : > { %456 = vst [vmem:[%s3398_s8 + $0x410] sm:$0xff] %v455_v2  ;;  %458 = vst [vmem:[%s3398_s8 + $0x418] sm:$0xff] %v457_v3  ;;  %v459_v4 = vld [vmem:[%s3393_s7 + $0x840] sm:$0xff]  ;;  %v461_v5 = vld [vmem:[%s3393_s7 + $0x848] sm:$0xff] }
  0x5b   : > { %v463_v6 = vld [vmem:[%s3393_s7 + $0x860] sm:$0xff]  ;;  %460 = vst [vmem:[%s3398_s8 + $0x420] sm:$0xff] %v459_v4  ;;  %462 = vst [vmem:[%s3398_s8 + $0x428] sm:$0xff] %v461_v5  ;;  %v465_v7 = vld [vmem:[%s3393_s7 + $0x868] sm:$0xff] }
  0x5c   : > { %464 = vst [vmem:[%s3398_s8 + $0x430] sm:$0xff] %v463_v6  ;;  %v467_v8 = vld [vmem:[%s3393_s7 + $0x880] sm:$0xff]  ;;  %v469_v9 = vld [vmem:[%s3393_s7 + $0x888] sm:$0xff]  ;;  %466 = vst [vmem:[%s3398_s8 + $0x438] sm:$0xff] %v465_v7 }
  0x5d   : > { %468 = vst [vmem:[%s3398_s8 + $0x440] sm:$0xff] %v467_v8  ;;  %470 = vst [vmem:[%s3398_s8 + $0x448] sm:$0xff] %v469_v9  ;;  %v471_v10 = vld [vmem:[%s3393_s7 + $0x8a0] sm:$0xff]  ;;  %v473_v11 = vld [vmem:[%s3393_s7 + $0x8a8] sm:$0xff] }
  0x5e   : > { %v475_v12 = vld [vmem:[%s3393_s7 + $0x8c0] sm:$0xff]  ;;  %472 = vst [vmem:[%s3398_s8 + $0x450] sm:$0xff] %v471_v10  ;;  %474 = vst [vmem:[%s3398_s8 + $0x458] sm:$0xff] %v473_v11  ;;  %v477_v13 = vld [vmem:[%s3393_s7 + $0x8c8] sm:$0xff] }
  0x5f   : > { %476 = vst [vmem:[%s3398_s8 + $0x460] sm:$0xff] %v475_v12  ;;  %v479_v14 = vld [vmem:[%s3393_s7 + $0x8e0] sm:$0xff]  ;;  %v481_v15 = vld [vmem:[%s3393_s7 + $0x8e8] sm:$0xff]  ;;  %478 = vst [vmem:[%s3398_s8 + $0x468] sm:$0xff] %v477_v13 }
  0x60   : > { %480 = vst [vmem:[%s3398_s8 + $0x470] sm:$0xff] %v479_v14  ;;  %482 = vst [vmem:[%s3398_s8 + $0x478] sm:$0xff] %v481_v15  ;;  %v483_v16 = vld [vmem:[%s3393_s7 + $0x900] sm:$0xff]  ;;  %v485_v17 = vld [vmem:[%s3393_s7 + $0x908] sm:$0xff] }
  0x61   : > { %v487_v18 = vld [vmem:[%s3393_s7 + $0x920] sm:$0xff]  ;;  %484 = vst [vmem:[%s3398_s8 + $0x480] sm:$0xff] %v483_v16  ;;  %486 = vst [vmem:[%s3398_s8 + $0x488] sm:$0xff] %v485_v17  ;;  %v489_v19 = vld [vmem:[%s3393_s7 + $0x928] sm:$0xff] }
  0x62   : > { %488 = vst [vmem:[%s3398_s8 + $0x490] sm:$0xff] %v487_v18  ;;  %v491_v20 = vld [vmem:[%s3393_s7 + $0x940] sm:$0xff]  ;;  %v493_v21 = vld [vmem:[%s3393_s7 + $0x948] sm:$0xff]  ;;  %490 = vst [vmem:[%s3398_s8 + $0x498] sm:$0xff] %v489_v19 }
  0x63   : > { %492 = vst [vmem:[%s3398_s8 + $0x4a0] sm:$0xff] %v491_v20  ;;  %494 = vst [vmem:[%s3398_s8 + $0x4a8] sm:$0xff] %v493_v21  ;;  %v495_v22 = vld [vmem:[%s3393_s7 + $0x960] sm:$0xff]  ;;  %v497_v23 = vld [vmem:[%s3393_s7 + $0x968] sm:$0xff] }
  0x64   : > { %v499_v24 = vld [vmem:[%s3393_s7 + $0x980] sm:$0xff]  ;;  %496 = vst [vmem:[%s3398_s8 + $0x4b0] sm:$0xff] %v495_v22  ;;  %498 = vst [vmem:[%s3398_s8 + $0x4b8] sm:$0xff] %v497_v23  ;;  %v501_v25 = vld [vmem:[%s3393_s7 + $0x988] sm:$0xff] }
  0x65   : > { %500 = vst [vmem:[%s3398_s8 + $0x4c0] sm:$0xff] %v499_v24  ;;  %v503_v26 = vld [vmem:[%s3393_s7 + $0x9a0] sm:$0xff]  ;;  %v505_v27 = vld [vmem:[%s3393_s7 + $0x9a8] sm:$0xff]  ;;  %502 = vst [vmem:[%s3398_s8 + $0x4c8] sm:$0xff] %v501_v25 }
  0x66   : > { %504 = vst [vmem:[%s3398_s8 + $0x4d0] sm:$0xff] %v503_v26  ;;  %506 = vst [vmem:[%s3398_s8 + $0x4d8] sm:$0xff] %v505_v27  ;;  %v507_v28 = vld [vmem:[%s3393_s7 + $0x9c0] sm:$0xff]  ;;  %v509_v29 = vld [vmem:[%s3393_s7 + $0x9c8] sm:$0xff] }
  0x67   : > { %v511_v30 = vld [vmem:[%s3393_s7 + $0x9e0] sm:$0xff]  ;;  %508 = vst [vmem:[%s3398_s8 + $0x4e0] sm:$0xff] %v507_v28  ;;  %510 = vst [vmem:[%s3398_s8 + $0x4e8] sm:$0xff] %v509_v29  ;;  %v513_v31 = vld [vmem:[%s3393_s7 + $0x9e8] sm:$0xff] }
  0x68   : > { %512 = vst [vmem:[%s3398_s8 + $0x4f0] sm:$0xff] %v511_v30  ;;  %v515_v32 = vld [vmem:[%s3393_s7 + $0xa00] sm:$0xff]  ;;  %v517_v33 = vld [vmem:[%s3393_s7 + $0xa08] sm:$0xff]  ;;  %514 = vst [vmem:[%s3398_s8 + $0x4f8] sm:$0xff] %v513_v31 }
  0x69   : > { %516 = vst [vmem:[%s3398_s8 + $0x500] sm:$0xff] %v515_v32  ;;  %518 = vst [vmem:[%s3398_s8 + $0x508] sm:$0xff] %v517_v33  ;;  %v519_v34 = vld [vmem:[%s3393_s7 + $0xa20] sm:$0xff]  ;;  %v521_v35 = vld [vmem:[%s3393_s7 + $0xa28] sm:$0xff] }
  0x6a   : > { %v523_v36 = vld [vmem:[%s3393_s7 + $0xa40] sm:$0xff]  ;;  %520 = vst [vmem:[%s3398_s8 + $0x510] sm:$0xff] %v519_v34  ;;  %522 = vst [vmem:[%s3398_s8 + $0x518] sm:$0xff] %v521_v35  ;;  %v525_v37 = vld [vmem:[%s3393_s7 + $0xa48] sm:$0xff] }
  0x6b   : > { %524 = vst [vmem:[%s3398_s8 + $0x520] sm:$0xff] %v523_v36  ;;  %v527_v38 = vld [vmem:[%s3393_s7 + $0xa60] sm:$0xff]  ;;  %v529_v39 = vld [vmem:[%s3393_s7 + $0xa68] sm:$0xff]  ;;  %526 = vst [vmem:[%s3398_s8 + $0x528] sm:$0xff] %v525_v37 }
  0x6c   : > { %528 = vst [vmem:[%s3398_s8 + $0x530] sm:$0xff] %v527_v38  ;;  %530 = vst [vmem:[%s3398_s8 + $0x538] sm:$0xff] %v529_v39  ;;  %v531_v40 = vld [vmem:[%s3393_s7 + $0xa80] sm:$0xff]  ;;  %v533_v41 = vld [vmem:[%s3393_s7 + $0xa88] sm:$0xff] }
  0x6d   : > { %v535_v42 = vld [vmem:[%s3393_s7 + $0xaa0] sm:$0xff]  ;;  %532 = vst [vmem:[%s3398_s8 + $0x540] sm:$0xff] %v531_v40  ;;  %534 = vst [vmem:[%s3398_s8 + $0x548] sm:$0xff] %v533_v41  ;;  %v537_v43 = vld [vmem:[%s3393_s7 + $0xaa8] sm:$0xff] }
  0x6e   : > { %536 = vst [vmem:[%s3398_s8 + $0x550] sm:$0xff] %v535_v42  ;;  %v539_v44 = vld [vmem:[%s3393_s7 + $0xac0] sm:$0xff]  ;;  %v541_v45 = vld [vmem:[%s3393_s7 + $0xac8] sm:$0xff]  ;;  %538 = vst [vmem:[%s3398_s8 + $0x558] sm:$0xff] %v537_v43 }
  0x6f   : > { %540 = vst [vmem:[%s3398_s8 + $0x560] sm:$0xff] %v539_v44  ;;  %542 = vst [vmem:[%s3398_s8 + $0x568] sm:$0xff] %v541_v45  ;;  %v543_v46 = vld [vmem:[%s3393_s7 + $0xae0] sm:$0xff]  ;;  %v545_v47 = vld [vmem:[%s3393_s7 + $0xae8] sm:$0xff] }
  0x70   : > { %v547_v48 = vld [vmem:[%s3393_s7 + $0xb00] sm:$0xff]  ;;  %544 = vst [vmem:[%s3398_s8 + $0x570] sm:$0xff] %v543_v46  ;;  %546 = vst [vmem:[%s3398_s8 + $0x578] sm:$0xff] %v545_v47  ;;  %v549_v49 = vld [vmem:[%s3393_s7 + $0xb08] sm:$0xff] }
  0x71   : > { %548 = vst [vmem:[%s3398_s8 + $0x580] sm:$0xff] %v547_v48  ;;  %v551_v50 = vld [vmem:[%s3393_s7 + $0xb20] sm:$0xff]  ;;  %v553_v51 = vld [vmem:[%s3393_s7 + $0xb28] sm:$0xff]  ;;  %550 = vst [vmem:[%s3398_s8 + $0x588] sm:$0xff] %v549_v49 }
  0x72   : > { %552 = vst [vmem:[%s3398_s8 + $0x590] sm:$0xff] %v551_v50  ;;  %554 = vst [vmem:[%s3398_s8 + $0x598] sm:$0xff] %v553_v51  ;;  %v555_v52 = vld [vmem:[%s3393_s7 + $0xb40] sm:$0xff]  ;;  %v557_v53 = vld [vmem:[%s3393_s7 + $0xb48] sm:$0xff] }
  0x73   : > { %v559_v54 = vld [vmem:[%s3393_s7 + $0xb60] sm:$0xff]  ;;  %556 = vst [vmem:[%s3398_s8 + $0x5a0] sm:$0xff] %v555_v52  ;;  %558 = vst [vmem:[%s3398_s8 + $0x5a8] sm:$0xff] %v557_v53  ;;  %v561_v55 = vld [vmem:[%s3393_s7 + $0xb68] sm:$0xff] }
  0x74   : > { %560 = vst [vmem:[%s3398_s8 + $0x5b0] sm:$0xff] %v559_v54  ;;  %v563_v56 = vld [vmem:[%s3393_s7 + $0xb80] sm:$0xff]  ;;  %v565_v57 = vld [vmem:[%s3393_s7 + $0xb88] sm:$0xff]  ;;  %562 = vst [vmem:[%s3398_s8 + $0x5b8] sm:$0xff] %v561_v55 }
  0x75   : > { %564 = vst [vmem:[%s3398_s8 + $0x5c0] sm:$0xff] %v563_v56  ;;  %566 = vst [vmem:[%s3398_s8 + $0x5c8] sm:$0xff] %v565_v57  ;;  %v567_v58 = vld [vmem:[%s3393_s7 + $0xba0] sm:$0xff]  ;;  %v569_v59 = vld [vmem:[%s3393_s7 + $0xba8] sm:$0xff] }
  0x76   : > { %v571_v60 = vld [vmem:[%s3393_s7 + $0xbc0] sm:$0xff]  ;;  %568 = vst [vmem:[%s3398_s8 + $0x5d0] sm:$0xff] %v567_v58  ;;  %570 = vst [vmem:[%s3398_s8 + $0x5d8] sm:$0xff] %v569_v59  ;;  %v573_v61 = vld [vmem:[%s3393_s7 + $0xbc8] sm:$0xff] }
  0x77   : > { %572 = vst [vmem:[%s3398_s8 + $0x5e0] sm:$0xff] %v571_v60  ;;  %v575_v62 = vld [vmem:[%s3393_s7 + $0xbe0] sm:$0xff]  ;;  %v577_v63 = vld [vmem:[%s3393_s7 + $0xbe8] sm:$0xff]  ;;  %574 = vst [vmem:[%s3398_s8 + $0x5e8] sm:$0xff] %v573_v61 }
  0x78   : > { %576 = vst [vmem:[%s3398_s8 + $0x5f0] sm:$0xff] %v575_v62  ;;  %578 = vst [vmem:[%s3398_s8 + $0x5f8] sm:$0xff] %v577_v63  ;;  %v579_v0 = vld [vmem:[%s3393_s7 + $0xc00] sm:$0xff]  ;;  %v581_v1 = vld [vmem:[%s3393_s7 + $0xc08] sm:$0xff] }
  0x79   : > { %v583_v2 = vld [vmem:[%s3393_s7 + $0xc20] sm:$0xff]  ;;  %580 = vst [vmem:[%s3398_s8 + $0x600] sm:$0xff] %v579_v0  ;;  %582 = vst [vmem:[%s3398_s8 + $0x608] sm:$0xff] %v581_v1  ;;  %v585_v3 = vld [vmem:[%s3393_s7 + $0xc28] sm:$0xff] }
  0x7a   : > { %584 = vst [vmem:[%s3398_s8 + $0x610] sm:$0xff] %v583_v2  ;;  %v587_v4 = vld [vmem:[%s3393_s7 + $0xc40] sm:$0xff]  ;;  %v589_v5 = vld [vmem:[%s3393_s7 + $0xc48] sm:$0xff]  ;;  %586 = vst [vmem:[%s3398_s8 + $0x618] sm:$0xff] %v585_v3 }
  0x7b   : > { %588 = vst [vmem:[%s3398_s8 + $0x620] sm:$0xff] %v587_v4  ;;  %590 = vst [vmem:[%s3398_s8 + $0x628] sm:$0xff] %v589_v5  ;;  %v591_v6 = vld [vmem:[%s3393_s7 + $0xc60] sm:$0xff]  ;;  %v593_v7 = vld [vmem:[%s3393_s7 + $0xc68] sm:$0xff] }
  0x7c   : > { %v595_v8 = vld [vmem:[%s3393_s7 + $0xc80] sm:$0xff]  ;;  %592 = vst [vmem:[%s3398_s8 + $0x630] sm:$0xff] %v591_v6  ;;  %594 = vst [vmem:[%s3398_s8 + $0x638] sm:$0xff] %v593_v7  ;;  %v597_v9 = vld [vmem:[%s3393_s7 + $0xc88] sm:$0xff] }
  0x7d   : > { %596 = vst [vmem:[%s3398_s8 + $0x640] sm:$0xff] %v595_v8  ;;  %v599_v10 = vld [vmem:[%s3393_s7 + $0xca0] sm:$0xff]  ;;  %v601_v11 = vld [vmem:[%s3393_s7 + $0xca8] sm:$0xff]  ;;  %598 = vst [vmem:[%s3398_s8 + $0x648] sm:$0xff] %v597_v9 }
  0x7e   : > { %600 = vst [vmem:[%s3398_s8 + $0x650] sm:$0xff] %v599_v10  ;;  %602 = vst [vmem:[%s3398_s8 + $0x658] sm:$0xff] %v601_v11  ;;  %v603_v12 = vld [vmem:[%s3393_s7 + $0xcc0] sm:$0xff]  ;;  %v605_v13 = vld [vmem:[%s3393_s7 + $0xcc8] sm:$0xff] }
  0x7f   : > { %v607_v14 = vld [vmem:[%s3393_s7 + $0xce0] sm:$0xff]  ;;  %604 = vst [vmem:[%s3398_s8 + $0x660] sm:$0xff] %v603_v12  ;;  %606 = vst [vmem:[%s3398_s8 + $0x668] sm:$0xff] %v605_v13  ;;  %v609_v15 = vld [vmem:[%s3393_s7 + $0xce8] sm:$0xff] }
  0x80   : > { %608 = vst [vmem:[%s3398_s8 + $0x670] sm:$0xff] %v607_v14  ;;  %v611_v16 = vld [vmem:[%s3393_s7 + $0xd00] sm:$0xff]  ;;  %v613_v17 = vld [vmem:[%s3393_s7 + $0xd08] sm:$0xff]  ;;  %610 = vst [vmem:[%s3398_s8 + $0x678] sm:$0xff] %v609_v15 }
  0x81   : > { %612 = vst [vmem:[%s3398_s8 + $0x680] sm:$0xff] %v611_v16  ;;  %614 = vst [vmem:[%s3398_s8 + $0x688] sm:$0xff] %v613_v17  ;;  %v615_v18 = vld [vmem:[%s3393_s7 + $0xd20] sm:$0xff]  ;;  %v617_v19 = vld [vmem:[%s3393_s7 + $0xd28] sm:$0xff] }
  0x82   : > { %v619_v20 = vld [vmem:[%s3393_s7 + $0xd40] sm:$0xff]  ;;  %616 = vst [vmem:[%s3398_s8 + $0x690] sm:$0xff] %v615_v18  ;;  %618 = vst [vmem:[%s3398_s8 + $0x698] sm:$0xff] %v617_v19  ;;  %v621_v21 = vld [vmem:[%s3393_s7 + $0xd48] sm:$0xff] }
  0x83   : > { %620 = vst [vmem:[%s3398_s8 + $0x6a0] sm:$0xff] %v619_v20  ;;  %v623_v22 = vld [vmem:[%s3393_s7 + $0xd60] sm:$0xff]  ;;  %v625_v23 = vld [vmem:[%s3393_s7 + $0xd68] sm:$0xff]  ;;  %622 = vst [vmem:[%s3398_s8 + $0x6a8] sm:$0xff] %v621_v21 }
  0x84   : > { %624 = vst [vmem:[%s3398_s8 + $0x6b0] sm:$0xff] %v623_v22  ;;  %626 = vst [vmem:[%s3398_s8 + $0x6b8] sm:$0xff] %v625_v23  ;;  %v627_v24 = vld [vmem:[%s3393_s7 + $0xd80] sm:$0xff]  ;;  %v629_v25 = vld [vmem:[%s3393_s7 + $0xd88] sm:$0xff] }
  0x85   : > { %v631_v26 = vld [vmem:[%s3393_s7 + $0xda0] sm:$0xff]  ;;  %628 = vst [vmem:[%s3398_s8 + $0x6c0] sm:$0xff] %v627_v24  ;;  %630 = vst [vmem:[%s3398_s8 + $0x6c8] sm:$0xff] %v629_v25  ;;  %v633_v27 = vld [vmem:[%s3393_s7 + $0xda8] sm:$0xff] }
  0x86   : > { %632 = vst [vmem:[%s3398_s8 + $0x6d0] sm:$0xff] %v631_v26  ;;  %v635_v28 = vld [vmem:[%s3393_s7 + $0xdc0] sm:$0xff]  ;;  %v637_v29 = vld [vmem:[%s3393_s7 + $0xdc8] sm:$0xff]  ;;  %634 = vst [vmem:[%s3398_s8 + $0x6d8] sm:$0xff] %v633_v27 }
  0x87   : > { %636 = vst [vmem:[%s3398_s8 + $0x6e0] sm:$0xff] %v635_v28  ;;  %638 = vst [vmem:[%s3398_s8 + $0x6e8] sm:$0xff] %v637_v29  ;;  %v639_v30 = vld [vmem:[%s3393_s7 + $0xde0] sm:$0xff]  ;;  %v641_v31 = vld [vmem:[%s3393_s7 + $0xde8] sm:$0xff] }
  0x88   : > { %v643_v32 = vld [vmem:[%s3393_s7 + $0xe00] sm:$0xff]  ;;  %640 = vst [vmem:[%s3398_s8 + $0x6f0] sm:$0xff] %v639_v30  ;;  %642 = vst [vmem:[%s3398_s8 + $0x6f8] sm:$0xff] %v641_v31  ;;  %v645_v33 = vld [vmem:[%s3393_s7 + $0xe08] sm:$0xff] }
  0x89   : > { %644 = vst [vmem:[%s3398_s8 + $0x700] sm:$0xff] %v643_v32  ;;  %v647_v34 = vld [vmem:[%s3393_s7 + $0xe20] sm:$0xff]  ;;  %v649_v35 = vld [vmem:[%s3393_s7 + $0xe28] sm:$0xff]  ;;  %646 = vst [vmem:[%s3398_s8 + $0x708] sm:$0xff] %v645_v33 }
  0x8a   : > { %648 = vst [vmem:[%s3398_s8 + $0x710] sm:$0xff] %v647_v34  ;;  %650 = vst [vmem:[%s3398_s8 + $0x718] sm:$0xff] %v649_v35  ;;  %v651_v36 = vld [vmem:[%s3393_s7 + $0xe40] sm:$0xff]  ;;  %v653_v37 = vld [vmem:[%s3393_s7 + $0xe48] sm:$0xff] }
  0x8b   : > { %v655_v38 = vld [vmem:[%s3393_s7 + $0xe60] sm:$0xff]  ;;  %652 = vst [vmem:[%s3398_s8 + $0x720] sm:$0xff] %v651_v36  ;;  %654 = vst [vmem:[%s3398_s8 + $0x728] sm:$0xff] %v653_v37  ;;  %v657_v39 = vld [vmem:[%s3393_s7 + $0xe68] sm:$0xff] }
  0x8c   : > { %656 = vst [vmem:[%s3398_s8 + $0x730] sm:$0xff] %v655_v38  ;;  %v659_v40 = vld [vmem:[%s3393_s7 + $0xe80] sm:$0xff]  ;;  %v661_v41 = vld [vmem:[%s3393_s7 + $0xe88] sm:$0xff]  ;;  %658 = vst [vmem:[%s3398_s8 + $0x738] sm:$0xff] %v657_v39 }
  0x8d   : > { %660 = vst [vmem:[%s3398_s8 + $0x740] sm:$0xff] %v659_v40  ;;  %662 = vst [vmem:[%s3398_s8 + $0x748] sm:$0xff] %v661_v41  ;;  %v663_v42 = vld [vmem:[%s3393_s7 + $0xea0] sm:$0xff]  ;;  %v665_v43 = vld [vmem:[%s3393_s7 + $0xea8] sm:$0xff] }
  0x8e   : > { %v667_v44 = vld [vmem:[%s3393_s7 + $0xec0] sm:$0xff]  ;;  %664 = vst [vmem:[%s3398_s8 + $0x750] sm:$0xff] %v663_v42  ;;  %666 = vst [vmem:[%s3398_s8 + $0x758] sm:$0xff] %v665_v43  ;;  %v669_v45 = vld [vmem:[%s3393_s7 + $0xec8] sm:$0xff] }
  0x8f   : > { %668 = vst [vmem:[%s3398_s8 + $0x760] sm:$0xff] %v667_v44  ;;  %v671_v46 = vld [vmem:[%s3393_s7 + $0xee0] sm:$0xff]  ;;  %v673_v47 = vld [vmem:[%s3393_s7 + $0xee8] sm:$0xff]  ;;  %670 = vst [vmem:[%s3398_s8 + $0x768] sm:$0xff] %v669_v45 }
  0x90   : > { %672 = vst [vmem:[%s3398_s8 + $0x770] sm:$0xff] %v671_v46  ;;  %674 = vst [vmem:[%s3398_s8 + $0x778] sm:$0xff] %v673_v47  ;;  %v675_v48 = vld [vmem:[%s3393_s7 + $0xf00] sm:$0xff]  ;;  %v677_v49 = vld [vmem:[%s3393_s7 + $0xf08] sm:$0xff] }
  0x91   : > { %v679_v50 = vld [vmem:[%s3393_s7 + $0xf20] sm:$0xff]  ;;  %676 = vst [vmem:[%s3398_s8 + $0x780] sm:$0xff] %v675_v48  ;;  %678 = vst [vmem:[%s3398_s8 + $0x788] sm:$0xff] %v677_v49  ;;  %v681_v51 = vld [vmem:[%s3393_s7 + $0xf28] sm:$0xff] }
  0x92   : > { %680 = vst [vmem:[%s3398_s8 + $0x790] sm:$0xff] %v679_v50  ;;  %v683_v52 = vld [vmem:[%s3393_s7 + $0xf40] sm:$0xff]  ;;  %v685_v53 = vld [vmem:[%s3393_s7 + $0xf48] sm:$0xff]  ;;  %682 = vst [vmem:[%s3398_s8 + $0x798] sm:$0xff] %v681_v51 }
  0x93   : > { %684 = vst [vmem:[%s3398_s8 + $0x7a0] sm:$0xff] %v683_v52  ;;  %686 = vst [vmem:[%s3398_s8 + $0x7a8] sm:$0xff] %v685_v53  ;;  %v687_v54 = vld [vmem:[%s3393_s7 + $0xf60] sm:$0xff]  ;;  %v689_v55 = vld [vmem:[%s3393_s7 + $0xf68] sm:$0xff] }
  0x94   : > { %v691_v56 = vld [vmem:[%s3393_s7 + $0xf80] sm:$0xff]  ;;  %688 = vst [vmem:[%s3398_s8 + $0x7b0] sm:$0xff] %v687_v54  ;;  %690 = vst [vmem:[%s3398_s8 + $0x7b8] sm:$0xff] %v689_v55  ;;  %v693_v57 = vld [vmem:[%s3393_s7 + $0xf88] sm:$0xff] }
  0x95   : > { %692 = vst [vmem:[%s3398_s8 + $0x7c0] sm:$0xff] %v691_v56  ;;  %v695_v58 = vld [vmem:[%s3393_s7 + $0xfa0] sm:$0xff]  ;;  %v697_v59 = vld [vmem:[%s3393_s7 + $0xfa8] sm:$0xff]  ;;  %694 = vst [vmem:[%s3398_s8 + $0x7c8] sm:$0xff] %v693_v57 }
  0x96   : > { %696 = vst [vmem:[%s3398_s8 + $0x7d0] sm:$0xff] %v695_v58  ;;  %698 = vst [vmem:[%s3398_s8 + $0x7d8] sm:$0xff] %v697_v59  ;;  %v699_v60 = vld [vmem:[%s3393_s7 + $0xfc0] sm:$0xff]  ;;  %v701_v61 = vld [vmem:[%s3393_s7 + $0xfc8] sm:$0xff] }
  0x97   : > { %v703_v62 = vld [vmem:[%s3393_s7 + $0xfe0] sm:$0xff]  ;;  %700 = vst [vmem:[%s3398_s8 + $0x7e0] sm:$0xff] %v699_v60  ;;  %702 = vst [vmem:[%s3398_s8 + $0x7e8] sm:$0xff] %v701_v61  ;;  %v705_v63 = vld [vmem:[%s3393_s7 + $0xfe8] sm:$0xff] }
  0x98   : > { %704 = vst [vmem:[%s3398_s8 + $0x7f0] sm:$0xff] %v703_v62  ;;  %v707_v0 = vld [vmem:[%s3393_s7 + $0x1000] sm:$0xff]  ;;  %v709_v1 = vld [vmem:[%s3393_s7 + $0x1008] sm:$0xff]  ;;  %706 = vst [vmem:[%s3398_s8 + $0x7f8] sm:$0xff] %v705_v63 }
  0x99   : > { %708 = vst [vmem:[%s3398_s8 + $0x800] sm:$0xff] %v707_v0  ;;  %710 = vst [vmem:[%s3398_s8 + $0x808] sm:$0xff] %v709_v1  ;;  %v711_v2 = vld [vmem:[%s3393_s7 + $0x1020] sm:$0xff]  ;;  %v713_v3 = vld [vmem:[%s3393_s7 + $0x1028] sm:$0xff] }
  0x9a   : > { %v715_v4 = vld [vmem:[%s3393_s7 + $0x1040] sm:$0xff]  ;;  %712 = vst [vmem:[%s3398_s8 + $0x810] sm:$0xff] %v711_v2  ;;  %714 = vst [vmem:[%s3398_s8 + $0x818] sm:$0xff] %v713_v3  ;;  %v717_v5 = vld [vmem:[%s3393_s7 + $0x1048] sm:$0xff] }
  0x9b   : > { %716 = vst [vmem:[%s3398_s8 + $0x820] sm:$0xff] %v715_v4  ;;  %v719_v6 = vld [vmem:[%s3393_s7 + $0x1060] sm:$0xff]  ;;  %v721_v7 = vld [vmem:[%s3393_s7 + $0x1068] sm:$0xff]  ;;  %718 = vst [vmem:[%s3398_s8 + $0x828] sm:$0xff] %v717_v5 }
  0x9c   : > { %720 = vst [vmem:[%s3398_s8 + $0x830] sm:$0xff] %v719_v6  ;;  %722 = vst [vmem:[%s3398_s8 + $0x838] sm:$0xff] %v721_v7  ;;  %v723_v8 = vld [vmem:[%s3393_s7 + $0x1080] sm:$0xff]  ;;  %v725_v9 = vld [vmem:[%s3393_s7 + $0x1088] sm:$0xff] }
  0x9d   : > { %v727_v10 = vld [vmem:[%s3393_s7 + $0x10a0] sm:$0xff]  ;;  %724 = vst [vmem:[%s3398_s8 + $0x840] sm:$0xff] %v723_v8  ;;  %726 = vst [vmem:[%s3398_s8 + $0x848] sm:$0xff] %v725_v9  ;;  %v729_v11 = vld [vmem:[%s3393_s7 + $0x10a8] sm:$0xff] }
  0x9e   : > { %728 = vst [vmem:[%s3398_s8 + $0x850] sm:$0xff] %v727_v10  ;;  %v731_v12 = vld [vmem:[%s3393_s7 + $0x10c0] sm:$0xff]  ;;  %v733_v13 = vld [vmem:[%s3393_s7 + $0x10c8] sm:$0xff]  ;;  %730 = vst [vmem:[%s3398_s8 + $0x858] sm:$0xff] %v729_v11 }
  0x9f   : > { %732 = vst [vmem:[%s3398_s8 + $0x860] sm:$0xff] %v731_v12  ;;  %734 = vst [vmem:[%s3398_s8 + $0x868] sm:$0xff] %v733_v13  ;;  %v735_v14 = vld [vmem:[%s3393_s7 + $0x10e0] sm:$0xff]  ;;  %v737_v15 = vld [vmem:[%s3393_s7 + $0x10e8] sm:$0xff] }
  0xa0   : > { %v739_v16 = vld [vmem:[%s3393_s7 + $0x1100] sm:$0xff]  ;;  %736 = vst [vmem:[%s3398_s8 + $0x870] sm:$0xff] %v735_v14  ;;  %738 = vst [vmem:[%s3398_s8 + $0x878] sm:$0xff] %v737_v15  ;;  %v741_v17 = vld [vmem:[%s3393_s7 + $0x1108] sm:$0xff] }
  0xa1   : > { %740 = vst [vmem:[%s3398_s8 + $0x880] sm:$0xff] %v739_v16  ;;  %v743_v18 = vld [vmem:[%s3393_s7 + $0x1120] sm:$0xff]  ;;  %v745_v19 = vld [vmem:[%s3393_s7 + $0x1128] sm:$0xff]  ;;  %742 = vst [vmem:[%s3398_s8 + $0x888] sm:$0xff] %v741_v17 }
  0xa2   : > { %744 = vst [vmem:[%s3398_s8 + $0x890] sm:$0xff] %v743_v18  ;;  %746 = vst [vmem:[%s3398_s8 + $0x898] sm:$0xff] %v745_v19  ;;  %v747_v20 = vld [vmem:[%s3393_s7 + $0x1140] sm:$0xff]  ;;  %v749_v21 = vld [vmem:[%s3393_s7 + $0x1148] sm:$0xff] }
  0xa3   : > { %v751_v22 = vld [vmem:[%s3393_s7 + $0x1160] sm:$0xff]  ;;  %748 = vst [vmem:[%s3398_s8 + $0x8a0] sm:$0xff] %v747_v20  ;;  %750 = vst [vmem:[%s3398_s8 + $0x8a8] sm:$0xff] %v749_v21  ;;  %v753_v23 = vld [vmem:[%s3393_s7 + $0x1168] sm:$0xff] }
  0xa4   : > { %752 = vst [vmem:[%s3398_s8 + $0x8b0] sm:$0xff] %v751_v22  ;;  %v755_v24 = vld [vmem:[%s3393_s7 + $0x1180] sm:$0xff]  ;;  %v757_v25 = vld [vmem:[%s3393_s7 + $0x1188] sm:$0xff]  ;;  %754 = vst [vmem:[%s3398_s8 + $0x8b8] sm:$0xff] %v753_v23 }
  0xa5   : > { %756 = vst [vmem:[%s3398_s8 + $0x8c0] sm:$0xff] %v755_v24  ;;  %758 = vst [vmem:[%s3398_s8 + $0x8c8] sm:$0xff] %v757_v25  ;;  %v759_v26 = vld [vmem:[%s3393_s7 + $0x11a0] sm:$0xff]  ;;  %v761_v27 = vld [vmem:[%s3393_s7 + $0x11a8] sm:$0xff] }
  0xa6   : > { %v763_v28 = vld [vmem:[%s3393_s7 + $0x11c0] sm:$0xff]  ;;  %760 = vst [vmem:[%s3398_s8 + $0x8d0] sm:$0xff] %v759_v26  ;;  %762 = vst [vmem:[%s3398_s8 + $0x8d8] sm:$0xff] %v761_v27  ;;  %v765_v29 = vld [vmem:[%s3393_s7 + $0x11c8] sm:$0xff] }
  0xa7   : > { %764 = vst [vmem:[%s3398_s8 + $0x8e0] sm:$0xff] %v763_v28  ;;  %v767_v30 = vld [vmem:[%s3393_s7 + $0x11e0] sm:$0xff]  ;;  %v769_v31 = vld [vmem:[%s3393_s7 + $0x11e8] sm:$0xff]  ;;  %766 = vst [vmem:[%s3398_s8 + $0x8e8] sm:$0xff] %v765_v29 }
  0xa8   : > { %768 = vst [vmem:[%s3398_s8 + $0x8f0] sm:$0xff] %v767_v30  ;;  %770 = vst [vmem:[%s3398_s8 + $0x8f8] sm:$0xff] %v769_v31  ;;  %v771_v32 = vld [vmem:[%s3393_s7 + $0x1200] sm:$0xff]  ;;  %v773_v33 = vld [vmem:[%s3393_s7 + $0x1208] sm:$0xff] }
  0xa9   : > { %v775_v34 = vld [vmem:[%s3393_s7 + $0x1220] sm:$0xff]  ;;  %772 = vst [vmem:[%s3398_s8 + $0x900] sm:$0xff] %v771_v32  ;;  %774 = vst [vmem:[%s3398_s8 + $0x908] sm:$0xff] %v773_v33  ;;  %v777_v35 = vld [vmem:[%s3393_s7 + $0x1228] sm:$0xff] }
  0xaa   : > { %776 = vst [vmem:[%s3398_s8 + $0x910] sm:$0xff] %v775_v34  ;;  %v779_v36 = vld [vmem:[%s3393_s7 + $0x1240] sm:$0xff]  ;;  %v781_v37 = vld [vmem:[%s3393_s7 + $0x1248] sm:$0xff]  ;;  %778 = vst [vmem:[%s3398_s8 + $0x918] sm:$0xff] %v777_v35 }
  0xab   : > { %780 = vst [vmem:[%s3398_s8 + $0x920] sm:$0xff] %v779_v36  ;;  %782 = vst [vmem:[%s3398_s8 + $0x928] sm:$0xff] %v781_v37  ;;  %v783_v38 = vld [vmem:[%s3393_s7 + $0x1260] sm:$0xff]  ;;  %v785_v39 = vld [vmem:[%s3393_s7 + $0x1268] sm:$0xff] }
  0xac   : > { %v787_v40 = vld [vmem:[%s3393_s7 + $0x1280] sm:$0xff]  ;;  %784 = vst [vmem:[%s3398_s8 + $0x930] sm:$0xff] %v783_v38  ;;  %786 = vst [vmem:[%s3398_s8 + $0x938] sm:$0xff] %v785_v39  ;;  %v789_v41 = vld [vmem:[%s3393_s7 + $0x1288] sm:$0xff] }
  0xad   : > { %788 = vst [vmem:[%s3398_s8 + $0x940] sm:$0xff] %v787_v40  ;;  %v791_v42 = vld [vmem:[%s3393_s7 + $0x12a0] sm:$0xff]  ;;  %v793_v43 = vld [vmem:[%s3393_s7 + $0x12a8] sm:$0xff]  ;;  %790 = vst [vmem:[%s3398_s8 + $0x948] sm:$0xff] %v789_v41 }
  0xae   : > { %792 = vst [vmem:[%s3398_s8 + $0x950] sm:$0xff] %v791_v42  ;;  %794 = vst [vmem:[%s3398_s8 + $0x958] sm:$0xff] %v793_v43  ;;  %v795_v44 = vld [vmem:[%s3393_s7 + $0x12c0] sm:$0xff]  ;;  %v797_v45 = vld [vmem:[%s3393_s7 + $0x12c8] sm:$0xff] }
  0xaf   : > { %v799_v46 = vld [vmem:[%s3393_s7 + $0x12e0] sm:$0xff]  ;;  %796 = vst [vmem:[%s3398_s8 + $0x960] sm:$0xff] %v795_v44  ;;  %798 = vst [vmem:[%s3398_s8 + $0x968] sm:$0xff] %v797_v45  ;;  %v801_v47 = vld [vmem:[%s3393_s7 + $0x12e8] sm:$0xff] }
  0xb0   : > { %800 = vst [vmem:[%s3398_s8 + $0x970] sm:$0xff] %v799_v46  ;;  %v803_v48 = vld [vmem:[%s3393_s7 + $0x1300] sm:$0xff]  ;;  %v805_v49 = vld [vmem:[%s3393_s7 + $0x1308] sm:$0xff]  ;;  %802 = vst [vmem:[%s3398_s8 + $0x978] sm:$0xff] %v801_v47 }
  0xb1   : > { %804 = vst [vmem:[%s3398_s8 + $0x980] sm:$0xff] %v803_v48  ;;  %806 = vst [vmem:[%s3398_s8 + $0x988] sm:$0xff] %v805_v49  ;;  %v807_v50 = vld [vmem:[%s3393_s7 + $0x1320] sm:$0xff]  ;;  %v809_v51 = vld [vmem:[%s3393_s7 + $0x1328] sm:$0xff] }
  0xb2   : > { %v811_v52 = vld [vmem:[%s3393_s7 + $0x1340] sm:$0xff]  ;;  %808 = vst [vmem:[%s3398_s8 + $0x990] sm:$0xff] %v807_v50  ;;  %810 = vst [vmem:[%s3398_s8 + $0x998] sm:$0xff] %v809_v51  ;;  %v813_v53 = vld [vmem:[%s3393_s7 + $0x1348] sm:$0xff] }
  0xb3   : > { %812 = vst [vmem:[%s3398_s8 + $0x9a0] sm:$0xff] %v811_v52  ;;  %v815_v54 = vld [vmem:[%s3393_s7 + $0x1360] sm:$0xff]  ;;  %v817_v55 = vld [vmem:[%s3393_s7 + $0x1368] sm:$0xff]  ;;  %814 = vst [vmem:[%s3398_s8 + $0x9a8] sm:$0xff] %v813_v53 }
  0xb4   : > { %816 = vst [vmem:[%s3398_s8 + $0x9b0] sm:$0xff] %v815_v54  ;;  %818 = vst [vmem:[%s3398_s8 + $0x9b8] sm:$0xff] %v817_v55  ;;  %v819_v56 = vld [vmem:[%s3393_s7 + $0x1380] sm:$0xff]  ;;  %v821_v57 = vld [vmem:[%s3393_s7 + $0x1388] sm:$0xff] }
  0xb5   : > { %v823_v58 = vld [vmem:[%s3393_s7 + $0x13a0] sm:$0xff]  ;;  %820 = vst [vmem:[%s3398_s8 + $0x9c0] sm:$0xff] %v819_v56  ;;  %822 = vst [vmem:[%s3398_s8 + $0x9c8] sm:$0xff] %v821_v57  ;;  %v825_v59 = vld [vmem:[%s3393_s7 + $0x13a8] sm:$0xff] }
  0xb6   : > { %824 = vst [vmem:[%s3398_s8 + $0x9d0] sm:$0xff] %v823_v58  ;;  %v827_v60 = vld [vmem:[%s3393_s7 + $0x13c0] sm:$0xff]  ;;  %v829_v61 = vld [vmem:[%s3393_s7 + $0x13c8] sm:$0xff]  ;;  %826 = vst [vmem:[%s3398_s8 + $0x9d8] sm:$0xff] %v825_v59 }
  0xb7   : > { %828 = vst [vmem:[%s3398_s8 + $0x9e0] sm:$0xff] %v827_v60  ;;  %830 = vst [vmem:[%s3398_s8 + $0x9e8] sm:$0xff] %v829_v61  ;;  %v831_v62 = vld [vmem:[%s3393_s7 + $0x13e0] sm:$0xff]  ;;  %v833_v63 = vld [vmem:[%s3393_s7 + $0x13e8] sm:$0xff] }
  0xb8   : > { %v835_v0 = vld [vmem:[%s3393_s7 + $0x1400] sm:$0xff]  ;;  %832 = vst [vmem:[%s3398_s8 + $0x9f0] sm:$0xff] %v831_v62  ;;  %834 = vst [vmem:[%s3398_s8 + $0x9f8] sm:$0xff] %v833_v63  ;;  %v837_v1 = vld [vmem:[%s3393_s7 + $0x1408] sm:$0xff] }
  0xb9   : > { %836 = vst [vmem:[%s3398_s8 + $0xa00] sm:$0xff] %v835_v0  ;;  %v839_v2 = vld [vmem:[%s3393_s7 + $0x1420] sm:$0xff]  ;;  %v841_v3 = vld [vmem:[%s3393_s7 + $0x1428] sm:$0xff]  ;;  %838 = vst [vmem:[%s3398_s8 + $0xa08] sm:$0xff] %v837_v1 }
  0xba   : > { %840 = vst [vmem:[%s3398_s8 + $0xa10] sm:$0xff] %v839_v2  ;;  %842 = vst [vmem:[%s3398_s8 + $0xa18] sm:$0xff] %v841_v3  ;;  %v843_v4 = vld [vmem:[%s3393_s7 + $0x1440] sm:$0xff]  ;;  %v845_v5 = vld [vmem:[%s3393_s7 + $0x1448] sm:$0xff] }
  0xbb   : > { %v847_v6 = vld [vmem:[%s3393_s7 + $0x1460] sm:$0xff]  ;;  %844 = vst [vmem:[%s3398_s8 + $0xa20] sm:$0xff] %v843_v4  ;;  %846 = vst [vmem:[%s3398_s8 + $0xa28] sm:$0xff] %v845_v5  ;;  %v849_v7 = vld [vmem:[%s3393_s7 + $0x1468] sm:$0xff] }
  0xbc   : > { %848 = vst [vmem:[%s3398_s8 + $0xa30] sm:$0xff] %v847_v6  ;;  %v851_v8 = vld [vmem:[%s3393_s7 + $0x1480] sm:$0xff]  ;;  %v853_v9 = vld [vmem:[%s3393_s7 + $0x1488] sm:$0xff]  ;;  %850 = vst [vmem:[%s3398_s8 + $0xa38] sm:$0xff] %v849_v7 }
  0xbd   : > { %852 = vst [vmem:[%s3398_s8 + $0xa40] sm:$0xff] %v851_v8  ;;  %854 = vst [vmem:[%s3398_s8 + $0xa48] sm:$0xff] %v853_v9  ;;  %v855_v10 = vld [vmem:[%s3393_s7 + $0x14a0] sm:$0xff]  ;;  %v857_v11 = vld [vmem:[%s3393_s7 + $0x14a8] sm:$0xff] }
  0xbe   : > { %v859_v12 = vld [vmem:[%s3393_s7 + $0x14c0] sm:$0xff]  ;;  %856 = vst [vmem:[%s3398_s8 + $0xa50] sm:$0xff] %v855_v10  ;;  %858 = vst [vmem:[%s3398_s8 + $0xa58] sm:$0xff] %v857_v11  ;;  %v861_v13 = vld [vmem:[%s3393_s7 + $0x14c8] sm:$0xff] }
  0xbf   : > { %860 = vst [vmem:[%s3398_s8 + $0xa60] sm:$0xff] %v859_v12  ;;  %v863_v14 = vld [vmem:[%s3393_s7 + $0x14e0] sm:$0xff]  ;;  %v865_v15 = vld [vmem:[%s3393_s7 + $0x14e8] sm:$0xff]  ;;  %862 = vst [vmem:[%s3398_s8 + $0xa68] sm:$0xff] %v861_v13 }
  0xc0   : > { %864 = vst [vmem:[%s3398_s8 + $0xa70] sm:$0xff] %v863_v14  ;;  %866 = vst [vmem:[%s3398_s8 + $0xa78] sm:$0xff] %v865_v15  ;;  %v867_v16 = vld [vmem:[%s3393_s7 + $0x1500] sm:$0xff]  ;;  %v869_v17 = vld [vmem:[%s3393_s7 + $0x1508] sm:$0xff] }
  0xc1   : > { %v871_v18 = vld [vmem:[%s3393_s7 + $0x1520] sm:$0xff]  ;;  %868 = vst [vmem:[%s3398_s8 + $0xa80] sm:$0xff] %v867_v16  ;;  %870 = vst [vmem:[%s3398_s8 + $0xa88] sm:$0xff] %v869_v17  ;;  %v873_v19 = vld [vmem:[%s3393_s7 + $0x1528] sm:$0xff] }
  0xc2   : > { %872 = vst [vmem:[%s3398_s8 + $0xa90] sm:$0xff] %v871_v18  ;;  %v875_v20 = vld [vmem:[%s3393_s7 + $0x1540] sm:$0xff]  ;;  %v877_v21 = vld [vmem:[%s3393_s7 + $0x1548] sm:$0xff]  ;;  %874 = vst [vmem:[%s3398_s8 + $0xa98] sm:$0xff] %v873_v19 }
  0xc3   : > { %876 = vst [vmem:[%s3398_s8 + $0xaa0] sm:$0xff] %v875_v20  ;;  %878 = vst [vmem:[%s3398_s8 + $0xaa8] sm:$0xff] %v877_v21  ;;  %v879_v22 = vld [vmem:[%s3393_s7 + $0x1560] sm:$0xff]  ;;  %v881_v23 = vld [vmem:[%s3393_s7 + $0x1568] sm:$0xff] }
  0xc4   : > { %v883_v24 = vld [vmem:[%s3393_s7 + $0x1580] sm:$0xff]  ;;  %880 = vst [vmem:[%s3398_s8 + $0xab0] sm:$0xff] %v879_v22  ;;  %882 = vst [vmem:[%s3398_s8 + $0xab8] sm:$0xff] %v881_v23  ;;  %v885_v25 = vld [vmem:[%s3393_s7 + $0x1588] sm:$0xff] }
  0xc5   : > { %884 = vst [vmem:[%s3398_s8 + $0xac0] sm:$0xff] %v883_v24  ;;  %v887_v26 = vld [vmem:[%s3393_s7 + $0x15a0] sm:$0xff]  ;;  %v889_v27 = vld [vmem:[%s3393_s7 + $0x15a8] sm:$0xff]  ;;  %886 = vst [vmem:[%s3398_s8 + $0xac8] sm:$0xff] %v885_v25 }
  0xc6   : > { %888 = vst [vmem:[%s3398_s8 + $0xad0] sm:$0xff] %v887_v26  ;;  %890 = vst [vmem:[%s3398_s8 + $0xad8] sm:$0xff] %v889_v27  ;;  %v891_v28 = vld [vmem:[%s3393_s7 + $0x15c0] sm:$0xff]  ;;  %v893_v29 = vld [vmem:[%s3393_s7 + $0x15c8] sm:$0xff] }
  0xc7   : > { %v895_v30 = vld [vmem:[%s3393_s7 + $0x15e0] sm:$0xff]  ;;  %892 = vst [vmem:[%s3398_s8 + $0xae0] sm:$0xff] %v891_v28  ;;  %894 = vst [vmem:[%s3398_s8 + $0xae8] sm:$0xff] %v893_v29  ;;  %v897_v31 = vld [vmem:[%s3393_s7 + $0x15e8] sm:$0xff] }
  0xc8   : > { %896 = vst [vmem:[%s3398_s8 + $0xaf0] sm:$0xff] %v895_v30  ;;  %v899_v32 = vld [vmem:[%s3393_s7 + $0x1600] sm:$0xff]  ;;  %v901_v33 = vld [vmem:[%s3393_s7 + $0x1608] sm:$0xff]  ;;  %898 = vst [vmem:[%s3398_s8 + $0xaf8] sm:$0xff] %v897_v31 }
  0xc9   : > { %900 = vst [vmem:[%s3398_s8 + $0xb00] sm:$0xff] %v899_v32  ;;  %902 = vst [vmem:[%s3398_s8 + $0xb08] sm:$0xff] %v901_v33  ;;  %v903_v34 = vld [vmem:[%s3393_s7 + $0x1620] sm:$0xff]  ;;  %v905_v35 = vld [vmem:[%s3393_s7 + $0x1628] sm:$0xff] }
  0xca   : > { %v907_v36 = vld [vmem:[%s3393_s7 + $0x1640] sm:$0xff]  ;;  %904 = vst [vmem:[%s3398_s8 + $0xb10] sm:$0xff] %v903_v34  ;;  %906 = vst [vmem:[%s3398_s8 + $0xb18] sm:$0xff] %v905_v35  ;;  %v909_v37 = vld [vmem:[%s3393_s7 + $0x1648] sm:$0xff] }
  0xcb   : > { %908 = vst [vmem:[%s3398_s8 + $0xb20] sm:$0xff] %v907_v36  ;;  %v911_v38 = vld [vmem:[%s3393_s7 + $0x1660] sm:$0xff]  ;;  %v913_v39 = vld [vmem:[%s3393_s7 + $0x1668] sm:$0xff]  ;;  %910 = vst [vmem:[%s3398_s8 + $0xb28] sm:$0xff] %v909_v37 }
  0xcc   : > { %912 = vst [vmem:[%s3398_s8 + $0xb30] sm:$0xff] %v911_v38  ;;  %914 = vst [vmem:[%s3398_s8 + $0xb38] sm:$0xff] %v913_v39  ;;  %v915_v40 = vld [vmem:[%s3393_s7 + $0x1680] sm:$0xff]  ;;  %v917_v41 = vld [vmem:[%s3393_s7 + $0x1688] sm:$0xff] }
  0xcd   : > { %v919_v42 = vld [vmem:[%s3393_s7 + $0x16a0] sm:$0xff]  ;;  %916 = vst [vmem:[%s3398_s8 + $0xb40] sm:$0xff] %v915_v40  ;;  %918 = vst [vmem:[%s3398_s8 + $0xb48] sm:$0xff] %v917_v41  ;;  %v921_v43 = vld [vmem:[%s3393_s7 + $0x16a8] sm:$0xff] }
  0xce   : > { %920 = vst [vmem:[%s3398_s8 + $0xb50] sm:$0xff] %v919_v42  ;;  %v923_v44 = vld [vmem:[%s3393_s7 + $0x16c0] sm:$0xff]  ;;  %v925_v45 = vld [vmem:[%s3393_s7 + $0x16c8] sm:$0xff]  ;;  %922 = vst [vmem:[%s3398_s8 + $0xb58] sm:$0xff] %v921_v43 }
  0xcf   : > { %924 = vst [vmem:[%s3398_s8 + $0xb60] sm:$0xff] %v923_v44  ;;  %926 = vst [vmem:[%s3398_s8 + $0xb68] sm:$0xff] %v925_v45  ;;  %v927_v46 = vld [vmem:[%s3393_s7 + $0x16e0] sm:$0xff]  ;;  %v929_v47 = vld [vmem:[%s3393_s7 + $0x16e8] sm:$0xff] }
  0xd0   : > { %v931_v48 = vld [vmem:[%s3393_s7 + $0x1700] sm:$0xff]  ;;  %928 = vst [vmem:[%s3398_s8 + $0xb70] sm:$0xff] %v927_v46  ;;  %930 = vst [vmem:[%s3398_s8 + $0xb78] sm:$0xff] %v929_v47  ;;  %v933_v49 = vld [vmem:[%s3393_s7 + $0x1708] sm:$0xff] }
  0xd1   : > { %932 = vst [vmem:[%s3398_s8 + $0xb80] sm:$0xff] %v931_v48  ;;  %v935_v50 = vld [vmem:[%s3393_s7 + $0x1720] sm:$0xff]  ;;  %v937_v51 = vld [vmem:[%s3393_s7 + $0x1728] sm:$0xff]  ;;  %934 = vst [vmem:[%s3398_s8 + $0xb88] sm:$0xff] %v933_v49 }
  0xd2   : > { %936 = vst [vmem:[%s3398_s8 + $0xb90] sm:$0xff] %v935_v50  ;;  %938 = vst [vmem:[%s3398_s8 + $0xb98] sm:$0xff] %v937_v51  ;;  %v939_v52 = vld [vmem:[%s3393_s7 + $0x1740] sm:$0xff]  ;;  %v941_v53 = vld [vmem:[%s3393_s7 + $0x1748] sm:$0xff] }
  0xd3   : > { %v943_v54 = vld [vmem:[%s3393_s7 + $0x1760] sm:$0xff]  ;;  %940 = vst [vmem:[%s3398_s8 + $0xba0] sm:$0xff] %v939_v52  ;;  %942 = vst [vmem:[%s3398_s8 + $0xba8] sm:$0xff] %v941_v53  ;;  %v945_v55 = vld [vmem:[%s3393_s7 + $0x1768] sm:$0xff] }
  0xd4   : > { %944 = vst [vmem:[%s3398_s8 + $0xbb0] sm:$0xff] %v943_v54  ;;  %v947_v56 = vld [vmem:[%s3393_s7 + $0x1780] sm:$0xff]  ;;  %v949_v57 = vld [vmem:[%s3393_s7 + $0x1788] sm:$0xff]  ;;  %946 = vst [vmem:[%s3398_s8 + $0xbb8] sm:$0xff] %v945_v55 }
  0xd5   : > { %948 = vst [vmem:[%s3398_s8 + $0xbc0] sm:$0xff] %v947_v56  ;;  %950 = vst [vmem:[%s3398_s8 + $0xbc8] sm:$0xff] %v949_v57  ;;  %v951_v58 = vld [vmem:[%s3393_s7 + $0x17a0] sm:$0xff]  ;;  %v953_v59 = vld [vmem:[%s3393_s7 + $0x17a8] sm:$0xff] }
  0xd6   : > { %v955_v60 = vld [vmem:[%s3393_s7 + $0x17c0] sm:$0xff]  ;;  %952 = vst [vmem:[%s3398_s8 + $0xbd0] sm:$0xff] %v951_v58  ;;  %954 = vst [vmem:[%s3398_s8 + $0xbd8] sm:$0xff] %v953_v59  ;;  %v957_v61 = vld [vmem:[%s3393_s7 + $0x17c8] sm:$0xff] }
  0xd7   : > { %956 = vst [vmem:[%s3398_s8 + $0xbe0] sm:$0xff] %v955_v60  ;;  %v959_v62 = vld [vmem:[%s3393_s7 + $0x17e0] sm:$0xff]  ;;  %v961_v63 = vld [vmem:[%s3393_s7 + $0x17e8] sm:$0xff]  ;;  %958 = vst [vmem:[%s3398_s8 + $0xbe8] sm:$0xff] %v957_v61 }
  0xd8   : > { %960 = vst [vmem:[%s3398_s8 + $0xbf0] sm:$0xff] %v959_v62  ;;  %962 = vst [vmem:[%s3398_s8 + $0xbf8] sm:$0xff] %v961_v63  ;;  %v963_v0 = vld [vmem:[%s3393_s7 + $0x1800] sm:$0xff]  ;;  %v965_v1 = vld [vmem:[%s3393_s7 + $0x1808] sm:$0xff] }
  0xd9   : > { %v967_v2 = vld [vmem:[%s3393_s7 + $0x1820] sm:$0xff]  ;;  %964 = vst [vmem:[%s3398_s8 + $0xc00] sm:$0xff] %v963_v0  ;;  %966 = vst [vmem:[%s3398_s8 + $0xc08] sm:$0xff] %v965_v1  ;;  %v969_v3 = vld [vmem:[%s3393_s7 + $0x1828] sm:$0xff] }
  0xda   : > { %968 = vst [vmem:[%s3398_s8 + $0xc10] sm:$0xff] %v967_v2  ;;  %v971_v4 = vld [vmem:[%s3393_s7 + $0x1840] sm:$0xff]  ;;  %v973_v5 = vld [vmem:[%s3393_s7 + $0x1848] sm:$0xff]  ;;  %970 = vst [vmem:[%s3398_s8 + $0xc18] sm:$0xff] %v969_v3 }
  0xdb   : > { %972 = vst [vmem:[%s3398_s8 + $0xc20] sm:$0xff] %v971_v4  ;;  %974 = vst [vmem:[%s3398_s8 + $0xc28] sm:$0xff] %v973_v5  ;;  %v975_v6 = vld [vmem:[%s3393_s7 + $0x1860] sm:$0xff]  ;;  %v977_v7 = vld [vmem:[%s3393_s7 + $0x1868] sm:$0xff] }
  0xdc   : > { %v979_v8 = vld [vmem:[%s3393_s7 + $0x1880] sm:$0xff]  ;;  %976 = vst [vmem:[%s3398_s8 + $0xc30] sm:$0xff] %v975_v6  ;;  %978 = vst [vmem:[%s3398_s8 + $0xc38] sm:$0xff] %v977_v7  ;;  %v981_v9 = vld [vmem:[%s3393_s7 + $0x1888] sm:$0xff] }
  0xdd   : > { %980 = vst [vmem:[%s3398_s8 + $0xc40] sm:$0xff] %v979_v8  ;;  %v983_v10 = vld [vmem:[%s3393_s7 + $0x18a0] sm:$0xff]  ;;  %v985_v11 = vld [vmem:[%s3393_s7 + $0x18a8] sm:$0xff]  ;;  %982 = vst [vmem:[%s3398_s8 + $0xc48] sm:$0xff] %v981_v9 }
  0xde   : > { %984 = vst [vmem:[%s3398_s8 + $0xc50] sm:$0xff] %v983_v10  ;;  %986 = vst [vmem:[%s3398_s8 + $0xc58] sm:$0xff] %v985_v11  ;;  %v987_v12 = vld [vmem:[%s3393_s7 + $0x18c0] sm:$0xff]  ;;  %v989_v13 = vld [vmem:[%s3393_s7 + $0x18c8] sm:$0xff] }
  0xdf   : > { %v991_v14 = vld [vmem:[%s3393_s7 + $0x18e0] sm:$0xff]  ;;  %988 = vst [vmem:[%s3398_s8 + $0xc60] sm:$0xff] %v987_v12  ;;  %990 = vst [vmem:[%s3398_s8 + $0xc68] sm:$0xff] %v989_v13  ;;  %v993_v15 = vld [vmem:[%s3393_s7 + $0x18e8] sm:$0xff] }
  0xe0   : > { %992 = vst [vmem:[%s3398_s8 + $0xc70] sm:$0xff] %v991_v14  ;;  %v995_v16 = vld [vmem:[%s3393_s7 + $0x1900] sm:$0xff]  ;;  %v997_v17 = vld [vmem:[%s3393_s7 + $0x1908] sm:$0xff]  ;;  %994 = vst [vmem:[%s3398_s8 + $0xc78] sm:$0xff] %v993_v15 }
  0xe1   : > { %996 = vst [vmem:[%s3398_s8 + $0xc80] sm:$0xff] %v995_v16  ;;  %998 = vst [vmem:[%s3398_s8 + $0xc88] sm:$0xff] %v997_v17  ;;  %v999_v18 = vld [vmem:[%s3393_s7 + $0x1920] sm:$0xff]  ;;  %v1001_v19 = vld [vmem:[%s3393_s7 + $0x1928] sm:$0xff] }
  0xe2   : > { %v1003_v20 = vld [vmem:[%s3393_s7 + $0x1940] sm:$0xff]  ;;  %1000 = vst [vmem:[%s3398_s8 + $0xc90] sm:$0xff] %v999_v18  ;;  %1002 = vst [vmem:[%s3398_s8 + $0xc98] sm:$0xff] %v1001_v19  ;;  %v1005_v21 = vld [vmem:[%s3393_s7 + $0x1948] sm:$0xff] }
  0xe3   : > { %1004 = vst [vmem:[%s3398_s8 + $0xca0] sm:$0xff] %v1003_v20  ;;  %v1007_v22 = vld [vmem:[%s3393_s7 + $0x1960] sm:$0xff]  ;;  %v1009_v23 = vld [vmem:[%s3393_s7 + $0x1968] sm:$0xff]  ;;  %1006 = vst [vmem:[%s3398_s8 + $0xca8] sm:$0xff] %v1005_v21 }
  0xe4   : > { %1008 = vst [vmem:[%s3398_s8 + $0xcb0] sm:$0xff] %v1007_v22  ;;  %1010 = vst [vmem:[%s3398_s8 + $0xcb8] sm:$0xff] %v1009_v23  ;;  %v1011_v24 = vld [vmem:[%s3393_s7 + $0x1980] sm:$0xff]  ;;  %v1013_v25 = vld [vmem:[%s3393_s7 + $0x1988] sm:$0xff] }
  0xe5   : > { %v1015_v26 = vld [vmem:[%s3393_s7 + $0x19a0] sm:$0xff]  ;;  %1012 = vst [vmem:[%s3398_s8 + $0xcc0] sm:$0xff] %v1011_v24  ;;  %1014 = vst [vmem:[%s3398_s8 + $0xcc8] sm:$0xff] %v1013_v25  ;;  %v1017_v27 = vld [vmem:[%s3393_s7 + $0x19a8] sm:$0xff] }
  0xe6   : > { %1016 = vst [vmem:[%s3398_s8 + $0xcd0] sm:$0xff] %v1015_v26  ;;  %v1019_v28 = vld [vmem:[%s3393_s7 + $0x19c0] sm:$0xff]  ;;  %v1021_v29 = vld [vmem:[%s3393_s7 + $0x19c8] sm:$0xff]  ;;  %1018 = vst [vmem:[%s3398_s8 + $0xcd8] sm:$0xff] %v1017_v27 }
  0xe7   : > { %1020 = vst [vmem:[%s3398_s8 + $0xce0] sm:$0xff] %v1019_v28  ;;  %1022 = vst [vmem:[%s3398_s8 + $0xce8] sm:$0xff] %v1021_v29  ;;  %v1023_v30 = vld [vmem:[%s3393_s7 + $0x19e0] sm:$0xff]  ;;  %v1025_v31 = vld [vmem:[%s3393_s7 + $0x19e8] sm:$0xff] }
  0xe8   : > { %v1027_v32 = vld [vmem:[%s3393_s7 + $0x1a00] sm:$0xff]  ;;  %1024 = vst [vmem:[%s3398_s8 + $0xcf0] sm:$0xff] %v1023_v30  ;;  %1026 = vst [vmem:[%s3398_s8 + $0xcf8] sm:$0xff] %v1025_v31  ;;  %v1029_v33 = vld [vmem:[%s3393_s7 + $0x1a08] sm:$0xff] }
  0xe9   : > { %1028 = vst [vmem:[%s3398_s8 + $0xd00] sm:$0xff] %v1027_v32  ;;  %v1031_v34 = vld [vmem:[%s3393_s7 + $0x1a20] sm:$0xff]  ;;  %v1033_v35 = vld [vmem:[%s3393_s7 + $0x1a28] sm:$0xff]  ;;  %1030 = vst [vmem:[%s3398_s8 + $0xd08] sm:$0xff] %v1029_v33 }
  0xea   : > { %1032 = vst [vmem:[%s3398_s8 + $0xd10] sm:$0xff] %v1031_v34  ;;  %1034 = vst [vmem:[%s3398_s8 + $0xd18] sm:$0xff] %v1033_v35  ;;  %v1035_v36 = vld [vmem:[%s3393_s7 + $0x1a40] sm:$0xff]  ;;  %v1037_v37 = vld [vmem:[%s3393_s7 + $0x1a48] sm:$0xff] }
  0xeb   : > { %v1039_v38 = vld [vmem:[%s3393_s7 + $0x1a60] sm:$0xff]  ;;  %1036 = vst [vmem:[%s3398_s8 + $0xd20] sm:$0xff] %v1035_v36  ;;  %1038 = vst [vmem:[%s3398_s8 + $0xd28] sm:$0xff] %v1037_v37  ;;  %v1041_v39 = vld [vmem:[%s3393_s7 + $0x1a68] sm:$0xff] }
  0xec   : > { %1040 = vst [vmem:[%s3398_s8 + $0xd30] sm:$0xff] %v1039_v38  ;;  %v1043_v40 = vld [vmem:[%s3393_s7 + $0x1a80] sm:$0xff]  ;;  %v1045_v41 = vld [vmem:[%s3393_s7 + $0x1a88] sm:$0xff]  ;;  %1042 = vst [vmem:[%s3398_s8 + $0xd38] sm:$0xff] %v1041_v39 }
  0xed   : > { %1044 = vst [vmem:[%s3398_s8 + $0xd40] sm:$0xff] %v1043_v40  ;;  %1046 = vst [vmem:[%s3398_s8 + $0xd48] sm:$0xff] %v1045_v41  ;;  %v1047_v42 = vld [vmem:[%s3393_s7 + $0x1aa0] sm:$0xff]  ;;  %v1049_v43 = vld [vmem:[%s3393_s7 + $0x1aa8] sm:$0xff] }
  0xee   : > { %v1051_v44 = vld [vmem:[%s3393_s7 + $0x1ac0] sm:$0xff]  ;;  %1048 = vst [vmem:[%s3398_s8 + $0xd50] sm:$0xff] %v1047_v42  ;;  %1050 = vst [vmem:[%s3398_s8 + $0xd58] sm:$0xff] %v1049_v43  ;;  %v1053_v45 = vld [vmem:[%s3393_s7 + $0x1ac8] sm:$0xff] }
  0xef   : > { %1052 = vst [vmem:[%s3398_s8 + $0xd60] sm:$0xff] %v1051_v44  ;;  %v1055_v46 = vld [vmem:[%s3393_s7 + $0x1ae0] sm:$0xff]  ;;  %v1057_v47 = vld [vmem:[%s3393_s7 + $0x1ae8] sm:$0xff]  ;;  %1054 = vst [vmem:[%s3398_s8 + $0xd68] sm:$0xff] %v1053_v45 }
  0xf0   : > { %1056 = vst [vmem:[%s3398_s8 + $0xd70] sm:$0xff] %v1055_v46  ;;  %1058 = vst [vmem:[%s3398_s8 + $0xd78] sm:$0xff] %v1057_v47  ;;  %v1059_v48 = vld [vmem:[%s3393_s7 + $0x1b00] sm:$0xff]  ;;  %v1061_v49 = vld [vmem:[%s3393_s7 + $0x1b08] sm:$0xff] }
  0xf1   : > { %v1063_v50 = vld [vmem:[%s3393_s7 + $0x1b20] sm:$0xff]  ;;  %1060 = vst [vmem:[%s3398_s8 + $0xd80] sm:$0xff] %v1059_v48  ;;  %1062 = vst [vmem:[%s3398_s8 + $0xd88] sm:$0xff] %v1061_v49  ;;  %v1065_v51 = vld [vmem:[%s3393_s7 + $0x1b28] sm:$0xff] }
  0xf2   : > { %1064 = vst [vmem:[%s3398_s8 + $0xd90] sm:$0xff] %v1063_v50  ;;  %v1067_v52 = vld [vmem:[%s3393_s7 + $0x1b40] sm:$0xff]  ;;  %v1069_v53 = vld [vmem:[%s3393_s7 + $0x1b48] sm:$0xff]  ;;  %1066 = vst [vmem:[%s3398_s8 + $0xd98] sm:$0xff] %v1065_v51 }
  0xf3   : > { %1068 = vst [vmem:[%s3398_s8 + $0xda0] sm:$0xff] %v1067_v52  ;;  %1070 = vst [vmem:[%s3398_s8 + $0xda8] sm:$0xff] %v1069_v53  ;;  %v1071_v54 = vld [vmem:[%s3393_s7 + $0x1b60] sm:$0xff]  ;;  %v1073_v55 = vld [vmem:[%s3393_s7 + $0x1b68] sm:$0xff] }
  0xf4   : > { %v1075_v56 = vld [vmem:[%s3393_s7 + $0x1b80] sm:$0xff]  ;;  %1072 = vst [vmem:[%s3398_s8 + $0xdb0] sm:$0xff] %v1071_v54  ;;  %1074 = vst [vmem:[%s3398_s8 + $0xdb8] sm:$0xff] %v1073_v55  ;;  %v1077_v57 = vld [vmem:[%s3393_s7 + $0x1b88] sm:$0xff] }
  0xf5   : > { %1076 = vst [vmem:[%s3398_s8 + $0xdc0] sm:$0xff] %v1075_v56  ;;  %v1079_v58 = vld [vmem:[%s3393_s7 + $0x1ba0] sm:$0xff]  ;;  %v1081_v59 = vld [vmem:[%s3393_s7 + $0x1ba8] sm:$0xff]  ;;  %1078 = vst [vmem:[%s3398_s8 + $0xdc8] sm:$0xff] %v1077_v57 }
  0xf6   : > { %1080 = vst [vmem:[%s3398_s8 + $0xdd0] sm:$0xff] %v1079_v58  ;;  %1082 = vst [vmem:[%s3398_s8 + $0xdd8] sm:$0xff] %v1081_v59  ;;  %v1083_v60 = vld [vmem:[%s3393_s7 + $0x1bc0] sm:$0xff]  ;;  %v1085_v61 = vld [vmem:[%s3393_s7 + $0x1bc8] sm:$0xff] }
  0xf7   : > { %v1087_v62 = vld [vmem:[%s3393_s7 + $0x1be0] sm:$0xff]  ;;  %1084 = vst [vmem:[%s3398_s8 + $0xde0] sm:$0xff] %v1083_v60  ;;  %1086 = vst [vmem:[%s3398_s8 + $0xde8] sm:$0xff] %v1085_v61  ;;  %v1089_v63 = vld [vmem:[%s3393_s7 + $0x1be8] sm:$0xff] }
  0xf8   : > { %1088 = vst [vmem:[%s3398_s8 + $0xdf0] sm:$0xff] %v1087_v62  ;;  %v1091_v0 = vld [vmem:[%s3393_s7 + $0x1c00] sm:$0xff]  ;;  %v1093_v1 = vld [vmem:[%s3393_s7 + $0x1c08] sm:$0xff]  ;;  %1090 = vst [vmem:[%s3398_s8 + $0xdf8] sm:$0xff] %v1089_v63 }
  0xf9   : > { %1092 = vst [vmem:[%s3398_s8 + $0xe00] sm:$0xff] %v1091_v0  ;;  %1094 = vst [vmem:[%s3398_s8 + $0xe08] sm:$0xff] %v1093_v1  ;;  %v1095_v2 = vld [vmem:[%s3393_s7 + $0x1c20] sm:$0xff]  ;;  %v1097_v3 = vld [vmem:[%s3393_s7 + $0x1c28] sm:$0xff] }
  0xfa   : > { %v1099_v4 = vld [vmem:[%s3393_s7 + $0x1c40] sm:$0xff]  ;;  %1096 = vst [vmem:[%s3398_s8 + $0xe10] sm:$0xff] %v1095_v2  ;;  %1098 = vst [vmem:[%s3398_s8 + $0xe18] sm:$0xff] %v1097_v3  ;;  %v1101_v5 = vld [vmem:[%s3393_s7 + $0x1c48] sm:$0xff] }
  0xfb   : > { %1100 = vst [vmem:[%s3398_s8 + $0xe20] sm:$0xff] %v1099_v4  ;;  %v1103_v6 = vld [vmem:[%s3393_s7 + $0x1c60] sm:$0xff]  ;;  %v1105_v7 = vld [vmem:[%s3393_s7 + $0x1c68] sm:$0xff]  ;;  %1102 = vst [vmem:[%s3398_s8 + $0xe28] sm:$0xff] %v1101_v5 }
  0xfc   : > { %1104 = vst [vmem:[%s3398_s8 + $0xe30] sm:$0xff] %v1103_v6  ;;  %1106 = vst [vmem:[%s3398_s8 + $0xe38] sm:$0xff] %v1105_v7  ;;  %v1107_v8 = vld [vmem:[%s3393_s7 + $0x1c80] sm:$0xff]  ;;  %v1109_v9 = vld [vmem:[%s3393_s7 + $0x1c88] sm:$0xff] }
  0xfd   : > { %v1111_v10 = vld [vmem:[%s3393_s7 + $0x1ca0] sm:$0xff]  ;;  %1108 = vst [vmem:[%s3398_s8 + $0xe40] sm:$0xff] %v1107_v8  ;;  %1110 = vst [vmem:[%s3398_s8 + $0xe48] sm:$0xff] %v1109_v9  ;;  %v1113_v11 = vld [vmem:[%s3393_s7 + $0x1ca8] sm:$0xff] }
  0xfe   : > { %1112 = vst [vmem:[%s3398_s8 + $0xe50] sm:$0xff] %v1111_v10  ;;  %v1115_v12 = vld [vmem:[%s3393_s7 + $0x1cc0] sm:$0xff]  ;;  %v1117_v13 = vld [vmem:[%s3393_s7 + $0x1cc8] sm:$0xff]  ;;  %1114 = vst [vmem:[%s3398_s8 + $0xe58] sm:$0xff] %v1113_v11 }
  0xff   : > { %1116 = vst [vmem:[%s3398_s8 + $0xe60] sm:$0xff] %v1115_v12  ;;  %1118 = vst [vmem:[%s3398_s8 + $0xe68] sm:$0xff] %v1117_v13  ;;  %v1119_v14 = vld [vmem:[%s3393_s7 + $0x1ce0] sm:$0xff]  ;;  %v1121_v15 = vld [vmem:[%s3393_s7 + $0x1ce8] sm:$0xff] }
 0x100   : > { %v1123_v16 = vld [vmem:[%s3393_s7 + $0x1d00] sm:$0xff]  ;;  %1120 = vst [vmem:[%s3398_s8 + $0xe70] sm:$0xff] %v1119_v14  ;;  %1122 = vst [vmem:[%s3398_s8 + $0xe78] sm:$0xff] %v1121_v15  ;;  %v1125_v17 = vld [vmem:[%s3393_s7 + $0x1d08] sm:$0xff] }
 0x101   : > { %1124 = vst [vmem:[%s3398_s8 + $0xe80] sm:$0xff] %v1123_v16  ;;  %v1127_v18 = vld [vmem:[%s3393_s7 + $0x1d20] sm:$0xff]  ;;  %v1129_v19 = vld [vmem:[%s3393_s7 + $0x1d28] sm:$0xff]  ;;  %1126 = vst [vmem:[%s3398_s8 + $0xe88] sm:$0xff] %v1125_v17 }
 0x102   : > { %1128 = vst [vmem:[%s3398_s8 + $0xe90] sm:$0xff] %v1127_v18  ;;  %1130 = vst [vmem:[%s3398_s8 + $0xe98] sm:$0xff] %v1129_v19  ;;  %v1131_v20 = vld [vmem:[%s3393_s7 + $0x1d40] sm:$0xff]  ;;  %v1133_v21 = vld [vmem:[%s3393_s7 + $0x1d48] sm:$0xff] }
 0x103   : > { %v1135_v22 = vld [vmem:[%s3393_s7 + $0x1d60] sm:$0xff]  ;;  %1132 = vst [vmem:[%s3398_s8 + $0xea0] sm:$0xff] %v1131_v20  ;;  %1134 = vst [vmem:[%s3398_s8 + $0xea8] sm:$0xff] %v1133_v21  ;;  %v1137_v23 = vld [vmem:[%s3393_s7 + $0x1d68] sm:$0xff] }
 0x104   : > { %1136 = vst [vmem:[%s3398_s8 + $0xeb0] sm:$0xff] %v1135_v22  ;;  %v1139_v24 = vld [vmem:[%s3393_s7 + $0x1d80] sm:$0xff]  ;;  %v1141_v25 = vld [vmem:[%s3393_s7 + $0x1d88] sm:$0xff]  ;;  %1138 = vst [vmem:[%s3398_s8 + $0xeb8] sm:$0xff] %v1137_v23 }
 0x105   : > { %1140 = vst [vmem:[%s3398_s8 + $0xec0] sm:$0xff] %v1139_v24  ;;  %1142 = vst [vmem:[%s3398_s8 + $0xec8] sm:$0xff] %v1141_v25  ;;  %v1143_v26 = vld [vmem:[%s3393_s7 + $0x1da0] sm:$0xff]  ;;  %v1145_v27 = vld [vmem:[%s3393_s7 + $0x1da8] sm:$0xff] }
 0x106   : > { %v1147_v28 = vld [vmem:[%s3393_s7 + $0x1dc0] sm:$0xff]  ;;  %1144 = vst [vmem:[%s3398_s8 + $0xed0] sm:$0xff] %v1143_v26  ;;  %1146 = vst [vmem:[%s3398_s8 + $0xed8] sm:$0xff] %v1145_v27  ;;  %v1149_v29 = vld [vmem:[%s3393_s7 + $0x1dc8] sm:$0xff] }
 0x107   : > { %1148 = vst [vmem:[%s3398_s8 + $0xee0] sm:$0xff] %v1147_v28  ;;  %v1151_v30 = vld [vmem:[%s3393_s7 + $0x1de0] sm:$0xff]  ;;  %v1153_v31 = vld [vmem:[%s3393_s7 + $0x1de8] sm:$0xff]  ;;  %1150 = vst [vmem:[%s3398_s8 + $0xee8] sm:$0xff] %v1149_v29 }
 0x108   : > { %1152 = vst [vmem:[%s3398_s8 + $0xef0] sm:$0xff] %v1151_v30  ;;  %1154 = vst [vmem:[%s3398_s8 + $0xef8] sm:$0xff] %v1153_v31  ;;  %v1155_v32 = vld [vmem:[%s3393_s7 + $0x1e00] sm:$0xff]  ;;  %v1157_v33 = vld [vmem:[%s3393_s7 + $0x1e08] sm:$0xff] }
 0x109   : > { %v1159_v34 = vld [vmem:[%s3393_s7 + $0x1e20] sm:$0xff]  ;;  %1156 = vst [vmem:[%s3398_s8 + $0xf00] sm:$0xff] %v1155_v32  ;;  %1158 = vst [vmem:[%s3398_s8 + $0xf08] sm:$0xff] %v1157_v33  ;;  %v1161_v35 = vld [vmem:[%s3393_s7 + $0x1e28] sm:$0xff] }
 0x10a   : > { %1160 = vst [vmem:[%s3398_s8 + $0xf10] sm:$0xff] %v1159_v34  ;;  %v1163_v36 = vld [vmem:[%s3393_s7 + $0x1e40] sm:$0xff]  ;;  %v1165_v37 = vld [vmem:[%s3393_s7 + $0x1e48] sm:$0xff]  ;;  %1162 = vst [vmem:[%s3398_s8 + $0xf18] sm:$0xff] %v1161_v35 }
 0x10b   : > { %1164 = vst [vmem:[%s3398_s8 + $0xf20] sm:$0xff] %v1163_v36  ;;  %1166 = vst [vmem:[%s3398_s8 + $0xf28] sm:$0xff] %v1165_v37  ;;  %v1167_v38 = vld [vmem:[%s3393_s7 + $0x1e60] sm:$0xff]  ;;  %v1169_v39 = vld [vmem:[%s3393_s7 + $0x1e68] sm:$0xff] }
 0x10c   : > { %v1171_v40 = vld [vmem:[%s3393_s7 + $0x1e80] sm:$0xff]  ;;  %1168 = vst [vmem:[%s3398_s8 + $0xf30] sm:$0xff] %v1167_v38  ;;  %1170 = vst [vmem:[%s3398_s8 + $0xf38] sm:$0xff] %v1169_v39  ;;  %v1173_v41 = vld [vmem:[%s3393_s7 + $0x1e88] sm:$0xff] }
 0x10d   : > { %1172 = vst [vmem:[%s3398_s8 + $0xf40] sm:$0xff] %v1171_v40  ;;  %v1175_v42 = vld [vmem:[%s3393_s7 + $0x1ea0] sm:$0xff]  ;;  %v1177_v43 = vld [vmem:[%s3393_s7 + $0x1ea8] sm:$0xff]  ;;  %1174 = vst [vmem:[%s3398_s8 + $0xf48] sm:$0xff] %v1173_v41 }
 0x10e   : > { %1176 = vst [vmem:[%s3398_s8 + $0xf50] sm:$0xff] %v1175_v42  ;;  %1178 = vst [vmem:[%s3398_s8 + $0xf58] sm:$0xff] %v1177_v43  ;;  %v1179_v44 = vld [vmem:[%s3393_s7 + $0x1ec0] sm:$0xff]  ;;  %v1181_v45 = vld [vmem:[%s3393_s7 + $0x1ec8] sm:$0xff] }
 0x10f   : > { %v1183_v46 = vld [vmem:[%s3393_s7 + $0x1ee0] sm:$0xff]  ;;  %1180 = vst [vmem:[%s3398_s8 + $0xf60] sm:$0xff] %v1179_v44  ;;  %1182 = vst [vmem:[%s3398_s8 + $0xf68] sm:$0xff] %v1181_v45  ;;  %v1185_v47 = vld [vmem:[%s3393_s7 + $0x1ee8] sm:$0xff] }
 0x110   : > { %1184 = vst [vmem:[%s3398_s8 + $0xf70] sm:$0xff] %v1183_v46  ;;  %v1187_v48 = vld [vmem:[%s3393_s7 + $0x1f00] sm:$0xff]  ;;  %v1189_v49 = vld [vmem:[%s3393_s7 + $0x1f08] sm:$0xff]  ;;  %1186 = vst [vmem:[%s3398_s8 + $0xf78] sm:$0xff] %v1185_v47 }
 0x111   : > { %1188 = vst [vmem:[%s3398_s8 + $0xf80] sm:$0xff] %v1187_v48  ;;  %1190 = vst [vmem:[%s3398_s8 + $0xf88] sm:$0xff] %v1189_v49  ;;  %v1191_v50 = vld [vmem:[%s3393_s7 + $0x1f20] sm:$0xff]  ;;  %v1193_v51 = vld [vmem:[%s3393_s7 + $0x1f28] sm:$0xff] }
 0x112   : > { %v1195_v52 = vld [vmem:[%s3393_s7 + $0x1f40] sm:$0xff]  ;;  %1192 = vst [vmem:[%s3398_s8 + $0xf90] sm:$0xff] %v1191_v50  ;;  %1194 = vst [vmem:[%s3398_s8 + $0xf98] sm:$0xff] %v1193_v51  ;;  %v1197_v53 = vld [vmem:[%s3393_s7 + $0x1f48] sm:$0xff] }
 0x113   : > { %1196 = vst [vmem:[%s3398_s8 + $0xfa0] sm:$0xff] %v1195_v52  ;;  %v1199_v54 = vld [vmem:[%s3393_s7 + $0x1f60] sm:$0xff]  ;;  %v1201_v55 = vld [vmem:[%s3393_s7 + $0x1f68] sm:$0xff]  ;;  %1198 = vst [vmem:[%s3398_s8 + $0xfa8] sm:$0xff] %v1197_v53 }
 0x114   : > { %1200 = vst [vmem:[%s3398_s8 + $0xfb0] sm:$0xff] %v1199_v54  ;;  %1202 = vst [vmem:[%s3398_s8 + $0xfb8] sm:$0xff] %v1201_v55  ;;  %v1203_v56 = vld [vmem:[%s3393_s7 + $0x1f80] sm:$0xff]  ;;  %v1205_v57 = vld [vmem:[%s3393_s7 + $0x1f88] sm:$0xff] }
 0x115   : > { %v1207_v58 = vld [vmem:[%s3393_s7 + $0x1fa0] sm:$0xff]  ;;  %1204 = vst [vmem:[%s3398_s8 + $0xfc0] sm:$0xff] %v1203_v56  ;;  %1206 = vst [vmem:[%s3398_s8 + $0xfc8] sm:$0xff] %v1205_v57  ;;  %v1209_v59 = vld [vmem:[%s3393_s7 + $0x1fa8] sm:$0xff] }
 0x116   : > { %1208 = vst [vmem:[%s3398_s8 + $0xfd0] sm:$0xff] %v1207_v58  ;;  %v1211_v60 = vld [vmem:[%s3393_s7 + $0x1fc0] sm:$0xff]  ;;  %v1213_v61 = vld [vmem:[%s3393_s7 + $0x1fc8] sm:$0xff]  ;;  %1210 = vst [vmem:[%s3398_s8 + $0xfd8] sm:$0xff] %v1209_v59 }
 0x117   : > { %1212 = vst [vmem:[%s3398_s8 + $0xfe0] sm:$0xff] %v1211_v60  ;;  %1214 = vst [vmem:[%s3398_s8 + $0xfe8] sm:$0xff] %v1213_v61  ;;  %v1215_v62 = vld [vmem:[%s3393_s7 + $0x1fe0] sm:$0xff]  ;;  %v1217_v63 = vld [vmem:[%s3393_s7 + $0x1fe8] sm:$0xff] }
 0x118   : > { %1216 = vst [vmem:[%s3398_s8 + $0xff0] sm:$0xff] %v1215_v62  ;;  %1218 = vst [vmem:[%s3398_s8 + $0xff8] sm:$0xff] %v1217_v63 }
 0x119 PF: > { %p2655_p7 = scmp.ge.s32.totalorder %s3309_s18, 1  ;;  %p1231_p8 = scmp.lt.s32.totalorder %s3309_s18, 5 }
 0x11b   : > { %p1232_p9 = pnand %p2655_p7, %p1231_p8 }
 0x11c   : > { %s1238_s9 = sand.u32 (!%p1232_p9), 1, %s3285_s12   ;;  %s2657_s10 = sshll.u32 (!%p1232_p9), %s3293_s14, 4 }
 0x11d   : > { %1235 = sbr.rel (%p1232_p9) target bundleno = 796 (0x31c), region = 51  ;;  %s2656_s11 = sshll.u32 (!%p1232_p9), %s1238_s9, 12 }
 0x11e   : > { %p1281_p10 = scmp.lt.s32.totalorder (!%p1232_p9), %s2657_s10, 31  ;;  %s2659_s21 = sshll.u32 (!%p1232_p9), %s3297_s15, 1 }
 0x11f   : > { %p1291_p11 = scmp.lt.s32.totalorder (!%p1232_p9), %s2659_s21, 3  ;;  %s4443_s5 = scalar_lea.vmem (!%p1232_p9), [#allocation3], %s2656_s11 }
 0x120   : > { %p2662_p12 = scmp.ne.s32.totalorder (!%p1232_p9), %s3293_s14, 0 }
 0x124   : > { %s5084_s10 = smov (!%p1281_p10, %s2657_s10), 31  ;;  %s5086_s21 = smov (!%p1291_p11, %s2659_s21), 3 }
 0x125   : > { %s2658_s22 = sshll.u32 %s5084_s10, 1  ;;  %s1293_s12 = scalar_lea.vmem %s5069_s2, %s5086_s21  ;;  %v3311_v0 = vmov (!%p2662_p12), 0.0  }
 0x126   : > { %s4429_s26 = scalar_lea.vmem %s5067_s0, %s2658_s22  ;;  %s2661_s29 = sshll.u32 %s5086_s21, 1  ;;  %1309 = vst [vmem:[#allocation2] sm:$0xf] (!%p2662_p12), %v3311_v0 }
 0x127   : > { %s4441_s15 = scalar_lea.vmem %s5070_s3, %s2661_s29  ;;  %1308 = sbr.rel (%p2662_p12) target bundleno = 302 (0x12e), region = 59 }
 0x12e PF: > { %v1316_v1 = vld [vmem:[%s4443_s5 + $0x8] sm:$0xff]  ;;  %v1318_v2 = vld [vmem:[%s4443_s5 + $0x18] sm:$0xff]  ;;  %v1315_v6 = vld [vmem:[%s4443_s5] sm:$0xff]  ;;  %p2663_p13 = scmp.ne.s32.totalorder %s3293_s14, 1 }
 0x12f   : > { %v1572_v3 = vld [vmem:[%s4443_s5 + $0x808] sm:$0xff]  ;;  %v2667_v4 = vpack.c.bf16 %v1318_v2, %v1316_v1  ;;  %v1574_v5 = vld [vmem:[%s4443_s5 + $0x818] sm:$0xff]  ;;  %v1317_v7 = vld [vmem:[%s4443_s5 + $0x10] sm:$0xff] }
 0x130   : > { %v2923_v8 = vpack.c.bf16 %v1574_v5, %v1572_v3  ;;  %v2669_v9 = vpack.c.bf16 %v1317_v7, %v1315_v6  ;;  %v1571_v10 = vld [vmem:[%s4443_s5 + $0x800] sm:$0xff]  ;;  %v1573_v11 = vld [vmem:[%s4443_s5 + $0x810] sm:$0xff]  ;;  %v1320_v12 = vld [vmem:[%s4443_s5 + $0x28] sm:$0xff] }
 0x131   : > { %2668 = vmatprep.subr.bf16.mxu1 %v2667_v4  ;;  %v2925_v13 = vpack.c.bf16 %v1573_v11, %v1571_v10  ;;  %v1322_v14 = vld [vmem:[%s4443_s5 + $0x38] sm:$0xff]  ;;  %v1576_v15 = vld [vmem:[%s4443_s5 + $0x828] sm:$0xff]  ;;  %v1319_v19 = vld [vmem:[%s4443_s5 + $0x20] sm:$0xff] }
 0x132   : > { %v1578_v16 = vld [vmem:[%s4443_s5 + $0x838] sm:$0xff]  ;;  %2924 = vmatprep.subr.bf16.mxu0 %v2923_v8  ;;  %2670 = vmatpush1.bf16.msra.mxu1 %v2669_v9  ;;  %v2671_v17 = vpack.c.bf16 %v1322_v14, %v1320_v12  ;;  %v1321_v20 = vld [vmem:[%s4443_s5 + $0x30] sm:$0xff]  ;;  %v1575_v21 = vld [vmem:[%s4443_s5 + $0x820] sm:$0xff] }
 0x133   : > { %v2927_v18 = vpack.c.bf16 %v1578_v16, %v1576_v15  ;;  %2926 = vmatpush1.bf16.msra.mxu0 %v2925_v13  ;;  %v2673_v22 = vpack.c.bf16 %v1321_v20, %v1319_v19  ;;  %v1577_v23 = vld [vmem:[%s4443_s5 + $0x830] sm:$0xff]  ;;  %v1324_v24 = vld [vmem:[%s4443_s5 + $0x48] sm:$0xff]  ;;  %v1326_v25 = vld [vmem:[%s4443_s5 + $0x58] sm:$0xff] }
 0x134   : > { %2672 = vmatprep.subr.bf16.mxu1 %v2671_v17  ;;  %v2929_v26 = vpack.c.bf16 %v1577_v23, %v1575_v21  ;;  %v2675_v27 = vpack.c.bf16 %v1326_v25, %v1324_v24  ;;  %v1580_v28 = vld [vmem:[%s4443_s5 + $0x848] sm:$0xff]  ;;  %v1582_v29 = vld [vmem:[%s4443_s5 + $0x858] sm:$0xff]  ;;  %v1323_v30 = vld [vmem:[%s4443_s5 + $0x40] sm:$0xff] }
 0x135   : > { %2928 = vmatprep.subr.bf16.mxu0 %v2927_v18  ;;  %v2931_v31 = vpack.c.bf16 %v1582_v29, %v1580_v28  ;;  %v1325_v32 = vld [vmem:[%s4443_s5 + $0x50] sm:$0xff]  ;;  %v1579_v33 = vld [vmem:[%s4443_s5 + $0x840] sm:$0xff]  ;;  %v1328_v36 = vld [vmem:[%s4443_s5 + $0x68] sm:$0xff] }
 0x136   : > { %v1581_v34 = vld [vmem:[%s4443_s5 + $0x850] sm:$0xff]  ;;  %2674 = vmatpush1.bf16.msra.mxu1 %v2673_v22  ;;  %v2677_v35 = vpack.c.bf16 %v1325_v32, %v1323_v30  ;;  %v1330_v37 = vld [vmem:[%s4443_s5 + $0x78] sm:$0xff]  ;;  %v1584_v38 = vld [vmem:[%s4443_s5 + $0x868] sm:$0xff] }
 0x137   : > { %2930 = vmatpush1.bf16.msra.mxu0 %v2929_v26  ;;  %2676 = vmatprep.subr.bf16.mxu1 %v2675_v27  ;;  %v2933_v39 = vpack.c.bf16 %v1581_v34, %v1579_v33  ;;  %v2679_v40 = vpack.c.bf16 %v1330_v37, %v1328_v36  ;;  %v1586_v41 = vld [vmem:[%s4443_s5 + $0x878] sm:$0xff]  ;;  %v1327_v42 = vld [vmem:[%s4443_s5 + $0x60] sm:$0xff]  ;;  %v1329_v43 = vld [vmem:[%s4443_s5 + $0x70] sm:$0xff] }
 0x138   : > { %2932 = vmatprep.subr.bf16.mxu0 %v2931_v31  ;;  %v2935_v44 = vpack.c.bf16 %v1586_v41, %v1584_v38  ;;  %v1583_v45 = vld [vmem:[%s4443_s5 + $0x860] sm:$0xff]  ;;  %v1585_v46 = vld [vmem:[%s4443_s5 + $0x870] sm:$0xff]  ;;  %v1332_v47 = vld [vmem:[%s4443_s5 + $0x88] sm:$0xff]  ;;  %v2681_v51 = vpack.c.bf16 %v1329_v43, %v1327_v42 }
 0x139   : > { %v1334_v48 = vld [vmem:[%s4443_s5 + $0x98] sm:$0xff]  ;;  %v1588_v49 = vld [vmem:[%s4443_s5 + $0x888] sm:$0xff]  ;;  %v2937_v52 = vpack.c.bf16 %v1585_v46, %v1583_v45  ;;  %v1331_v54 = vld [vmem:[%s4443_s5 + $0x80] sm:$0xff] }
 0x13a   : > { %v1590_v50 = vld [vmem:[%s4443_s5 + $0x898] sm:$0xff]  ;;  %2678 = vmatpush1.bf16.msra.mxu1 %v2677_v35  ;;  %v2683_v53 = vpack.c.bf16 %v1334_v48, %v1332_v47  ;;  %v1333_v55 = vld [vmem:[%s4443_s5 + $0x90] sm:$0xff]  ;;  %v1587_v56 = vld [vmem:[%s4443_s5 + $0x880] sm:$0xff]  ;;  %v3312_v47 = vmov 1983009808  }
 0x13b   : > { %2934 = vmatpush1.bf16.msra.mxu0 %v2933_v39  ;;  %2680 = vmatprep.subr.bf16.mxu1 %v2679_v40  ;;  %v2939_v57 = vpack.c.bf16 %v1590_v50, %v1588_v49  ;;  %v1589_v58 = vld [vmem:[%s4443_s5 + $0x890] sm:$0xff]  ;;  %v1336_v59 = vld [vmem:[%s4443_s5 + $0xa8] sm:$0xff]  ;;  %v1338_v60 = vld [vmem:[%s4443_s5 + $0xb8] sm:$0xff]  ;;  %v2685_v63 = vpack.c.bf16 %v1333_v55, %v1331_v54  ;;  %v1833_v48 = vunpack.c.l.s4 %v3312_v47  ;;  %v1835_v49 = vlaneseq }
 0x13c   : > { %2936 = vmatprep.subr.bf16.mxu0 %v2935_v44  ;;  %v1592_v61 = vld [vmem:[%s4443_s5 + $0x8a8] sm:$0xff]  ;;  %v1594_v62 = vld [vmem:[%s4443_s5 + $0x8b8] sm:$0xff]  ;;  %v2941_v0 = vpack.c.bf16 %v1589_v58, %v1587_v56  ;;  %v2687_v1 = vpack.c.bf16 %v1338_v60, %v1336_v59  ;;  %v1335_v2 = vld [vmem:[%s4443_s5 + $0xa0] sm:$0xff] }
 0x13d   : > { %v1337_v3 = vld [vmem:[%s4443_s5 + $0xb0] sm:$0xff]  ;;  %v1591_v4 = vld [vmem:[%s4443_s5 + $0x8a0] sm:$0xff]  ;;  %v2943_v5 = vpack.c.bf16 %v1594_v62, %v1592_v61  ;;  %v1340_v7 = vld [vmem:[%s4443_s5 + $0xc8] sm:$0xff]  ;;  %v1834_v62 = vunpack.c.0.s8 %v1833_v48 }
 0x13e   : > { %2682 = vmatpush1.bf16.msra.mxu1 %v2681_v51  ;;  %v1593_v6 = vld [vmem:[%s4443_s5 + $0x8b0] sm:$0xff]  ;;  %v1342_v8 = vld [vmem:[%s4443_s5 + $0xd8] sm:$0xff]  ;;  %v1596_v9 = vld [vmem:[%s4443_s5 + $0x8c8] sm:$0xff]  ;;  %v2689_v11 = vpack.c.bf16 %v1337_v3, %v1335_v2 }
 0x13f   : > { %2938 = vmatpush1.bf16.msra.mxu0 %v2937_v52  ;;  %2684 = vmatprep.subr.bf16.mxu1 %v2683_v53  ;;  %v1598_v10 = vld [vmem:[%s4443_s5 + $0x8d8] sm:$0xff]  ;;  %v2945_v12 = vpack.c.bf16 %v1593_v6, %v1591_v4  ;;  %v2691_v13 = vpack.c.bf16 %v1342_v8, %v1340_v7  ;;  %v1339_v14 = vld [vmem:[%s4443_s5 + $0xc0] sm:$0xff]  ;;  %v1341_v15 = vld [vmem:[%s4443_s5 + $0xd0] sm:$0xff] }
 0x140   : > { %2940 = vmatprep.subr.bf16.mxu0 %v2939_v57  ;;  %v1595_v16 = vld [vmem:[%s4443_s5 + $0x8c0] sm:$0xff]  ;;  %v2947_v17 = vpack.c.bf16 %v1598_v10, %v1596_v9  ;;  %v1597_v18 = vld [vmem:[%s4443_s5 + $0x8d0] sm:$0xff]  ;;  %v1344_v19 = vld [vmem:[%s4443_s5 + $0xe8] sm:$0xff]  ;;  %v2693_v23 = vpack.c.bf16 %v1341_v15, %v1339_v14 }
 0x141   : > { %v1346_v20 = vld [vmem:[%s4443_s5 + $0xf8] sm:$0xff]  ;;  %v1600_v21 = vld [vmem:[%s4443_s5 + $0x8e8] sm:$0xff]  ;;  %v2949_v24 = vpack.c.bf16 %v1597_v18, %v1595_v16  ;;  %v1343_v26 = vld [vmem:[%s4443_s5 + $0xe0] sm:$0xff] }
 0x142   : > { %2686 = vmatpush1.bf16.msra.mxu1 %v2685_v63  ;;  %v1602_v22 = vld [vmem:[%s4443_s5 + $0x8f8] sm:$0xff]  ;;  %v2695_v25 = vpack.c.bf16 %v1346_v20, %v1344_v19  ;;  %v1345_v27 = vld [vmem:[%s4443_s5 + $0xf0] sm:$0xff]  ;;  %v1599_v28 = vld [vmem:[%s4443_s5 + $0x8e0] sm:$0xff]  ;;  %v4530_v63 = vshrl.u32 %v1835_v49, 7 }
 0x143   : > { %2942 = vmatpush1.bf16.msra.mxu0 %v2941_v0  ;;  %2688 = vmatprep.subr.bf16.mxu1 %v2687_v1  ;;  %v2951_v29 = vpack.c.bf16 %v1602_v22, %v1600_v21  ;;  %v1601_v30 = vld [vmem:[%s4443_s5 + $0x8f0] sm:$0xff]  ;;  %v1348_v31 = vld [vmem:[%s4443_s5 + $0x108] sm:$0xff]  ;;  %v1350_v32 = vld [vmem:[%s4443_s5 + $0x118] sm:$0xff]  ;;  %v2697_v35 = vpack.c.bf16 %v1345_v27, %v1343_v26 }
 0x144   : > { %2944 = vmatprep.subr.bf16.mxu0 %v2943_v5  ;;  %v1604_v33 = vld [vmem:[%s4443_s5 + $0x908] sm:$0xff]  ;;  %v1606_v34 = vld [vmem:[%s4443_s5 + $0x918] sm:$0xff]  ;;  %v2953_v36 = vpack.c.bf16 %v1601_v30, %v1599_v28  ;;  %v2699_v37 = vpack.c.bf16 %v1350_v32, %v1348_v31  ;;  %v1347_v38 = vld [vmem:[%s4443_s5 + $0x100] sm:$0xff] }
 0x145   : > { %v1349_v39 = vld [vmem:[%s4443_s5 + $0x110] sm:$0xff]  ;;  %v1603_v40 = vld [vmem:[%s4443_s5 + $0x900] sm:$0xff]  ;;  %v2955_v41 = vpack.c.bf16 %v1606_v34, %v1604_v33  ;;  %v1352_v43 = vld [vmem:[%s4443_s5 + $0x128] sm:$0xff] }
 0x146   : > { %2690 = vmatpush1.bf16.msra.mxu1 %v2689_v11  ;;  %v1605_v42 = vld [vmem:[%s4443_s5 + $0x910] sm:$0xff]  ;;  %v1354_v44 = vld [vmem:[%s4443_s5 + $0x138] sm:$0xff]  ;;  %v1608_v45 = vld [vmem:[%s4443_s5 + $0x928] sm:$0xff]  ;;  %v2701_v50 = vpack.c.bf16 %v1349_v39, %v1347_v38 }
 0x147   : > { %2946 = vmatpush1.bf16.msra.mxu0 %v2945_v12  ;;  %2692 = vmatprep.subr.bf16.mxu1 %v2691_v13  ;;  %v1610_v46 = vld [vmem:[%s4443_s5 + $0x938] sm:$0xff]  ;;  %v2957_v51 = vpack.c.bf16 %v1605_v42, %v1603_v40  ;;  %v2703_v52 = vpack.c.bf16 %v1354_v44, %v1352_v43  ;;  %v1351_v53 = vld [vmem:[%s4443_s5 + $0x120] sm:$0xff]  ;;  %v1353_v54 = vld [vmem:[%s4443_s5 + $0x130] sm:$0xff]  ;;  %v4541_v12 = vsub.s32 %v1834_v62, %v4530_v63 }
 0x148   : > { %2948 = vmatprep.subr.bf16.mxu0 %v2947_v17  ;;  %v1607_v55 = vld [vmem:[%s4443_s5 + $0x920] sm:$0xff]  ;;  %v2959_v56 = vpack.c.bf16 %v1610_v46, %v1608_v45  ;;  %v1609_v57 = vld [vmem:[%s4443_s5 + $0x930] sm:$0xff]  ;;  %v1356_v58 = vld [vmem:[%s4443_s5 + $0x148] sm:$0xff]  ;;  %v2705_v0 = vpack.c.bf16 %v1353_v54, %v1351_v53 }
 0x149   : > { %v1358_v59 = vld [vmem:[%s4443_s5 + $0x158] sm:$0xff]  ;;  %v1612_v60 = vld [vmem:[%s4443_s5 + $0x948] sm:$0xff]  ;;  %v2961_v1 = vpack.c.bf16 %v1609_v57, %v1607_v55  ;;  %v1355_v3 = vld [vmem:[%s4443_s5 + $0x140] sm:$0xff] }
 0x14a   : > { %2694 = vmatpush1.bf16.msra.mxu1 %v2693_v23  ;;  %v1614_v61 = vld [vmem:[%s4443_s5 + $0x958] sm:$0xff]  ;;  %v2707_v2 = vpack.c.bf16 %v1358_v59, %v1356_v58  ;;  %v1357_v4 = vld [vmem:[%s4443_s5 + $0x150] sm:$0xff]  ;;  %v1611_v5 = vld [vmem:[%s4443_s5 + $0x940] sm:$0xff] }
 0x14b   : > { %2950 = vmatpush1.bf16.msra.mxu0 %v2949_v24  ;;  %2696 = vmatprep.subr.bf16.mxu1 %v2695_v25  ;;  %v2963_v6 = vpack.c.bf16 %v1614_v61, %v1612_v60  ;;  %v1613_v7 = vld [vmem:[%s4443_s5 + $0x950] sm:$0xff]  ;;  %v1360_v8 = vld [vmem:[%s4443_s5 + $0x168] sm:$0xff]  ;;  %v1362_v9 = vld [vmem:[%s4443_s5 + $0x178] sm:$0xff]  ;;  %v2709_v13 = vpack.c.bf16 %v1357_v4, %v1355_v3 }
 0x14c   : > { %2952 = vmatprep.subr.bf16.mxu0 %v2951_v29  ;;  %v1616_v10 = vld [vmem:[%s4443_s5 + $0x968] sm:$0xff]  ;;  %v1618_v11 = vld [vmem:[%s4443_s5 + $0x978] sm:$0xff]  ;;  %v1359_v14 = vld [vmem:[%s4443_s5 + $0x160] sm:$0xff]  ;;  %v2965_v15 = vpack.c.bf16 %v1613_v7, %v1611_v5  ;;  %v2711_v16 = vpack.c.bf16 %v1362_v9, %v1360_v8 }
 0x14d   : > { %v1361_v17 = vld [vmem:[%s4443_s5 + $0x170] sm:$0xff]  ;;  %v1615_v18 = vld [vmem:[%s4443_s5 + $0x960] sm:$0xff]  ;;  %v2967_v20 = vpack.c.bf16 %v1618_v11, %v1616_v10  ;;  %v1364_v21 = vld [vmem:[%s4443_s5 + $0x188] sm:$0xff] }
 0x14e   : > { %2698 = vmatpush1.bf16.msra.mxu1 %v2697_v35  ;;  %v1617_v19 = vld [vmem:[%s4443_s5 + $0x970] sm:$0xff]  ;;  %v1366_v22 = vld [vmem:[%s4443_s5 + $0x198] sm:$0xff]  ;;  %v1620_v24 = vld [vmem:[%s4443_s5 + $0x988] sm:$0xff]  ;;  %v2713_v28 = vpack.c.bf16 %v1361_v17, %v1359_v14 }
 0x14f   : > { %2954 = vmatpush1.bf16.msra.mxu0 %v2953_v36  ;;  %2700 = vmatprep.subr.bf16.mxu1 %v2699_v37  ;;  %v4550_v23 = vld [vmem:[%s4429_s26] sm:$0xff]  ;;  %v4559_v27 = vld [vmem:[%s4429_s26 + $0x10] sm:$0xff]  ;;  %v2969_v30 = vpack.c.bf16 %v1617_v19, %v1615_v18  ;;  %v2715_v31 = vpack.c.bf16 %v1366_v22, %v1364_v21 }
 0x150   : > { %2956 = vmatprep.subr.bf16.mxu0 %v2955_v41  ;;  %v1622_v25 = vld [vmem:[%s4443_s5 + $0x998] sm:$0xff]  ;;  %v4556_v26 = vrot.slane %v4550_v23, %v4541_v12  ;;  %v4563_v29 = vrot.slane %v4559_v27, %v4541_v12  ;;  %v1363_v32 = vld [vmem:[%s4443_s5 + $0x180] sm:$0xff]  ;;  %v1365_v33 = vld [vmem:[%s4443_s5 + $0x190] sm:$0xff] }
 0x151   : > { %v1619_v34 = vld [vmem:[%s4443_s5 + $0x980] sm:$0xff]  ;;  %v2971_v36 = vpack.c.bf16 %v1622_v25, %v1620_v24  ;;  %v1621_v37 = vld [vmem:[%s4443_s5 + $0x990] sm:$0xff]  ;;  %v1368_v38 = vld [vmem:[%s4443_s5 + $0x1a8] sm:$0xff]  ;;  %v2717_v43 = vpack.c.bf16 %v1365_v33, %v1363_v32 }
 0x152   : > { %2702 = vmatpush1.bf16.msra.mxu1 %v2701_v50  ;;  %v1846_v35 = vcombine.high %v4556_v26, %v4556_v26  ;;  %v1370_v39 = vld [vmem:[%s4443_s5 + $0x1b8] sm:$0xff]  ;;  %v1880_v40 = vcombine.high %v4563_v29, %v4563_v29  ;;  %v1624_v41 = vld [vmem:[%s4443_s5 + $0x9a8] sm:$0xff]  ;;  %v2973_v44 = vpack.c.bf16 %v1621_v37, %v1619_v34  ;;  %v1367_v46 = vld [vmem:[%s4443_s5 + $0x1a0] sm:$0xff] }
 0x153   : > { %2958 = vmatpush1.bf16.msra.mxu0 %v2957_v51  ;;  %2704 = vmatprep.subr.bf16.mxu1 %v2703_v52  ;;  %v1626_v42 = vld [vmem:[%s4443_s5 + $0x9b8] sm:$0xff]  ;;  %v2719_v45 = vpack.c.bf16 %v1370_v39, %v1368_v38  ;;  %v1369_v47 = vld [vmem:[%s4443_s5 + $0x1b0] sm:$0xff]  ;;  %v1623_v48 = vld [vmem:[%s4443_s5 + $0x9a0] sm:$0xff] }
 0x154   : > { %2960 = vmatprep.subr.bf16.mxu0 %v2959_v56  ;;  %1979 = vmatprep.mubr.f32.mxu1 %v1846_v35  ;;  %v2975_v49 = vpack.c.bf16 %v1626_v42, %v1624_v41  ;;  %v1625_v50 = vld [vmem:[%s4443_s5 + $0x9b0] sm:$0xff]  ;;  %v1372_v51 = vld [vmem:[%s4443_s5 + $0x1c8] sm:$0xff]  ;;  %v1374_v52 = vld [vmem:[%s4443_s5 + $0x1d8] sm:$0xff]  ;;  %v2721_v55 = vpack.c.bf16 %v1369_v47, %v1367_v46 }
 0x155   : > { %2263 = vmatprep.mubr.f32.mxu0 %v1880_v40  ;;  %v1628_v53 = vld [vmem:[%s4443_s5 + $0x9c8] sm:$0xff]  ;;  %v1630_v54 = vld [vmem:[%s4443_s5 + $0x9d8] sm:$0xff]  ;;  %v2977_v56 = vpack.c.bf16 %v1625_v50, %v1623_v48  ;;  %v2723_v57 = vpack.c.bf16 %v1374_v52, %v1372_v51  ;;  %v1371_v58 = vld [vmem:[%s4443_s5 + $0x1c0] sm:$0xff] }
 0x156   : > { %2706 = vmatpush1.bf16.msra.mxu1 %v2705_v0  ;;  %v1373_v59 = vld [vmem:[%s4443_s5 + $0x1d0] sm:$0xff]  ;;  %v1627_v60 = vld [vmem:[%s4443_s5 + $0x9c0] sm:$0xff]  ;;  %v2979_v61 = vpack.c.bf16 %v1630_v54, %v1628_v53  ;;  %v1376_v0 = vld [vmem:[%s4443_s5 + $0x1e8] sm:$0xff] }
 0x157   : > { %2962 = vmatpush1.bf16.msra.mxu0 %v2961_v1  ;;  %2708 = vmatprep.subr.bf16.mxu1 %v2707_v2  ;;  %v1629_v62 = vld [vmem:[%s4443_s5 + $0x9d0] sm:$0xff]  ;;  %v1378_v1 = vld [vmem:[%s4443_s5 + $0x1f8] sm:$0xff]  ;;  %v1632_v2 = vld [vmem:[%s4443_s5 + $0x9e8] sm:$0xff]  ;;  %v2725_v4 = vpack.c.bf16 %v1373_v59, %v1371_v58 }
 0x158   : > { %2964 = vmatprep.subr.bf16.mxu0 %v2963_v6  ;;  %v1634_v3 = vld [vmem:[%s4443_s5 + $0x9f8] sm:$0xff]  ;;  %v2981_v5 = vpack.c.bf16 %v1629_v62, %v1627_v60  ;;  %v2727_v6 = vpack.c.bf16 %v1378_v1, %v1376_v0  ;;  %v1375_v7 = vld [vmem:[%s4443_s5 + $0x1e0] sm:$0xff]  ;;  %v1377_v8 = vld [vmem:[%s4443_s5 + $0x1f0] sm:$0xff] }
 0x159   : > { %v1631_v9 = vld [vmem:[%s4443_s5 + $0x9e0] sm:$0xff]  ;;  %v2983_v10 = vpack.c.bf16 %v1634_v3, %v1632_v2  ;;  %v1633_v11 = vld [vmem:[%s4443_s5 + $0x9f0] sm:$0xff]  ;;  %v1380_v14 = vld [vmem:[%s4443_s5 + $0x208] sm:$0xff]  ;;  %v2729_v19 = vpack.c.bf16 %v1377_v8, %v1375_v7 }
 0x15a   : > { %2710 = vmatpush1.bf16.msra.mxu1 %v2709_v13  ;;  %v1831_v13 = vcombine.high %v4550_v23, %v4550_v23  ;;  %v1636_v17 = vld [vmem:[%s4443_s5 + $0xa08] sm:$0xff]  ;;  %v1638_v18 = vld [vmem:[%s4443_s5 + $0xa18] sm:$0xff]  ;;  %v1379_v22 = vld [vmem:[%s4443_s5 + $0x200] sm:$0xff] }
 0x15b   : > { %2966 = vmatpush1.bf16.msra.mxu0 %v2965_v15  ;;  %2712 = vmatprep.subr.bf16.mxu1 %v2711_v16  ;;  %v1382_v15 = vld [vmem:[%s4443_s5 + $0x218] sm:$0xff]  ;;  %v1865_v16 = vcombine.high %v4559_v27, %v4559_v27  ;;  %v1381_v23 = vld [vmem:[%s4443_s5 + $0x210] sm:$0xff]  ;;  %v1635_v24 = vld [vmem:[%s4443_s5 + $0xa00] sm:$0xff]  ;;  %v2987_v25 = vpack.c.bf16 %v1638_v18, %v1636_v17 }
 0x15c   : > { %2968 = vmatprep.subr.bf16.mxu0 %v2967_v20  ;;  %v2985_v20 = vpack.c.bf16 %v1633_v11, %v1631_v9  ;;  %v2731_v21 = vpack.c.bf16 %v1382_v15, %v1380_v14  ;;  %v1637_v27 = vld [vmem:[%s4443_s5 + $0xa10] sm:$0xff]  ;;  %v1640_v32 = vld [vmem:[%s4443_s5 + $0xa28] sm:$0xff]  ;;  %v1642_v33 = vld [vmem:[%s4443_s5 + $0xa38] sm:$0xff]  ;;  %v2733_v35 = vpack.c.bf16 %v1381_v23, %v1379_v22 }
 0x15d   : > { %v4617_v34 = vrot.slane %v1865_v16, %v4541_v12  ;;  %v1383_v38 = vld [vmem:[%s4443_s5 + $0x220] sm:$0xff]  ;;  %v1385_v39 = vld [vmem:[%s4443_s5 + $0x230] sm:$0xff]  ;;  %v2991_v41 = vpack.c.bf16 %v1642_v33, %v1640_v32  ;;  %v1644_v46 = vld [vmem:[%s4443_s5 + $0xa48] sm:$0xff] }
 0x15e   : > { %2714 = vmatpush1.bf16.msra.mxu1 %v2713_v28  ;;  %v1384_v28 = vld [vmem:[%s4443_s5 + $0x228] sm:$0xff]  ;;  %v1639_v40 = vld [vmem:[%s4443_s5 + $0xa20] sm:$0xff]  ;;  %v1641_v42 = vld [vmem:[%s4443_s5 + $0xa30] sm:$0xff] }
 0x15f   : > { %2970 = vmatpush1.bf16.msra.mxu0 %v2969_v30  ;;  %2716 = vmatprep.subr.bf16.mxu1 %v2715_v31  ;;  %v1386_v30 = vld [vmem:[%s4443_s5 + $0x238] sm:$0xff]  ;;  %v4612_v31 = vrot.slane %v1831_v13, %v4541_v12  ;;  %v1881_v48 = vcombine.high %v4617_v34, %v4617_v34  ;;  %v2993_v50 = vpack.c.bf16 %v1641_v42, %v1639_v40  ;;  %v1387_v52 = vld [vmem:[%s4443_s5 + $0x240] sm:$0xff]  ;;  %v1393_v0 = vld [vmem:[%s4443_s5 + $0x270] sm:$0xff] }
 0x160   : > { %2972 = vmatprep.subr.bf16.mxu0 %v2971_v36  ;;  %v2989_v36 = vpack.c.bf16 %v1637_v27, %v1635_v24  ;;  %v2735_v37 = vpack.c.bf16 %v1386_v30, %v1384_v28  ;;  %v1646_v47 = vld [vmem:[%s4443_s5 + $0xa58] sm:$0xff]  ;;  %v1643_v53 = vld [vmem:[%s4443_s5 + $0xa40] sm:$0xff]  ;;  %v1649_v3 = vld [vmem:[%s4443_s5 + $0xa70] sm:$0xff] }
 0x161   : > { %v2995_v54 = vpack.c.bf16 %v1646_v47, %v1644_v46  ;;  %v1650_v58 = vld [vmem:[%s4443_s5 + $0xa78] sm:$0xff]  ;;  %v1391_v62 = vld [vmem:[%s4443_s5 + $0x260] sm:$0xff]  ;;  %v1397_v13 = vld [vmem:[%s4443_s5 + $0x290] sm:$0xff] }
 0x162   : > { %2718 = vmatpush1.bf16.msra.mxu1 %v2717_v43  ;;  %v1388_v43 = vld [vmem:[%s4443_s5 + $0x248] sm:$0xff]  ;;  %v1647_v1 = vld [vmem:[%s4443_s5 + $0xa60] sm:$0xff]  ;;  %v1654_v7 = vld [vmem:[%s4443_s5 + $0xa98] sm:$0xff]  ;;  %v2745_v8 = vpack.c.bf16 %v1393_v0, %v1391_v62 }
 0x163   : > { %2974 = vmatpush1.bf16.msra.mxu0 %v2973_v44  ;;  %2720 = vmatprep.subr.bf16.mxu1 %v2719_v45  ;;  %v1390_v44 = vld [vmem:[%s4443_s5 + $0x258] sm:$0xff]  ;;  %v1847_v45 = vcombine.high %v4612_v31, %v4612_v31  ;;  %v3001_v9 = vpack.c.bf16 %v1649_v3, %v1647_v1  ;;  %v1395_v11 = vld [vmem:[%s4443_s5 + $0x280] sm:$0xff]  ;;  %v1653_v16 = vld [vmem:[%s4443_s5 + $0xa90] sm:$0xff] }
 0x164   : > { %2976 = vmatprep.subr.bf16.mxu0 %v2975_v49  ;;  %v2737_v49 = vpack.c.bf16 %v1385_v39, %v1383_v38  ;;  %v2739_v51 = vpack.c.bf16 %v1390_v44, %v1388_v43  ;;  %v1651_v14 = vld [vmem:[%s4443_s5 + $0xa80] sm:$0xff]  ;;  %v1400_v17 = vld [vmem:[%s4443_s5 + $0x2a8] sm:$0xff]  ;;  %v1402_v18 = vld [vmem:[%s4443_s5 + $0x2b8] sm:$0xff] }
 0x165   : > { %v3005_v22 = vpack.c.bf16 %v1653_v16, %v1651_v14  ;;  %v2751_v23 = vpack.c.bf16 %v1402_v18, %v1400_v17  ;;  %v1399_v24 = vld [vmem:[%s4443_s5 + $0x2a0] sm:$0xff]  ;;  %v1657_v30 = vld [vmem:[%s4443_s5 + $0xab0] sm:$0xff]  ;;  %v1404_v32 = vld [vmem:[%s4443_s5 + $0x2c8] sm:$0xff] }
 0x166   : > { %2722 = vmatpush1.bf16.msra.mxu1 %v2721_v55  ;;  %v1645_v55 = vld [vmem:[%s4443_s5 + $0xa50] sm:$0xff]  ;;  %v1655_v27 = vld [vmem:[%s4443_s5 + $0xaa0] sm:$0xff]  ;;  %v1406_v33 = vld [vmem:[%s4443_s5 + $0x2d8] sm:$0xff] }
 0x167   : > { %2978 = vmatpush1.bf16.msra.mxu0 %v2977_v56  ;;  %2724 = vmatprep.subr.bf16.mxu1 %v2723_v57  ;;  %v1392_v56 = vld [vmem:[%s4443_s5 + $0x268] sm:$0xff]  ;;  %v1394_v57 = vld [vmem:[%s4443_s5 + $0x278] sm:$0xff]  ;;  %v2997_v60 = vpack.c.bf16 %v1645_v55, %v1643_v53  ;;  %v3009_v38 = vpack.c.bf16 %v1657_v30, %v1655_v27  ;;  %v2755_v39 = vpack.c.bf16 %v1406_v33, %v1404_v32  ;;  %v1403_v40 = vld [vmem:[%s4443_s5 + $0x2c0] sm:$0xff] }
 0x168   : > { %2980 = vmatprep.subr.bf16.mxu0 %v2979_v61  ;;  %v2743_v61 = vpack.c.bf16 %v1394_v57, %v1392_v56  ;;  %v1659_v42 = vld [vmem:[%s4443_s5 + $0xac0] sm:$0xff]  ;;  %v1661_v44 = vld [vmem:[%s4443_s5 + $0xad0] sm:$0xff]  ;;  %v1410_v46 = vld [vmem:[%s4443_s5 + $0x2f8] sm:$0xff] }
 0x169   : > { %v1664_v47 = vld [vmem:[%s4443_s5 + $0xae8] sm:$0xff]  ;;  %v1663_v53 = vld [vmem:[%s4443_s5 + $0xae0] sm:$0xff]  ;;  %v1665_v55 = vld [vmem:[%s4443_s5 + $0xaf0] sm:$0xff] }
 0x16a   : > { %2726 = vmatpush1.bf16.msra.mxu1 %v2725_v4  ;;  %v1396_v4 = vld [vmem:[%s4443_s5 + $0x288] sm:$0xff]  ;;  %v1414_v57 = vld [vmem:[%s4443_s5 + $0x318] sm:$0xff]  ;;  %v1411_v62 = vld [vmem:[%s4443_s5 + $0x300] sm:$0xff] }
 0x16b   : > { %2982 = vmatpush1.bf16.msra.mxu0 %v2981_v5  ;;  %2728 = vmatprep.subr.bf16.mxu1 %v2727_v6  ;;  %v1398_v5 = vld [vmem:[%s4443_s5 + $0x298] sm:$0xff]  ;;  %v1652_v6 = vld [vmem:[%s4443_s5 + $0xa88] sm:$0xff]  ;;  %v1413_v0 = vld [vmem:[%s4443_s5 + $0x310] sm:$0xff] }
 0x16c   : > { %2984 = vmatprep.subr.bf16.mxu0 %v2983_v10  ;;  %v2747_v10 = vpack.c.bf16 %v1398_v5, %v1396_v4  ;;  %v3003_v15 = vpack.c.bf16 %v1654_v7, %v1652_v6  ;;  %v1412_v56 = vld [vmem:[%s4443_s5 + $0x308] sm:$0xff]  ;;  %v1667_v1 = vld [vmem:[%s4443_s5 + $0xb00] sm:$0xff]  ;;  %v1669_v3 = vld [vmem:[%s4443_s5 + $0xb10] sm:$0xff] }
 0x16d   : > { %v1416_v4 = vld [vmem:[%s4443_s5 + $0x328] sm:$0xff]  ;;  %v1418_v5 = vld [vmem:[%s4443_s5 + $0x338] sm:$0xff]  ;;  %v1671_v14 = vld [vmem:[%s4443_s5 + $0xb20] sm:$0xff] }
 0x16e   : > { %2730 = vmatpush1.bf16.msra.mxu1 %v2729_v19  ;;  %v1656_v19 = vld [vmem:[%s4443_s5 + $0xaa8] sm:$0xff]  ;;  %v1674_v7 = vld [vmem:[%s4443_s5 + $0xb38] sm:$0xff]  ;;  %v1673_v16 = vld [vmem:[%s4443_s5 + $0xb30] sm:$0xff] }
 0x16f   : > { %2986 = vmatpush1.bf16.msra.mxu0 %v2985_v20  ;;  %2732 = vmatprep.subr.bf16.mxu1 %v2731_v21  ;;  %v1658_v20 = vld [vmem:[%s4443_s5 + $0xab8] sm:$0xff]  ;;  %v2749_v21 = vpack.c.bf16 %v1397_v13, %v1395_v11  ;;  %v1672_v6 = vld [vmem:[%s4443_s5 + $0xb28] sm:$0xff]  ;;  %v1415_v11 = vld [vmem:[%s4443_s5 + $0x320] sm:$0xff] }
 0x170   : > { %2988 = vmatprep.subr.bf16.mxu0 %v2987_v25  ;;  %v1401_v25 = vld [vmem:[%s4443_s5 + $0x2b0] sm:$0xff]  ;;  %v3007_v28 = vpack.c.bf16 %v1658_v20, %v1656_v19  ;;  %v1420_v17 = vld [vmem:[%s4443_s5 + $0x348] sm:$0xff]  ;;  %v1422_v18 = vld [vmem:[%s4443_s5 + $0x358] sm:$0xff] }
 0x171   : > { %1980 = vmatmul.mubr.f32.vlgmr.msra.gmra.mrb[0].mxu1 %v4556_v26  ;;  %v1389_v26 = vld [vmem:[%s4443_s5 + $0x250] sm:$0xff]  ;;  %v1676_v19 = vld [vmem:[%s4443_s5 + $0xb48] sm:$0xff]  ;;  %v1678_v20 = vld [vmem:[%s4443_s5 + $0xb58] sm:$0xff] }
 0x172   : > { %2734 = vmatpush1.bf16.msra.mxu1 %v2733_v35  ;;  %2264 = vmatmul.mubr.f32.vlgmr.msra.gmra.mrb[0].mxu0 %v4563_v29  ;;  %v1648_v29 = vld [vmem:[%s4443_s5 + $0xa68] sm:$0xff]  ;;  %v2741_v59 = vpack.c.bf16 %v1389_v26, %v1387_v52  ;;  %v1407_v52 = vld [vmem:[%s4443_s5 + $0x2e0] sm:$0xff]  ;;  %v1409_v26 = vld [vmem:[%s4443_s5 + $0x2f0] sm:$0xff] }
 0x173   : > { %2990 = vmatpush1.bf16.msra.mxu0 %v2989_v36  ;;  %2736 = vmatprep.subr.bf16.mxu1 %v2735_v37  ;;  %v2999_v2 = vpack.c.bf16 %v1650_v58, %v1648_v29  ;;  %v1660_v35 = vld [vmem:[%s4443_s5 + $0xac8] sm:$0xff]  ;;  %v1662_v36 = vld [vmem:[%s4443_s5 + $0xad8] sm:$0xff]  ;;  %v2753_v37 = vpack.c.bf16 %v1401_v25, %v1399_v24  ;;  %v1417_v13 = vld [vmem:[%s4443_s5 + $0x330] sm:$0xff] }
 0x174   : > { %2992 = vmatprep.subr.bf16.mxu0 %v2991_v41  ;;  %2050 = vmatprep.mubr.f32.mxu1 %v1847_v45  ;;  %v1405_v41 = vld [vmem:[%s4443_s5 + $0x2d0] sm:$0xff]  ;;  %v3011_v43 = vpack.c.bf16 %v1662_v36, %v1660_v35  ;;  %v1408_v45 = vld [vmem:[%s4443_s5 + $0x2e8] sm:$0xff]  ;;  %v1670_v58 = vld [vmem:[%s4443_s5 + $0xb18] sm:$0xff] }
 0x175   : > { %2334 = vmatprep.mubr.f32.mxu0 %v1881_v48  ;;  %v1666_v48 = vld [vmem:[%s4443_s5 + $0xaf8] sm:$0xff]  ;;  %v1668_v29 = vld [vmem:[%s4443_s5 + $0xb08] sm:$0xff]  ;;  %v1419_v24 = vld [vmem:[%s4443_s5 + $0x340] sm:$0xff] }
 0x176   : > { %2738 = vmatpush1.bf16.msra.mxu1 %v2737_v49  ;;  %v2757_v49 = vpack.c.bf16 %v1405_v41, %v1403_v40  ;;  %v1421_v25 = vld [vmem:[%s4443_s5 + $0x350] sm:$0xff]  ;;  %v1675_v27 = vld [vmem:[%s4443_s5 + $0xb40] sm:$0xff]  ;;  %v1424_v32 = vld [vmem:[%s4443_s5 + $0x368] sm:$0xff] }
 0x177   : > { %2994 = vmatpush1.bf16.msra.mxu0 %v2993_v50  ;;  %2740 = vmatprep.subr.bf16.mxu1 %v2739_v51  ;;  %v3013_v50 = vpack.c.bf16 %v1661_v44, %v1659_v42  ;;  %v2759_v51 = vpack.c.bf16 %v1410_v46, %v1408_v45  ;;  %v1677_v30 = vld [vmem:[%s4443_s5 + $0xb50] sm:$0xff]  ;;  %v1426_v33 = vld [vmem:[%s4443_s5 + $0x378] sm:$0xff]  ;;  %v1680_v35 = vld [vmem:[%s4443_s5 + $0xb68] sm:$0xff] }
 0x178   : > { %2996 = vmatprep.subr.bf16.mxu0 %v2995_v54  ;;  %v3015_v54 = vpack.c.bf16 %v1666_v48, %v1664_v47  ;;  %v1682_v36 = vld [vmem:[%s4443_s5 + $0xb78] sm:$0xff]  ;;  %v1423_v40 = vld [vmem:[%s4443_s5 + $0x360] sm:$0xff]  ;;  %v1425_v41 = vld [vmem:[%s4443_s5 + $0x370] sm:$0xff] }
 0x179   : > { %v1679_v42 = vld [vmem:[%s4443_s5 + $0xb60] sm:$0xff]  ;;  %v1681_v44 = vld [vmem:[%s4443_s5 + $0xb70] sm:$0xff]  ;;  %v1428_v45 = vld [vmem:[%s4443_s5 + $0x388] sm:$0xff] }
 0x17a   : > { %2742 = vmatpush1.bf16.msra.mxu1 %v2741_v59  ;;  %v2761_v59 = vpack.c.bf16 %v1409_v26, %v1407_v52  ;;  %v1430_v46 = vld [vmem:[%s4443_s5 + $0x398] sm:$0xff]  ;;  %v1684_v47 = vld [vmem:[%s4443_s5 + $0xb88] sm:$0xff]  ;;  %v1427_v52 = vld [vmem:[%s4443_s5 + $0x380] sm:$0xff] }
 0x17b   : > { %2998 = vmatpush1.bf16.msra.mxu0 %v2997_v60  ;;  %2744 = vmatprep.subr.bf16.mxu1 %v2743_v61  ;;  %v3017_v60 = vpack.c.bf16 %v1665_v55, %v1663_v53  ;;  %v2763_v61 = vpack.c.bf16 %v1414_v57, %v1412_v56  ;;  %v1686_v48 = vld [vmem:[%s4443_s5 + $0xb98] sm:$0xff]  ;;  %v1429_v26 = vld [vmem:[%s4443_s5 + $0x390] sm:$0xff]  ;;  %v1683_v53 = vld [vmem:[%s4443_s5 + $0xb80] sm:$0xff] }
 0x17c   : > { %3000 = vmatprep.subr.bf16.mxu0 %v2999_v2  ;;  %v3019_v2 = vpack.c.bf16 %v1670_v58, %v1668_v29  ;;  %v1685_v55 = vld [vmem:[%s4443_s5 + $0xb90] sm:$0xff]  ;;  %v1432_v56 = vld [vmem:[%s4443_s5 + $0x3a8] sm:$0xff]  ;;  %v1434_v57 = vld [vmem:[%s4443_s5 + $0x3b8] sm:$0xff] }
 0x17d   : > { %v1688_v29 = vld [vmem:[%s4443_s5 + $0xba8] sm:$0xff]  ;;  %v1690_v58 = vld [vmem:[%s4443_s5 + $0xbb8] sm:$0xff] }
 0x17e   : > { %2746 = vmatpush1.bf16.msra.mxu1 %v2745_v8  ;;  %v2765_v8 = vpack.c.bf16 %v1413_v0, %v1411_v62  ;;  %v1431_v62 = vld [vmem:[%s4443_s5 + $0x3a0] sm:$0xff]  ;;  %v1433_v0 = vld [vmem:[%s4443_s5 + $0x3b0] sm:$0xff] }
 0x17f   : > { %3002 = vmatpush1.bf16.msra.mxu0 %v3001_v9  ;;  %2748 = vmatprep.subr.bf16.mxu1 %v2747_v10  ;;  %v3021_v9 = vpack.c.bf16 %v1669_v3, %v1667_v1  ;;  %v2767_v10 = vpack.c.bf16 %v1418_v5, %v1416_v4  ;;  %v1687_v1 = vld [vmem:[%s4443_s5 + $0xba0] sm:$0xff]  ;;  %v1689_v3 = vld [vmem:[%s4443_s5 + $0xbb0] sm:$0xff]  ;;  %v1436_v4 = vld [vmem:[%s4443_s5 + $0x3c8] sm:$0xff] }
 0x180   : > { %3004 = vmatprep.subr.bf16.mxu0 %v3003_v15  ;;  %v3023_v15 = vpack.c.bf16 %v1674_v7, %v1672_v6  ;;  %v1438_v5 = vld [vmem:[%s4443_s5 + $0x3d8] sm:$0xff]  ;;  %v1692_v6 = vld [vmem:[%s4443_s5 + $0xbc8] sm:$0xff] }
 0x181   : > { %v1694_v7 = vld [vmem:[%s4443_s5 + $0xbd8] sm:$0xff] }
 0x182   : > { %2750 = vmatpush1.bf16.msra.mxu1 %v2749_v21  ;;  %v2769_v21 = vpack.c.bf16 %v1417_v13, %v1415_v11  ;;  %v1435_v11 = vld [vmem:[%s4443_s5 + $0x3c0] sm:$0xff]  ;;  %v1437_v13 = vld [vmem:[%s4443_s5 + $0x3d0] sm:$0xff] }
 0x183   : > { %3006 = vmatpush1.bf16.msra.mxu0 %v3005_v22  ;;  %2752 = vmatprep.subr.bf16.mxu1 %v2751_v23  ;;  %v3025_v22 = vpack.c.bf16 %v1673_v16, %v1671_v14  ;;  %v2771_v23 = vpack.c.bf16 %v1422_v18, %v1420_v17  ;;  %v1691_v14 = vld [vmem:[%s4443_s5 + $0xbc0] sm:$0xff]  ;;  %v1693_v16 = vld [vmem:[%s4443_s5 + $0xbd0] sm:$0xff]  ;;  %v1440_v17 = vld [vmem:[%s4443_s5 + $0x3e8] sm:$0xff] }
 0x184   : > { %3008 = vmatprep.subr.bf16.mxu0 %v3007_v28  ;;  %v3027_v28 = vpack.c.bf16 %v1678_v20, %v1676_v19  ;;  %v1442_v18 = vld [vmem:[%s4443_s5 + $0x3f8] sm:$0xff]  ;;  %v1696_v19 = vld [vmem:[%s4443_s5 + $0xbe8] sm:$0xff] }
 0x185   : > { %v1698_v20 = vld [vmem:[%s4443_s5 + $0xbf8] sm:$0xff] }
 0x186   : > { %2754 = vmatpush1.bf16.msra.mxu1 %v2753_v37  ;;  %v2773_v37 = vpack.c.bf16 %v1421_v25, %v1419_v24  ;;  %v1439_v24 = vld [vmem:[%s4443_s5 + $0x3e0] sm:$0xff]  ;;  %v1441_v25 = vld [vmem:[%s4443_s5 + $0x3f0] sm:$0xff] }
 0x187   : > { %3010 = vmatpush1.bf16.msra.mxu0 %v3009_v38  ;;  %2756 = vmatprep.subr.bf16.mxu1 %v2755_v39  ;;  %v3029_v38 = vpack.c.bf16 %v1677_v30, %v1675_v27  ;;  %v2775_v39 = vpack.c.bf16 %v1426_v33, %v1424_v32  ;;  %v1695_v27 = vld [vmem:[%s4443_s5 + $0xbe0] sm:$0xff]  ;;  %v1697_v30 = vld [vmem:[%s4443_s5 + $0xbf0] sm:$0xff]  ;;  %v1444_v32 = vld [vmem:[%s4443_s5 + $0x408] sm:$0xff] }
 0x188   : > { %3012 = vmatprep.subr.bf16.mxu0 %v3011_v43  ;;  %v3031_v43 = vpack.c.bf16 %v1682_v36, %v1680_v35  ;;  %v1446_v33 = vld [vmem:[%s4443_s5 + $0x418] sm:$0xff]  ;;  %v1700_v35 = vld [vmem:[%s4443_s5 + $0xc08] sm:$0xff] }
 0x189   : > { %v1702_v36 = vld [vmem:[%s4443_s5 + $0xc18] sm:$0xff] }
 0x18a   : > { %2758 = vmatpush1.bf16.msra.mxu1 %v2757_v49  ;;  %v2777_v49 = vpack.c.bf16 %v1425_v41, %v1423_v40  ;;  %v1443_v40 = vld [vmem:[%s4443_s5 + $0x400] sm:$0xff]  ;;  %v1445_v41 = vld [vmem:[%s4443_s5 + $0x410] sm:$0xff] }
 0x18b   : > { %3014 = vmatpush1.bf16.msra.mxu0 %v3013_v50  ;;  %2760 = vmatprep.subr.bf16.mxu1 %v2759_v51  ;;  %v3033_v50 = vpack.c.bf16 %v1681_v44, %v1679_v42  ;;  %v2779_v51 = vpack.c.bf16 %v1430_v46, %v1428_v45  ;;  %v1699_v42 = vld [vmem:[%s4443_s5 + $0xc00] sm:$0xff]  ;;  %v1701_v44 = vld [vmem:[%s4443_s5 + $0xc10] sm:$0xff]  ;;  %v1448_v45 = vld [vmem:[%s4443_s5 + $0x428] sm:$0xff] }
 0x18c   : > { %3016 = vmatprep.subr.bf16.mxu0 %v3015_v54  ;;  %v3035_v54 = vpack.c.bf16 %v1686_v48, %v1684_v47  ;;  %v1450_v46 = vld [vmem:[%s4443_s5 + $0x438] sm:$0xff]  ;;  %v1704_v47 = vld [vmem:[%s4443_s5 + $0xc28] sm:$0xff] }
 0x18d   : > { %v1706_v48 = vld [vmem:[%s4443_s5 + $0xc38] sm:$0xff] }
 0x18e   : > { %2762 = vmatpush1.bf16.msra.mxu1 %v2761_v59  ;;  %v2781_v59 = vpack.c.bf16 %v1429_v26, %v1427_v52  ;;  %v3053_v52 = vpack.c.bf16 %v1701_v44, %v1699_v42  ;;  %v2799_v26 = vpack.c.bf16 %v1450_v46, %v1448_v45  ;;  %v1463_v44 = vld [vmem:[%s4443_s5 + $0x4a0] sm:$0xff]  ;;  %v1465_v45 = vld [vmem:[%s4443_s5 + $0x4b0] sm:$0xff] }
 0x18f   : > { %3018 = vmatpush1.bf16.msra.mxu0 %v3017_v60  ;;  %2764 = vmatprep.subr.bf16.mxu1 %v2763_v61  ;;  %v3037_v60 = vpack.c.bf16 %v1685_v55, %v1683_v53  ;;  %v2783_v61 = vpack.c.bf16 %v1434_v57, %v1432_v56  ;;  %v1449_v53 = vld [vmem:[%s4443_s5 + $0x430] sm:$0xff]  ;;  %v3055_v57 = vpack.c.bf16 %v1706_v48, %v1704_v47  ;;  %v1719_v46 = vld [vmem:[%s4443_s5 + $0xca0] sm:$0xff] }
 0x190   : > { %3020 = vmatprep.subr.bf16.mxu0 %v3019_v2  ;;  %v3039_v2 = vpack.c.bf16 %v1690_v58, %v1688_v29  ;;  %v4764_v56 = vld [vmem:[%s4429_s26 + $0x18] sm:$0xff]  ;;  %v1452_v58 = vld [vmem:[%s4443_s5 + $0x448] sm:$0xff] }
 0x191   : > { %v1705_v29 = vld [vmem:[%s4443_s5 + $0xc30] sm:$0xff] }
 0x192   : > { %2766 = vmatpush1.bf16.msra.mxu1 %v2765_v8  ;;  %v2785_v8 = vpack.c.bf16 %v1433_v0, %v1431_v62  ;;  %v1710_v62 = vld [vmem:[%s4443_s5 + $0xc58] sm:$0xff]  ;;  %v1721_v48 = vld [vmem:[%s4443_s5 + $0xcb0] sm:$0xff] }
 0x193   : > { %3022 = vmatpush1.bf16.msra.mxu0 %v3021_v9  ;;  %2768 = vmatprep.subr.bf16.mxu1 %v2767_v10  ;;  %v3041_v9 = vpack.c.bf16 %v1689_v3, %v1687_v1  ;;  %v2787_v10 = vpack.c.bf16 %v1438_v5, %v1436_v4  ;;  %v1451_v4 = vld [vmem:[%s4443_s5 + $0x440] sm:$0xff]  ;;  %v1453_v5 = vld [vmem:[%s4443_s5 + $0x450] sm:$0xff] }
 0x194   : > { %3024 = vmatprep.subr.bf16.mxu0 %v3023_v15  ;;  %v3043_v15 = vpack.c.bf16 %v1694_v7, %v1692_v6  ;;  %v1707_v6 = vld [vmem:[%s4443_s5 + $0xc40] sm:$0xff] }
 0x196   : > { %2770 = vmatpush1.bf16.msra.mxu1 %v2769_v21  ;;  %v2789_v21 = vpack.c.bf16 %v1437_v13, %v1435_v11  ;;  %v1714_v11 = vld [vmem:[%s4443_s5 + $0xc78] sm:$0xff]  ;;  %v2805_v13 = vpack.c.bf16 %v1453_v5, %v1451_v4 }
 0x197   : > { %3026 = vmatpush1.bf16.msra.mxu0 %v3025_v22  ;;  %2772 = vmatprep.subr.bf16.mxu1 %v2771_v23  ;;  %v3045_v22 = vpack.c.bf16 %v1693_v16, %v1691_v14  ;;  %v2791_v23 = vpack.c.bf16 %v1442_v18, %v1440_v17  ;;  %v1455_v16 = vld [vmem:[%s4443_s5 + $0x460] sm:$0xff]  ;;  %v1457_v17 = vld [vmem:[%s4443_s5 + $0x470] sm:$0xff] }
 0x198   : > { %3028 = vmatprep.subr.bf16.mxu0 %v3027_v28  ;;  %v3047_v28 = vpack.c.bf16 %v1698_v20, %v1696_v19  ;;  %v1711_v18 = vld [vmem:[%s4443_s5 + $0xc60] sm:$0xff]  ;;  %v1713_v20 = vld [vmem:[%s4443_s5 + $0xc70] sm:$0xff] }
 0x19a   : > { %2774 = vmatpush1.bf16.msra.mxu1 %v2773_v37  ;;  %v2793_v37 = vpack.c.bf16 %v1441_v25, %v1439_v24  ;;  %v1718_v24 = vld [vmem:[%s4443_s5 + $0xc98] sm:$0xff]  ;;  %v2809_v25 = vpack.c.bf16 %v1457_v17, %v1455_v16 }
 0x19b   : > { %3030 = vmatpush1.bf16.msra.mxu0 %v3029_v38  ;;  %2776 = vmatprep.subr.bf16.mxu1 %v2775_v39  ;;  %v3049_v38 = vpack.c.bf16 %v1697_v30, %v1695_v27  ;;  %v2795_v39 = vpack.c.bf16 %v1446_v33, %v1444_v32  ;;  %v3065_v27 = vpack.c.bf16 %v1713_v20, %v1711_v18  ;;  %v1459_v30 = vld [vmem:[%s4443_s5 + $0x480] sm:$0xff]  ;;  %v1461_v32 = vld [vmem:[%s4443_s5 + $0x490] sm:$0xff] }
 0x19c   : > { %3032 = vmatprep.subr.bf16.mxu0 %v3031_v43  ;;  %v3051_v43 = vpack.c.bf16 %v1702_v36, %v1700_v35  ;;  %v1715_v33 = vld [vmem:[%s4443_s5 + $0xc80] sm:$0xff]  ;;  %v1717_v36 = vld [vmem:[%s4443_s5 + $0xc90] sm:$0xff] }
 0x19d   : > { %v3069_v42 = vpack.c.bf16 %v1717_v36, %v1715_v33  ;;  %v1475_v18 = vld [vmem:[%s4443_s5 + $0x500] sm:$0xff] }
 0x19e   : > { %2778 = vmatpush1.bf16.msra.mxu1 %v2777_v49  ;;  %v2797_v49 = vpack.c.bf16 %v1445_v41, %v1443_v40  ;;  %v1722_v40 = vld [vmem:[%s4443_s5 + $0xcb8] sm:$0xff]  ;;  %v2813_v41 = vpack.c.bf16 %v1461_v32, %v1459_v30  ;;  %v1731_v20 = vld [vmem:[%s4443_s5 + $0xd00] sm:$0xff] }
 0x19f   : > { %3034 = vmatpush1.bf16.msra.mxu0 %v3033_v50  ;;  %2780 = vmatprep.subr.bf16.mxu1 %v2779_v51  ;;  %v1447_v50 = vld [vmem:[%s4443_s5 + $0x420] sm:$0xff] }
 0x1a0   : > { %3036 = vmatprep.subr.bf16.mxu0 %v3035_v54  ;;  %v4755_v51 = vld [vmem:[%s4429_s26 + $0x8] sm:$0xff]  ;;  %v2801_v1 = vpack.c.bf16 %v1449_v53, %v1447_v50  ;;  %v1470_v50 = vld [vmem:[%s4443_s5 + $0x4d8] sm:$0xff]  ;;  %v2817_v53 = vpack.c.bf16 %v1465_v45, %v1463_v44 }
 0x1a1   : > { %v1703_v54 = vld [vmem:[%s4443_s5 + $0xc20] sm:$0xff]  ;;  %v4761_v55 = vrot.slane %v4755_v51, %v4541_v12 }
 0x1a2   : > { %2782 = vmatpush1.bf16.msra.mxu1 %v2781_v59  ;;  %v1454_v59 = vld [vmem:[%s4443_s5 + $0x458] sm:$0xff]  ;;  %v1479_v33 = vld [vmem:[%s4443_s5 + $0x520] sm:$0xff] }
 0x1a3   : > { %3038 = vmatpush1.bf16.msra.mxu0 %v3037_v60  ;;  %2784 = vmatprep.subr.bf16.mxu1 %v2783_v61  ;;  %v4771_v60 = vrot.slane %v4764_v56, %v4541_v12  ;;  %v1708_v61 = vld [vmem:[%s4443_s5 + $0xc48] sm:$0xff]  ;;  %v1863_v0 = vcombine.high %v4761_v55, %v4761_v55  ;;  %v2803_v3 = vpack.c.bf16 %v1454_v59, %v1452_v58  ;;  %v1469_v58 = vld [vmem:[%s4443_s5 + $0x4d0] sm:$0xff]  ;;  %v1723_v59 = vld [vmem:[%s4443_s5 + $0xcc0] sm:$0xff] }
 0x1a4   : > { %3040 = vmatprep.subr.bf16.mxu0 %v3039_v2  ;;  %v3059_v7 = vpack.c.bf16 %v1710_v62, %v1708_v61  ;;  %v1725_v62 = vld [vmem:[%s4443_s5 + $0xcd0] sm:$0xff]  ;;  %v1735_v36 = vld [vmem:[%s4443_s5 + $0xd20] sm:$0xff] }
 0x1a5   : > { %v1897_v2 = vcombine.high %v4771_v60, %v4771_v60  ;;  %v3077_v4 = vpack.c.bf16 %v1725_v62, %v1723_v59  ;;  %v1487_v59 = vld [vmem:[%s4443_s5 + $0x560] sm:$0xff] }
 0x1a6   : > { %2786 = vmatpush1.bf16.msra.mxu1 %v2785_v8  ;;  %v1709_v8 = vld [vmem:[%s4443_s5 + $0xc50] sm:$0xff]  ;;  %v1743_v62 = vld [vmem:[%s4443_s5 + $0xd60] sm:$0xff] }
 0x1a7   : > { %3042 = vmatpush1.bf16.msra.mxu0 %v3041_v9  ;;  %2788 = vmatprep.subr.bf16.mxu1 %v2787_v10  ;;  %v1458_v9 = vld [vmem:[%s4443_s5 + $0x478] sm:$0xff]  ;;  %v1712_v10 = vld [vmem:[%s4443_s5 + $0xc68] sm:$0xff]  ;;  %v3061_v14 = vpack.c.bf16 %v1709_v8, %v1707_v6  ;;  %v1471_v6 = vld [vmem:[%s4443_s5 + $0x4e0] sm:$0xff] }
 0x1a8   : > { %3044 = vmatprep.subr.bf16.mxu0 %v3043_v15  ;;  %v3063_v19 = vpack.c.bf16 %v1714_v11, %v1712_v10  ;;  %v1727_v8 = vld [vmem:[%s4443_s5 + $0xce0] sm:$0xff]  ;;  %v1476_v10 = vld [vmem:[%s4443_s5 + $0x508] sm:$0xff]  ;;  %v1478_v11 = vld [vmem:[%s4443_s5 + $0x518] sm:$0xff] }
 0x1a9   : > { %v2827_v17 = vpack.c.bf16 %v1478_v11, %v1476_v10  ;;  %v1749_v11 = vld [vmem:[%s4443_s5 + $0xd90] sm:$0xff] }
 0x1aa   : > { %2790 = vmatpush1.bf16.msra.mxu1 %v2789_v21  ;;  %v1460_v21 = vld [vmem:[%s4443_s5 + $0x488] sm:$0xff] }
 0x1ab   : > { %3046 = vmatpush1.bf16.msra.mxu0 %v3045_v22  ;;  %2792 = vmatprep.subr.bf16.mxu1 %v2791_v23  ;;  %v1462_v22 = vld [vmem:[%s4443_s5 + $0x498] sm:$0xff]  ;;  %v1716_v23 = vld [vmem:[%s4443_s5 + $0xc88] sm:$0xff] }
 0x1ac   : > { %3048 = vmatprep.subr.bf16.mxu0 %v3047_v28  ;;  %v2811_v28 = vpack.c.bf16 %v1462_v22, %v1460_v21  ;;  %v3067_v35 = vpack.c.bf16 %v1718_v24, %v1716_v23  ;;  %v1733_v22 = vld [vmem:[%s4443_s5 + $0xd10] sm:$0xff]  ;;  %v1480_v23 = vld [vmem:[%s4443_s5 + $0x528] sm:$0xff]  ;;  %v1482_v24 = vld [vmem:[%s4443_s5 + $0x538] sm:$0xff] }
 0x1ad   : > { %v3085_v30 = vpack.c.bf16 %v1733_v22, %v1731_v20  ;;  %v2831_v32 = vpack.c.bf16 %v1482_v24, %v1480_v23  ;;  %v1495_v20 = vld [vmem:[%s4443_s5 + $0x5a0] sm:$0xff]  ;;  %v1753_v24 = vld [vmem:[%s4443_s5 + $0xdb0] sm:$0xff] }
 0x1ae   : > { %2794 = vmatpush1.bf16.msra.mxu1 %v2793_v37  ;;  %v1464_v37 = vld [vmem:[%s4443_s5 + $0x4a8] sm:$0xff]  ;;  %v1751_v22 = vld [vmem:[%s4443_s5 + $0xda0] sm:$0xff] }
 0x1af   : > { %3050 = vmatpush1.bf16.msra.mxu0 %v3049_v38  ;;  %2796 = vmatprep.subr.bf16.mxu1 %v2795_v39  ;;  %v1466_v38 = vld [vmem:[%s4443_s5 + $0x4b8] sm:$0xff]  ;;  %v1720_v39 = vld [vmem:[%s4443_s5 + $0xca8] sm:$0xff] }
 0x1b0   : > { %3052 = vmatprep.subr.bf16.mxu0 %v3051_v43  ;;  %v2815_v43 = vpack.c.bf16 %v1466_v38, %v1464_v37  ;;  %v3071_v47 = vpack.c.bf16 %v1722_v40, %v1720_v39  ;;  %v1737_v38 = vld [vmem:[%s4443_s5 + $0xd30] sm:$0xff]  ;;  %v1484_v39 = vld [vmem:[%s4443_s5 + $0x548] sm:$0xff]  ;;  %v1486_v40 = vld [vmem:[%s4443_s5 + $0x558] sm:$0xff] }
 0x1b1   : > { %2051 = vmatmul.mubr.f32.vlgmr.msra.gmra.mrb[0].mxu1 %v4612_v31  ;;  %v3057_v31 = vpack.c.bf16 %v1705_v29, %v1703_v54  ;;  %v3073_v54 = vpack.c.bf16 %v1721_v48, %v1719_v46  ;;  %v1467_v29 = vld [vmem:[%s4443_s5 + $0x4c0] sm:$0xff]  ;;  %v3089_v44 = vpack.c.bf16 %v1737_v38, %v1735_v36  ;;  %v2835_v45 = vpack.c.bf16 %v1486_v40, %v1484_v39  ;;  %v1757_v40 = vld [vmem:[%s4443_s5 + $0xdd0] sm:$0xff] }
 0x1b2   : > { %2798 = vmatpush1.bf16.msra.mxu1 %v2797_v49  ;;  %2335 = vmatmul.mubr.f32.vlgmr.msra.gmra.mrb[0].mxu0 %v4617_v34  ;;  %v1456_v34 = vld [vmem:[%s4443_s5 + $0x468] sm:$0xff]  ;;  %v1483_v46 = vld [vmem:[%s4443_s5 + $0x540] sm:$0xff] }
 0x1b3   : > { %3054 = vmatpush1.bf16.msra.mxu0 %v3053_v52  ;;  %2800 = vmatprep.subr.bf16.mxu1 %v2799_v26  ;;  %v2807_v15 = vpack.c.bf16 %v1458_v9, %v1456_v34  ;;  %v1468_v49 = vld [vmem:[%s4443_s5 + $0x4c8] sm:$0xff]  ;;  %v1726_v26 = vld [vmem:[%s4443_s5 + $0xcd8] sm:$0xff]  ;;  %v1729_v9 = vld [vmem:[%s4443_s5 + $0xcf0] sm:$0xff] }
 0x1b4   : > { %3056 = vmatprep.subr.bf16.mxu0 %v3055_v57  ;;  %2121 = vmatprep.mubr.f32.mxu1 %v1863_v0  ;;  %v1724_v52 = vld [vmem:[%s4443_s5 + $0xcc8] sm:$0xff]  ;;  %v2819_v57 = vpack.c.bf16 %v1470_v50, %v1468_v49  ;;  %v3081_v16 = vpack.c.bf16 %v1729_v9, %v1727_v8  ;;  %v1739_v48 = vld [vmem:[%s4443_s5 + $0xd40] sm:$0xff]  ;;  %v1741_v50 = vld [vmem:[%s4443_s5 + $0xd50] sm:$0xff] }
 0x1b5   : > { %2405 = vmatprep.mubr.f32.mxu0 %v1897_v2  ;;  %v3075_v61 = vpack.c.bf16 %v1726_v26, %v1724_v52  ;;  %v1472_v0 = vld [vmem:[%s4443_s5 + $0x4e8] sm:$0xff]  ;;  %v1490_v26 = vld [vmem:[%s4443_s5 + $0x578] sm:$0xff]  ;;  %v1491_v8 = vld [vmem:[%s4443_s5 + $0x580] sm:$0xff] }
 0x1b6   : > { %2802 = vmatpush1.bf16.msra.mxu1 %v2801_v1  ;;  %v1474_v1 = vld [vmem:[%s4443_s5 + $0x4f8] sm:$0xff]  ;;  %v1728_v2 = vld [vmem:[%s4443_s5 + $0xce8] sm:$0xff]  ;;  %v1747_v9 = vld [vmem:[%s4443_s5 + $0xd80] sm:$0xff] }
 0x1b7   : > { %3058 = vmatpush1.bf16.msra.mxu0 %v3057_v31  ;;  %2804 = vmatprep.subr.bf16.mxu1 %v2803_v3  ;;  %v1730_v31 = vld [vmem:[%s4443_s5 + $0xcf8] sm:$0xff]  ;;  %v2821_v3 = vpack.c.bf16 %v1469_v58, %v1467_v29  ;;  %v2823_v5 = vpack.c.bf16 %v1474_v1, %v1472_v0  ;;  %v1488_v52 = vld [vmem:[%s4443_s5 + $0x568] sm:$0xff]  ;;  %v3093_v29 = vpack.c.bf16 %v1741_v50, %v1739_v48  ;;  %v1745_v1 = vld [vmem:[%s4443_s5 + $0xd70] sm:$0xff] }
 0x1b8   : > { %3060 = vmatprep.subr.bf16.mxu0 %v3059_v7  ;;  %v1473_v7 = vld [vmem:[%s4443_s5 + $0x4f0] sm:$0xff]  ;;  %v3079_v34 = vpack.c.bf16 %v1730_v31, %v1728_v2  ;;  %v2839_v58 = vpack.c.bf16 %v1490_v26, %v1488_v52  ;;  %v1492_v2 = vld [vmem:[%s4443_s5 + $0x588] sm:$0xff]  ;;  %v1494_v31 = vld [vmem:[%s4443_s5 + $0x598] sm:$0xff] }
 0x1b9   : > { %v1499_v36 = vld [vmem:[%s4443_s5 + $0x5c0] sm:$0xff]  ;;  %v1761_v26 = vld [vmem:[%s4443_s5 + $0xdf0] sm:$0xff] }
 0x1ba   : > { %2806 = vmatpush1.bf16.msra.mxu1 %v2805_v13  ;;  %v1732_v13 = vld [vmem:[%s4443_s5 + $0xd08] sm:$0xff]  ;;  %v1755_v38 = vld [vmem:[%s4443_s5 + $0xdc0] sm:$0xff] }
 0x1bb   : > { %3062 = vmatpush1.bf16.msra.mxu0 %v3061_v14  ;;  %2808 = vmatprep.subr.bf16.mxu1 %v2807_v15  ;;  %v1734_v14 = vld [vmem:[%s4443_s5 + $0xd18] sm:$0xff]  ;;  %v2825_v15 = vpack.c.bf16 %v1473_v7, %v1471_v6  ;;  %v3097_v6 = vpack.c.bf16 %v1745_v1, %v1743_v62  ;;  %v2843_v7 = vpack.c.bf16 %v1494_v31, %v1492_v2  ;;  %v1503_v48 = vld [vmem:[%s4443_s5 + $0x5e0] sm:$0xff]  ;;  %v1509_v2 = vld [vmem:[%s4443_s5 + $0x610] sm:$0xff] }
 0x1bc   : > { %3064 = vmatprep.subr.bf16.mxu0 %v3063_v19  ;;  %v1477_v19 = vld [vmem:[%s4443_s5 + $0x510] sm:$0xff]  ;;  %v3083_v21 = vpack.c.bf16 %v1734_v14, %v1732_v13  ;;  %v1496_v13 = vld [vmem:[%s4443_s5 + $0x5a8] sm:$0xff]  ;;  %v1498_v14 = vld [vmem:[%s4443_s5 + $0x5b8] sm:$0xff] }
 0x1bd   : > { %v1759_v50 = vld [vmem:[%s4443_s5 + $0xde0] sm:$0xff] }
 0x1be   : > { %2810 = vmatpush1.bf16.msra.mxu1 %v2809_v25  ;;  %v1736_v25 = vld [vmem:[%s4443_s5 + $0xd28] sm:$0xff]  ;;  %v3113_v62 = vpack.c.bf16 %v1761_v26, %v1759_v50  ;;  %v1507_v1 = vld [vmem:[%s4443_s5 + $0x600] sm:$0xff] }
 0x1bf   : > { %3066 = vmatpush1.bf16.msra.mxu0 %v3065_v27  ;;  %2812 = vmatprep.subr.bf16.mxu1 %v2811_v28  ;;  %v1738_v27 = vld [vmem:[%s4443_s5 + $0xd38] sm:$0xff]  ;;  %v2829_v28 = vpack.c.bf16 %v1477_v19, %v1475_v18  ;;  %v3101_v18 = vpack.c.bf16 %v1749_v11, %v1747_v9  ;;  %v2847_v19 = vpack.c.bf16 %v1498_v14, %v1496_v13  ;;  %v1763_v31 = vld [vmem:[%s4443_s5 + $0xe00] sm:$0xff]  ;;  %v1513_v13 = vld [vmem:[%s4443_s5 + $0x630] sm:$0xff] }
 0x1c0   : > { %3068 = vmatprep.subr.bf16.mxu0 %v3067_v35  ;;  %v1481_v35 = vld [vmem:[%s4443_s5 + $0x530] sm:$0xff]  ;;  %v3087_v37 = vpack.c.bf16 %v1738_v27, %v1736_v25  ;;  %v1500_v25 = vld [vmem:[%s4443_s5 + $0x5c8] sm:$0xff]  ;;  %v1502_v27 = vld [vmem:[%s4443_s5 + $0x5d8] sm:$0xff] }
 0x1c1   : > { %v1511_v11 = vld [vmem:[%s4443_s5 + $0x620] sm:$0xff] }
 0x1c2   : > { %2814 = vmatpush1.bf16.msra.mxu1 %v2813_v41  ;;  %v1740_v41 = vld [vmem:[%s4443_s5 + $0xd48] sm:$0xff]  ;;  %v1767_v14 = vld [vmem:[%s4443_s5 + $0xe20] sm:$0xff] }
 0x1c3   : > { %3070 = vmatpush1.bf16.msra.mxu0 %v3069_v42  ;;  %2816 = vmatprep.subr.bf16.mxu1 %v2815_v43  ;;  %v1742_v42 = vld [vmem:[%s4443_s5 + $0xd58] sm:$0xff]  ;;  %v2833_v43 = vpack.c.bf16 %v1481_v35, %v1479_v33  ;;  %v3105_v33 = vpack.c.bf16 %v1753_v24, %v1751_v22  ;;  %v2851_v35 = vpack.c.bf16 %v1502_v27, %v1500_v25  ;;  %v1515_v27 = vld [vmem:[%s4443_s5 + $0x640] sm:$0xff] }
 0x1c4   : > { %3072 = vmatprep.subr.bf16.mxu0 %v3071_v47  ;;  %v1485_v47 = vld [vmem:[%s4443_s5 + $0x550] sm:$0xff]  ;;  %v3091_v49 = vpack.c.bf16 %v1742_v42, %v1740_v41  ;;  %v1504_v41 = vld [vmem:[%s4443_s5 + $0x5e8] sm:$0xff]  ;;  %v1506_v42 = vld [vmem:[%s4443_s5 + $0x5f8] sm:$0xff] }
 0x1c5   : > { %v1523_v26 = vld [vmem:[%s4443_s5 + $0x680] sm:$0xff] }
 0x1c6   : > { %2818 = vmatpush1.bf16.msra.mxu1 %v2817_v53  ;;  %v1744_v53 = vld [vmem:[%s4443_s5 + $0xd68] sm:$0xff] }
 0x1c7   : > { %3074 = vmatpush1.bf16.msra.mxu0 %v3073_v54  ;;  %2820 = vmatprep.subr.bf16.mxu1 %v2819_v57  ;;  %v1746_v54 = vld [vmem:[%s4443_s5 + $0xd78] sm:$0xff]  ;;  %v2837_v57 = vpack.c.bf16 %v1485_v47, %v1483_v46  ;;  %v3109_v46 = vpack.c.bf16 %v1757_v40, %v1755_v38  ;;  %v2855_v47 = vpack.c.bf16 %v1506_v42, %v1504_v41  ;;  %v1519_v40 = vld [vmem:[%s4443_s5 + $0x660] sm:$0xff]  ;;  %v1521_v41 = vld [vmem:[%s4443_s5 + $0x670] sm:$0xff] }
 0x1c8   : > { %3076 = vmatprep.subr.bf16.mxu0 %v3075_v61  ;;  %v1489_v61 = vld [vmem:[%s4443_s5 + $0x570] sm:$0xff]  ;;  %v3095_v0 = vpack.c.bf16 %v1746_v54, %v1744_v53  ;;  %v1508_v53 = vld [vmem:[%s4443_s5 + $0x608] sm:$0xff]  ;;  %v1510_v54 = vld [vmem:[%s4443_s5 + $0x618] sm:$0xff] }
 0x1c9   : > { %v1775_v42 = vld [vmem:[%s4443_s5 + $0xe60] sm:$0xff] }
 0x1ca   : > { %2822 = vmatpush1.bf16.msra.mxu1 %v2821_v3  ;;  %v1748_v3 = vld [vmem:[%s4443_s5 + $0xd88] sm:$0xff] }
 0x1cb   : > { %3078 = vmatpush1.bf16.msra.mxu0 %v3077_v4  ;;  %2824 = vmatprep.subr.bf16.mxu1 %v2823_v5  ;;  %v1750_v4 = vld [vmem:[%s4443_s5 + $0xd98] sm:$0xff]  ;;  %v2841_v5 = vpack.c.bf16 %v1489_v61, %v1487_v59  ;;  %v1882_v59 = vcombine.high %v4764_v56, %v4764_v56 }
 0x1cc   : > { %3080 = vmatprep.subr.bf16.mxu0 %v3079_v34  ;;  %v1493_v34 = vld [vmem:[%s4443_s5 + $0x590] sm:$0xff]  ;;  %v3099_v10 = vpack.c.bf16 %v1750_v4, %v1748_v3  ;;  %v1512_v4 = vld [vmem:[%s4443_s5 + $0x628] sm:$0xff] }
 0x1cd   : > { %v1765_v3 = vld [vmem:[%s4443_s5 + $0xe10] sm:$0xff] }
 0x1ce   : > { %2826 = vmatpush1.bf16.msra.mxu1 %v2825_v15  ;;  %v1752_v15 = vld [vmem:[%s4443_s5 + $0xda8] sm:$0xff]  ;;  %v3117_v9 = vpack.c.bf16 %v1765_v3, %v1763_v31  ;;  %v1527_v31 = vld [vmem:[%s4443_s5 + $0x6a0] sm:$0xff] }
 0x1cf   : > { %3082 = vmatpush1.bf16.msra.mxu0 %v3081_v16  ;;  %2828 = vmatprep.subr.bf16.mxu1 %v2827_v17  ;;  %v1754_v16 = vld [vmem:[%s4443_s5 + $0xdb8] sm:$0xff]  ;;  %v2845_v17 = vpack.c.bf16 %v1493_v34, %v1491_v8  ;;  %v4909_v8 = vrot.slane %v1882_v59, %v4541_v12  ;;  %v2861_v34 = vpack.c.bf16 %v1509_v2, %v1507_v1  ;;  %v1783_v3 = vld [vmem:[%s4443_s5 + $0xea0] sm:$0xff] }
 0x1d0   : > { %3084 = vmatprep.subr.bf16.mxu0 %v3083_v21  ;;  %v1497_v21 = vld [vmem:[%s4443_s5 + $0x5b0] sm:$0xff]  ;;  %v3103_v23 = vpack.c.bf16 %v1754_v16, %v1752_v15  ;;  %v1530_v59 = vld [vmem:[%s4443_s5 + $0x6b8] sm:$0xff] }
 0x1d1   : > { %v1769_v16 = vld [vmem:[%s4443_s5 + $0xe30] sm:$0xff]  ;;  %v1898_v22 = vcombine.high %v4909_v8, %v4909_v8 }
 0x1d2   : > { %2830 = vmatpush1.bf16.msra.mxu1 %v2829_v28  ;;  %v1756_v28 = vld [vmem:[%s4443_s5 + $0xdc8] sm:$0xff]  ;;  %v3121_v24 = vpack.c.bf16 %v1769_v16, %v1767_v14  ;;  %v1531_v14 = vld [vmem:[%s4443_s5 + $0x6c0] sm:$0xff] }
 0x1d3   : > { %3086 = vmatpush1.bf16.msra.mxu0 %v3085_v30  ;;  %2832 = vmatprep.subr.bf16.mxu1 %v2831_v32  ;;  %v1758_v30 = vld [vmem:[%s4443_s5 + $0xdd8] sm:$0xff]  ;;  %v2849_v32 = vpack.c.bf16 %v1497_v21, %v1495_v20  ;;  %v1772_v20 = vld [vmem:[%s4443_s5 + $0xe48] sm:$0xff]  ;;  %v1787_v16 = vld [vmem:[%s4443_s5 + $0xec0] sm:$0xff] }
 0x1d4   : > { %3088 = vmatprep.subr.bf16.mxu0 %v3087_v37  ;;  %v1501_v37 = vld [vmem:[%s4443_s5 + $0x5d0] sm:$0xff]  ;;  %v3107_v39 = vpack.c.bf16 %v1758_v30, %v1756_v28  ;;  %v1774_v21 = vld [vmem:[%s4443_s5 + $0xe58] sm:$0xff]  ;;  %v1771_v28 = vld [vmem:[%s4443_s5 + $0xe40] sm:$0xff] }
 0x1d5   : > { %v3123_v30 = vpack.c.bf16 %v1774_v21, %v1772_v20  ;;  %v1538_v20 = vld [vmem:[%s4443_s5 + $0x6f8] sm:$0xff]  ;;  %v1792_v21 = vld [vmem:[%s4443_s5 + $0xee8] sm:$0xff] }
 0x1d6   : > { %2834 = vmatpush1.bf16.msra.mxu1 %v2833_v43  ;;  %v1760_v43 = vld [vmem:[%s4443_s5 + $0xde8] sm:$0xff] }
 0x1d7   : > { %3090 = vmatpush1.bf16.msra.mxu0 %v3089_v44  ;;  %2836 = vmatprep.subr.bf16.mxu1 %v2835_v45  ;;  %v1762_v44 = vld [vmem:[%s4443_s5 + $0xdf8] sm:$0xff]  ;;  %v2853_v45 = vpack.c.bf16 %v1501_v37, %v1499_v36 }
 0x1d8   : > { %3092 = vmatprep.subr.bf16.mxu0 %v3091_v49  ;;  %v1505_v49 = vld [vmem:[%s4443_s5 + $0x5f0] sm:$0xff]  ;;  %v3111_v52 = vpack.c.bf16 %v1762_v44, %v1760_v43  ;;  %v1778_v36 = vld [vmem:[%s4443_s5 + $0xe78] sm:$0xff] }
 0x1d9   : > { %v2857_v61 = vpack.c.bf16 %v1505_v49, %v1503_v48  ;;  %v1777_v44 = vld [vmem:[%s4443_s5 + $0xe70] sm:$0xff]  ;;  %v1782_v48 = vld [vmem:[%s4443_s5 + $0xe98] sm:$0xff]  ;;  %v2873_v49 = vpack.c.bf16 %v1521_v41, %v1519_v40  ;;  %v1539_v40 = vld [vmem:[%s4443_s5 + $0x700] sm:$0xff] }
 0x1da   : > { %2838 = vmatpush1.bf16.msra.mxu1 %v2837_v57  ;;  %v1848_v57 = vcombine.high %v4755_v51, %v4755_v51  ;;  %v3129_v50 = vpack.c.bf16 %v1777_v44, %v1775_v42  ;;  %v1541_v41 = vld [vmem:[%s4443_s5 + $0x710] sm:$0xff]  ;;  %v1795_v42 = vld [vmem:[%s4443_s5 + $0xf00] sm:$0xff] }
 0x1db   : > { %3094 = vmatpush1.bf16.msra.mxu0 %v3093_v29  ;;  %2840 = vmatprep.subr.bf16.mxu1 %v2839_v58  ;;  %v1764_v29 = vld [vmem:[%s4443_s5 + $0xe08] sm:$0xff]  ;;  %v1766_v58 = vld [vmem:[%s4443_s5 + $0xe18] sm:$0xff]  ;;  %v1797_v44 = vld [vmem:[%s4443_s5 + $0xf10] sm:$0xff] }
 0x1dc   : > { %3096 = vmatprep.subr.bf16.mxu0 %v3095_v0  ;;  %v2859_v0 = vpack.c.bf16 %v1510_v54, %v1508_v53  ;;  %v3115_v51 = vpack.c.bf16 %v1766_v58, %v1764_v29  ;;  %v4904_v56 = vrot.slane %v1848_v57, %v4541_v12  ;;  %v1525_v53 = vld [vmem:[%s4443_s5 + $0x690] sm:$0xff]  ;;  %v1779_v54 = vld [vmem:[%s4443_s5 + $0xe80] sm:$0xff]  ;;  %v1528_v58 = vld [vmem:[%s4443_s5 + $0x6a8] sm:$0xff] }
 0x1dd   : > { %v1781_v29 = vld [vmem:[%s4443_s5 + $0xe90] sm:$0xff]  ;;  %v2879_v2 = vpack.c.bf16 %v1530_v59, %v1528_v58  ;;  %v1548_v58 = vld [vmem:[%s4443_s5 + $0x748] sm:$0xff]  ;;  %v1550_v59 = vld [vmem:[%s4443_s5 + $0x758] sm:$0xff] }
 0x1de   : > { %2842 = vmatpush1.bf16.msra.mxu1 %v2841_v5  ;;  %v1514_v5 = vld [vmem:[%s4443_s5 + $0x638] sm:$0xff]  ;;  %v3133_v1 = vpack.c.bf16 %v1781_v29, %v1779_v54  ;;  %v1799_v54 = vld [vmem:[%s4443_s5 + $0xf20] sm:$0xff]  ;;  %v1801_v29 = vld [vmem:[%s4443_s5 + $0xf30] sm:$0xff] }
 0x1df   : > { %3098 = vmatpush1.bf16.msra.mxu0 %v3097_v6  ;;  %2844 = vmatprep.subr.bf16.mxu1 %v2843_v7  ;;  %v1768_v6 = vld [vmem:[%s4443_s5 + $0xe28] sm:$0xff]  ;;  %v1770_v7 = vld [vmem:[%s4443_s5 + $0xe38] sm:$0xff] }
 0x1e0   : > { %3100 = vmatprep.subr.bf16.mxu0 %v3099_v10  ;;  %v2863_v10 = vpack.c.bf16 %v1514_v5, %v1512_v4  ;;  %v3119_v15 = vpack.c.bf16 %v1770_v7, %v1768_v6  ;;  %v1785_v5 = vld [vmem:[%s4443_s5 + $0xeb0] sm:$0xff]  ;;  %v1532_v6 = vld [vmem:[%s4443_s5 + $0x6c8] sm:$0xff]  ;;  %v1534_v7 = vld [vmem:[%s4443_s5 + $0x6d8] sm:$0xff] }
 0x1e2   : > { %2846 = vmatpush1.bf16.msra.mxu1 %v2845_v17  ;;  %v1516_v17 = vld [vmem:[%s4443_s5 + $0x648] sm:$0xff] }
 0x1e3   : > { %3102 = vmatpush1.bf16.msra.mxu0 %v3101_v18  ;;  %2848 = vmatprep.subr.bf16.mxu1 %v2847_v19  ;;  %v1518_v18 = vld [vmem:[%s4443_s5 + $0x658] sm:$0xff]  ;;  %v1864_v19 = vcombine.high %v4904_v56, %v4904_v56 }
 0x1e4   : > { %3104 = vmatprep.subr.bf16.mxu0 %v3103_v23  ;;  %v2865_v23 = vpack.c.bf16 %v1513_v13, %v1511_v11  ;;  %v2867_v25 = vpack.c.bf16 %v1518_v18, %v1516_v17  ;;  %v3137_v11 = vpack.c.bf16 %v1785_v5, %v1783_v3  ;;  %v2883_v13 = vpack.c.bf16 %v1534_v7, %v1532_v6  ;;  %v1789_v18 = vld [vmem:[%s4443_s5 + $0xed0] sm:$0xff]  ;;  %v1803_v3 = vld [vmem:[%s4443_s5 + $0xf40] sm:$0xff]  ;;  %v1552_v6 = vld [vmem:[%s4443_s5 + $0x768] sm:$0xff] }
 0x1e5   : > { %v1805_v5 = vld [vmem:[%s4443_s5 + $0xf50] sm:$0xff]  ;;  %v1554_v7 = vld [vmem:[%s4443_s5 + $0x778] sm:$0xff] }
 0x1e6   : > { %2850 = vmatpush1.bf16.msra.mxu1 %v2849_v32  ;;  %v1773_v32 = vld [vmem:[%s4443_s5 + $0xe50] sm:$0xff] }
 0x1e7   : > { %3106 = vmatpush1.bf16.msra.mxu0 %v3105_v33  ;;  %2852 = vmatprep.subr.bf16.mxu1 %v2851_v35  ;;  %v1520_v33 = vld [vmem:[%s4443_s5 + $0x668] sm:$0xff]  ;;  %v1522_v35 = vld [vmem:[%s4443_s5 + $0x678] sm:$0xff]  ;;  %v3125_v38 = vpack.c.bf16 %v1773_v32, %v1771_v28  ;;  %v1791_v28 = vld [vmem:[%s4443_s5 + $0xee0] sm:$0xff] }
 0x1e8   : > { %3108 = vmatprep.subr.bf16.mxu0 %v3107_v39  ;;  %v2871_v39 = vpack.c.bf16 %v1522_v35, %v1520_v33  ;;  %v1793_v32 = vld [vmem:[%s4443_s5 + $0xef0] sm:$0xff]  ;;  %v1540_v33 = vld [vmem:[%s4443_s5 + $0x708] sm:$0xff]  ;;  %v1542_v35 = vld [vmem:[%s4443_s5 + $0x718] sm:$0xff] }
 0x1ea   : > { %2854 = vmatpush1.bf16.msra.mxu1 %v2853_v45  ;;  %v1524_v45 = vld [vmem:[%s4443_s5 + $0x688] sm:$0xff] }
 0x1eb   : > { %3110 = vmatpush1.bf16.msra.mxu0 %v3109_v46  ;;  %2856 = vmatprep.subr.bf16.mxu1 %v2855_v47  ;;  %v1526_v46 = vld [vmem:[%s4443_s5 + $0x698] sm:$0xff]  ;;  %v1780_v47 = vld [vmem:[%s4443_s5 + $0xe88] sm:$0xff] }
 0x1ec   : > { %3112 = vmatprep.subr.bf16.mxu0 %v3111_v52  ;;  %v2875_v52 = vpack.c.bf16 %v1526_v46, %v1524_v45  ;;  %v3131_v57 = vpack.c.bf16 %v1782_v48, %v1780_v47  ;;  %v1544_v45 = vld [vmem:[%s4443_s5 + $0x728] sm:$0xff]  ;;  %v1546_v46 = vld [vmem:[%s4443_s5 + $0x738] sm:$0xff] }
 0x1ed   : > { %v1800_v47 = vld [vmem:[%s4443_s5 + $0xf28] sm:$0xff]  ;;  %v1802_v48 = vld [vmem:[%s4443_s5 + $0xf38] sm:$0xff] }
 0x1ee   : > { %2858 = vmatpush1.bf16.msra.mxu1 %v2857_v61  ;;  %v1784_v61 = vld [vmem:[%s4443_s5 + $0xea8] sm:$0xff] }
 0x1ef   : > { %3114 = vmatpush1.bf16.msra.mxu0 %v3113_v62  ;;  %2860 = vmatprep.subr.bf16.mxu1 %v2859_v0  ;;  %v1786_v62 = vld [vmem:[%s4443_s5 + $0xeb8] sm:$0xff]  ;;  %v2877_v0 = vpack.c.bf16 %v1525_v53, %v1523_v26  ;;  %v1543_v26 = vld [vmem:[%s4443_s5 + $0x720] sm:$0xff]  ;;  %v1545_v53 = vld [vmem:[%s4443_s5 + $0x730] sm:$0xff] }
 0x1f0   : > { %3116 = vmatprep.subr.bf16.mxu0 %v3115_v51  ;;  %v1529_v51 = vld [vmem:[%s4443_s5 + $0x6b0] sm:$0xff]  ;;  %v3135_v4 = vpack.c.bf16 %v1786_v62, %v1784_v61  ;;  %v1804_v61 = vld [vmem:[%s4443_s5 + $0xf48] sm:$0xff]  ;;  %v1806_v62 = vld [vmem:[%s4443_s5 + $0xf58] sm:$0xff] }
 0x1f1   : > { %2122 = vmatmul.mubr.f32.vlgmr.msra.gmra.mrb[0].mxu1 %v4761_v55  ;;  %v1517_v55 = vld [vmem:[%s4443_s5 + $0x650] sm:$0xff] }
 0x1f2   : > { %2862 = vmatpush1.bf16.msra.mxu1 %v2861_v34  ;;  %2406 = vmatmul.mubr.f32.vlgmr.msra.gmra.mrb[0].mxu0 %v4771_v60  ;;  %v1776_v60 = vld [vmem:[%s4443_s5 + $0xe68] sm:$0xff]  ;;  %v2869_v37 = vpack.c.bf16 %v1517_v55, %v1515_v27  ;;  %v1535_v27 = vld [vmem:[%s4443_s5 + $0x6e0] sm:$0xff]  ;;  %v1537_v55 = vld [vmem:[%s4443_s5 + $0x6f0] sm:$0xff] }
 0x1f3   : > { %3118 = vmatpush1.bf16.msra.mxu0 %v3117_v9  ;;  %2864 = vmatprep.subr.bf16.mxu1 %v2863_v10  ;;  %v3127_v43 = vpack.c.bf16 %v1778_v36, %v1776_v60  ;;  %v1788_v34 = vld [vmem:[%s4443_s5 + $0xec8] sm:$0xff]  ;;  %v1790_v9 = vld [vmem:[%s4443_s5 + $0xed8] sm:$0xff]  ;;  %v2881_v10 = vpack.c.bf16 %v1529_v51, %v1527_v31  ;;  %v1547_v31 = vld [vmem:[%s4443_s5 + $0x740] sm:$0xff] }
 0x1f4   : > { %3120 = vmatprep.subr.bf16.mxu0 %v3119_v15  ;;  %2192 = vmatprep.mubr.f32.mxu1 %v1864_v19  ;;  %v1533_v15 = vld [vmem:[%s4443_s5 + $0x6d0] sm:$0xff]  ;;  %v3139_v17 = vpack.c.bf16 %v1790_v9, %v1788_v34  ;;  %v1536_v19 = vld [vmem:[%s4443_s5 + $0x6e8] sm:$0xff]  ;;  %v1798_v36 = vld [vmem:[%s4443_s5 + $0xf18] sm:$0xff] }
 0x1f5   : > { %2476 = vmatprep.mubr.f32.mxu0 %v1898_v22  ;;  %v1794_v22 = vld [vmem:[%s4443_s5 + $0xef8] sm:$0xff]  ;;  %v1796_v60 = vld [vmem:[%s4443_s5 + $0xf08] sm:$0xff]  ;;  %v1549_v51 = vld [vmem:[%s4443_s5 + $0x750] sm:$0xff] }
 0x1f6   : > { %2866 = vmatpush1.bf16.msra.mxu1 %v2865_v23  ;;  %v2885_v23 = vpack.c.bf16 %v1533_v15, %v1531_v14  ;;  %v1808_v34 = vld [vmem:[%s4443_s5 + $0xf68] sm:$0xff]  ;;  %v1810_v9 = vld [vmem:[%s4443_s5 + $0xf78] sm:$0xff]  ;;  %v1551_v14 = vld [vmem:[%s4443_s5 + $0x760] sm:$0xff] }
 0x1f7   : > { %3122 = vmatpush1.bf16.msra.mxu0 %v3121_v24  ;;  %2868 = vmatprep.subr.bf16.mxu1 %v2867_v25  ;;  %v3141_v24 = vpack.c.bf16 %v1789_v18, %v1787_v16  ;;  %v2887_v25 = vpack.c.bf16 %v1538_v20, %v1536_v19  ;;  %v1553_v15 = vld [vmem:[%s4443_s5 + $0x770] sm:$0xff]  ;;  %v1807_v16 = vld [vmem:[%s4443_s5 + $0xf60] sm:$0xff]  ;;  %v1556_v19 = vld [vmem:[%s4443_s5 + $0x788] sm:$0xff] }
 0x1f8   : > { %3124 = vmatprep.subr.bf16.mxu0 %v3123_v30  ;;  %v3143_v30 = vpack.c.bf16 %v1794_v22, %v1792_v21  ;;  %v1809_v18 = vld [vmem:[%s4443_s5 + $0xf70] sm:$0xff]  ;;  %v1558_v20 = vld [vmem:[%s4443_s5 + $0x798] sm:$0xff]  ;;  %v1812_v21 = vld [vmem:[%s4443_s5 + $0xf88] sm:$0xff] }
 0x1f9   : > { %v1814_v22 = vld [vmem:[%s4443_s5 + $0xf98] sm:$0xff] }
 0x1fa   : > { %2870 = vmatpush1.bf16.msra.mxu1 %v2869_v37  ;;  %v2889_v37 = vpack.c.bf16 %v1537_v55, %v1535_v27  ;;  %v1555_v27 = vld [vmem:[%s4443_s5 + $0x780] sm:$0xff]  ;;  %v1557_v55 = vld [vmem:[%s4443_s5 + $0x790] sm:$0xff] }
 0x1fb   : > { %3126 = vmatpush1.bf16.msra.mxu0 %v3125_v38  ;;  %2872 = vmatprep.subr.bf16.mxu1 %v2871_v39  ;;  %v3145_v38 = vpack.c.bf16 %v1793_v32, %v1791_v28  ;;  %v2891_v39 = vpack.c.bf16 %v1542_v35, %v1540_v33  ;;  %v1811_v28 = vld [vmem:[%s4443_s5 + $0xf80] sm:$0xff]  ;;  %v1813_v32 = vld [vmem:[%s4443_s5 + $0xf90] sm:$0xff]  ;;  %v1560_v33 = vld [vmem:[%s4443_s5 + $0x7a8] sm:$0xff] }
 0x1fc   : > { %3128 = vmatprep.subr.bf16.mxu0 %v3127_v43  ;;  %v3147_v43 = vpack.c.bf16 %v1798_v36, %v1796_v60  ;;  %v1562_v35 = vld [vmem:[%s4443_s5 + $0x7b8] sm:$0xff]  ;;  %v1816_v60 = vld [vmem:[%s4443_s5 + $0xfa8] sm:$0xff] }
 0x1fd   : > { %v1818_v36 = vld [vmem:[%s4443_s5 + $0xfb8] sm:$0xff] }
 0x1fe   : > { %2874 = vmatpush1.bf16.msra.mxu1 %v2873_v49  ;;  %v2893_v49 = vpack.c.bf16 %v1541_v41, %v1539_v40  ;;  %v1559_v40 = vld [vmem:[%s4443_s5 + $0x7a0] sm:$0xff]  ;;  %v1561_v41 = vld [vmem:[%s4443_s5 + $0x7b0] sm:$0xff] }
 0x1ff   : > { %3130 = vmatpush1.bf16.msra.mxu0 %v3129_v50  ;;  %2876 = vmatprep.subr.bf16.mxu1 %v2875_v52  ;;  %v3149_v50 = vpack.c.bf16 %v1797_v44, %v1795_v42  ;;  %v2895_v52 = vpack.c.bf16 %v1546_v46, %v1544_v45  ;;  %v1815_v42 = vld [vmem:[%s4443_s5 + $0xfa0] sm:$0xff]  ;;  %v1817_v44 = vld [vmem:[%s4443_s5 + $0xfb0] sm:$0xff]  ;;  %v1564_v45 = vld [vmem:[%s4443_s5 + $0x7c8] sm:$0xff] }
 0x200   : > { %3132 = vmatprep.subr.bf16.mxu0 %v3131_v57  ;;  %v3151_v57 = vpack.c.bf16 %v1802_v48, %v1800_v47  ;;  %v1566_v46 = vld [vmem:[%s4443_s5 + $0x7d8] sm:$0xff]  ;;  %v1820_v47 = vld [vmem:[%s4443_s5 + $0xfc8] sm:$0xff] }
 0x201   : > { %v1822_v48 = vld [vmem:[%s4443_s5 + $0xfd8] sm:$0xff] }
 0x202   : > { %2878 = vmatpush1.bf16.msra.mxu1 %v2877_v0  ;;  %v2897_v0 = vpack.c.bf16 %v1545_v53, %v1543_v26  ;;  %v1563_v26 = vld [vmem:[%s4443_s5 + $0x7c0] sm:$0xff]  ;;  %v1565_v53 = vld [vmem:[%s4443_s5 + $0x7d0] sm:$0xff] }
 0x203   : > { %3134 = vmatpush1.bf16.msra.mxu0 %v3133_v1  ;;  %2880 = vmatprep.subr.bf16.mxu1 %v2879_v2  ;;  %v3153_v1 = vpack.c.bf16 %v1801_v29, %v1799_v54  ;;  %v2899_v2 = vpack.c.bf16 %v1550_v59, %v1548_v58  ;;  %v1819_v54 = vld [vmem:[%s4443_s5 + $0xfc0] sm:$0xff]  ;;  %v1821_v29 = vld [vmem:[%s4443_s5 + $0xfd0] sm:$0xff]  ;;  %v1568_v58 = vld [vmem:[%s4443_s5 + $0x7e8] sm:$0xff] }
 0x204   : > { %3136 = vmatprep.subr.bf16.mxu0 %v3135_v4  ;;  %v3155_v4 = vpack.c.bf16 %v1806_v62, %v1804_v61  ;;  %v1570_v59 = vld [vmem:[%s4443_s5 + $0x7f8] sm:$0xff]  ;;  %v1824_v61 = vld [vmem:[%s4443_s5 + $0xfe8] sm:$0xff] }
 0x205   : > { %v1826_v62 = vld [vmem:[%s4443_s5 + $0xff8] sm:$0xff] }
 0x206   : > { %2882 = vmatpush1.bf16.msra.mxu1 %v2881_v10  ;;  %v2901_v10 = vpack.c.bf16 %v1549_v51, %v1547_v31  ;;  %v1567_v31 = vld [vmem:[%s4443_s5 + $0x7e0] sm:$0xff]  ;;  %v1569_v51 = vld [vmem:[%s4443_s5 + $0x7f0] sm:$0xff] }
 0x207   : > { %3138 = vmatpush1.bf16.msra.mxu0 %v3137_v11  ;;  %2884 = vmatprep.subr.bf16.mxu1 %v2883_v13  ;;  %v3157_v11 = vpack.c.bf16 %v1805_v5, %v1803_v3  ;;  %v2903_v13 = vpack.c.bf16 %v1554_v7, %v1552_v6  ;;  %v3175_v3 = vpack.c.bf16 %v1826_v62, %v1824_v61  ;;  %v1825_v5 = vld [vmem:[%s4443_s5 + $0xff0] sm:$0xff] }
 0x208   : > { %3140 = vmatprep.subr.bf16.mxu0 %v3139_v17  ;;  %v3159_v17 = vpack.c.bf16 %v1810_v9, %v1808_v34  ;;  %v2921_v6 = vpack.c.bf16 %v1569_v51, %v1567_v31 }
 0x20a   : > { %2886 = vmatpush1.bf16.msra.mxu1 %v2885_v23  ;;  %v2905_v23 = vpack.c.bf16 %v1553_v15, %v1551_v14 }
 0x20b   : > { %3142 = vmatpush1.bf16.msra.mxu0 %v3141_v24  ;;  %2888 = vmatprep.subr.bf16.mxu1 %v2887_v25  ;;  %v3161_v24 = vpack.c.bf16 %v1809_v18, %v1807_v16  ;;  %v2907_v25 = vpack.c.bf16 %v1558_v20, %v1556_v19  ;;  %v1310_v16 = vld [vmem:[#allocation2] sm:$0xf]  ;;  %v2509_v19 = vsub.s32 (!%p2663_p13), 1, %v4530_v63 }
 0x20c   : > { %3144 = vmatprep.subr.bf16.mxu0 %v3143_v30  ;;  %v3163_v30 = vpack.c.bf16 %v1814_v22, %v1812_v21 }
 0x20e   : > { %2890 = vmatpush1.bf16.msra.mxu1 %v2889_v37  ;;  %v2909_v37 = vpack.c.bf16 %v1557_v55, %v1555_v27 }
 0x20f   : > { %3146 = vmatpush1.bf16.msra.mxu0 %v3145_v38  ;;  %2892 = vmatprep.subr.bf16.mxu1 %v2891_v39  ;;  %v3165_v38 = vpack.c.bf16 %v1813_v32, %v1811_v28  ;;  %v2911_v39 = vpack.c.bf16 %v1562_v35, %v1560_v33 }
 0x210   : > { %3148 = vmatprep.subr.bf16.mxu0 %v3147_v43  ;;  %v3167_v43 = vpack.c.bf16 %v1818_v36, %v1816_v60 }
 0x212   : > { %2894 = vmatpush1.bf16.msra.mxu1 %v2893_v49  ;;  %v2913_v49 = vpack.c.bf16 %v1561_v41, %v1559_v40 }
 0x213   : > { %3150 = vmatpush1.bf16.msra.mxu0 %v3149_v50  ;;  %2896 = vmatprep.subr.bf16.mxu1 %v2895_v52  ;;  %v3169_v50 = vpack.c.bf16 %v1817_v44, %v1815_v42  ;;  %v2915_v52 = vpack.c.bf16 %v1566_v46, %v1564_v45 }
 0x214   : > { %3152 = vmatprep.subr.bf16.mxu0 %v3151_v57  ;;  %v3171_v57 = vpack.c.bf16 %v1822_v48, %v1820_v47 }
 0x216   : > { %2898 = vmatpush1.bf16.msra.mxu1 %v2897_v0  ;;  %v2917_v0 = vpack.c.bf16 %v1565_v53, %v1563_v26 }
 0x217   : > { %3154 = vmatpush1.bf16.msra.mxu0 %v3153_v1  ;;  %2900 = vmatprep.subr.bf16.mxu1 %v2899_v2  ;;  %v3173_v1 = vpack.c.bf16 %v1821_v29, %v1819_v54  ;;  %v2919_v2 = vpack.c.bf16 %v1570_v59, %v1568_v58 }
 0x218   : > { %3156 = vmatprep.subr.bf16.mxu0 %v3155_v4  ;;  %v1823_v4 = vld [vmem:[%s4443_s5 + $0xfe0] sm:$0xff] }
 0x219   : > { %v3177_v7 = vpack.c.bf16 %v1825_v5, %v1823_v4 }
 0x21a   : > { %2902 = vmatpush1.bf16.msra.mxu1 %v2901_v10 }
 0x21b   : > { %3158 = vmatpush1.bf16.msra.mxu0 %v3157_v11  ;;  %2904 = vmatprep.subr.bf16.mxu1 %v2903_v13 }
 0x21c   : > { %3160 = vmatprep.subr.bf16.mxu0 %v3159_v17 }
 0x21e   : > { %2906 = vmatpush1.bf16.msra.mxu1 %v2905_v23 }
 0x21f   : > { %3162 = vmatpush1.bf16.msra.mxu0 %v3161_v24  ;;  %2908 = vmatprep.subr.bf16.mxu1 %v2907_v25 }
 0x220   : > { %3164 = vmatprep.subr.bf16.mxu0 %v3163_v30 }
 0x222   : > { %2910 = vmatpush1.bf16.msra.mxu1 %v2909_v37 }
 0x223   : > { %3166 = vmatpush1.bf16.msra.mxu0 %v3165_v38  ;;  %2912 = vmatprep.subr.bf16.mxu1 %v2911_v39 }
 0x224   : > { %3168 = vmatprep.subr.bf16.mxu0 %v3167_v43 }
 0x226   : > { %2914 = vmatpush1.bf16.msra.mxu1 %v2913_v49 }
 0x227   : > { %3170 = vmatpush1.bf16.msra.mxu0 %v3169_v50  ;;  %2916 = vmatprep.subr.bf16.mxu1 %v2915_v52 }
 0x228   : > { %3172 = vmatprep.subr.bf16.mxu0 %v3171_v57 }
 0x22a   : > { %2918 = vmatpush1.bf16.msra.mxu1 %v2917_v0 }
 0x22b   : > { %3174 = vmatpush1.bf16.msra.mxu0 %v3173_v1  ;;  %2920 = vmatprep.subr.bf16.mxu1 %v2919_v2 }
 0x22c   : > { %3176 = vmatprep.subr.bf16.mxu0 %v3175_v3 }
 0x22e   : > { %2922 = vmatpush1.bf16.msra.mxu1 %v2921_v6 }
 0x22f   : > { %3178 = vmatpush1.bf16.msra.mxu0 %v3177_v7 }
 0x231   : > { %2193 = vmatmul.mubr.f32.vlgmr.msra.gmra.mrb[0].mxu1 %v4904_v56  ;;  %v2501_v56 = vld [vmem:[%s1293_s12] sm:$0x3] (!%p2663_p13) }
 0x232   : > { %2477 = vmatmul.mubr.f32.vlgmr.msra.gmra.mrb[0].mxu0 %v4909_v8  ;;  %v2505_v8 = vsub.s32 (!%p2663_p13), 0, %v4530_v63  ;;  %v2510_v21 = vrot.slane (!%p2663_p13), %v2501_v56, %v2509_v19 }
 0x234   : > { %v2506_v20 = vrot.slane (!%p2663_p13), %v2501_v56, %v2505_v8 }
 0x236   : > { %v2511_v22 = vcombine.low (!%p2663_p13), %v2506_v20, %v2510_v21 }
 0x238   : > { %v2518_v24 = vrot.slane (!%p2663_p13), %v2511_v22, %v4541_v12 }
 0x304   : > { %v2194_v34 = vpop.f32.mrb[0].mxu1 }
 0x305   : > { %v2478_v9 = vpop.f32.mrb[0].mxu0  ;;  %v2196_v10 = vpop.f32.mrb[1].mxu1 }
 0x306   : > { %v3179_v11 = vadd.f32 %v2478_v9, %v2194_v34  ;;  %v2480_v13 = vpop.f32.mrb[1].mxu0 }
 0x307   : > { %v3180_v14 = vadd.f32 %v2480_v13, %v2196_v10 }
 0x309   : > { %v2485_v15 = vcombine.low %v3179_v11, %v3180_v14  ;;  %2499 = sbr.rel (%p2663_p13) target bundleno = 796 (0x31c), region = 63 }
 0x30b   : > { %v2492_v17 = vrot.slane %v2485_v15, %v4541_v12 }
 0x30d   : > { %v2494_v18 = vadd.f32 %v2492_v17, %v1310_v16 }
 0x30f   : > { %2495 = vst [vmem:[#allocation2] sm:$0xf] %v2494_v18 }
 0x316   : > { %v2500_v23 = vld [vmem:[#allocation2] sm:$0xf] }
 0x317   : > { %v2520_v25 = vadd.f32 %v2518_v24, %v2500_v23 }
 0x319   : > { %v2521_v27 = vmax.f32 %v2520_v25, 0.0 }
 0x31b   : > { %2522 = vst [vmem:[%s4441_s15] sm:$0xf] %v2521_v27 }
 0x31c PF: > { %s13_s18 = sadd.s32 1, %s3309_s18   ;;  %s5071_s12 = smov %s3289_s13 }
 0x31d   : > { %p10_p0 = scmp.ge.s32.totalorder %s13_s18, 6   ;;  %s5072_s13 = smov %s3384_s25 }
 0x31e   : > { %s5073_s14 = smov %s3301_s16  ;;  %s5074_s15 = smov %s3305_s17 }
 0x31f   : > { %s5075_s16 = smov %s5078_s19  ;;  %s5076_s17 = smov %s5082_s20 }
 0x320   :  { %12 = sbr.rel (!%p10_p0) target bundleno = 4 (0x4), region = 104 }

</bundles_post_ra>
